<compile_context>
chip_gen: v7x
topology: tpu7x:2x2x1
jax: 0.10.0
libtpu: 0.0.40
codegen_flags: <defaults>
</compile_context>

<pallas_src>
import jax
import jax.numpy as jnp
from jax.experimental import pallas as pl
from jax.experimental.pallas import tpu as pltpu

IGNORE_ID = -1
NEG = jnp.float32(-1e30)


def _round_up(x, m):
    return (x + m - 1) // m * m


def _pad_to(x, shape, value=0):
    pads = [(0, s - d) for d, s in zip(x.shape, shape)]
    if all(p == (0, 0) for p in pads):
        return x
    return jnp.pad(x, pads, constant_values=value)


def _eup_dtype():
    """bf16 exp/tanh on generations with a bf16 EUP (v6e/v7x); f32 otherwise (v5e-)."""
    try:
        kind = jax.devices()[0].device_kind.lower()
    except Exception:
        return jnp.float32
    if any(tag in kind for tag in ("v6", "v7", "7x")):
        return jnp.bfloat16
    return jnp.float32


# -----------------------------------------------------------------------------
# Pallas kernel: fused RNN-T joint network + log-softmax -> blank/label log-probs
# (both directions via the leading grid axis, u-chunked, vocab-streamed)
# -----------------------------------------------------------------------------
def joint_log_probs(u_lens, enc2, dec2, lab2, we2, be2, wd2, bd2, wo2, bo2,
                    *, uc_size, vc_size):
    """Returns (blank_lp, label_lp): each (2, B, Up, Tp) float32 (T minor)."""
    nd, B, Tp, De = enc2.shape
    Up, Dd = dec2.shape[2], dec2.shape[3]
    H = we2.shape[2]
    Vp = wo2.shape[2]
    UC = uc_size
    VC = vc_size
    n_uc = Up // UC
    n_vc = Vp // VC
    eup = _eup_dtype()

    def kernel(ulen_ref, enc_ref, dec_ref, lab_ref,
               we_ref, be_ref, wd_ref, bd_ref, wo_ref, bo_ref,
               blank_ref, label_ref, ep_ref):
        b = pl.program_id(1)
        uc = pl.program_id(2)

        # Encoder projection depends only on (dir, b): compute it once per (dir, b)
        # into VMEM scratch and reuse it across every u-chunk.
        @pl.when(uc == 0)
        def _():
            ep_ref[...] = (jnp.dot(enc_ref[0, 0], we_ref[0],
                                   preferred_element_type=jnp.float32)
                           + be_ref[0])                                  # (Tp, H) f32

        # Skip u-chunks entirely beyond this utterance's label length: rows with
        # u > u_len are never read by the DP (only cells u' <= u_len matter).
        needed = uc * UC < ulen_ref[b] + 1

        @pl.when(needed)
        def _():
            d = dec_ref[0, 0]                                            # (UC, Dd) bf16
            lid = lab_ref[0, 0]                                          # (UC, 1)  int32
            dp = (jnp.dot(d, wd_ref[0], preferred_element_type=jnp.float32)
                  + bd_ref[0])                                           # (UC, H)  f32

            z = dp[:, None, :] + ep_ref[...][None, :, :]                 # (UC, Tp, H) f32
            z = jnp.tanh(z.astype(eup)).astype(jnp.bfloat16)
            z2 = z.reshape(UC * Tp, H)                   # clean sublane merge (Tp % 16 == 0)

            v_iota = jax.lax.broadcasted_iota(jnp.int32, (1, 1, VC), 2)
            lid_b = lid[:, None, :]                                      # (UC, 1, 1)

            # --- vocab chunk 0 (peeled): blank comes from the static lane-0 column ---
            logits = (jnp.dot(z2, wo_ref[0, :, :VC],
                              preferred_element_type=jnp.float32)
                      + bo_ref[0, :, :VC])                               # (UC*Tp, VC) f32
            l3 = logits.reshape(UC, Tp, VC)
            m = jnp.max(l3, axis=-1, keepdims=True)                      # (UC, Tp, 1)
            s = jnp.sum(jnp.exp((l3 - m).astype(eup)).astype(jnp.float32),
                        axis=-1, keepdims=True)
            blank_logit = l3[:, :, 0:1]                                  # blank id == 0
            lab_acc = jnp.sum(jnp.where(v_iota == lid_b, l3, 0.0),
                              axis=-1, keepdims=True)

            # --- remaining vocab chunks: online logsumexp + masked label pick ---
            if n_vc > 1:
                def vc_body(c, carry):
                    m_c, s_c, lab_c = carry
                    off = pl.multiple_of(c * VC, VC)
                    lc = (jnp.dot(z2, wo_ref[0, :, pl.ds(off, VC)],
                                  preferred_element_type=jnp.float32)
                          + bo_ref[0, :, pl.ds(off, VC)])
                    lc3 = lc.reshape(UC, Tp, VC)
                    m_new = jnp.maximum(m_c, jnp.max(lc3, axis=-1, keepdims=True))
                    s_new = (s_c * jnp.exp((m_c - m_new).astype(eup)).astype(jnp.float32)
                             + jnp.sum(jnp.exp((lc3 - m_new).astype(eup))
                                       .astype(jnp.float32), axis=-1, keepdims=True))
                    lab_new = lab_c + jnp.sum(
                        jnp.where(v_iota + off == lid_b, lc3, 0.0),
                        axis=-1, keepdims=True)
                    return m_new, s_new, lab_new

                m, s, lab_acc = jax.lax.fori_loop(1, n_vc, vc_body, (m, s, lab_acc))

            lse = m + jnp.log(s)                                         # (UC, Tp, 1)
            # Lane-dense (UC, Tp) stores; padded label rows (lid == -1) give
            # label_lp = -lse, never read by the DP.
            blank_ref[0, 0] = (blank_logit - lse)[:, :, 0]
            label_ref[0, 0] = (lab_acc - lse)[:, :, 0]

        @pl.when(jnp.logical_not(needed))
        def _():
            blank_ref[0, 0] = jnp.zeros((UC, Tp), jnp.float32)
            label_ref[0, 0] = jnp.zeros((UC, Tp), jnp.float32)

    grid_spec = pltpu.PrefetchScalarGridSpec(
        num_scalar_prefetch=1,
        grid=(nd, B, n_uc),     # dir slowest -> weight blocks fetched once per direction
        in_specs=[
            pl.BlockSpec((1, 1, Tp, De), lambda dd, b, uc, ul: (dd, b, 0, 0)),
            pl.BlockSpec((1, 1, UC, Dd), lambda dd, b, uc, ul: (dd, b, uc, 0)),
            pl.BlockSpec((1, 1, UC, 1), lambda dd, b, uc, ul: (dd, b, uc, 0)),
            pl.BlockSpec((1, De, H), lambda dd, b, uc, ul: (dd, 0, 0)),
            pl.BlockSpec((1, 1, H), lambda dd, b, uc, ul: (dd, 0, 0)),
            pl.BlockSpec((1, Dd, H), lambda dd, b, uc, ul: (dd, 0, 0)),
            pl.BlockSpec((1, 1, H), lambda dd, b, uc, ul: (dd, 0, 0)),
            pl.BlockSpec((1, H, Vp), lambda dd, b, uc, ul: (dd, 0, 0)),
            pl.BlockSpec((1, 1, Vp), lambda dd, b, uc, ul: (dd, 0, 0)),
        ],
        out_specs=[
            pl.BlockSpec((1, 1, UC, Tp), lambda dd, b, uc, ul: (dd, b, uc, 0)),
            pl.BlockSpec((1, 1, UC, Tp), lambda dd, b, uc, ul: (dd, b, uc, 0)),
        ],
        scratch_shapes=[pltpu.VMEM((Tp, H), jnp.float32)],
    )

    return pl.pallas_call(
        kernel,
        out_shape=(jax.ShapeDtypeStruct((nd, B, Up, Tp), jnp.float32),
                   jax.ShapeDtypeStruct((nd, B, Up, Tp), jnp.float32)),
        grid_spec=grid_spec,
        compiler_params=pltpu.CompilerParams(
            dimension_semantics=("parallel", "parallel", "arbitrary"),
            vmem_limit_bytes=48 * 1024 * 1024),
    )(u_lens, enc2, dec2, lab2, we2, be2, wd2, bd2, wo2, bo2)


# -----------------------------------------------------------------------------
# Plain-JAX glue: sequence reversal, stateless decoder, RNN-T lattice DP.
# -----------------------------------------------------------------------------
def reverse_pad_list_jax(x, lens, pad_value):
    """Reverse each sequence x[b, :lens[b]] along time, pad tail with pad_value."""
    T = x.shape[1]
    pos = jnp.arange(T)
    idx = lens[:, None] - 1 - pos[None, :]
    valid = idx >= 0
    idxc = jnp.clip(idx, 0, T - 1)
    if x.ndim == 3:
        g = jnp.take_along_axis(x, idxc[:, :, None], axis=1)
        return jnp.where(valid[:, :, None], g, jnp.asarray(pad_value, x.dtype))
    g = jnp.take_along_axis(x, idxc, axis=1)
    return jnp.where(valid, g, jnp.asarray(pad_value, x.dtype))


def rnnt_neg_log_likelihood(blank_lp, label_lp, t_lens, u_lens):
    """Log-space RNN-T forward (alpha) DP.  blank_lp/label_lp are (B', U1, T):
    time on the last axis, matching the kernel's lane-dense store layout."""
    # TODO(synk): warp-transducer / torchaudio external loss replaced by this native
    #             log-space DP (mathematically equivalent forward likelihood).
    B2, U1, T = blank_lp.shape

    # t = 0 row: only label transitions.
    first = jnp.concatenate(
        [jnp.zeros((B2, 1), jnp.float32),
         jnp.cumsum(label_lp[:, :U1 - 1, 0], axis=-1)], axis=-1)         # (B2, U1)

    def combine(c1, c2):
        a1, b1 = c1
        a2, b2 = c2
        return a1 + a2, jnp.logaddexp(b1 + a2, b2)

    def t_step(alpha_prev, t):
        a_blank = alpha_prev + blank_lp[:, :, t - 1]                     # (B2, U1)
        lab_shift = jnp.concatenate(
            [jnp.full((B2, 1), NEG), label_lp[:, :U1 - 1, t]], axis=-1)  # (B2, U1)
        # First-order log-semiring linear recurrence over u, parallelized:
        #   alpha_t[u] = logaddexp(a_blank[u], alpha_t[u-1] + lab_shift[u])
        a_cum, b_cum = jax.lax.associative_scan(
            combine, (lab_shift, a_blank), axis=-1)
        alpha_t = jnp.logaddexp(b_cum, NEG + a_cum)
        return alpha_t, alpha_t

    _, rest = jax.lax.scan(t_step, first, jnp.arange(1, T))              # (T-1, B2, U1)
    alpha = jnp.concatenate([first[None], rest], axis=0)                 # (T, B2, U1)

    bi = jnp.arange(B2)
    t_last = t_lens - 1
    loglike = alpha[t_last, bi, u_lens] + blank_lp[bi, u_lens, t_last]
    return -loglike


def bitransducer_forward(params, encoder_out, encoder_out_lens, labels, labels_lengths):
    B, T, D_enc = encoder_out.shape
    U = labels.shape[1]
    U1 = U + 1
    D_dec = params["l"]["embed"].shape[1]
    H = params["l"]["we"].shape[1]
    V = params["l"]["wo"].shape[1]

    # ---- tile sizing / padded (lane-aligned) kernel shapes ----------------------
    UC = 8                                 # decoder-position rows per grid step (Mc = UC*Tp)
    Tp = _round_up(T, 128)                 # output lane dim -> unmasked lane-dense stores
    De = _round_up(D_enc, 128)
    Dd = _round_up(D_dec, 128)
    Hp = _round_up(H, 128)
    VC = min(_round_up(V, 128), 1024)      # resident wo, streamed in VC-wide lane chunks
    Vp = _round_up(V, VC)
    Up = _round_up(U1, UC)

    # ---- direction-specific inputs (fwd + reversed), as in the reference --------
    enc_r = reverse_pad_list_jax(encoder_out, encoder_out_lens, 0.0)
    labels_r = reverse_pad_list_jax(labels, labels_lengths, IGNORE_ID)

    def dec_inputs(lbl, p):
        # Stateless decoder: prepend blank (id 0), embed.
        lbl_safe = jnp.maximum(lbl, 0)
        dec_in = jnp.concatenate([jnp.zeros((B, 1), lbl.dtype), lbl_safe], axis=1)
        return p["embed"][dec_in]                                        # (B, U1, D_dec)

    def lab_ids(lbl):
        # Label emitted when advancing u -> u+1 (IGNORE_ID at pads / last row).
        return jnp.concatenate([lbl, jnp.full((B, 1), IGNORE_ID, lbl.dtype)], axis=1)

    enc2 = _pad_to(jnp.stack([encoder_out, enc_r]),
                   (2, B, Tp, De)).astype(jnp.bfloat16)
    dec2 = _pad_to(jnp.stack([dec_inputs(labels, params["l"]),
                              dec_inputs(labels_r, params["r"])]),
                   (2, B, Up, Dd)).astype(jnp.bfloat16)
    lab2 = _pad_to(jnp.stack([lab_ids(labels), lab_ids(labels_r)])[..., None],
                   (2, B, Up, 1), value=IGNORE_ID).astype(jnp.int32)

    def stack_w(name, shape, dtype, value=0):
        return _pad_to(jnp.stack([params["l"][name], params["r"][name]]),
                       shape, value=value).astype(dtype)

    we2 = stack_w("we", (2, De, Hp), jnp.bfloat16)
    be2 = stack_w("be", (2, 1, Hp), jnp.float32)
    wd2 = stack_w("wd", (2, Dd, Hp), jnp.bfloat16)
    bd2 = stack_w("bd", (2, 1, Hp), jnp.float32)
    wo2 = stack_w("wo", (2, Hp, Vp), jnp.bfloat16)
    # Padded vocab columns get a huge negative bias so exp underflows to 0 and they
    # drop out of the log-softmax denominator.
    bo2 = stack_w("bo", (2, 1, Vp), jnp.float32, value=-1e30)

    blank_lp, label_lp = joint_log_probs(
        labels_lengths.astype(jnp.int32), enc2, dec2, lab2,
        we2, be2, wd2, bd2, wo2, bo2, uc_size=UC, vc_size=VC)

    # Crop padding; keep the kernel's lane-dense (U1, T) layout for the DP
    # (no (0,1,3,2) transposes / extra HBM round trips).
    blank_ut = blank_lp[:, :, :U1, :T].reshape(2 * B, U1, T)
    label_ut = label_lp[:, :, :U1, :T].reshape(2 * B, U1, T)

    t_lens2 = jnp.concatenate([encoder_out_lens, encoder_out_lens])
    u_lens2 = jnp.concatenate([labels_lengths, labels_lengths])
    nll = rnnt_neg_log_likelihood(blank_ut, label_ut, t_lens2, u_lens2)

    loss_l = jnp.mean(nll[:B])
    loss_r = jnp.mean(nll[B:])
    return 0.7 * loss_l + 0.3 * loss_r


# -----------------------------------------------------------------------------
# Deterministic parameter init (stateless decoder + ESPnet-style joint network).
# -----------------------------------------------------------------------------
def init_params(key, d_enc, d_dec, h, vocab):
    ks = jax.random.split(key, 4)

    def dense(k, fan_in, shape):
        return jax.random.normal(k, shape, jnp.float32) / jnp.sqrt(float(fan_in))

    return {
        "embed": dense(ks[0], d_dec, (vocab, d_dec)),   # decoder embedding
        "we": dense(ks[1], d_enc, (d_enc, h)),          # joint lin_enc
        "be": jnp.zeros((1, h), jnp.float32),
        "wd": dense(ks[2], d_dec, (d_dec, h)),          # joint lin_dec
        "bd": jnp.zeros((1, h), jnp.float32),
        "wo": dense(ks[3], h, (h, vocab)),              # joint lin_out
        "bo": jnp.zeros((1, vocab), jnp.float32),
    }


if __name__ == "__main__":
    B, T, D_ENC, D_DEC, H, V, U = 2, 16, 32, 16, 32, 16, 8

    key = jax.random.PRNGKey(0)
    k_enc, k_lab, k_pl, k_pr = jax.random.split(key, 4)

    encoder_out = jax.random.normal(k_enc, (B, T, D_ENC), jnp.float32)
    encoder_out_lens = jnp.array([16, 11], jnp.int32)
    labels_lengths = jnp.array([8, 5], jnp.int32)
    labels = jax.random.randint(k_lab, (B, U), 1, V, dtype=jnp.int32)
    labels = jnp.where(jnp.arange(U)[None, :] < labels_lengths[:, None],
                       labels, jnp.int32(IGNORE_ID))

    params = {
        "l": init_params(k_pl, D_ENC, D_DEC, H, V),
        "r": init_params(k_pr, D_ENC, D_DEC, H, V),
    }

    loss = jax.jit(bitransducer_forward)(
        params, encoder_out, encoder_out_lens, labels, labels_lengths)
    loss = jax.block_until_ready(loss)
    assert loss.shape == () and bool(jnp.isfinite(loss))
    print("KERNEL_OK")
</pallas_src>

<mosaic_0001>
module attributes {stable_mosaic.version = 11 : i64} {
  func.func @kernel(%arg0: i32, %arg1: i32, %arg2: i32, %arg3: memref<2xi32, #tpu.memory_space<smem>>, %arg4: memref<1x1x128x128xbf16, #tpu.memory_space<vmem>>, %arg5: memref<1x1x8x128xbf16, #tpu.memory_space<vmem>>, %arg6: memref<1x1x8x1xi32, #tpu.memory_space<vmem>>, %arg7: memref<1x128x128xbf16, #tpu.memory_space<vmem>>, %arg8: memref<1x1x128xf32, #tpu.memory_space<vmem>>, %arg9: memref<1x128x128xbf16, #tpu.memory_space<vmem>>, %arg10: memref<1x1x128xf32, #tpu.memory_space<vmem>>, %arg11: memref<1x128x128xbf16, #tpu.memory_space<vmem>>, %arg12: memref<1x1x128xf32, #tpu.memory_space<vmem>>, %arg13: memref<1x1x8x128xf32, #tpu.memory_space<vmem>>, %arg14: memref<1x1x8x128xf32, #tpu.memory_space<vmem>>, %arg15: memref<128x128xf32, #tpu.memory_space<vmem>>) attributes {dimension_semantics = [#tpu.dimension_semantics<parallel>, #tpu.dimension_semantics<parallel>, #tpu.dimension_semantics<arbitrary>], iteration_bounds = array<i64: 2, 2, 2>, scalar_prefetch = 1 : i64, scratch_operands = 1 : i64, tpu.core_type = #tpu.core_type<tc>, window_params = [{transform_indices = @transform_0, window_bounds = array<i64: 1, 1, 128, 128>}, {transform_indices = @transform_1, window_bounds = array<i64: 1, 1, 8, 128>}, {transform_indices = @transform_2, window_bounds = array<i64: 1, 1, 8, 1>}, {transform_indices = @transform_3, window_bounds = array<i64: 1, 128, 128>}, {transform_indices = @transform_4, window_bounds = array<i64: 1, 1, 128>}, {transform_indices = @transform_5, window_bounds = array<i64: 1, 128, 128>}, {transform_indices = @transform_6, window_bounds = array<i64: 1, 1, 128>}, {transform_indices = @transform_7, window_bounds = array<i64: 1, 128, 128>}, {transform_indices = @transform_8, window_bounds = array<i64: 1, 1, 128>}, {transform_indices = @transform_9, window_bounds = array<i64: 1, 1, 8, 128>}, {transform_indices = @transform_10, window_bounds = array<i64: 1, 1, 8, 128>}]} {
    %c0_i32 = arith.constant 0 : i32
    %0 = arith.cmpi eq, %arg2, %c0_i32 : i32
    %1 = arith.extui %0 : i1 to i32
    %c0_i32_0 = arith.constant 0 : i32
    %2 = arith.cmpi ne, %1, %c0_i32_0 : i32
    scf.if %2 {
      %c0 = arith.constant 0 : index
      %c0_3 = arith.constant 0 : index
      %c0_4 = arith.constant 0 : index
      %c0_5 = arith.constant 0 : index
      %13 = vector.load %arg4[%c0, %c0_3, %c0_4, %c0_5] : memref<1x1x128x128xbf16, #tpu.memory_space<vmem>>, vector<1x1x128x128xbf16>
      %14 = vector.shape_cast %13 : vector<1x1x128x128xbf16> to vector<128x128xbf16>
      %c0_6 = arith.constant 0 : index
      %c0_7 = arith.constant 0 : index
      %c0_8 = arith.constant 0 : index
      %15 = vector.load %arg7[%c0_6, %c0_7, %c0_8] : memref<1x128x128xbf16, #tpu.memory_space<vmem>>, vector<1x128x128xbf16>
      %16 = vector.shape_cast %15 : vector<1x128x128xbf16> to vector<128x128xbf16>
      %cst = arith.constant dense<0.000000e+00> : vector<128x128xf32>
      %17 = tpu.matmul %14, %16, %cst {dimension_numbers = #tpu.dot_dimension_numbers<[1], [0], [0], [1], [0, 0, 1, 1], [], []>} : vector<128x128xbf16>, vector<128x128xbf16>, vector<128x128xf32> -> vector<128x128xf32>
      %c0_9 = arith.constant 0 : index
      %c0_10 = arith.constant 0 : index
      %c0_11 = arith.constant 0 : index
      %18 = vector.load %arg8[%c0_9, %c0_10, %c0_11] : memref<1x1x128xf32, #tpu.memory_space<vmem>>, vector<1x1x128xf32>
      %19 = vector.shape_cast %18 : vector<1x1x128xf32> to vector<1x128xf32>
      %20 = vector.broadcast %19 : vector<1x128xf32> to vector<128x128xf32>
      %21 = arith.addf %17, %20 : vector<128x128xf32>
      %c0_12 = arith.constant 0 : index
      %c0_13 = arith.constant 0 : index
      %22 = vector.load %arg15[%c0_12, %c0_13] : memref<128x128xf32, #tpu.memory_space<vmem>>, vector<128x128xf32>
      tpu.vector_store %arg15[%c0_12, %c0_13], %21 {strides = array<i32>} : memref<128x128xf32, #tpu.memory_space<vmem>>, vector<128x128xf32>,
    } else {
    }
    %c8_i32 = arith.constant 8 : i32
    %3 = arith.muli %arg2, %c8_i32 : i32
    %4 = arith.index_cast %arg1 : i32 to index
    %5 = memref.load %arg3[%4] : memref<2xi32, #tpu.memory_space<smem>>
    %c1_i32 = arith.constant 1 : i32
    %6 = arith.addi %5, %c1_i32 : i32
    %7 = arith.cmpi slt, %3, %6 : i32
    %8 = arith.extui %7 : i1 to i32
    %c0_i32_1 = arith.constant 0 : i32
    %9 = arith.cmpi ne, %8, %c0_i32_1 : i32
    scf.if %9 {
      %c0 = arith.constant 0 : index
      %c0_3 = arith.constant 0 : index
      %c0_4 = arith.constant 0 : index
      %c0_5 = arith.constant 0 : index
      %13 = vector.load %arg5[%c0, %c0_3, %c0_4, %c0_5] : memref<1x1x8x128xbf16, #tpu.memory_space<vmem>>, vector<1x1x8x128xbf16>
      %14 = vector.shape_cast %13 : vector<1x1x8x128xbf16> to vector<8x128xbf16>
      %c0_6 = arith.constant 0 : index
      %c0_7 = arith.constant 0 : index
      %c0_8 = arith.constant 0 : index
      %c0_9 = arith.constant 0 : index
      %15 = vector.load %arg6[%c0_6, %c0_7, %c0_8, %c0_9] : memref<1x1x8x1xi32, #tpu.memory_space<vmem>>, vector<1x1x8x1xi32>
      %16 = vector.shape_cast %15 : vector<1x1x8x1xi32> to vector<8x1xi32>
      %c0_10 = arith.constant 0 : index
      %c0_11 = arith.constant 0 : index
      %c0_12 = arith.constant 0 : index
      %17 = vector.load %arg9[%c0_10, %c0_11, %c0_12] : memref<1x128x128xbf16, #tpu.memory_space<vmem>>, vector<1x128x128xbf16>
      %18 = vector.shape_cast %17 : vector<1x128x128xbf16> to vector<128x128xbf16>
      %cst = arith.constant dense<0.000000e+00> : vector<8x128xf32>
      %19 = tpu.matmul %14, %18, %cst {dimension_numbers = #tpu.dot_dimension_numbers<[1], [0], [0], [1], [0, 0, 1, 1], [], []>} : vector<8x128xbf16>, vector<128x128xbf16>, vector<8x128xf32> -> vector<8x128xf32>
      %c0_13 = arith.constant 0 : index
      %c0_14 = arith.constant 0 : index
      %c0_15 = arith.constant 0 : index
      %20 = vector.load %arg10[%c0_13, %c0_14, %c0_15] : memref<1x1x128xf32, #tpu.memory_space<vmem>>, vector<1x1x128xf32>
      %21 = vector.shape_cast %20 : vector<1x1x128xf32> to vector<1x128xf32>
      %22 = vector.broadcast %21 : vector<1x128xf32> to vector<8x128xf32>
      %23 = arith.addf %19, %22 : vector<8x128xf32>
      %24 = vector.shape_cast %23 : vector<8x128xf32> to vector<8x1x128xf32>
      %c0_16 = arith.constant 0 : index
      %c0_17 = arith.constant 0 : index
      %25 = vector.load %arg15[%c0_16, %c0_17] : memref<128x128xf32, #tpu.memory_space<vmem>>, vector<128x128xf32>
      %26 = vector.shape_cast %25 : vector<128x128xf32> to vector<1x128x128xf32>
      %27 = vector.broadcast %24 : vector<8x1x128xf32> to vector<8x128x128xf32>
      %28 = vector.broadcast %26 : vector<1x128x128xf32> to vector<8x128x128xf32>
      %29 = arith.addf %27, %28 : vector<8x128x128xf32>
      %30 = math.tanh %29 : vector<8x128x128xf32>
      %31 = arith.truncf %30 : vector<8x128x128xf32> to vector<8x128x128xbf16>
      %32 = vector.shape_cast %31 : vector<8x128x128xbf16> to vector<1024x128xbf16>
      %33 = tpu.iota {dimensions = array<i32: 2>} : vector<1x1x128xi32>
      %34 = vector.shape_cast %16 : vector<8x1xi32> to vector<8x1x1xi32>
      %c0_18 = arith.constant 0 : index
      %c0_19 = arith.constant 0 : index
      %c0_20 = arith.constant 0 : index
      %35 = vector.load %arg11[%c0_18, %c0_19, %c0_20] : memref<1x128x128xbf16, #tpu.memory_space<vmem>>, vector<1x128x128xbf16>
      %36 = vector.shape_cast %35 : vector<1x128x128xbf16> to vector<128x128xbf16>
      %cst_21 = arith.constant dense<0.000000e+00> : vector<1024x128xf32>
      %37 = tpu.matmul %32, %36, %cst_21 {dimension_numbers = #tpu.dot_dimension_numbers<[1], [0], [0], [1], [0, 0, 1, 1], [], []>} : vector<1024x128xbf16>, vector<128x128xbf16>, vector<1024x128xf32> -> vector<1024x128xf32>
      %c0_22 = arith.constant 0 : index
      %c0_23 = arith.constant 0 : index
      %c0_24 = arith.constant 0 : index
      %38 = vector.load %arg12[%c0_22, %c0_23, %c0_24] : memref<1x1x128xf32, #tpu.memory_space<vmem>>, vector<1x1x128xf32>
      %39 = vector.shape_cast %38 : vector<1x1x128xf32> to vector<1x128xf32>
      %40 = vector.broadcast %39 : vector<1x128xf32> to vector<1024x128xf32>
      %41 = arith.addf %37, %40 : vector<1024x128xf32>
      %42 = vector.shape_cast %41 : vector<1024x128xf32> to vector<8x128x128xf32>
      %cst_25 = arith.constant dense<0xFF800000> : vector<8x128xf32>
      %43 = vector.multi_reduction <maximumf>, %42, %cst_25 [2] : vector<8x128x128xf32> to vector<8x128xf32>
      %44 = vector.shape_cast %43 : vector<8x128xf32> to vector<8x128x1xf32>
      %45 = vector.broadcast %44 : vector<8x128x1xf32> to vector<8x128x128xf32>
      %46 = arith.subf %42, %45 : vector<8x128x128xf32>
      %47 = math.exp %46 : vector<8x128x128xf32>
      %cst_26 = arith.constant dense<0.000000e+00> : vector<8x128xf32>
      %48 = vector.multi_reduction <add>, %47, %cst_26 [2] : vector<8x128x128xf32> to vector<8x128xf32>
      %49 = vector.shape_cast %48 : vector<8x128xf32> to vector<8x128x1xf32>
      %50 = vector.extract_strided_slice %42 {offsets = [0, 0, 0], sizes = [8, 128, 1], strides = [1, 1, 1]} : vector<8x128x128xf32> to vector<8x128x1xf32>
      %51 = vector.broadcast %33 : vector<1x1x128xi32> to vector<8x1x128xi32>
      %52 = vector.broadcast %34 : vector<8x1x1xi32> to vector<8x1x128xi32>
      %53 = arith.cmpi eq, %51, %52 : vector<8x1x128xi32>
      %cst_27 = arith.constant 0.000000e+00 : f32
      %54 = vector.shape_cast %53 : vector<8x1x128xi1> to vector<8x1x128xi1>
      %55 = vector.broadcast %54 : vector<8x1x128xi1> to vector<8x128x128xi1>
      %56 = vector.broadcast %cst_27 : f32 to vector<8x128x128xf32>
      %57 = arith.select %55, %42, %56 : vector<8x128x128xi1>, vector<8x128x128xf32>
      %cst_28 = arith.constant dense<0.000000e+00> : vector<8x128xf32>
      %58 = vector.multi_reduction <add>, %57, %cst_28 [2] : vector<8x128x128xf32> to vector<8x128xf32>
      %59 = vector.shape_cast %58 : vector<8x128xf32> to vector<8x128x1xf32>
      %60 = math.log %49 : vector<8x128x1xf32>
      %61 = arith.addf %44, %60 : vector<8x128x1xf32>
      %62 = arith.subf %50, %61 : vector<8x128x1xf32>
      %63 = vector.shape_cast %62 : vector<8x128x1xf32> to vector<8x128xf32>
      %c0_29 = arith.constant 0 : index
      %c0_30 = arith.constant 0 : index
      %c0_31 = arith.constant 0 : index
      %c0_32 = arith.constant 0 : index
      %64 = vector.load %arg13[%c0_29, %c0_30, %c0_31, %c0_32] : memref<1x1x8x128xf32, #tpu.memory_space<vmem>>, vector<1x1x8x128xf32>
      %65 = vector.shape_cast %64 : vector<1x1x8x128xf32> to vector<8x128xf32>
      %66 = vector.shape_cast %63 : vector<8x128xf32> to vector<1x1x8x128xf32>
      tpu.vector_store %arg13[%c0_29, %c0_30, %c0_31, %c0_32], %66 {strides = array<i32>} : memref<1x1x8x128xf32, #tpu.memory_space<vmem>>, vector<1x1x8x128xf32>,
      %67 = arith.subf %59, %61 : vector<8x128x1xf32>
      %68 = vector.shape_cast %67 : vector<8x128x1xf32> to vector<8x128xf32>
      %c0_33 = arith.constant 0 : index
      %c0_34 = arith.constant 0 : index
      %c0_35 = arith.constant 0 : index
      %c0_36 = arith.constant 0 : index
      %69 = vector.load %arg14[%c0_33, %c0_34, %c0_35, %c0_36] : memref<1x1x8x128xf32, #tpu.memory_space<vmem>>, vector<1x1x8x128xf32>
      %70 = vector.shape_cast %69 : vector<1x1x8x128xf32> to vector<8x128xf32>
      %71 = vector.shape_cast %68 : vector<8x128xf32> to vector<1x1x8x128xf32>
      tpu.vector_store %arg14[%c0_33, %c0_34, %c0_35, %c0_36], %71 {strides = array<i32>} : memref<1x1x8x128xf32, #tpu.memory_space<vmem>>, vector<1x1x8x128xf32>,
    } else {
    }
    %true = arith.constant true
    %10 = arith.xori %7, %true : i1
    %11 = arith.extui %10 : i1 to i32
    %c0_i32_2 = arith.constant 0 : i32
    %12 = arith.cmpi ne, %11, %c0_i32_2 : i32
    scf.if %12 {
      %cst = arith.constant 0.000000e+00 : f32
      %13 = vector.broadcast %cst : f32 to vector<8x128xf32>
      %c0 = arith.constant 0 : index
      %c0_3 = arith.constant 0 : index
      %c0_4 = arith.constant 0 : index
      %c0_5 = arith.constant 0 : index
      %14 = vector.load %arg13[%c0, %c0_3, %c0_4, %c0_5] : memref<1x1x8x128xf32, #tpu.memory_space<vmem>>, vector<1x1x8x128xf32>
      %15 = vector.shape_cast %14 : vector<1x1x8x128xf32> to vector<8x128xf32>
      %16 = vector.shape_cast %13 : vector<8x128xf32> to vector<1x1x8x128xf32>
      tpu.vector_store %arg13[%c0, %c0_3, %c0_4, %c0_5], %16 {strides = array<i32>} : memref<1x1x8x128xf32, #tpu.memory_space<vmem>>, vector<1x1x8x128xf32>,
      %cst_6 = arith.constant 0.000000e+00 : f32
      %17 = vector.broadcast %cst_6 : f32 to vector<8x128xf32>
      %c0_7 = arith.constant 0 : index
      %c0_8 = arith.constant 0 : index
      %c0_9 = arith.constant 0 : index
      %c0_10 = arith.constant 0 : index
      %18 = vector.load %arg14[%c0_7, %c0_8, %c0_9, %c0_10] : memref<1x1x8x128xf32, #tpu.memory_space<vmem>>, vector<1x1x8x128xf32>
      %19 = vector.shape_cast %18 : vector<1x1x8x128xf32> to vector<8x128xf32>
      %20 = vector.shape_cast %17 : vector<8x128xf32> to vector<1x1x8x128xf32>
      tpu.vector_store %arg14[%c0_7, %c0_8, %c0_9, %c0_10], %20 {strides = array<i32>} : memref<1x1x8x128xf32, #tpu.memory_space<vmem>>, vector<1x1x8x128xf32>,
    } else {
    }
    return
  }
  func.func @transform_0(%arg0: i32, %arg1: i32, %arg2: i32, %arg3: memref<2xi32, #tpu.memory_space<smem>>) -> (i32, i32, i32, i32) {
    %c0_i32 = arith.constant 0 : i32
    %c0_i32_0 = arith.constant 0 : i32
    %c0_i32_1 = arith.constant 0 : i32
    return %arg0, %arg1, %c0_i32, %c0_i32_0 : i32, i32, i32, i32
  }
  func.func @transform_1(%arg0: i32, %arg1: i32, %arg2: i32, %arg3: memref<2xi32, #tpu.memory_space<smem>>) -> (i32, i32, i32, i32) {
    %c0_i32 = arith.constant 0 : i32
    %c0_i32_0 = arith.constant 0 : i32
    return %arg0, %arg1, %arg2, %c0_i32 : i32, i32, i32, i32
  }
  func.func @transform_2(%arg0: i32, %arg1: i32, %arg2: i32, %arg3: memref<2xi32, #tpu.memory_space<smem>>) -> (i32, i32, i32, i32) {
    %c0_i32 = arith.constant 0 : i32
    %c0_i32_0 = arith.constant 0 : i32
    return %arg0, %arg1, %arg2, %c0_i32 : i32, i32, i32, i32
  }
  func.func @transform_3(%arg0: i32, %arg1: i32, %arg2: i32, %arg3: memref<2xi32, #tpu.memory_space<smem>>) -> (i32, i32, i32) {
    %c0_i32 = arith.constant 0 : i32
    %c0_i32_0 = arith.constant 0 : i32
    %c0_i32_1 = arith.constant 0 : i32
    return %arg0, %c0_i32, %c0_i32_0 : i32, i32, i32
  }
  func.func @transform_4(%arg0: i32, %arg1: i32, %arg2: i32, %arg3: memref<2xi32, #tpu.memory_space<smem>>) -> (i32, i32, i32) {
    %c0_i32 = arith.constant 0 : i32
    %c0_i32_0 = arith.constant 0 : i32
    %c0_i32_1 = arith.constant 0 : i32
    return %arg0, %c0_i32, %c0_i32_0 : i32, i32, i32
  }
  func.func @transform_5(%arg0: i32, %arg1: i32, %arg2: i32, %arg3: memref<2xi32, #tpu.memory_space<smem>>) -> (i32, i32, i32) {
    %c0_i32 = arith.constant 0 : i32
    %c0_i32_0 = arith.constant 0 : i32
    %c0_i32_1 = arith.constant 0 : i32
    return %arg0, %c0_i32, %c0_i32_0 : i32, i32, i32
  }
  func.func @transform_6(%arg0: i32, %arg1: i32, %arg2: i32, %arg3: memref<2xi32, #tpu.memory_space<smem>>) -> (i32, i32, i32) {
    %c0_i32 = arith.constant 0 : i32
    %c0_i32_0 = arith.constant 0 : i32
    %c0_i32_1 = arith.constant 0 : i32
    return %arg0, %c0_i32, %c0_i32_0 : i32, i32, i32
  }
  func.func @transform_7(%arg0: i32, %arg1: i32, %arg2: i32, %arg3: memref<2xi32, #tpu.memory_space<smem>>) -> (i32, i32, i32) {
    %c0_i32 = arith.constant 0 : i32
    %c0_i32_0 = arith.constant 0 : i32
    %c0_i32_1 = arith.constant 0 : i32
    return %arg0, %c0_i32, %c0_i32_0 : i32, i32, i32
  }
  func.func @transform_8(%arg0: i32, %arg1: i32, %arg2: i32, %arg3: memref<2xi32, #tpu.memory_space<smem>>) -> (i32, i32, i32) {
    %c0_i32 = arith.constant 0 : i32
    %c0_i32_0 = arith.constant 0 : i32
    %c0_i32_1 = arith.constant 0 : i32
    return %arg0, %c0_i32, %c0_i32_0 : i32, i32, i32
  }
  func.func @transform_9(%arg0: i32, %arg1: i32, %arg2: i32, %arg3: memref<2xi32, #tpu.memory_space<smem>>) -> (i32, i32, i32, i32) {
    %c0_i32 = arith.constant 0 : i32
    %c0_i32_0 = arith.constant 0 : i32
    return %arg0, %arg1, %arg2, %c0_i32 : i32, i32, i32, i32
  }
  func.func @transform_10(%arg0: i32, %arg1: i32, %arg2: i32, %arg3: memref<2xi32, #tpu.memory_space<smem>>) -> (i32, i32, i32, i32) {
    %c0_i32 = arith.constant 0 : i32
    %c0_i32_0 = arith.constant 0 : i32
    return %arg0, %arg1, %arg2, %c0_i32 : i32, i32, i32, i32
  }
}

</mosaic_0001>

<bundles_post_ra>
// kernel: custom-call.12
= control target key start
LH: loop header
LB: loop body
LE: loop exit
PB: predicated region body
PF: predicated region fallthrough
CT: control target
= control target key end

     0   :  { %s6_s0 = inlined_call_operand.vmem [shape: f32[15,4,9], index: 0, kind: output, shape index: {}]  }

// kernel: bitransducer_forward.1
= control target key start
LH: loop header
LB: loop body
LE: loop exit
PB: predicated region body
PF: predicated region fallthrough
CT: control target
= control target key end

     0   :  { %s12630_s0 = inlined_call_operand.vmem [shape: s32[2], index: 0, kind: input, shape index: {}]   ;;  %s12631_s1 = inlined_call_operand.vmem [shape: bf16[2,2,128,128], index: 1, kind: input, shape index: {}]   ;;  %s12632_s2 = inlined_call_operand.vmem [shape: bf16[2,2,16,128], index: 2, kind: input, shape index: {}]   ;;  %s12633_s3 = inlined_call_operand.vmem [shape: s32[2,2,16,1], index: 3, kind: input, shape index: {}]   ;;  %s12634_s4 = inlined_call_operand.vmem [shape: bf16[2,128,128], index: 4, kind: input, shape index: {}]   ;;  %s12635_s5 = inlined_call_operand.vmem [shape: f32[2,1,128], index: 5, kind: input, shape index: {}]   ;;  %s12636_s6 = inlined_call_operand.vmem [shape: bf16[2,128,128], index: 6, kind: input, shape index: {}]   ;;  %s12637_s7 = inlined_call_operand.vmem [shape: f32[2,1,128], index: 7, kind: input, shape index: {}]   ;;  %s12638_s8 = inlined_call_operand.vmem [shape: bf16[2,128,128], index: 8, kind: input, shape index: {}]   ;;  %s12639_s9 = inlined_call_operand.vmem [shape: f32[2,1,128], index: 9, kind: input, shape index: {}]   ;;  %s12640_s10 = inlined_call_operand.vmem [shape: f32[2,2,16,128], index: 10, kind: output, shape index: {0}]   ;;  %s12641_s11 = inlined_call_operand.vmem [shape: f32[2,2,16,128], index: 11, kind: output, shape index: {1}]  }
   0x1   :  { %13210 = sst [smem:[#allocation383_spill]] %s12631_s1  ;;  %s17_s19 = sshll.u32 %s12630_s0, 4  ;;  %s18_s19 = int_to_ptr.vmem [resolvable:$true] %s17_s19 }
   0x2   :  { %13211 = sst [smem:[#allocation384_spill]] %s12634_s4  ;;  %s7618_s20 = scalar_lea.vmem %s18_s19, 16 }
   0x3   :  { %13212 = sst [smem:[#allocation385_spill]] %s12641_s11  ;;  %p7619_p0 = scmp.ne.s32.totalorder %s18_s19, %s7618_s20 }
   0x4   :  { %p7623_p1 = scmp.lt.s32.totalorder %s18_s19, %s18_s19  ;;  %p7624_p2 = scmp.lt.s32.totalorder %s7618_s20, %s7618_s20 }
   0x6   :  { %p7625_p3 = por %p7624_p2, %p7623_p1 }
   0x8   :  { %p7626_p4 = pnand %p7625_p3, %p7619_p0 }
   0xa   :  { %7629 = shalt.err (!%p7626_p4)  }
   0xb   :  { %s7688_s21 = smov [#allocation4]  }
   0xc   :  { %20 = dma.vmem_to_smem %s18_s19, 16, %s7688_s21, [#allocation3] }
   0xd   :  { %7658 = dma.done.wait [#allocation3], 16 }
   0xe   :  { %7659 = vsyncadd [#allocation3], 4294967280 }
   0xf   :  { %22 = sfence }
  0x10   :  { %s7757_s22 = smov 0   ;;  %s7759_s23 = smov 0  }
  0x11   :  { %s7761_s24 = smov 0   ;;  %s7763_s0 = smov 0  }
  0x12   :  { %s7765_s25 = smov 0   ;;  %s7767_s26 = smov 0  }
  0x13   :  { %s7769_s27 = smov 0  }
  0x14 LB: > { %13213 = sst [smem:[#allocation6_spill]] %s7666_s23  ;;  %s40_s28 = sadd.s32 1, %s7674_s0  ;;  %s7686_s27 = sphi %s7769_s27, %s28_s27   ;;  %s7682_s26 = sphi %s7767_s26, %s14702_s26   ;;  %s7678_s25 = sphi %s7765_s25, %s14701_s25   ;;  %s7674_s0 = sphi %s7763_s0, %s14700_s0   ;;  %s7670_s24 = sphi %s7761_s24, %s14699_s24   ;;  %s7666_s23 = sphi %s7759_s23, %s14698_s23   ;;  %s7662_s22 = sphi %s7757_s22, %s14697_s22  }
  0x15   : > { %13214 = sst [smem:[#allocation7_spill]] %s7674_s0  ;;  %p41_p5 = scmp.ge.s32.totalorder %s40_s28, 2 }
  0x16   : > { %13215 = sst [smem:[#allocation8_spill]] %s7678_s25  ;;  %s43_s29 = sadd.s32 1, %s7678_s25 }
  0x17   : > { %13216 = sst [smem:[#allocation9_spill]] %s7682_s26  ;;  %p6361_p6 = scmp.ge.s32.totalorder %s7686_s27, 1 }
  0x18   : > { %13217 = sst [smem:[#allocation10_spill]] %s7686_s27  ;;  %p451_p7 = scmp.lt.s32.totalorder %s7686_s27, 9 }
  0x19   : > { %s14704_s28 = smov (%p41_p5, %s40_s28), 0  ;;  %s14706_s29 = smov (!%p41_p5, %s43_s29), %s7678_s25 }
  0x1a   : > { %13218 = sst [smem:[#allocation11_spill]] %s14704_s28  ;;  %p452_p8 = pnand %p6361_p6, %p451_p7 }
  0x1b   : > { %p45_p9 = scmp.ge.s32.totalorder %s14706_s29, 2  ;;  %s47_s30 = sadd.s32 1, %s7682_s26 }
  0x1c   : > { %455 = sbr.rel (%p452_p8) target bundleno = 2011 (0x7db), region = 56 }
  0x1d   : > { %s14708_s29 = smov (%p45_p9, %s14706_s29), 0  ;;  %s14710_s30 = smov (!%p45_p9, %s47_s30), %s7682_s26 }
  0x1e   : > { %13219 = sst [smem:[#allocation12_spill]] %s14708_s29  ;;  %p49_p10 = scmp.ge.s32.totalorder %s14710_s30, 2 }
  0x20   : > { %s14712_s30 = smov (%p49_p10, %s14710_s30), 0 }
  0x21   : > { %13220 = sst [smem:[#allocation13_spill]] %s14712_s30 }
  0x23   : > { %p560_p11 = scmp.lt.s32.totalorder %s7670_s24, 1  ;;  %p562_p12 = scmp.lt.s32.totalorder %s7666_s23, 1 }
  0x24   : > { %p573_p13 = scmp.lt.s32.totalorder %s7662_s22, 1  ;;  %s13221_s4 = sld [smem:[#allocation384_spill]] }
  0x25   : > { %s14714_s24 = smov (!%p560_p11, %s7670_s24), 1  ;;  %s13223_s1 = sld [smem:[#allocation383_spill]] }
  0x26   : > { %s563_s12 = scalar_select %p562_p12, %s7666_s23, 1 }
  0x27   : > { %s6363_s13 = sshll.u32 %s14714_s24, 5  ;;  %s6366_s14 = sshll.u32 %s14714_s24, 2 }
  0x28   : > { %s6362_s15 = sshll.u32 %s563_s12, 4  ;;  %s6365_s16 = sshll.u32 %s563_s12, 1 }
  0x29   : > { %s566_s17 = sadd.s32 %s6363_s13, %s6362_s15  ;;  %s6424_s18 = sshll.u32 %s14714_s24, 6 }
  0x2a   : > { %s6364_s19 = sshll.u32 %s566_s17, 2  ;;  %s7814_s30 = scalar_lea.vmem %s13221_s4, %s6424_s18 }
  0x2b   : > { %13222 = sst [smem:[#allocation14_spill]] %s7814_s30  ;;  %s7819_s26 = scalar_lea.vmem %s13223_s1, %s6364_s19 }
  0x2c   : > { %s574_s23 = scalar_select %p573_p13, %s7662_s22, 1 }
  0x2d   : > { %s7829_s13 = scalar_lea.vmem %s12636_s6, %s6424_s18  ;;  %s608_s20 = scalar_lea.vmem %s12637_s7, %s14714_s24 }
  0x2e   : > { %s576_s21 = sadd.s32 %s6365_s16, %s574_s23  ;;  %s7838_s28 = scalar_lea.vmem %s12638_s8, %s6424_s18 }
  0x2f   : > { %s578_s29 = sadd.s32 %s6366_s14, %s576_s21  ;;  %s7844_s25 = scalar_lea.vmem %s12639_s9, %s14714_s24 }
  0x30   : > { %s6367_s27 = sshll.u32 %s578_s29, 2  ;;  %s7846_s11 = sshll.u32 %s578_s29, 3 }
  0x31   : > { %s7851_s23 = scalar_lea.vmem %s12632_s2, %s6367_s27  ;;  %s592_s14 = scalar_lea.vmem %s12633_s3, %s7846_s11 }
  0x32   : > { %s7861_s15 = scalar_lea.vmem %s12640_s10, %s7846_s11  ;;  %s13224_s29 = sld [smem:[#allocation385_spill]] }
  0x33   : > { %p6383_p0 = scmp.ne.s32.totalorder %s7662_s22, 0 }
  0x34   : > { %s13225_s1 = sld [smem:[#allocation14_spill]] (!%p6383_p0)  ;;  %v6822_v4 = vld [vmem:[%s7819_s26] sm:$0xff] (!%p6383_p0)   ;;  %v6824_v10 = vld [vmem:[%s7819_s26 + $0x8] sm:$0xff] (!%p6383_p0)   ;;  %v6826_v12 = vld [vmem:[%s7819_s26 + $0x10] sm:$0xff] (!%p6383_p0)   ;;  %s13226_s12 = scalar_lea.vmem (!%p6383_p0), %s12635_s5, %s14714_s24 }
  0x35   : > { %645 = sbr.rel (%p6383_p0) target bundleno = 317 (0x13d), region = 60  ;;  %v6823_v5 = vld [vmem:[%s7819_s26 + $0x20] sm:$0xff] (!%p6383_p0)   ;;  %6540 = vmatprep.mubr.bf16.mxu0 (!%p6383_p0), %v6822_v4  ;;  %v6825_v11 = vld [vmem:[%s7819_s26 + $0x28] sm:$0xff] (!%p6383_p0)   ;;  %v6827_v13 = vld [vmem:[%s7819_s26 + $0x30] sm:$0xff] (!%p6383_p0)  }
  0x36   : > { %6548 = vmatprep.mubr.bf16.mxu1 (!%p6383_p0), %v6823_v5  ;;  %v6828_v14 = vld [vmem:[%s7819_s26 + $0x18] sm:$0xff] (!%p6383_p0)   ;;  %v6384_v16 = vld [vmem:[%s13226_s12] ss:$0 sm:$0xff] (!%p6383_p0) }
  0x37   : > { %v6829_v15 = vld [vmem:[%s7819_s26 + $0x38] sm:$0xff] (!%p6383_p0)  }
  0x38   : > { %s7867_s19 = scalar_lea.vmem %s13224_s29, %s7846_s11 }
  0x3a   : > { %v6814_v0 = vld [vmem:[%s13225_s1] sm:$0xff] (!%p6383_p0)   ;;  %v6815_v1 = vld [vmem:[%s13225_s1 + $0x8] sm:$0xff] (!%p6383_p0)   ;;  %v6816_v2 = vld [vmem:[%s13225_s1 + $0x10] sm:$0xff] (!%p6383_p0)  }
  0x3b   : > { %6524 = vmatprep.subr.bf16.mxu0 (!%p6383_p0), %v6814_v0  ;;  %6720 = vmatprep.subr.bf16.mxu1 (!%p6383_p0), %v6814_v0  ;;  %v6817_v3 = vld [vmem:[%s13225_s1 + $0x18] sm:$0xff] (!%p6383_p0)   ;;  %v6818_v6 = vld [vmem:[%s13225_s1 + $0x20] sm:$0xff] (!%p6383_p0)   ;;  %v6819_v7 = vld [vmem:[%s13225_s1 + $0x28] sm:$0xff] (!%p6383_p0)  }
  0x3c   : > { %6525 = vmatpush3.bf16.msra.mxu0 %v6814_v0  ;;  %6728 = vmatpush3.bf16.msra.mxu1 %v6814_v0  ;;  %v6820_v8 = vld [vmem:[%s13225_s1 + $0x30] sm:$0xff]   ;;  %v6821_v9 = vld [vmem:[%s13225_s1 + $0x38] sm:$0xff]  }
  0x3d   : > { %6526 = vmatprep.subr.bf16.mxu0 %v6815_v1  ;;  %6721 = vmatprep.subr.bf16.mxu1 %v6815_v1 }
  0x40   : > { %6527 = vmatpush3.bf16.msra.mxu0 %v6815_v1  ;;  %6729 = vmatpush3.bf16.msra.mxu1 %v6815_v1 }
  0x41   : > { %6528 = vmatprep.subr.bf16.mxu0 %v6816_v2  ;;  %6722 = vmatprep.subr.bf16.mxu1 %v6816_v2 }
  0x44   : > { %6529 = vmatpush3.bf16.msra.mxu0 %v6816_v2  ;;  %6730 = vmatpush3.bf16.msra.mxu1 %v6816_v2 }
  0x45   : > { %6530 = vmatprep.subr.bf16.mxu0 %v6817_v3  ;;  %6723 = vmatprep.subr.bf16.mxu1 %v6817_v3 }
  0x48   : > { %6531 = vmatpush3.bf16.msra.mxu0 %v6817_v3  ;;  %6731 = vmatpush3.bf16.msra.mxu1 %v6817_v3 }
  0x49   : > { %6532 = vmatprep.subr.bf16.mxu0 %v6818_v6  ;;  %6724 = vmatprep.subr.bf16.mxu1 %v6818_v6 }
  0x4c   : > { %6533 = vmatpush3.bf16.msra.mxu0 %v6818_v6  ;;  %6732 = vmatpush3.bf16.msra.mxu1 %v6818_v6 }
  0x4d   : > { %6534 = vmatprep.subr.bf16.mxu0 %v6819_v7  ;;  %6725 = vmatprep.subr.bf16.mxu1 %v6819_v7 }
  0x50   : > { %6535 = vmatpush3.bf16.msra.mxu0 %v6819_v7  ;;  %6733 = vmatpush3.bf16.msra.mxu1 %v6819_v7 }
  0x51   : > { %6536 = vmatprep.subr.bf16.mxu0 %v6820_v8  ;;  %6726 = vmatprep.subr.bf16.mxu1 %v6820_v8 }
  0x54   : > { %6537 = vmatpush3.bf16.msra.mxu0 %v6820_v8  ;;  %6734 = vmatpush3.bf16.msra.mxu1 %v6820_v8 }
  0x55   : > { %6538 = vmatprep.subr.bf16.mxu0 %v6821_v9  ;;  %6727 = vmatprep.subr.bf16.mxu1 %v6821_v9 }
  0x58   : > { %6539 = vmatpush3.bf16.msra.mxu0 %v6821_v9  ;;  %6735 = vmatpush3.bf16.msra.mxu1 %v6821_v9 }
  0x5b   : > { %6541 = vmatmul.mubr.bf16.vlgmr.msra.gmra.mrb[0].mxu0 %v6824_v10  ;;  %6549 = vmatmul.mubr.bf16.vlgmr.msra.gmra.mrb[0].mxu1 %v6825_v11 }
  0x5c   : > { %6544 = vmatprep.mubr.bf16.mxu0 %v6826_v12  ;;  %6552 = vmatprep.mubr.bf16.mxu1 %v6827_v13 }
  0x63   : > { %6545 = vmatmul.mubr.bf16.gmra.mrb[4].mxu0 %v6828_v14  ;;  %6553 = vmatmul.mubr.bf16.gmra.mrb[4].mxu1 %v6829_v15 }
 0x12e   : > { %v6542_v17 = vpop.f32.mrb[0].mxu0  ;;  %v6550_v18 = vpop.f32.mrb[0].mxu1 }
 0x12f   : > { %v824_v19 = vadd.f32 %v6542_v17, %v6384_v16  ;;  %v856_v20 = vadd.f32 %v6550_v18, %v6384_v16  ;;  %v815_v21 = vpop.f32.mrb[1].mxu0  ;;  %v847_v22 = vpop.f32.mrb[1].mxu1 }
 0x130   : > { %v816_v23 = vadd.f32 %v6384_v16, %v815_v21  ;;  %v848_v24 = vadd.f32 %v6384_v16, %v847_v22  ;;  %v6543_v25 = vpop.f32.mrb[2].mxu0  ;;  %v6551_v26 = vpop.f32.mrb[2].mxu1 }
 0x131   : > { %880 = vst [vmem:[#allocation2 + $0x10] sm:$0xff] %v824_v19  ;;  %888 = vst [vmem:[#allocation2 + $0x50] sm:$0xff] %v856_v20  ;;  %v827_v27 = vadd.f32 %v6543_v25, %v6384_v16  ;;  %v859_v28 = vadd.f32 %v6551_v26, %v6384_v16  ;;  %v818_v29 = vpop.f32.mrb[3].mxu0  ;;  %v850_v30 = vpop.f32.mrb[3].mxu1 }
 0x132   : > { %878 = vst [vmem:[#allocation2] sm:$0xff] %v816_v23  ;;  %886 = vst [vmem:[#allocation2 + $0x40] sm:$0xff] %v848_v24  ;;  %v819_v31 = vadd.f32 %v6384_v16, %v818_v29  ;;  %v851_v32 = vadd.f32 %v6384_v16, %v850_v30 }
 0x133   : > { %881 = vst [vmem:[#allocation2 + $0x18] sm:$0xff] %v827_v27  ;;  %889 = vst [vmem:[#allocation2 + $0x58] sm:$0xff] %v859_v28 }
 0x134   : > { %879 = vst [vmem:[#allocation2 + $0x8] sm:$0xff] %v819_v31  ;;  %887 = vst [vmem:[#allocation2 + $0x48] sm:$0xff] %v851_v32 }
 0x136   : > { %v6546_v33 = vpop.f32.mrb[4].mxu0  ;;  %v6554_v34 = vpop.f32.mrb[4].mxu1 }
 0x137   : > { %v840_v35 = vadd.f32 %v6546_v33, %v6384_v16  ;;  %v872_v36 = vadd.f32 %v6554_v34, %v6384_v16  ;;  %v831_v37 = vpop.f32.mrb[5].mxu0  ;;  %v863_v38 = vpop.f32.mrb[5].mxu1 }
 0x138   : > { %v832_v39 = vadd.f32 %v6384_v16, %v831_v37  ;;  %v864_v40 = vadd.f32 %v6384_v16, %v863_v38  ;;  %v6547_v41 = vpop.f32.mrb[6].mxu0  ;;  %v6555_v42 = vpop.f32.mrb[6].mxu1 }
 0x139   : > { %884 = vst [vmem:[#allocation2 + $0x30] sm:$0xff] %v840_v35  ;;  %892 = vst [vmem:[#allocation2 + $0x70] sm:$0xff] %v872_v36  ;;  %v843_v43 = vadd.f32 %v6547_v41, %v6384_v16  ;;  %v875_v44 = vadd.f32 %v6555_v42, %v6384_v16  ;;  %v834_v45 = vpop.f32.mrb[7].mxu0  ;;  %v866_v46 = vpop.f32.mrb[7].mxu1 }
 0x13a   : > { %882 = vst [vmem:[#allocation2 + $0x20] sm:$0xff] %v832_v39  ;;  %890 = vst [vmem:[#allocation2 + $0x60] sm:$0xff] %v864_v40  ;;  %v835_v47 = vadd.f32 %v6384_v16, %v834_v45  ;;  %v867_v48 = vadd.f32 %v6384_v16, %v866_v46 }
 0x13b   : > { %885 = vst [vmem:[#allocation2 + $0x38] sm:$0xff] %v843_v43  ;;  %893 = vst [vmem:[#allocation2 + $0x78] sm:$0xff] %v875_v44 }
 0x13c   : > { %883 = vst [vmem:[#allocation2 + $0x28] sm:$0xff] %v835_v47  ;;  %891 = vst [vmem:[#allocation2 + $0x68] sm:$0xff] %v867_v48 }
 0x13d PF: > { %s13227_s26 = sld [smem:[#allocation6_spill]]  ;;  %s6401_s4 = sshll.u32 %s7662_s22, 3 }
 0x143   : > { %s7893_s30 = sld [smem:[#allocation4 + %s13227_s26]] }
 0x149   : > { %s896_s16 = sadd.s32 1, %s7893_s30 }
 0x14a   : > { %p6402_p1 = scmp.ge.s32.totalorder %s6401_s4, %s896_s16 }
 0x14c   : > { %900 = sbr.rel (%p6402_p1) target bundleno = 2002 (0x7d2), region = 64 }
 0x153   : > { %v6832_v49 = vld [vmem:[%s7829_s13] sm:$0xff]   ;;  %v7689_v50 = vmov 0.0   ;;  %v6833_v51 = vld [vmem:[%s7829_s13 + $0x8] sm:$0xff]   ;;  %vm7690_vm0 = vmmov 0   ;;  %v6834_v52 = vld [vmem:[%s7829_s13 + $0x10] sm:$0xff]   ;;  %v12648_v5 = vlaneseq  ;;  %v7692_v10 = vmov 0  }
 0x154   : > { %6556 = vmatprep.subr.bf16.mxu0 %v7689_v50  ;;  %6572 = vmatprep.mubr.msk.bf16.mxu0 %vm7690_vm0, %v7689_v50  ;;  %v6840_v53 = vld [vmem:[%s7838_s28] sm:$0xff]   ;;  %v6835_v54 = vld [vmem:[%s7829_s13 + $0x18] sm:$0xff]   ;;  %v6841_v55 = vld [vmem:[%s7838_s28 + $0x8] sm:$0xff]   ;;  %v7691_v3 = vmov 1966171168   ;;  %vm4500_vm8 = vcmask 130112  }
 0x155   : > { %6557 = vmatpush3.bf16.msra.mxu0 %v6832_v49  ;;  %6736 = vmatprep.subr.bf16.mxu1 %v6840_v53  ;;  %v6836_v56 = vld [vmem:[%s7829_s13 + $0x20] sm:$0xff]   ;;  %v6837_v57 = vld [vmem:[%s7829_s13 + $0x28] sm:$0xff]   ;;  %v6838_v58 = vld [vmem:[%s7829_s13 + $0x30] sm:$0xff]   ;;  %v1017_v4 = vunpack.c.l.s4 %v7691_v3  ;;  %v7918_v7 = vshrl.u32 %v12648_v5, 7  ;;  %vm4507_vm9 = vcmask 195712   ;;  %vm4514_vm10 = vcmask 261312  }
 0x156   : > { %6558 = vmatprep.subr.bf16.mxu0 %v7689_v50  ;;  %6744 = vmatpush3.bf16.msra.mxu1 %v6840_v53  ;;  %v6839_v59 = vld [vmem:[%s7829_s13 + $0x38] sm:$0xff]   ;;  %v901_v60 = vld [vmem:[%s7851_s23] sm:$0xf]  ;;  %v6842_v61 = vld [vmem:[%s7838_s28 + $0x10] sm:$0xff]   ;;  %vm4521_vm11 = vcmask 326912   ;;  %vm4528_vm12 = vcmask 392512  }
 0x157   : > { %6737 = vmatprep.subr.bf16.mxu1 %v6841_v55  ;;  %v6843_v62 = vld [vmem:[%s7838_s28 + $0x18] sm:$0xff]   ;;  %v6844_v63 = vld [vmem:[%s7838_s28 + $0x20] sm:$0xff]   ;;  %v6845_v0 = vld [vmem:[%s7838_s28 + $0x28] sm:$0xff]   ;;  %v1018_v6 = vunpack.c.0.s8 %v1017_v4  ;;  %13228 = vst [vmem:[#allocation15_spill] sm:$0xff] %v7918_v7  ;;  %6831 = vset.pattern.permute.xlu1 %v7692_v10  ;;  %v7932_v32 = vsub.s32 0, %v7918_v7  ;;  %vm4535_vm13 = vcmask 458112  }
 0x158   : > { %v6846_v1 = vld [vmem:[%s7838_s28 + $0x30] sm:$0xff]   ;;  %v6847_v2 = vld [vmem:[%s7838_s28 + $0x38] sm:$0xff]   ;;  %v902_v9 = vld [vmem:[%s592_s14] sm:$0xff]  ;;  %6830 = vset.pattern.permute.xlu0 %v7692_v10  ;;  %vm4542_vm14 = vcmask 523712   ;;  %vm4549_vm15 = vcmask 589312   ;;  %vm4556_vm0 = vcmask 654912  }
 0x159   : > { %6559 = vmatpush3.bf16.msra.mxu0 %v6833_v51  ;;  %v1021_v8 = vsub.s32 %v1018_v6, %v7918_v7  ;;  %v1442_v16 = vcombine.high %v902_v9, %v902_v9  ;;  %v6403_v22 = vld [vmem:[%s608_s20] ss:$0 sm:$0xff]  ;;  %13229 = vst [vmem:[#allocation16_spill] sm:$0xff] %v7932_v32  ;;  %v7936_v39 = vld [vmem:[#allocation2 + $0x8] sm:$0xff]  ;;  %v7941_v43 = vld [vmem:[#allocation2 + $0x10] sm:$0xff] }
 0x15a   : > { %6560 = vmatprep.subr.bf16.mxu0 %v7689_v50  ;;  %6745 = vmatpush3.bf16.msra.mxu1 %v6841_v55  ;;  %v7934_v38 = vld [vmem:[#allocation2] sm:$0xff]  ;;  %v7943_v44 = vld [vmem:[#allocation2 + $0x18] sm:$0xff]  ;;  %v7951_v48 = vld [vmem:[#allocation2 + $0x28] sm:$0xff] }
 0x15b   : > { %6738 = vmatprep.subr.bf16.mxu1 %v6842_v61  ;;  %v1449_v11 = vrot.slane %v902_v9, %v1021_v8  ;;  %v1456_v18 = vrot.slane %v1442_v16, %v1021_v8  ;;  %v7945_v45 = vld [vmem:[#allocation2 + $0x20] sm:$0xff]  ;;  %v7982_v3 = vld [vmem:[#allocation2 + $0x30] sm:$0xff]  ;;  %v7987_v6 = vld [vmem:[#allocation2 + $0x68] sm:$0xff] }
 0x15c   : > { %v7991_v9 = vld [vmem:[#allocation2 + $0x38] sm:$0xff] }
 0x15d   : > { %6561 = vmatpush3.bf16.msra.mxu0 %v6834_v52  ;;  %v1457_v12 = vcombine.high %v1449_v11, %v1449_v11  ;;  %v1465_v13 = vrot.slane %v1449_v11, %v1021_v8  ;;  %v1472_v19 = vrot.slane %v1456_v18, %v1021_v8  ;;  %v1458_v20 = vcombine.high %v1456_v18, %v1456_v18 }
 0x15e   : > { %6562 = vmatprep.subr.bf16.mxu0 %v7689_v50  ;;  %6746 = vmatpush3.bf16.msra.mxu1 %v6842_v61 }
 0x15f   : > { %6739 = vmatprep.subr.bf16.mxu1 %v6843_v62  ;;  %v1479_v14 = vrot.slane %v1457_v12, %v1021_v8  ;;  %3004 = vperm.xlu0 %6830, %v1465_v13   ;;  %v1487_v15 = vcombine.high %v1465_v13, %v1465_v13  ;;  %v1486_v21 = vrot.slane %v1458_v20, %v1021_v8  ;;  %v8018_v20 = vld [vmem:[#allocation2 + $0x78] sm:$0xff] }
 0x160   : > { %v1488_v23 = vcombine.high %v1472_v19, %v1472_v19 }
 0x161   : > { %6563 = vmatpush3.bf16.msra.mxu0 %v6835_v54  ;;  %3011 = vperm.xlu1 %6831, %v1479_v14   ;;  %v1489_v17 = vcombine.high %v1479_v14, %v1479_v14  ;;  %v1490_v31 = vcombine.high %v1486_v21, %v1486_v21 }
 0x162   : > { %6564 = vmatprep.subr.bf16.mxu0 %v7689_v50  ;;  %6747 = vmatpush3.bf16.msra.mxu1 %v6843_v62 }
 0x163   : > { %6740 = vmatprep.subr.bf16.mxu1 %v6844_v63 }
 0x165   : > { %6565 = vmatpush3.bf16.msra.mxu0 %v6836_v56  ;;  %3018 = vperm.xlu1 %6831, %v1487_v15   ;;  %v7966_v56 = vld [vmem:[#allocation2 + $0x48] sm:$0xff] }
 0x166   : > { %6566 = vmatprep.subr.bf16.mxu0 %v7689_v50  ;;  %6748 = vmatpush3.bf16.msra.mxu1 %v6844_v63 }
 0x167   : > { %6741 = vmatprep.subr.bf16.mxu1 %v6845_v0 }
 0x169   : > { %6567 = vmatpush3.bf16.msra.mxu0 %v6837_v57  ;;  %3025 = vperm.xlu1 %6831, %v1489_v17  }
 0x16a   : > { %6568 = vmatprep.subr.bf16.mxu0 %v7689_v50  ;;  %6749 = vmatpush3.bf16.msra.mxu1 %v6845_v0 }
 0x16b   : > { %6742 = vmatprep.subr.bf16.mxu1 %v6846_v1 }
 0x16d   : > { %6569 = vmatpush3.bf16.msra.mxu0 %v6838_v58  ;;  %3032 = vperm.xlu1 %6831, %v1472_v19   ;;  %v8016_v19 = vld [vmem:[#allocation2 + $0x70] sm:$0xff] }
 0x16e   : > { %6570 = vmatprep.subr.bf16.mxu0 %v7689_v50  ;;  %6750 = vmatpush3.bf16.msra.mxu1 %v6846_v1 }
 0x16f   : > { %6743 = vmatprep.subr.bf16.mxu1 %v6847_v2 }
 0x171   : > { %6571 = vmatpush3.bf16.msra.mxu0 %v6839_v59  ;;  %3039 = vperm.xlu1 %6831, %v1486_v21  }
 0x172   : > { %6576 = vmatprep.subr.bf16.mxu0 %v6840_v53  ;;  %6751 = vmatpush3.bf16.msra.mxu1 %v6847_v2 }
 0x174   : > { %6573 = vmatmul.mubr.bf16.vlgmr.msra.gmra.mrb[0].mxu0 %v901_v60  ;;  %v7972_v60 = vld [vmem:[#allocation2 + $0x50] sm:$0xff] }
 0x175   : > { %6577 = vmatpush3.bf16.msra.mxu0 %v6840_v53  ;;  %3046 = vperm.xlu1 %6831, %v1488_v23  }
 0x176   : > { %6578 = vmatprep.subr.bf16.mxu0 %v6841_v55 }
 0x179   : > { %6579 = vmatpush3.bf16.msra.mxu0 %v6841_v55  ;;  %3053 = vperm.xlu1 %6831, %v1490_v31   ;;  %v7964_v55 = vld [vmem:[#allocation2 + $0x40] sm:$0xff] }
 0x17a   : > { %6580 = vmatprep.subr.bf16.mxu0 %v6842_v61 }
 0x17d   : > { %6581 = vmatpush3.bf16.msra.mxu0 %v6842_v61 }
 0x17e   : > { %6582 = vmatprep.subr.bf16.mxu0 %v6843_v62 }
 0x181   : > { %6583 = vmatpush3.bf16.msra.mxu0 %v6843_v62  ;;  %v7974_v62 = vld [vmem:[#allocation2 + $0x58] sm:$0xff] }
 0x182   : > { %6584 = vmatprep.subr.bf16.mxu0 %v6844_v63 }
 0x185   : > { %6585 = vmatpush3.bf16.msra.mxu0 %v6844_v63 }
 0x186   : > { %6586 = vmatprep.subr.bf16.mxu0 %v6845_v0 }
 0x189   : > { %6587 = vmatpush3.bf16.msra.mxu0 %v6845_v0 }
 0x18a   : > { %6588 = vmatprep.subr.bf16.mxu0 %v6846_v1 }
 0x18d   : > { %6589 = vmatpush3.bf16.msra.mxu0 %v6846_v1 }
 0x18e   : > { %6590 = vmatprep.subr.bf16.mxu0 %v6847_v2 }
 0x191   : > { %6591 = vmatpush3.bf16.msra.mxu0 %v6847_v2  ;;  %v7980_v2 = vld [vmem:[#allocation2 + $0x60] sm:$0xff] }
 0x247   : > { %v1008_v24 = vpop.f32.mrb[0].mxu0 }
 0x248   : > { %v1009_v25 = vadd.f32 %v6403_v22, %v1008_v24  ;;  %v6574_v26 = vpop.f32.mrb[1].mxu0 }
 0x249   : > { %v1011_v27 = vpop.f32.mrb[2].mxu0 }
 0x24a   : > { %v1015_v28 = vcombine.high %v1009_v25, %v1009_v25  ;;  %v1022_v29 = vrot.slane %v1009_v25, %v1021_v8  ;;  %v6575_v30 = vpop.f32.mrb[3].mxu0 }
 0x24c   : > { %v1029_v33 = vrot.slane %v1015_v28, %v1021_v8  ;;  %v1030_v34 = vcombine.high %v1022_v29, %v1022_v29  ;;  %v1038_v35 = vrot.slane %v1022_v29, %v1021_v8 }
 0x24e   : > { %v1031_v36 = vcombine.high %v1029_v33, %v1029_v33  ;;  %v1052_v37 = vrot.slane %v1030_v34, %v1021_v8  ;;  %v7939_v40 = vrot.slane %v1038_v35, %v7932_v32  ;;  %v1045_v49 = vrot.slane %v1029_v33, %v1021_v8 }
 0x24f   : > { %v1060_v58 = vcombine.high %v1038_v35, %v1038_v35 }
 0x250   : > { %v1059_v41 = vrot.slane %v1031_v36, %v1021_v8  ;;  %v1062_v42 = vcombine.high %v1052_v37, %v1052_v37  ;;  %v1120_v46 = vadd.f32 %v7939_v40, %v7934_v38  ;;  %v1121_v47 = vadd.f32 %v7939_v40, %v7936_v39 }
 0x251   : > { %v1122_v51 = vadd.f32 %v7939_v40, %v7941_v43  ;;  %v1123_v52 = vadd.f32 %v7939_v40, %v7943_v44  ;;  %v1124_v53 = vadd.f32 %v7939_v40, %v7945_v45  ;;  %v1125_v54 = vadd.f32 %v7939_v40, %v7951_v48 }
 0x252   : > { %v7954_v50 = vrot.slane %v1062_v42, %v7932_v32  ;;  %6849 = vtanh.f32 %v1120_v46  ;;  %v1061_v61 = vcombine.high %v1045_v49, %v1045_v49  ;;  %v1063_v0 = vcombine.high %v1059_v41, %v1059_v41 }
 0x253   : > { %6851 = vtanh.f32 %v1121_v47  ;;  %v7985_v4 = vrot.slane %v1052_v37, %v7932_v32  ;;  %v7994_v10 = vrot.slane %v1060_v58, %v7932_v32  ;;  %v7997_v11 = vrot.slane %v1045_v49, %v7932_v32 }
 0x254   : > { %6853 = vtanh.f32 %v1122_v51  ;;  %v1176_v57 = vadd.f32 %v7954_v50, %v7964_v55  ;;  %v1177_v59 = vadd.f32 %v7954_v50, %v7966_v56  ;;  %v1178_v63 = vadd.f32 %v7954_v50, %v7972_v60 }
 0x255   : > { %6855 = vtanh.f32 %v1123_v52  ;;  %v1179_v1 = vadd.f32 %v7954_v50, %v7974_v62  ;;  %v1180_v8 = vadd.f32 %v7954_v50, %v7980_v2  ;;  %v1181_v12 = vadd.f32 %v7954_v50, %v7987_v6 }
 0x256   : > { %6857 = vtanh.f32 %v1124_v53  ;;  %v8002_v13 = vrot.slane %v1059_v41, %v7932_v32  ;;  %v8005_v14 = vrot.slane %v1061_v61, %v7932_v32  ;;  %v1126_v15 = vadd.f32 %v7939_v40, %v7982_v3 }
 0x257   : > { %6859 = vtanh.f32 %v1125_v54  ;;  %v8010_v16 = vrot.slane %v1063_v0, %v7932_v32  ;;  %v1127_v17 = vadd.f32 %v7939_v40, %v7991_v9  ;;  %v1128_v18 = vadd.f32 %v7939_v40, %v7964_v55 }
 0x258   : > { %6861 = vtanh.f32 %v1176_v57  ;;  %v1129_v22 = vadd.f32 %v7939_v40, %v7966_v56  ;;  %v1182_v23 = vadd.f32 %v7954_v50, %v8016_v19  ;;  %v1183_v24 = vadd.f32 %v7954_v50, %v8018_v20 }
 0x259   : > { %6863 = vtanh.f32 %v1177_v59  ;;  %v1184_v26 = vadd.f32 %v7997_v11, %v7934_v38  ;;  %v1185_v27 = vadd.f32 %v7997_v11, %v7936_v39  ;;  %v1130_v28 = vadd.f32 %v7939_v40, %v7972_v60 }
 0x25a   : > { %6865 = vtanh.f32 %v1178_v63  ;;  %v1131_v31 = vadd.f32 %v7939_v40, %v7974_v62  ;;  %v1132_v33 = vadd.f32 %v7939_v40, %v7980_v2  ;;  %v1133_v35 = vadd.f32 %v7939_v40, %v7987_v6 }
 0x25b   : > { %6867 = vtanh.f32 %v1179_v1  ;;  %v1186_v36 = vadd.f32 %v7997_v11, %v7941_v43  ;;  %v1187_v37 = vadd.f32 %v7997_v11, %v7943_v44  ;;  %v8044_v46 = vadd.f32 %v7997_v11, %v7945_v45 }
 0x25c   : > { %v6850_v21 = vpop.eup %6849  ;;  %6869 = vtanh.f32 %v1180_v8  ;;  %v8048_v47 = vadd.f32 %v7997_v11, %v7951_v48  ;;  %v8052_v51 = vadd.f32 %v7939_v40, %v8016_v19  ;;  %v8056_v52 = vadd.f32 %v7939_v40, %v8018_v20 }
 0x25d   : > { %v6852_v25 = vpop.eup %6851  ;;  %6871 = vtanh.f32 %v1181_v12  ;;  %v8060_v53 = vadd.f32 %v7985_v4, %v7934_v38  ;;  %v8064_v58 = vadd.f32 %v7985_v4, %v7936_v39  ;;  %v8068_v59 = vadd.f32 %v7997_v11, %v7982_v3 }
 0x25e   : > { %v6854_v29 = vpop.eup %6853  ;;  %v1376_v30 = vpack.c.bf16 %v6852_v25, %v6850_v21  ;;  %6873 = vtanh.f32 %v1126_v15  ;;  %v8072_v40 = vadd.f32 %v7997_v11, %v7991_v9  ;;  %v8076_v63 = vadd.f32 %v7997_v11, %v7964_v55 }
 0x25f   : > { %v6856_v34 = vpop.eup %6855  ;;  %6875 = vtanh.f32 %v1127_v17  ;;  %v8080_v0 = vadd.f32 %v7997_v11, %v7966_v56  ;;  %v8084_v12 = vadd.f32 %v7985_v4, %v7941_v43  ;;  %v8088_v15 = vadd.f32 %v7985_v4, %v7943_v44 }
 0x260   : > { %v6858_v41 = vpop.eup %6857  ;;  %6592 = vmatprep.mubr.bf16.mxu0 %v1376_v30  ;;  %v1377_v42 = vpack.c.bf16 %v6856_v34, %v6854_v29  ;;  %6877 = vtanh.f32 %v1128_v18  ;;  %v8092_v18 = vadd.f32 %v7985_v4, %v7945_v45  ;;  %v8096_v21 = vadd.f32 %v7985_v4, %v7951_v48 }
 0x261   : > { %v6860_v49 = vpop.eup %6859  ;;  %6879 = vtanh.f32 %v1129_v22  ;;  %v8100_v22 = vadd.f32 %v7997_v11, %v7972_v60  ;;  %v8104_v25 = vadd.f32 %v7997_v11, %v7974_v62  ;;  %v8112_v29 = vadd.f32 %v7997_v11, %v7987_v6 }
 0x262   : > { %v6862_v54 = vpop.eup %6861  ;;  %6593 = vmatmul.mubr.bf16.vlgmr.msra.gmra.mrb[4].mxu0 %v1377_v42  ;;  %v1378_v57 = vpack.c.bf16 %v6860_v49, %v6858_v41  ;;  %6881 = vtanh.f32 %v1182_v23  ;;  %v8116_v30 = vadd.f32 %v7985_v4, %v7982_v3  ;;  %v8124_v42 = vadd.f32 %v7985_v4, %v7964_v55 }
 0x263   : > { %v6864_v61 = vpop.eup %6863  ;;  %6883 = vtanh.f32 %v1183_v24  ;;  %v8191_v5 = vadd.f32 %v7994_v10, %v7964_v55  ;;  %v8196_v32 = vadd.f32 %v7994_v10, %v7966_v56 }
 0x264   : > { %v6866_v1 = vpop.eup %6865  ;;  %6596 = vmatprep.mubr.bf16.mxu0 %v1378_v57  ;;  %v1404_v8 = vpack.c.bf16 %v6864_v61, %v6862_v54  ;;  %6885 = vtanh.f32 %v1184_v26  ;;  %v8108_v26 = vadd.f32 %v7997_v11, %v7980_v2  ;;  %v8132_v54 = vadd.f32 %v7997_v11, %v8016_v19 }
 0x265   : > { %v6868_v17 = vpop.eup %6867  ;;  %6887 = vtanh.f32 %v1185_v27  ;;  %v8136_v57 = vadd.f32 %v7997_v11, %v8018_v20  ;;  %v8152_v11 = vadd.f32 %v7994_v10, %v7943_v44  ;;  %13230 = vst [vmem:[#allocation17_spill] sm:$0xff] %v8191_v5  ;;  %13231 = vst [vmem:[#allocation18_spill] sm:$0xff] %v8196_v32  ;;  %v8213_v32 = vadd.f32 %v8005_v14, %v7936_v39 }
 0x266   : > { %v6870_v23 = vpop.eup %6869  ;;  %6648 = vmatprep.mubr.bf16.mxu1 %v1404_v8  ;;  %v1405_v24 = vpack.c.bf16 %v6868_v17, %v6866_v1  ;;  %6889 = vtanh.f32 %v1130_v28  ;;  %v8120_v28 = vadd.f32 %v7985_v4, %v7991_v9  ;;  %v8144_v8 = vadd.f32 %v8002_v13, %v7936_v39 }
 0x267   : > { %v6872_v27 = vpop.eup %6871  ;;  %6891 = vtanh.f32 %v1131_v31  ;;  %v8128_v31 = vadd.f32 %v7985_v4, %v7966_v56  ;;  %13233 = vst [vmem:[#allocation20_spill] sm:$0xff] %v8213_v32 }
 0x268   : > { %v6874_v34 = vpop.eup %6873  ;;  %6649 = vmatmul.mubr.bf16.vlgmr.msra.gmra.mrb[0].mxu1 %v1405_v24  ;;  %v1406_v41 = vpack.c.bf16 %v6872_v27, %v6870_v23  ;;  %6893 = vtanh.f32 %v1132_v33  ;;  %v8140_v33 = vadd.f32 %v8002_v13, %v7934_v38  ;;  %v8156_v23 = vadd.f32 %v7994_v10, %v7945_v45 }
 0x269   : > { %v6876_v49 = vpop.eup %6875  ;;  %6895 = vtanh.f32 %v1133_v35  ;;  %v8148_v35 = vadd.f32 %v7994_v10, %v7941_v43 }
 0x26a   : > { %v6878_v61 = vpop.eup %6877  ;;  %6652 = vmatprep.mubr.bf16.mxu1 %v1406_v41  ;;  %v1379_v1 = vpack.c.bf16 %v6876_v49, %v6874_v34  ;;  %6897 = vtanh.f32 %v1186_v36  ;;  %v8160_v36 = vadd.f32 %v7994_v10, %v7951_v48  ;;  %v8169_v34 = vadd.f32 %v8002_v13, %v7974_v62 }
 0x26b   : > { %v6880_v17 = vpop.eup %6879  ;;  %6899 = vtanh.f32 %v1187_v37  ;;  %v8165_v37 = vadd.f32 %v8002_v13, %v7972_v60  ;;  %v8174_v49 = vadd.f32 %v8002_v13, %v7980_v2 }
 0x26c   : > { %v6882_v24 = vpop.eup %6881  ;;  %6597 = vmatmul.mubr.bf16.gmra.mrb[8].mxu0 %v1379_v1  ;;  %v1380_v27 = vpack.c.bf16 %v6880_v17, %v6878_v61  ;;  %6901 = vtanh.f32 %v8044_v46  ;;  %v8178_v61 = vadd.f32 %v8002_v13, %v7987_v6  ;;  %v8182_v46 = vadd.f32 %v7994_v10, %v7982_v3 }
 0x26d   : > { %v6884_v41 = vpop.eup %6883  ;;  %6903 = vtanh.f32 %v8048_v47  ;;  %v8187_v47 = vadd.f32 %v7994_v10, %v7991_v9 }
 0x26e   : > { %v6886_v1 = vpop.eup %6885  ;;  %6600 = vmatprep.mubr.bf16.mxu0 %v1380_v27  ;;  %v1407_v17 = vpack.c.bf16 %v6884_v41, %v6882_v24  ;;  %6905 = vtanh.f32 %v8052_v51  ;;  %v8200_v24 = vadd.f32 %v8002_v13, %v8016_v19  ;;  %v8204_v51 = vadd.f32 %v8002_v13, %v8018_v20 }
 0x26f   : > { %v6888_v7 = vpop.eup %6887  ;;  %6907 = vtanh.f32 %v8056_v52  ;;  %v8209_v52 = vadd.f32 %v8005_v14, %v7934_v38 }
 0x270   : > { %13232 = vst [vmem:[#allocation19_spill] sm:$0xff] %v8200_v24  ;;  %v6890_v27 = vpop.eup %6889  ;;  %6653 = vmatmul.mubr.bf16.gmra.mrb[4].mxu1 %v1407_v17  ;;  %v1408_v41 = vpack.c.bf16 %v6888_v7, %v6886_v1  ;;  %6909 = vtanh.f32 %v8060_v53  ;;  %v8218_v24 = vadd.f32 %v7994_v10, %v7972_v60  ;;  %v8222_v7 = vadd.f32 %v7994_v10, %v7974_v62 }
 0x271   : > { %v6892_v5 = vpop.eup %6891  ;;  %6911 = vtanh.f32 %v8064_v58  ;;  %v8226_v53 = vadd.f32 %v7994_v10, %v7980_v2  ;;  %v8231_v58 = vadd.f32 %v7994_v10, %v7987_v6 }
 0x272   : > { %13234 = vst [vmem:[#allocation21_spill] sm:$0xff] %v8218_v24  ;;  %13235 = vst [vmem:[#allocation22_spill] sm:$0xff] %v8222_v7  ;;  %v6894_v1 = vpop.eup %6893  ;;  %6656 = vmatprep.mubr.bf16.mxu1 %v1408_v41  ;;  %v1381_v17 = vpack.c.bf16 %v6892_v5, %v6890_v27  ;;  %6913 = vtanh.f32 %v8068_v59  ;;  %v8235_v24 = vadd.f32 %v8005_v14, %v7941_v43 }
 0x273   : > { %v6896_v32 = vpop.eup %6895  ;;  %6915 = vtanh.f32 %v8072_v40  ;;  %v8240_v7 = vadd.f32 %v8005_v14, %v7943_v44  ;;  %v8244_v5 = vadd.f32 %v8005_v14, %v7945_v45  ;;  %v8248_v59 = vadd.f32 %v8005_v14, %v7951_v48 }
 0x274   : > { %13236 = vst [vmem:[#allocation23_spill] sm:$0xff] %v8235_v24  ;;  %v6898_v27 = vpop.eup %6897  ;;  %6601 = vmatmul.mubr.bf16.gmra.mrb[12].mxu0 %v1381_v17  ;;  %v1382_v41 = vpack.c.bf16 %v6896_v32, %v6894_v1  ;;  %6917 = vtanh.f32 %v8076_v63  ;;  %v8253_v40 = vadd.f32 %v7994_v10, %v8016_v19  ;;  %v8266_v32 = vadd.f32 %v7954_v50, %v7936_v39 }
 0x275   : > { %13237 = vst [vmem:[#allocation24_spill] sm:$0xff] %v8240_v7  ;;  %13238 = vst [vmem:[#allocation25_spill] sm:$0xff] %v8244_v5  ;;  %v8257_v7 = vadd.f32 %v7994_v10, %v8018_v20  ;;  %v6900_v24 = vpop.eup %6899  ;;  %6919 = vtanh.f32 %v8080_v0  ;;  %v8262_v5 = vadd.f32 %v7954_v50, %v7934_v38  ;;  %v8270_v63 = vadd.f32 %v8005_v14, %v7982_v3 }
 0x276   : > { %13241 = vst [vmem:[#allocation28_spill] sm:$0xff] %v8266_v32  ;;  %v6902_v1 = vpop.eup %6901  ;;  %6604 = vmatprep.mubr.bf16.mxu0 %v1382_v41  ;;  %v1409_v17 = vpack.c.bf16 %v6900_v24, %v6898_v27  ;;  %6921 = vtanh.f32 %v8084_v12  ;;  %v8275_v0 = vadd.f32 %v8005_v14, %v7991_v9  ;;  %v8284_v32 = vadd.f32 %v8005_v14, %v7966_v56 }
 0x277   : > { %13239 = vst [vmem:[#allocation26_spill] sm:$0xff] %v8257_v7  ;;  %13240 = vst [vmem:[#allocation27_spill] sm:$0xff] %v8262_v5  ;;  %v8279_v5 = vadd.f32 %v8005_v14, %v7964_v55  ;;  %v6904_v7 = vpop.eup %6903  ;;  %6923 = vtanh.f32 %v8088_v15  ;;  %v8288_v24 = vadd.f32 %v7954_v50, %v7941_v43  ;;  %v8292_v12 = vadd.f32 %v7954_v50, %v7943_v44 }
 0x278   : > { %13243 = vst [vmem:[#allocation30_spill] sm:$0xff] %v8284_v32  ;;  %v6906_v27 = vpop.eup %6905  ;;  %6657 = vmatmul.mubr.bf16.gmra.mrb[8].mxu1 %v1409_v17  ;;  %v1410_v41 = vpack.c.bf16 %v6904_v7, %v6902_v1  ;;  %6925 = vtanh.f32 %v8092_v18  ;;  %v8297_v15 = vadd.f32 %v7954_v50, %v7945_v45  ;;  %v8301_v32 = vadd.f32 %v7954_v50, %v7951_v48 }
 0x279   : > { %13242 = vst [vmem:[#allocation29_spill] sm:$0xff] %v8279_v5  ;;  %13244 = vst [vmem:[#allocation31_spill] sm:$0xff] %v8288_v24  ;;  %v6908_v5 = vpop.eup %6907  ;;  %6927 = vtanh.f32 %v8096_v21  ;;  %v8306_v24 = vadd.f32 %v8005_v14, %v7972_v60  ;;  %v8310_v7 = vadd.f32 %v8005_v14, %v7974_v62  ;;  %v8314_v18 = vadd.f32 %v8005_v14, %v7980_v2 }
 0x27a   : > { %13245 = vst [vmem:[#allocation32_spill] sm:$0xff] %v8301_v32  ;;  %v6910_v1 = vpop.eup %6909  ;;  %6660 = vmatprep.mubr.bf16.mxu1 %v1410_v41  ;;  %v1383_v17 = vpack.c.bf16 %v6908_v5, %v6906_v27  ;;  %6929 = vtanh.f32 %v8100_v22  ;;  %v8319_v21 = vadd.f32 %v8005_v14, %v7987_v6  ;;  %v8332_v5 = vadd.f32 %v8005_v14, %v8016_v19 }
 0x27b   : > { %13246 = vst [vmem:[#allocation33_spill] sm:$0xff] %v8306_v24  ;;  %13247 = vst [vmem:[#allocation34_spill] sm:$0xff] %v8310_v7  ;;  %v8323_v24 = vadd.f32 %v7954_v50, %v7982_v3  ;;  %v6912_v32 = vpop.eup %6911  ;;  %6931 = vtanh.f32 %v8104_v25  ;;  %v8328_v7 = vadd.f32 %v7954_v50, %v7991_v9  ;;  %v8336_v22 = vadd.f32 %v8005_v14, %v8018_v20 }
 0x27c   : > { %v6914_v27 = vpop.eup %6913  ;;  %6605 = vmatmul.mubr.bf16.gmra.mrb[16].mxu0 %v1383_v17  ;;  %v1384_v41 = vpack.c.bf16 %v6912_v32, %v6910_v1  ;;  %6933 = vtanh.f32 %v8108_v26  ;;  %v8341_v25 = vadd.f32 %v8010_v16, %v7934_v38  ;;  %v8345_v50 = vadd.f32 %v8010_v16, %v7936_v39 }
 0x27d   : > { %13248 = vst [vmem:[#allocation35_spill] sm:$0xff] %v8328_v7  ;;  %v6916_v7 = vpop.eup %6915  ;;  %6935 = vtanh.f32 %v8112_v29  ;;  %v8350_v14 = vadd.f32 %v8010_v16, %v7941_v43  ;;  %v8354_v32 = vadd.f32 %v8010_v16, %v7943_v44  ;;  %v8358_v26 = vadd.f32 %v8010_v16, %v7945_v45 }
 0x27e   : > { %13249 = vst [vmem:[#allocation36_spill] sm:$0xff] %v8345_v50  ;;  %v6918_v1 = vpop.eup %6917  ;;  %6608 = vmatprep.mubr.bf16.mxu0 %v1384_v41  ;;  %v1411_v17 = vpack.c.bf16 %v6916_v7, %v6914_v27  ;;  %6937 = vtanh.f32 %v8116_v30  ;;  %v8363_v29 = vadd.f32 %v8010_v16, %v7951_v48  ;;  %v8376_v7 = vadd.f32 %v8010_v16, %v7964_v55 }
 0x27f   : > { %13250 = vst [vmem:[#allocation37_spill] sm:$0xff] %v8350_v14  ;;  %13251 = vst [vmem:[#allocation38_spill] sm:$0xff] %v8354_v32  ;;  %v8367_v14 = vadd.f32 %v8010_v16, %v7982_v3  ;;  %v6920_v50 = vpop.eup %6919  ;;  %6939 = vtanh.f32 %v8120_v28  ;;  %v8372_v32 = vadd.f32 %v8010_v16, %v7991_v9  ;;  %v8380_v30 = vadd.f32 %v8010_v16, %v7966_v56 }
 0x280   : > { %13254 = vst [vmem:[#allocation41_spill] sm:$0xff] %v8376_v7  ;;  %v6922_v27 = vpop.eup %6921  ;;  %6661 = vmatmul.mubr.bf16.gmra.mrb[12].mxu1 %v1411_v17  ;;  %v1412_v41 = vpack.c.bf16 %v6920_v50, %v6918_v1  ;;  %6941 = vtanh.f32 %v8124_v42  ;;  %v8385_v28 = vadd.f32 %v8010_v16, %v7972_v60  ;;  %v8394_v7 = vadd.f32 %v8010_v16, %v7980_v2 }
 0x281   : > { %13252 = vst [vmem:[#allocation39_spill] sm:$0xff] %v8367_v14  ;;  %13253 = vst [vmem:[#allocation40_spill] sm:$0xff] %v8372_v32  ;;  %v8389_v32 = vadd.f32 %v8010_v16, %v7974_v62  ;;  %v6924_v14 = vpop.eup %6923  ;;  %6943 = vtanh.f32 %v8128_v31  ;;  %v8398_v50 = vadd.f32 %v8010_v16, %v7987_v6  ;;  %v8402_v42 = vadd.f32 %v8010_v16, %v8016_v19 }
 0x282   : > { %13255 = vst [vmem:[#allocation42_spill] sm:$0xff] %v8385_v28  ;;  %13257 = vst [vmem:[#allocation44_spill] sm:$0xff] %v8394_v7  ;;  %v6926_v1 = vpop.eup %6925  ;;  %6664 = vmatprep.mubr.bf16.mxu1 %v1412_v41  ;;  %v1385_v17 = vpack.c.bf16 %v6924_v14, %v6922_v27  ;;  %6945 = vtanh.f32 %v8132_v54  ;;  %v1146_v31 = vadd.f32 %v7985_v4, %v7972_v60 }
 0x283   : > { %13256 = vst [vmem:[#allocation43_spill] sm:$0xff] %v8389_v32  ;;  %13258 = vst [vmem:[#allocation45_spill] sm:$0xff] %v8398_v50  ;;  %v8409_v32 = vadd.f32 %v8010_v16, %v8018_v20  ;;  %v6928_v7 = vpop.eup %6927  ;;  %6947 = vtanh.f32 %v8136_v57  ;;  %v1147_v50 = vadd.f32 %v7985_v4, %v7974_v62  ;;  %v1148_v54 = vadd.f32 %v7985_v4, %v7980_v2 }
 0x284   : > { %13259 = vst [vmem:[#allocation46_spill] sm:$0xff] %v8402_v42  ;;  %v6930_v28 = vpop.eup %6929  ;;  %6609 = vmatmul.mubr.bf16.gmra.mrb[20].mxu0 %v1385_v17  ;;  %v1386_v42 = vpack.c.bf16 %v6928_v7, %v6926_v1  ;;  %6949 = vtanh.f32 %v8140_v33  ;;  %v1149_v60 = vadd.f32 %v7985_v4, %v7987_v6  ;;  %v1202_v62 = vadd.f32 %v8002_v13, %v7941_v43 }
 0x285   : > { %v6932_v14 = vpop.eup %6931  ;;  %6951 = vtanh.f32 %v8144_v8  ;;  %v1203_v33 = vadd.f32 %v8002_v13, %v7943_v44  ;;  %v1204_v8 = vadd.f32 %v8002_v13, %v7945_v45  ;;  %v1205_v41 = vadd.f32 %v8002_v13, %v7951_v48 }
 0x286   : > { %v6934_v16 = vpop.eup %6933  ;;  %6612 = vmatprep.mubr.bf16.mxu0 %v1386_v42  ;;  %v1413_v57 = vpack.c.bf16 %v6932_v14, %v6930_v28  ;;  %6953 = vtanh.f32 %v1146_v31  ;;  %v1151_v42 = vadd.f32 %v7985_v4, %v8018_v20  ;;  %v1152_v17 = vadd.f32 %v7994_v10, %v7934_v38 }
 0x287   : > { %v6936_v27 = vpop.eup %6935  ;;  %6955 = vtanh.f32 %v1147_v50  ;;  %v1150_v50 = vadd.f32 %v7985_v4, %v8016_v19  ;;  %v1153_v31 = vadd.f32 %v7994_v10, %v7936_v39  ;;  %v1206_v14 = vadd.f32 %v8002_v13, %v7982_v3 }
 0x288   : > { %v6938_v7 = vpop.eup %6937  ;;  %6665 = vmatmul.mubr.bf16.gmra.mrb[16].mxu1 %v1413_v57  ;;  %v1414_v2 = vpack.c.bf16 %v6936_v27, %v6934_v16  ;;  %6957 = vtanh.f32 %v1148_v54  ;;  %v1207_v20 = vadd.f32 %v8002_v13, %v7991_v9  ;;  %v1208_v16 = vadd.f32 %v8002_v13, %v7964_v55 }
 0x289   : > { %v6940_v6 = vpop.eup %6939  ;;  %6959 = vtanh.f32 %v1149_v60  ;;  %v1209_v10 = vadd.f32 %v8002_v13, %v7966_v56 }
 0x28a   : > { %v6942_v28 = vpop.eup %6941  ;;  %6668 = vmatprep.mubr.bf16.mxu1 %v1414_v2  ;;  %v1387_v43 = vpack.c.bf16 %v6940_v6, %v6938_v7  ;;  %6961 = vtanh.f32 %v1202_v62 }
 0x28b   : > { %v6944_v44 = vpop.eup %6943  ;;  %6963 = vtanh.f32 %v1203_v33 }
 0x28c   : > { %v6946_v1 = vpop.eup %6945  ;;  %6613 = vmatmul.mubr.bf16.gmra.mrb[24].mxu0 %v1387_v43  ;;  %v1388_v45 = vpack.c.bf16 %v6944_v44, %v6942_v28  ;;  %6965 = vtanh.f32 %v1204_v8 }
 0x28d   : > { %v6948_v48 = vpop.eup %6947  ;;  %6967 = vtanh.f32 %v1205_v41 }
 0x28e   : > { %v6950_v54 = vpop.eup %6949  ;;  %6616 = vmatprep.mubr.bf16.mxu0 %v1388_v45  ;;  %v1415_v19 = vpack.c.bf16 %v6948_v48, %v6946_v1  ;;  %6969 = vtanh.f32 %v1150_v50  ;;  %v13261_v1 = vld [vmem:[#allocation18_spill] sm:$0xff] }
 0x28f   : > { %v6952_v4 = vpop.eup %6951  ;;  %6971 = vtanh.f32 %v1151_v42 }
 0x290   : > { %v6954_v60 = vpop.eup %6953  ;;  %6669 = vmatmul.mubr.bf16.gmra.mrb[20].mxu1 %v1415_v19  ;;  %v1416_v38 = vpack.c.bf16 %v6952_v4, %v6950_v54  ;;  %6973 = vtanh.f32 %v1152_v17 }
 0x291   : > { %v6956_v39 = vpop.eup %6955  ;;  %6975 = vtanh.f32 %v1153_v31  ;;  %v13263_v31 = vld [vmem:[#allocation20_spill] sm:$0xff] }
 0x292   : > { %v6958_v57 = vpop.eup %6957  ;;  %6672 = vmatprep.mubr.bf16.mxu1 %v1416_v38  ;;  %v1389_v3 = vpack.c.bf16 %v6956_v39, %v6954_v60  ;;  %6977 = vtanh.f32 %v1206_v14  ;;  %v13264_v14 = vld [vmem:[#allocation21_spill] sm:$0xff]  ;;  %v13266_v39 = vld [vmem:[#allocation23_spill] sm:$0xff] }
 0x293   : > { %v6960_v62 = vpop.eup %6959  ;;  %6979 = vtanh.f32 %v1207_v20  ;;  %v13265_v20 = vld [vmem:[#allocation22_spill] sm:$0xff] }
 0x294   : > { %v6962_v27 = vpop.eup %6961  ;;  %6617 = vmatmul.mubr.bf16.gmra.mrb[28].mxu0 %v1389_v3  ;;  %v1390_v9 = vpack.c.bf16 %v6960_v62, %v6958_v57  ;;  %6981 = vtanh.f32 %v1208_v16  ;;  %v13267_v57 = vld [vmem:[#allocation24_spill] sm:$0xff] }
 0x295   : > { %v6964_v33 = vpop.eup %6963  ;;  %6983 = vtanh.f32 %v1209_v10 }
 0x296   : > { %v6966_v7 = vpop.eup %6965  ;;  %6620 = vmatprep.mubr.bf16.mxu0 %v1390_v9  ;;  %v1417_v55 = vpack.c.bf16 %v6964_v33, %v6962_v27  ;;  %6985 = vtanh.f32 %v8148_v35  ;;  %v13268_v27 = vld [vmem:[#allocation25_spill] sm:$0xff] }
 0x297   : > { %v6968_v2 = vpop.eup %6967  ;;  %6987 = vtanh.f32 %v8152_v11 }
 0x298   : > { %v6970_v56 = vpop.eup %6969  ;;  %6673 = vmatmul.mubr.bf16.gmra.mrb[24].mxu1 %v1417_v55  ;;  %v1418_v13 = vpack.c.bf16 %v6968_v2, %v6966_v7  ;;  %6989 = vtanh.f32 %v8156_v23  ;;  %v13269_v7 = vld [vmem:[#allocation26_spill] sm:$0xff] }
 0x299   : > { %v6972_v8 = vpop.eup %6971  ;;  %6991 = vtanh.f32 %v8160_v36 }
 0x29a   : > { %v6974_v6 = vpop.eup %6973  ;;  %6676 = vmatprep.mubr.bf16.mxu1 %v1418_v13  ;;  %v1391_v41 = vpack.c.bf16 %v6972_v8, %v6970_v56  ;;  %6993 = vtanh.f32 %v8165_v37  ;;  %v13270_v56 = vld [vmem:[#allocation27_spill] sm:$0xff]  ;;  %v13271_v8 = vld [vmem:[#allocation28_spill] sm:$0xff] }
 0x29b   : > { %v6976_v28 = vpop.eup %6975  ;;  %6995 = vtanh.f32 %v8169_v34  ;;  %v13260_v34 = vld [vmem:[#allocation17_spill] sm:$0xff] }
 0x29c   : > { %v6978_v35 = vpop.eup %6977  ;;  %6621 = vmatmul.mubr.bf16.gmra.mrb[32].mxu0 %v1391_v41  ;;  %v1392_v43 = vpack.c.bf16 %v6976_v28, %v6974_v6  ;;  %6997 = vtanh.f32 %v8174_v49 }
 0x29d   : > { %v6980_v11 = vpop.eup %6979  ;;  %6999 = vtanh.f32 %v8178_v61  ;;  %v13262_v61 = vld [vmem:[#allocation19_spill] sm:$0xff] }
 0x29e   : > { %v6982_v23 = vpop.eup %6981  ;;  %6624 = vmatprep.mubr.bf16.mxu0 %v1392_v43  ;;  %v1419_v50 = vpack.c.bf16 %v6980_v11, %v6978_v35  ;;  %7001 = vtanh.f32 %v8182_v46  ;;  %v13272_v35 = vld [vmem:[#allocation29_spill] sm:$0xff]  ;;  %v13273_v11 = vld [vmem:[#allocation30_spill] sm:$0xff] }
 0x29f   : > { %v6984_v36 = vpop.eup %6983  ;;  %7003 = vtanh.f32 %v8187_v47 }
 0x2a0   : > { %v6986_v37 = vpop.eup %6985  ;;  %6677 = vmatmul.mubr.bf16.gmra.mrb[28].mxu1 %v1419_v50  ;;  %v1420_v44 = vpack.c.bf16 %v6984_v36, %v6982_v23  ;;  %7005 = vtanh.f32 %v13260_v34  ;;  %v13274_v36 = vld [vmem:[#allocation31_spill] sm:$0xff]  ;;  %v13275_v34 = vld [vmem:[#allocation32_spill] sm:$0xff] }
 0x2a1   : > { %v6988_v42 = vpop.eup %6987  ;;  %7007 = vtanh.f32 %v13261_v1 }
 0x2a2   : > { %v6990_v49 = vpop.eup %6989  ;;  %6680 = vmatprep.mubr.bf16.mxu1 %v1420_v44  ;;  %v1393_v45 = vpack.c.bf16 %v6988_v42, %v6986_v37  ;;  %7009 = vtanh.f32 %v13262_v61  ;;  %v13277_v61 = vld [vmem:[#allocation34_spill] sm:$0xff] }
 0x2a3   : > { %v6992_v17 = vpop.eup %6991  ;;  %7011 = vtanh.f32 %v8204_v51 }
 0x2a4   : > { %v6994_v46 = vpop.eup %6993  ;;  %6625 = vmatmul.mubr.bf16.gmra.mrb[36].mxu0 %v1393_v45  ;;  %v1394_v48 = vpack.c.bf16 %v6992_v17, %v6990_v49  ;;  %7013 = vtanh.f32 %v8209_v52  ;;  %v13276_v49 = vld [vmem:[#allocation33_spill] sm:$0xff] }
 0x2a5   : > { %v6996_v47 = vpop.eup %6995  ;;  %7015 = vtanh.f32 %v13263_v31  ;;  %v13278_v31 = vld [vmem:[#allocation35_spill] sm:$0xff] }
 0x2a6   : > { %v6998_v54 = vpop.eup %6997  ;;  %6628 = vmatprep.mubr.bf16.mxu0 %v1394_v48  ;;  %v1421_v19 = vpack.c.bf16 %v6996_v47, %v6994_v46  ;;  %7017 = vtanh.f32 %v13264_v14 }
 0x2a7   : > { %v7000_v4 = vpop.eup %6999  ;;  %7019 = vtanh.f32 %v13265_v20  ;;  %v13279_v20 = vld [vmem:[#allocation36_spill] sm:$0xff] }
 0x2a8   : > { %v7002_v60 = vpop.eup %7001  ;;  %6681 = vmatmul.mubr.bf16.gmra.mrb[32].mxu1 %v1421_v19  ;;  %v1422_v38 = vpack.c.bf16 %v7000_v4, %v6998_v54  ;;  %7021 = vtanh.f32 %v8226_v53 }
 0x2a9   : > { %v7004_v51 = vpop.eup %7003  ;;  %7023 = vtanh.f32 %v8231_v58 }
 0x2aa   : > { %v7006_v52 = vpop.eup %7005  ;;  %6684 = vmatprep.mubr.bf16.mxu1 %v1422_v38  ;;  %v1395_v16 = vpack.c.bf16 %v7004_v51, %v7002_v60  ;;  %7025 = vtanh.f32 %v13266_v39  ;;  %v13280_v38 = vld [vmem:[#allocation37_spill] sm:$0xff] }
 0x2ab   : > { %v7008_v10 = vpop.eup %7007  ;;  %7027 = vtanh.f32 %v13267_v57 }
 0x2ac   : > { %v7010_v3 = vpop.eup %7009  ;;  %6629 = vmatmul.mubr.bf16.gmra.mrb[40].mxu0 %v1395_v16  ;;  %v1396_v62 = vpack.c.bf16 %v7008_v10, %v7006_v52  ;;  %7029 = vtanh.f32 %v13268_v27  ;;  %v13281_v52 = vld [vmem:[#allocation38_spill] sm:$0xff]  ;;  %v13282_v10 = vld [vmem:[#allocation39_spill] sm:$0xff] }
 0x2ad   : > { %v7012_v9 = vpop.eup %7011  ;;  %7031 = vtanh.f32 %v8248_v59 }
 0x2ae   : > { %v7014_v53 = vpop.eup %7013  ;;  %6632 = vmatprep.mubr.bf16.mxu0 %v1396_v62  ;;  %v1423_v33 = vpack.c.bf16 %v7012_v9, %v7010_v3  ;;  %7033 = vtanh.f32 %v8253_v40  ;;  %v13283_v3 = vld [vmem:[#allocation40_spill] sm:$0xff]  ;;  %v13284_v9 = vld [vmem:[#allocation41_spill] sm:$0xff] }
 0x2af   : > { %v7016_v58 = vpop.eup %7015  ;;  %7035 = vtanh.f32 %v13269_v7  ;;  %v13286_v7 = vld [vmem:[#allocation43_spill] sm:$0xff] }
 0x2b0   : > { %v7018_v55 = vpop.eup %7017  ;;  %6685 = vmatmul.mubr.bf16.gmra.mrb[36].mxu1 %v1423_v33  ;;  %v1424_v2 = vpack.c.bf16 %v7016_v58, %v7014_v53  ;;  %7037 = vtanh.f32 %v13270_v56  ;;  %v13287_v56 = vld [vmem:[#allocation44_spill] sm:$0xff] }
 0x2b1   : > { %v7020_v13 = vpop.eup %7019  ;;  %7039 = vtanh.f32 %v13271_v8  ;;  %v13288_v8 = vld [vmem:[#allocation45_spill] sm:$0xff] }
 0x2b2   : > { %v7022_v6 = vpop.eup %7021  ;;  %6688 = vmatprep.mubr.bf16.mxu1 %v1424_v2  ;;  %v1397_v41 = vpack.c.bf16 %v7020_v13, %v7018_v55  ;;  %7041 = vtanh.f32 %v8270_v63 }
 0x2b3   : > { %v7024_v59 = vpop.eup %7023  ;;  %7043 = vtanh.f32 %v8275_v0 }
 0x2b4   : > { %v7026_v40 = vpop.eup %7025  ;;  %6633 = vmatmul.mubr.bf16.gmra.mrb[44].mxu0 %v1397_v41  ;;  %v1398_v28 = vpack.c.bf16 %v7024_v59, %v7022_v6  ;;  %7045 = vtanh.f32 %v13272_v35  ;;  %v13289_v59 = vld [vmem:[#allocation46_spill] sm:$0xff] }
 0x2b5   : > { %v7028_v43 = vpop.eup %7027  ;;  %7047 = vtanh.f32 %v13273_v11 }
 0x2b6   : > { %v7030_v23 = vpop.eup %7029  ;;  %6636 = vmatprep.mubr.bf16.mxu0 %v1398_v28  ;;  %v1425_v50 = vpack.c.bf16 %v7028_v43, %v7026_v40  ;;  %7049 = vtanh.f32 %v13274_v36 }
 0x2b7   : > { %v7032_v37 = vpop.eup %7031  ;;  %7051 = vtanh.f32 %v8292_v12 }
 0x2b8   : > { %v7034_v63 = vpop.eup %7033  ;;  %6689 = vmatmul.mubr.bf16.gmra.mrb[40].mxu1 %v1425_v50  ;;  %v1426_v44 = vpack.c.bf16 %v7032_v37, %v7030_v23  ;;  %7053 = vtanh.f32 %v8297_v15 }
 0x2b9   : > { %v7036_v0 = vpop.eup %7035  ;;  %7055 = vtanh.f32 %v13275_v34 }
 0x2ba   : > { %v7038_v42 = vpop.eup %7037  ;;  %6692 = vmatprep.mubr.bf16.mxu1 %v1426_v44  ;;  %v1399_v1 = vpack.c.bf16 %v7036_v0, %v7034_v63  ;;  %7057 = vtanh.f32 %v13276_v49 }
 0x2bb   : > { %v7040_v45 = vpop.eup %7039  ;;  %7059 = vtanh.f32 %v13277_v61  ;;  %v13290_v61 = vlaneseq }
 0x2bc   : > { %v7042_v17 = vpop.eup %7041  ;;  %6637 = vmatmul.mubr.bf16.gmra.mrb[48].mxu0 %v1399_v1  ;;  %v1400_v46 = vpack.c.bf16 %v7040_v45, %v7038_v42  ;;  %7061 = vtanh.f32 %v8314_v18  ;;  %v8505_v45 = vld [vmem:[%s7844_s25] ss:$0 sm:$0xff] }
 0x2bd   : > { %v7044_v12 = vpop.eup %7043  ;;  %7063 = vtanh.f32 %v8319_v21 }
 0x2be   : > { %v7046_v15 = vpop.eup %7045  ;;  %6640 = vmatprep.mubr.bf16.mxu0 %v1400_v46  ;;  %v1427_v48 = vpack.c.bf16 %v7044_v12, %v7042_v17  ;;  %7065 = vtanh.f32 %v8323_v24  ;;  %v8508_v17 = vand.u32 127, %v13290_v61  ;;  %v13292_v46 = vld [vmem:[#allocation16_spill] sm:$0xff] }
 0x2bf   : > { %v7048_v47 = vpop.eup %7047  ;;  %7067 = vtanh.f32 %v13278_v31 }
 0x2c0   : > { %v7050_v54 = vpop.eup %7049  ;;  %6693 = vmatmul.mubr.bf16.gmra.mrb[44].mxu1 %v1427_v48  ;;  %v1428_v19 = vpack.c.bf16 %v7048_v47, %v7046_v15  ;;  %7069 = vtanh.f32 %v8332_v5  ;;  %13291 = vst [vmem:[#allocation17_spill] sm:$0xff] %v8508_v17 }
 0x2c1   : > { %v7052_v14 = vpop.eup %7051  ;;  %7071 = vtanh.f32 %v8336_v22 }
 0x2c2   : > { %v7054_v18 = vpop.eup %7053  ;;  %6696 = vmatprep.mubr.bf16.mxu1 %v1428_v19  ;;  %v1401_v4 = vpack.c.bf16 %v7052_v14, %v7050_v54  ;;  %7073 = vtanh.f32 %v8341_v25 }
 0x2c3   : > { %v7056_v21 = vpop.eup %7055  ;;  %7075 = vtanh.f32 %v13279_v20 }
 0x2c4   : > { %v7058_v24 = vpop.eup %7057  ;;  %6641 = vmatmul.mubr.bf16.gmra.mrb[52].mxu0 %v1401_v4  ;;  %v1402_v60 = vpack.c.bf16 %v7056_v21, %v7054_v18  ;;  %7077 = vtanh.f32 %v13280_v38  ;;  %v8527_v21 = vpop.permute.xlu1 %3011 }
 0x2c5   : > { %v7060_v51 = vpop.eup %7059  ;;  %7079 = vtanh.f32 %v13281_v52 }
 0x2c6   : > { %v7062_v5 = vpop.eup %7061  ;;  %6644 = vmatprep.mubr.bf16.mxu0 %v1402_v60  ;;  %v1429_v16 = vpack.c.bf16 %v7060_v51, %v7058_v24  ;;  %7081 = vtanh.f32 %v8358_v26 }
 0x2c7   : > { %v7064_v22 = vpop.eup %7063  ;;  %7083 = vtanh.f32 %v8363_v29  ;;  %v13285_v29 = vld [vmem:[#allocation42_spill] sm:$0xff] }
 0x2c8   : > { %v7066_v25 = vpop.eup %7065  ;;  %6697 = vmatmul.mubr.bf16.gmra.mrb[48].mxu1 %v1429_v16  ;;  %v1430_v39 = vpack.c.bf16 %v7064_v22, %v7062_v5  ;;  %7085 = vtanh.f32 %v13282_v10 }
 0x2c9   : > { %v7068_v57 = vpop.eup %7067  ;;  %7087 = vtanh.f32 %v13283_v3 }
 0x2ca   : > { %v7070_v62 = vpop.eup %7069  ;;  %6700 = vmatprep.mubr.bf16.mxu1 %v1430_v39  ;;  %v1403_v27 = vpack.c.bf16 %v7068_v57, %v7066_v25  ;;  %7089 = vtanh.f32 %v13284_v9  ;;  %v8540_v25 = vpop.permute.xlu1 %3018 }
 0x2cb   : > { %v7072_v53 = vpop.eup %7071  ;;  %7091 = vtanh.f32 %v8380_v30 }
 0x2cc   : > { %v7074_v26 = vpop.eup %7073  ;;  %6645 = vmatmul.mubr.bf16.gmra.mrb[56].mxu0 %v1403_v27  ;;  %v1431_v33 = vpack.c.bf16 %v7072_v53, %v7070_v62  ;;  %7093 = vtanh.f32 %v13285_v29 }
 0x2cd   : > { %v7076_v58 = vpop.eup %7075  ;;  %7095 = vtanh.f32 %v13286_v7 }
 0x2ce   : > { %v7078_v55 = vpop.eup %7077  ;;  %v1432_v2 = vpack.c.bf16 %v7076_v58, %v7074_v26  ;;  %7097 = vtanh.f32 %v13287_v56 }
 0x2cf   : > { %v7080_v13 = vpop.eup %7079  ;;  %7099 = vtanh.f32 %v13288_v8 }
 0x2d0   : > { %v7082_v6 = vpop.eup %7081  ;;  %6701 = vmatmul.mubr.bf16.gmra.mrb[52].mxu1 %v1431_v33  ;;  %v1433_v41 = vpack.c.bf16 %v7080_v13, %v7078_v55  ;;  %7101 = vtanh.f32 %v13289_v59  ;;  %v3026_v33 = vpop.permute.xlu1 %3025 }
 0x2d1   : > { %v7084_v30 = vpop.eup %7083  ;;  %6704 = vmatprep.mubr.bf16.mxu1 %v1432_v2  ;;  %7103 = vtanh.f32 %v8409_v32  ;;  %v3005_v32 = vpop.permute.xlu0 %3004  ;;  %v3030_v7 = vrot.slane %v3026_v33, %v13292_v46 }
 0x2d2   : > { %v7086_v40 = vpop.eup %7085  ;;  %v1434_v28 = vpack.c.bf16 %v7084_v30, %v7082_v6  ;;  %v3009_v12 = vrot.slane %v3005_v32, %v13292_v46 }
 0x2d3   : > { %v7088_v35 = vpop.eup %7087  ;;  %vm8585_vm2 = vcmp.eq.s32.totalorder %v8508_v17, %v3030_v7 }
 0x2d4   : > { %v7090_v43 = vpop.eup %7089  ;;  %v1435_v11 = vpack.c.bf16 %v7088_v35, %v7086_v40  ;;  %vm8519_vm1 = vcmp.eq.s32.totalorder %v8508_v17, %v3009_v12 }
 0x2d5   : > { %v7092_v23 = vpop.eup %7091 }
 0x2d6   : > { %v7094_v50 = vpop.eup %7093  ;;  %v1436_v36 = vpack.c.bf16 %v7092_v23, %v7090_v43 }
 0x2d7   : > { %v7096_v37 = vpop.eup %7095 }
 0x2d8   : > { %v7098_v63 = vpop.eup %7097  ;;  %6705 = vmatmul.mubr.bf16.gmra.mrb[56].mxu1 %v1433_v41  ;;  %v1437_v44 = vpack.c.bf16 %v7096_v37, %v7094_v50  ;;  %v13303_v41 = vmov 0 }
 0x2d9   : > { %v7100_v0 = vpop.eup %7099  ;;  %6708 = vmatprep.mubr.bf16.mxu1 %v1434_v28  ;;  %v13304_v41 = vsel %vm8585_vm2, 4294967295, %v13303_v41 }
 0x2da   : > { %v7102_v34 = vpop.eup %7101  ;;  %v1438_v42 = vpack.c.bf16 %v7100_v0, %v7098_v63  ;;  %13305 = vst [vmem:[#allocation26_spill] sm:$0xff] %v13304_v41 }
 0x2db   : > { %v7104_v1 = vpop.eup %7103 }
 0x2dc   : > { %v1439_v49 = vpack.c.bf16 %v7104_v1, %v7102_v34 }
 0x2e0   : > { %6709 = vmatmul.mubr.bf16.gmra.mrb[60].mxu1 %v1435_v11 }
 0x2e1   : > { %6712 = vmatprep.mubr.bf16.mxu1 %v1436_v36 }
 0x2e8   : > { %6713 = vmatmul.mubr.bf16.gmra.mrb[64].mxu1 %v1437_v44 }
 0x2e9   : > { %6716 = vmatprep.mubr.bf16.mxu1 %v1438_v42 }
 0x2f0   : > { %6717 = vmatmul.mubr.bf16.gmra.mrb[68].mxu1 %v1439_v49 }
 0x335   : > { %v6594_v15 = vpop.f32.mrb[4].mxu0 }
 0x336   : > { %v8512_v48 = vadd.f32 %v6594_v15, %v8505_v45  ;;  %v1596_v47 = vpop.f32.mrb[5].mxu0 }
 0x337   : > { %v8515_v31 = vadd.f32 %v8505_v45, %v1596_v47  ;;  %v6595_v54 = vpop.f32.mrb[6].mxu0 }
 0x338   : > { %13293 = vst [vmem:[#allocation18_spill] sm:$0xff] %v8512_v48  ;;  %2111 = vmax.xlane.f32.xlu1 %v8512_v48  ;;  %v1599_v19 = vpop.f32.mrb[7].mxu0  ;;  %v8525_v18 = vadd.f32 %v6595_v54, %v8505_v45  ;;  %v3085_v24 = vsel %vm8519_vm1, %v8512_v48, 0.0 }
 0x339   : > { %13294 = vst [vmem:[#allocation19_spill] sm:$0xff] %v8515_v31  ;;  %2107 = vmax.xlane.f32.xlu0 %v8515_v31  ;;  %v8534_v51 = vadd.f32 %v8505_v45, %v1599_v19  ;;  %v3083_v5 = vsel %vm8519_vm1, %v8515_v31, 0.0 }
 0x33a   : > { %13297 = vst [vmem:[#allocation20_spill] sm:$0xff] %v8525_v18  ;;  %v3086_v3 = vsel %vm8519_vm1, %v8525_v18, 0.0 }
 0x33b   : > { %v6650_v4 = vpop.f32.mrb[0].mxu1  ;;  %13298 = vst [vmem:[#allocation21_spill] sm:$0xff] %v8534_v51  ;;  %v3084_v58 = vsel %vm8519_vm1, %v8534_v51, 0.0 }
 0x33c   : > { %v1820_v20 = vpop.f32.mrb[1].mxu1  ;;  %2113 = vmax.xlane.f32.xlu1 %v8525_v18  ;;  %v8543_v10 = vadd.f32 %v6650_v4, %v8505_v45 }
 0x33d   : > { %v6651_v60 = vpop.f32.mrb[2].mxu1  ;;  %3215 = vadd.xlane.f32.xlu0 %v3085_v24  ;;  %v8577_v13 = vadd.f32 %v8505_v45, %v1820_v20 }
 0x33e   : > { %v1823_v38 = vpop.f32.mrb[3].mxu1  ;;  %13299 = vst [vmem:[#allocation22_spill] sm:$0xff] %v8543_v10  ;;  %v8556_v9 = vadd.f32 %v6651_v60, %v8505_v45  ;;  %v3141_v43 = vsel %vm8585_vm2, %v8543_v10, 0.0 }
 0x33f   : > { %v6598_v52 = vpop.f32.mrb[8].mxu0  ;;  %v8572_v2 = vadd.f32 %v8505_v45, %v1823_v38  ;;  %13302 = vst [vmem:[#allocation25_spill] sm:$0xff] %v8577_v13  ;;  %v3139_v63 = vsel %vm8585_vm2, %v8577_v13, 0.0 }
 0x340   : > { %v1612_v16 = vpop.f32.mrb[9].mxu0  ;;  %3211 = vadd.xlane.f32.xlu1 %v3083_v5  ;;  %13300 = vst [vmem:[#allocation23_spill] sm:$0xff] %v8556_v9  ;;  %v3142_v28 = vsel %vm8585_vm2, %v8556_v9, 0.0  ;;  %v8626_v42 = vadd.f32 %v6598_v52, %v8505_v45 }
 0x341   : > { %v6599_v22 = vpop.f32.mrb[10].mxu0  ;;  %2109 = vmax.xlane.f32.xlu0 %v8534_v51  ;;  %13301 = vst [vmem:[#allocation24_spill] sm:$0xff] %v8572_v2  ;;  %v3140_v36 = vsel %vm8585_vm2, %v8572_v2, 0.0  ;;  %v8642_v15 = vadd.f32 %v8505_v45, %v1612_v16 }
 0x342   : > { %v1615_v39 = vpop.f32.mrb[11].mxu0  ;;  %v8621_v0 = vadd.f32 %v6599_v22, %v8505_v45  ;;  %13307 = vst [vmem:[#allocation28_spill] sm:$0xff] %v8626_v42  ;;  %v3089_v38 = vsel %vm8519_vm1, %v8626_v42, 0.0 }
 0x343   : > { %v8545_v57 = vpop.f32.mrb[4].mxu1  ;;  %v8637_v61 = vadd.f32 %v8505_v45, %v1615_v39  ;;  %13309 = vst [vmem:[#allocation30_spill] sm:$0xff] %v8642_v15 }
 0x344   : > { %v8550_v62 = vpop.f32.mrb[5].mxu1  ;;  %3217 = vadd.xlane.f32.xlu1 %v3086_v3  ;;  %13306 = vst [vmem:[#allocation27_spill] sm:$0xff] %v8621_v0  ;;  %v3090_v24 = vsel %vm8519_vm1, %v8621_v0, 0.0  ;;  %v3087_v3 = vsel %vm8519_vm1, %v8642_v15, 0.0 }
 0x345   : > { %v8552_v27 = vpop.f32.mrb[6].mxu1  ;;  %2223 = vmax.xlane.f32.xlu0 %v8543_v10  ;;  %13308 = vst [vmem:[#allocation29_spill] sm:$0xff] %v8637_v61  ;;  %v3088_v22 = vsel %vm8519_vm1, %v8637_v61, 0.0 }
 0x346   : > { %v8558_v53 = vpop.f32.mrb[7].mxu1 }
 0x347   : > { %v8560_v26 = vpop.f32.mrb[12].mxu0 }
 0x348   : > { %v8562_v29 = vpop.f32.mrb[13].mxu0  ;;  %2225 = vmax.xlane.f32.xlu1 %v8556_v9  ;;  %v8752_v31 = vadd.f32 %v8560_v26, %v8505_v45 }
 0x349   : > { %v8569_v55 = vpop.f32.mrb[14].mxu0  ;;  %3213 = vadd.xlane.f32.xlu0 %v3084_v58  ;;  %v8682_v58 = vadd.f32 %v8552_v27, %v8505_v45  ;;  %v8700_v27 = vadd.f32 %v8505_v45, %v8558_v53  ;;  %v8770_v26 = vadd.f32 %v8505_v45, %v8562_v29 }
 0x34a   : > { %v8574_v56 = vpop.f32.mrb[15].mxu0  ;;  %13315 = vst [vmem:[#allocation36_spill] sm:$0xff] %v8752_v31 }
 0x34b   : > { %v8579_v8 = vpop.f32.mrb[8].mxu1  ;;  %13310 = vst [vmem:[#allocation31_spill] sm:$0xff] %v8682_v58  ;;  %13312 = vst [vmem:[#allocation33_spill] sm:$0xff] %v8700_v27  ;;  %v3144_v10 = vsel %vm8585_vm2, %v8700_v27, 0.0 }
 0x34c   : > { %v8581_v6 = vpop.f32.mrb[9].mxu1  ;;  %2221 = vmax.xlane.f32.xlu1 %v8572_v2  ;;  %13319 = vst [vmem:[#allocation40_spill] sm:$0xff] %v8770_v26 }
 0x34d   : > { %v8589_v59 = vpop.f32.mrb[10].mxu1  ;;  %2219 = vmax.xlane.f32.xlu0 %v8577_v13 }
 0x34e   : > { %v8592_v30 = vpop.f32.mrb[11].mxu1 }
 0x34f   : > { %v8594_v40 = vpop.f32.mrb[16].mxu0 }
 0x350   : > { %v8599_v35 = vpop.f32.mrb[17].mxu0  ;;  %3329 = vadd.xlane.f32.xlu1 %v3142_v28  ;;  %v8688_v28 = vadd.f32 %v8545_v57, %v8505_v45  ;;  %v8706_v57 = vadd.f32 %v8505_v45, %v8550_v62 }
 0x351   : > { %v8604_v11 = vpop.f32.mrb[18].mxu0  ;;  %3327 = vadd.xlane.f32.xlu0 %v3141_v43 }
 0x352   : > { %v8606_v23 = vpop.f32.mrb[19].mxu0  ;;  %13311 = vst [vmem:[#allocation32_spill] sm:$0xff] %v8688_v28  ;;  %13313 = vst [vmem:[#allocation34_spill] sm:$0xff] %v8706_v57 }
 0x353   : > { %v8608_v50 = vpop.f32.mrb[12].mxu1 }
 0x354   : > { %v8613_v37 = vpop.f32.mrb[13].mxu1  ;;  %3325 = vadd.xlane.f32.xlu1 %v3140_v36 }
 0x355   : > { %v8618_v44 = vpop.f32.mrb[14].mxu1  ;;  %3323 = vadd.xlane.f32.xlu0 %v3139_v63 }
 0x356   : > { %v8623_v34 = vpop.f32.mrb[15].mxu1 }
 0x357   : > { %v8628_v1 = vpop.f32.mrb[20].mxu0  ;;  %v8956_v14 = vadd.f32 %v8505_v45, %v8623_v34 }
 0x358   : > { %v8630_v49 = vpop.f32.mrb[21].mxu0  ;;  %2121 = vmax.xlane.f32.xlu1 %v8621_v0 }
 0x359   : > { %v8633_v32 = vpop.f32.mrb[22].mxu0  ;;  %2119 = vmax.xlane.f32.xlu0 %v8626_v42  ;;  %v3145_v42 = vsel %vm8585_vm2, %v8688_v28, 0.0  ;;  %13363 = vst [vmem:[#allocation82_spill] sm:$0xff] %v8956_v14 }
 0x35a   : > { %v8639_v12 = vpop.f32.mrb[23].mxu0 }
 0x35b   : > { %v8644_v47 = vpop.f32.mrb[16].mxu1 }
 0x35c   : > { %v8646_v54 = vpop.f32.mrb[17].mxu1  ;;  %2117 = vmax.xlane.f32.xlu1 %v8637_v61  ;;  %v3146_v61 = vsel %vm8585_vm2, %v8682_v58, 0.0 }
 0x35d   : > { %v8649_v19 = vpop.f32.mrb[18].mxu1  ;;  %2115 = vmax.xlane.f32.xlu0 %v8642_v15 }
 0x35e   : > { %v8652_v4 = vpop.f32.mrb[19].mxu1 }
 0x35f   : > { %v8654_v20 = vpop.f32.mrb[24].mxu0 }
 0x360   : > { %v8659_v60 = vpop.f32.mrb[25].mxu0  ;;  %3225 = vadd.xlane.f32.xlu1 %v3090_v24 }
 0x361   : > { %v8664_v52 = vpop.f32.mrb[26].mxu0  ;;  %3223 = vadd.xlane.f32.xlu0 %v3089_v38 }
 0x362   : > { %v8666_v5 = vpop.f32.mrb[27].mxu0 }
 0x363   : > { %v8668_v16 = vpop.f32.mrb[20].mxu1 }
 0x364   : > { %v8673_v39 = vpop.f32.mrb[21].mxu1  ;;  %3221 = vadd.xlane.f32.xlu1 %v3088_v22 }
 0x365   : > { %v8678_v33 = vpop.f32.mrb[22].mxu1  ;;  %3219 = vadd.xlane.f32.xlu0 %v3087_v3 }
 0x366   : > { %v8684_v7 = vpop.f32.mrb[23].mxu1 }
 0x367   : > { %v8690_v43 = vpop.f32.mrb[28].mxu0 }
 0x368   : > { %v8692_v36 = vpop.f32.mrb[29].mxu0  ;;  %2233 = vmax.xlane.f32.xlu1 %v8682_v58 }
 0x369   : > { %v8695_v63 = vpop.f32.mrb[30].mxu0  ;;  %2231 = vmax.xlane.f32.xlu0 %v8688_v28 }
 0x36a   : > { %v8702_v24 = vpop.f32.mrb[31].mxu0 }
 0x36b   : > { %v8708_v38 = vpop.f32.mrb[24].mxu1 }
 0x36c   : > { %v8710_v22 = vpop.f32.mrb[25].mxu1  ;;  %2229 = vmax.xlane.f32.xlu1 %v8700_v27 }
 0x36d   : > { %v8713_v3 = vpop.f32.mrb[26].mxu1  ;;  %2227 = vmax.xlane.f32.xlu0 %v8706_v57 }
 0x36e   : > { %v8716_v15 = vpop.f32.mrb[27].mxu1 }
 0x36f   : > { %v8718_v53 = vpop.f32.mrb[32].mxu0 }
 0x370   : > { %v8723_v62 = vpop.f32.mrb[33].mxu0  ;;  %3337 = vadd.xlane.f32.xlu1 %v3146_v61  ;;  %v3143_v61 = vsel %vm8585_vm2, %v8706_v57, 0.0 }
 0x371   : > { %v8728_v0 = vpop.f32.mrb[34].mxu0  ;;  %3335 = vadd.xlane.f32.xlu0 %v3145_v42  ;;  %v8746_v42 = vadd.f32 %v8569_v55, %v8505_v45  ;;  %v8764_v55 = vadd.f32 %v8505_v45, %v8574_v56 }
 0x372   : > { %v8730_v13 = vpop.f32.mrb[35].mxu0 }
 0x373   : > { %v8732_v2 = vpop.f32.mrb[28].mxu1  ;;  %13314 = vst [vmem:[#allocation35_spill] sm:$0xff] %v8746_v42  ;;  %13317 = vst [vmem:[#allocation38_spill] sm:$0xff] %v8764_v55 }
 0x374   : > { %v8737_v9 = vpop.f32.mrb[29].mxu1  ;;  %3333 = vadd.xlane.f32.xlu1 %v3144_v10 }
 0x375   : > { %v8742_v58 = vpop.f32.mrb[30].mxu1  ;;  %3331 = vadd.xlane.f32.xlu0 %v3143_v61 }
 0x376   : > { %v8748_v28 = vpop.f32.mrb[31].mxu1 }
 0x377   : > { %v8754_v27 = vpop.f32.mrb[36].mxu0 }
 0x378   : > { %v8756_v10 = vpop.f32.mrb[37].mxu0  ;;  %2129 = vmax.xlane.f32.xlu1 %v8746_v42 }
 0x379   : > { %13316 = vst [vmem:[#allocation37_spill] sm:$0xff] %v8756_v10  ;;  %v8759_v57 = vpop.f32.mrb[38].mxu0  ;;  %2127 = vmax.xlane.f32.xlu0 %v8752_v31  ;;  %v3094_v10 = vsel %vm8519_vm1, %v8746_v42, 0.0 }
 0x37a   : > { %v8766_v61 = vpop.f32.mrb[39].mxu0 }
 0x37b   : > { %13318 = vst [vmem:[#allocation39_spill] sm:$0xff] %v8766_v61  ;;  %v8772_v51 = vpop.f32.mrb[32].mxu1 }
 0x37c   : > { %13320 = vst [vmem:[#allocation41_spill] sm:$0xff] %v8772_v51  ;;  %v8774_v48 = vpop.f32.mrb[33].mxu1  ;;  %2125 = vmax.xlane.f32.xlu1 %v8764_v55 }
 0x37d   : > { %13321 = vst [vmem:[#allocation42_spill] sm:$0xff] %v8774_v48  ;;  %v8777_v18 = vpop.f32.mrb[34].mxu1  ;;  %2123 = vmax.xlane.f32.xlu0 %v8770_v26  ;;  %v3093_v48 = vsel %vm8519_vm1, %v8752_v31, 0.0 }
 0x37e   : > { %13322 = vst [vmem:[#allocation43_spill] sm:$0xff] %v8777_v18  ;;  %v8780_v41 = vpop.f32.mrb[35].mxu1 }
 0x37f   : > { %13323 = vst [vmem:[#allocation44_spill] sm:$0xff] %v8780_v41  ;;  %v8782_v56 = vpop.f32.mrb[40].mxu0 }
 0x380   : > { %13324 = vst [vmem:[#allocation45_spill] sm:$0xff] %v8782_v56  ;;  %v8787_v29 = vpop.f32.mrb[41].mxu0  ;;  %3233 = vadd.xlane.f32.xlu1 %v3094_v10  ;;  %v3092_v56 = vsel %vm8519_vm1, %v8764_v55, 0.0  ;;  %v3091_v10 = vsel %vm8519_vm1, %v8770_v26, 0.0  ;;  %v3033_v26 = vpop.permute.xlu1 %3032 }
 0x381   : > { %v8792_v51 = vpop.f32.mrb[42].mxu0  ;;  %3231 = vadd.xlane.f32.xlu0 %v3093_v48  ;;  %v8810_v48 = vadd.f32 %v8589_v59, %v8505_v45  ;;  %v3037_v59 = vrot.slane %v3033_v26, %v13292_v46 }
 0x382   : > { %v8794_v18 = vpop.f32.mrb[43].mxu0 }
 0x383   : > { %v8796_v61 = vpop.f32.mrb[36].mxu1  ;;  %13328 = vst [vmem:[#allocation49_spill] sm:$0xff] %v8810_v48  ;;  %vm8846_vm3 = vcmp.eq.s32.totalorder %v8508_v17, %v3037_v59 }
 0x384   : > { %13325 = vst [vmem:[#allocation46_spill] sm:$0xff] %v8796_v61  ;;  %v8801_v41 = vpop.f32.mrb[37].mxu1  ;;  %3229 = vadd.xlane.f32.xlu1 %v3092_v56  ;;  %v8816_v61 = vadd.f32 %v8579_v8, %v8505_v45  ;;  %v8835_v8 = vadd.f32 %v8505_v45, %v8581_v6  ;;  %v3150_v6 = vsel %vm8846_vm3, %v8810_v48, 0.0 }
 0x385   : > { %13326 = vst [vmem:[#allocation47_spill] sm:$0xff] %v8801_v41  ;;  %v8806_v42 = vpop.f32.mrb[38].mxu1  ;;  %3227 = vadd.xlane.f32.xlu0 %v3091_v10  ;;  %v8829_v10 = vadd.f32 %v8505_v45, %v8592_v30  ;;  %v9215_v30 = vadd.f32 %v8505_v45, %v8702_v24 }
 0x386   : > { %13327 = vst [vmem:[#allocation48_spill] sm:$0xff] %v8806_v42  ;;  %v8812_v31 = vpop.f32.mrb[39].mxu1  ;;  %13330 = vst [vmem:[#allocation51_spill] sm:$0xff] %v8816_v61 }
 0x387   : > { %13329 = vst [vmem:[#allocation50_spill] sm:$0xff] %v8812_v31  ;;  %v8818_v55 = vpop.f32.mrb[44].mxu0  ;;  %13334 = vst [vmem:[#allocation55_spill] sm:$0xff] %v8829_v10 }
 0x388   : > { %13331 = vst [vmem:[#allocation52_spill] sm:$0xff] %v8818_v55  ;;  %v8820_v56 = vpop.f32.mrb[45].mxu0  ;;  %2241 = vmax.xlane.f32.xlu1 %v8810_v48  ;;  %13336 = vst [vmem:[#allocation57_spill] sm:$0xff] %v8835_v8 }
 0x389   : > { %13332 = vst [vmem:[#allocation53_spill] sm:$0xff] %v8820_v56  ;;  %v8823_v41 = vpop.f32.mrb[46].mxu0  ;;  %2239 = vmax.xlane.f32.xlu0 %v8816_v61  ;;  %13422 = vst [vmem:[#allocation139_spill] sm:$0xff] %v9215_v30 }
 0x38a   : > { %13333 = vst [vmem:[#allocation54_spill] sm:$0xff] %v8823_v41  ;;  %v8831_v31 = vpop.f32.mrb[47].mxu0 }
 0x38b   : > { %13335 = vst [vmem:[#allocation56_spill] sm:$0xff] %v8831_v31  ;;  %v8837_v56 = vpop.f32.mrb[40].mxu1 }
 0x38c   : > { %13337 = vst [vmem:[#allocation58_spill] sm:$0xff] %v8837_v56  ;;  %v8839_v55 = vpop.f32.mrb[41].mxu1  ;;  %2237 = vmax.xlane.f32.xlu1 %v8829_v10  ;;  %v3149_v56 = vsel %vm8846_vm3, %v8816_v61, 0.0 }
 0x38d   : > { %13338 = vst [vmem:[#allocation59_spill] sm:$0xff] %v8839_v55  ;;  %v8842_v41 = vpop.f32.mrb[42].mxu1  ;;  %2235 = vmax.xlane.f32.xlu0 %v8835_v8 }
 0x38e   : > { %13339 = vst [vmem:[#allocation60_spill] sm:$0xff] %v8842_v41  ;;  %v8850_v26 = vpop.f32.mrb[43].mxu1 }
 0x38f   : > { %13342 = vst [vmem:[#allocation61_spill] sm:$0xff] %v8850_v26  ;;  %v8852_v31 = vpop.f32.mrb[48].mxu0 }
 0x390   : > { %13343 = vst [vmem:[#allocation62_spill] sm:$0xff] %v8852_v31  ;;  %v8857_v55 = vpop.f32.mrb[49].mxu0  ;;  %3345 = vadd.xlane.f32.xlu1 %v3150_v6  ;;  %v3148_v31 = vsel %vm8846_vm3, %v8829_v10, 0.0  ;;  %v3147_v6 = vsel %vm8846_vm3, %v8835_v8, 0.0 }
 0x391   : > { %v8862_v41 = vpop.f32.mrb[50].mxu0  ;;  %3343 = vadd.xlane.f32.xlu0 %v3149_v56  ;;  %v8880_v56 = vadd.f32 %v8604_v11, %v8505_v45  ;;  %v8898_v11 = vadd.f32 %v8505_v45, %v8606_v23 }
 0x392   : > { %v8864_v59 = vpop.f32.mrb[51].mxu0 }
 0x393   : > { %v8866_v42 = vpop.f32.mrb[44].mxu1  ;;  %13346 = vst [vmem:[#allocation65_spill] sm:$0xff] %v8880_v56  ;;  %13352 = vst [vmem:[#allocation71_spill] sm:$0xff] %v8898_v11 }
 0x394   : > { %13344 = vst [vmem:[#allocation63_spill] sm:$0xff] %v8866_v42  ;;  %v8871_v26 = vpop.f32.mrb[45].mxu1  ;;  %3341 = vadd.xlane.f32.xlu1 %v3148_v31  ;;  %v8886_v42 = vadd.f32 %v8594_v40, %v8505_v45  ;;  %v8904_v40 = vadd.f32 %v8505_v45, %v8599_v35 }
 0x395   : > { %13345 = vst [vmem:[#allocation64_spill] sm:$0xff] %v8871_v26  ;;  %v8876_v48 = vpop.f32.mrb[46].mxu1  ;;  %3339 = vadd.xlane.f32.xlu0 %v3147_v6 }
 0x396   : > { %v8882_v61 = vpop.f32.mrb[47].mxu1  ;;  %13348 = vst [vmem:[#allocation67_spill] sm:$0xff] %v8886_v42  ;;  %13354 = vst [vmem:[#allocation73_spill] sm:$0xff] %v8904_v40 }
 0x397   : > { %13347 = vst [vmem:[#allocation66_spill] sm:$0xff] %v8882_v61  ;;  %v8888_v10 = vpop.f32.mrb[52].mxu0 }
 0x398   : > { %13349 = vst [vmem:[#allocation68_spill] sm:$0xff] %v8888_v10  ;;  %v8890_v31 = vpop.f32.mrb[53].mxu0  ;;  %2137 = vmax.xlane.f32.xlu1 %v8880_v56 }
 0x399   : > { %13350 = vst [vmem:[#allocation69_spill] sm:$0xff] %v8890_v31  ;;  %v8893_v8 = vpop.f32.mrb[54].mxu0  ;;  %2135 = vmax.xlane.f32.xlu0 %v8886_v42 }
 0x39a   : > { %13351 = vst [vmem:[#allocation70_spill] sm:$0xff] %v8893_v8  ;;  %v8900_v6 = vpop.f32.mrb[55].mxu0 }
 0x39b   : > { %13353 = vst [vmem:[#allocation72_spill] sm:$0xff] %v8900_v6  ;;  %v8906_v26 = vpop.f32.mrb[48].mxu1  ;;  %v3098_v6 = vsel %vm8519_vm1, %v8880_v56, 0.0 }
 0x39c   : > { %13355 = vst [vmem:[#allocation74_spill] sm:$0xff] %v8906_v26  ;;  %v8908_v10 = vpop.f32.mrb[49].mxu1  ;;  %2133 = vmax.xlane.f32.xlu1 %v8898_v11 }
 0x39d   : > { %13356 = vst [vmem:[#allocation75_spill] sm:$0xff] %v8908_v10  ;;  %v8911_v31 = vpop.f32.mrb[50].mxu1  ;;  %2131 = vmax.xlane.f32.xlu0 %v8904_v40  ;;  %v3097_v10 = vsel %vm8519_vm1, %v8886_v42, 0.0 }
 0x39e   : > { %13357 = vst [vmem:[#allocation76_spill] sm:$0xff] %v8911_v31  ;;  %v8914_v8 = vpop.f32.mrb[51].mxu1 }
 0x39f   : > { %13358 = vst [vmem:[#allocation77_spill] sm:$0xff] %v8914_v8  ;;  %v8916_v23 = vpop.f32.mrb[56].mxu0 }
 0x3a0   : > { %13359 = vst [vmem:[#allocation78_spill] sm:$0xff] %v8916_v23  ;;  %v8921_v35 = vpop.f32.mrb[57].mxu0  ;;  %3241 = vadd.xlane.f32.xlu1 %v3098_v6  ;;  %v3096_v23 = vsel %vm8519_vm1, %v8898_v11, 0.0  ;;  %v3095_v6 = vsel %vm8519_vm1, %v8904_v40, 0.0  ;;  %vm13174_vm1 = vcmask 720512  }
 0x3a1   : > { %v8926_v26 = vpop.f32.mrb[58].mxu0  ;;  %3239 = vadd.xlane.f32.xlu0 %v3097_v10  ;;  %v8944_v10 = vadd.f32 %v8618_v44, %v8505_v45 }
 0x3a2   : > { %v8928_v31 = vpop.f32.mrb[59].mxu0 }
 0x3a3   : > { %v8930_v61 = vpop.f32.mrb[52].mxu1  ;;  %13361 = vst [vmem:[#allocation80_spill] sm:$0xff] %v8944_v10  ;;  %v3154_v34 = vsel %vm8846_vm3, %v8944_v10, 0.0 }
 0x3a4   : > { %13360 = vst [vmem:[#allocation79_spill] sm:$0xff] %v8930_v61  ;;  %v8935_v8 = vpop.f32.mrb[53].mxu1  ;;  %3237 = vadd.xlane.f32.xlu1 %v3096_v23  ;;  %v8950_v61 = vadd.f32 %v8608_v50, %v8505_v45  ;;  %v8960_v23 = vadd.f32 %v8505_v45, %v8613_v37 }
 0x3a5   : > { %v8940_v56 = vpop.f32.mrb[54].mxu1  ;;  %3235 = vadd.xlane.f32.xlu0 %v3095_v6 }
 0x3a6   : > { %v8946_v42 = vpop.f32.mrb[55].mxu1  ;;  %13362 = vst [vmem:[#allocation81_spill] sm:$0xff] %v8950_v61  ;;  %13364 = vst [vmem:[#allocation83_spill] sm:$0xff] %v8960_v23  ;;  %v3153_v37 = vsel %vm8846_vm3, %v8950_v61, 0.0 }
 0x3a8   : > { %2249 = vmax.xlane.f32.xlu1 %v8944_v10  ;;  %v8988_v10 = vpop.permute.xlu1 %3039 }
 0x3a9   : > { %2247 = vmax.xlane.f32.xlu0 %v8950_v61 }
 0x3ab   : > { %v8962_v44 = vpop.f32.mrb[56].mxu1 }
 0x3ac   : > { %13365 = vst [vmem:[#allocation84_spill] sm:$0xff] %v8962_v44  ;;  %v8964_v6 = vpop.f32.mrb[57].mxu1  ;;  %2245 = vmax.xlane.f32.xlu1 %v8956_v14 }
 0x3ad   : > { %13366 = vst [vmem:[#allocation85_spill] sm:$0xff] %v8964_v6  ;;  %v8967_v50 = vpop.f32.mrb[58].mxu1  ;;  %2243 = vmax.xlane.f32.xlu0 %v8960_v23  ;;  %v3152_v6 = vsel %vm8846_vm3, %v8956_v14, 0.0  ;;  %v9000_v14 = vadd.f32 %v8628_v1, %v8505_v45 }
 0x3ae   : > { %v8970_v40 = vpop.f32.mrb[59].mxu1 }
 0x3af   : > { %13367 = vst [vmem:[#allocation86_spill] sm:$0xff] %v8970_v40  ;;  %v3151_v40 = vsel %vm8846_vm3, %v8960_v23, 0.0  ;;  %13372 = vst [vmem:[#allocation91_spill] sm:$0xff] %v9000_v14  ;;  %v9010_v23 = vpop.permute.xlu1 %3046 }
 0x3b0   : > { %3353 = vadd.xlane.f32.xlu1 %v3154_v34 }
 0x3b1   : > { %3351 = vadd.xlane.f32.xlu0 %v3153_v37  ;;  %v8994_v37 = vadd.f32 %v8633_v32, %v8505_v45  ;;  %v9014_v32 = vadd.f32 %v8505_v45, %v8630_v49 }
 0x3b3   : > { %v8978_v11 = vpop.f32.mrb[60].mxu1  ;;  %13370 = vst [vmem:[#allocation89_spill] sm:$0xff] %v8994_v37  ;;  %13374 = vst [vmem:[#allocation93_spill] sm:$0xff] %v9014_v32 }
 0x3b4   : > { %13368 = vst [vmem:[#allocation87_spill] sm:$0xff] %v8978_v11  ;;  %v8983_v44 = vpop.f32.mrb[61].mxu1  ;;  %3349 = vadd.xlane.f32.xlu1 %v3152_v6  ;;  %v3016_v6 = vrot.slane %v8527_v21, %v13292_v46  ;;  %v9366_v21 = vadd.f32 %v8505_v45, %v8748_v28 }
 0x3b5   : > { %13369 = vst [vmem:[#allocation88_spill] sm:$0xff] %v8983_v44  ;;  %v8990_v34 = vpop.f32.mrb[62].mxu1  ;;  %3347 = vadd.xlane.f32.xlu0 %v3151_v40  ;;  %v9008_v40 = vadd.f32 %v8505_v45, %v8639_v12 }
 0x3b6   : > { %v8996_v61 = vpop.f32.mrb[63].mxu1  ;;  %vm9025_vm4 = vcmp.eq.s32.totalorder %v8508_v17, %v3016_v6  ;;  %13460 = vst [vmem:[#allocation175_spill] sm:$0xff] %v9366_v21 }
 0x3b7   : > { %13371 = vst [vmem:[#allocation90_spill] sm:$0xff] %v8996_v61  ;;  %13373 = vst [vmem:[#allocation92_spill] sm:$0xff] %v9008_v40  ;;  %v3102_v49 = vsel %vm9025_vm4, %v8994_v37, 0.0  ;;  %v3100_v6 = vsel %vm9025_vm4, %v9008_v40, 0.0 }
 0x3b8   : > { %2145 = vmax.xlane.f32.xlu1 %v8994_v37 }
 0x3b9   : > { %2143 = vmax.xlane.f32.xlu0 %v9000_v14 }
 0x3bb   : > { %v9016_v44 = vpop.f32.mrb[64].mxu1 }
 0x3bc   : > { %13375 = vst [vmem:[#allocation94_spill] sm:$0xff] %v9016_v44  ;;  %v9018_v1 = vpop.f32.mrb[65].mxu1  ;;  %2141 = vmax.xlane.f32.xlu1 %v9008_v40  ;;  %v9037_v44 = vpop.permute.xlu1 %3053  ;;  %v9077_v40 = vadd.f32 %v8505_v45, %v8646_v54 }
 0x3bd   : > { %13376 = vst [vmem:[#allocation95_spill] sm:$0xff] %v9018_v1  ;;  %v9021_v61 = vpop.f32.mrb[66].mxu1  ;;  %2139 = vmax.xlane.f32.xlu0 %v9014_v32  ;;  %v3101_v1 = vsel %vm9025_vm4, %v9000_v14, 0.0  ;;  %13381 = vst [vmem:[#allocation98_spill] sm:$0xff] %v9037_v44 }
 0x3be   : > { %13377 = vst [vmem:[#allocation96_spill] sm:$0xff] %v9021_v61  ;;  %v9029_v12 = vpop.f32.mrb[67].mxu1  ;;  %13391 = vst [vmem:[#allocation108_spill] sm:$0xff] %v9077_v40 }
 0x3bf   : > { %13380 = vst [vmem:[#allocation97_spill] sm:$0xff] %v9029_v12 }
 0x3c0   : > { %3249 = vadd.xlane.f32.xlu1 %v3102_v49  ;;  %v3099_v49 = vsel %vm9025_vm4, %v9014_v32, 0.0 }
 0x3c1   : > { %3247 = vadd.xlane.f32.xlu0 %v3101_v1  ;;  %v9055_v1 = vadd.f32 %v8649_v19, %v8505_v45 }
 0x3c3   : > { %v9039_v61 = vpop.f32.mrb[68].mxu1  ;;  %13385 = vst [vmem:[#allocation102_spill] sm:$0xff] %v9055_v1 }
 0x3c4   : > { %13382 = vst [vmem:[#allocation99_spill] sm:$0xff] %v9039_v61  ;;  %v9044_v11 = vpop.f32.mrb[69].mxu1  ;;  %3245 = vadd.xlane.f32.xlu1 %v3100_v6  ;;  %v9063_v6 = vadd.f32 %v8644_v47, %v8505_v45  ;;  %v3155_v61 = vsel %vm8846_vm3, %v9077_v40, 0.0 }
 0x3c5   : > { %13383 = vst [vmem:[#allocation100_spill] sm:$0xff] %v9044_v11  ;;  %v9049_v37 = vpop.f32.mrb[70].mxu1  ;;  %v9051_v12 = vpop.xlane.xlu1 %2111  ;;  %3243 = vadd.xlane.f32.xlu0 %v3099_v49  ;;  %v9071_v49 = vadd.f32 %v8505_v45, %v8652_v4 }
 0x3c6   : > { %13384 = vst [vmem:[#allocation101_spill] sm:$0xff] %v9051_v12  ;;  %v9057_v44 = vpop.f32.mrb[71].mxu1  ;;  %v9059_v14 = vpop.xlane.xlu0 %2107  ;;  %13387 = vst [vmem:[#allocation104_spill] sm:$0xff] %v9063_v6  ;;  %v3157_v4 = vsel %vm8846_vm3, %v9063_v6, 0.0 }
 0x3c7   : > { %13386 = vst [vmem:[#allocation103_spill] sm:$0xff] %v9057_v44  ;;  %13389 = vst [vmem:[#allocation106_spill] sm:$0xff] %v9071_v49  ;;  %v3158_v44 = vsel %vm8846_vm3, %v9055_v1, 0.0 }
 0x3c8   : > { %2257 = vmax.xlane.f32.xlu1 %v9055_v1 }
 0x3c9   : > { %v9066_v32 = vpop.xlane.xlu1 %2113  ;;  %2255 = vmax.xlane.f32.xlu0 %v9063_v6  ;;  %v9105_v6 = vadd.f32 %v8664_v52, %v8505_v45  ;;  %v9125_v52 = vadd.f32 %v8505_v45, %v8659_v60 }
 0x3ca   : > { %13388 = vst [vmem:[#allocation105_spill] sm:$0xff] %v9066_v32  ;;  %v9073_v19 = vpop.xlane.xlu0 %3215 }
 0x3cb   : > { %13390 = vst [vmem:[#allocation107_spill] sm:$0xff] %v9073_v19  ;;  %13396 = vst [vmem:[#allocation113_spill] sm:$0xff] %v9105_v6 }
 0x3cc   : > { %2253 = vmax.xlane.f32.xlu1 %v9071_v49  ;;  %13402 = vst [vmem:[#allocation119_spill] sm:$0xff] %v9125_v52 }
 0x3cd   : > { %2251 = vmax.xlane.f32.xlu0 %v9077_v40  ;;  %v9081_v47 = vpop.xlane.xlu1 %3211 }
 0x3ce   : > { %13392 = vst [vmem:[#allocation109_spill] sm:$0xff] %v9081_v47  ;;  %v9083_v11 = vpop.xlane.xlu0 %2109  ;;  %v3156_v47 = vsel %vm8846_vm3, %v9071_v49, 0.0  ;;  %v3106_v49 = vsel %vm9025_vm4, %v9105_v6, 0.0 }
 0x3d0   : > { %3361 = vadd.xlane.f32.xlu1 %v3158_v44 }
 0x3d1   : > { %3359 = vadd.xlane.f32.xlu0 %v3157_v4  ;;  %v9091_v54 = vpop.xlane.xlu1 %3217 }
 0x3d2   : > { %13393 = vst [vmem:[#allocation110_spill] sm:$0xff] %v9091_v54  ;;  %v9093_v19 = vpop.xlane.xlu0 %2223  ;;  %v9111_v54 = vadd.f32 %v8654_v20, %v8505_v45 }
 0x3d3   : > { %13394 = vst [vmem:[#allocation111_spill] sm:$0xff] %v9093_v19 }
 0x3d4   : > { %3357 = vadd.xlane.f32.xlu1 %v3156_v47  ;;  %13398 = vst [vmem:[#allocation115_spill] sm:$0xff] %v9111_v54 }
 0x3d5   : > { %3355 = vadd.xlane.f32.xlu0 %v3155_v61  ;;  %v9101_v44 = vpop.xlane.xlu1 %2225  ;;  %v9119_v61 = vadd.f32 %v8505_v45, %v8666_v5  ;;  %v3105_v5 = vsel %vm9025_vm4, %v9111_v54, 0.0 }
 0x3d6   : > { %13395 = vst [vmem:[#allocation112_spill] sm:$0xff] %v9101_v44  ;;  %v9107_v4 = vpop.xlane.xlu0 %3213 }
 0x3d7   : > { %13397 = vst [vmem:[#allocation114_spill] sm:$0xff] %v9107_v4  ;;  %13400 = vst [vmem:[#allocation117_spill] sm:$0xff] %v9119_v61 }
 0x3d8   : > { %2153 = vmax.xlane.f32.xlu1 %v9105_v6 }
 0x3d9   : > { %2151 = vmax.xlane.f32.xlu0 %v9111_v54  ;;  %v9115_v47 = vpop.xlane.xlu1 %2221  ;;  %v9153_v54 = vadd.f32 %v8678_v33, %v8505_v45  ;;  %v9173_v33 = vadd.f32 %v8505_v45, %v8673_v39 }
 0x3da   : > { %13399 = vst [vmem:[#allocation116_spill] sm:$0xff] %v9115_v47  ;;  %v9121_v40 = vpop.xlane.xlu0 %2219 }
 0x3db   : > { %13401 = vst [vmem:[#allocation118_spill] sm:$0xff] %v9121_v40  ;;  %13407 = vst [vmem:[#allocation124_spill] sm:$0xff] %v9153_v54 }
 0x3dc   : > { %2149 = vmax.xlane.f32.xlu1 %v9119_v61  ;;  %13412 = vst [vmem:[#allocation129_spill] sm:$0xff] %v9173_v33 }
 0x3dd   : > { %2147 = vmax.xlane.f32.xlu0 %v9125_v52  ;;  %v9129_v20 = vpop.xlane.xlu1 %3329 }
 0x3de   : > { %13403 = vst [vmem:[#allocation120_spill] sm:$0xff] %v9129_v20  ;;  %v9131_v4 = vpop.xlane.xlu0 %3327  ;;  %v3104_v20 = vsel %vm9025_vm4, %v9119_v61, 0.0  ;;  %v3162_v61 = vsel %vm8846_vm3, %v9153_v54, 0.0 }
 0x3df   : > { %13404 = vst [vmem:[#allocation121_spill] sm:$0xff] %v9131_v4  ;;  %v3103_v4 = vsel %vm9025_vm4, %v9125_v52, 0.0 }
 0x3e0   : > { %3257 = vadd.xlane.f32.xlu1 %v3106_v49 }
 0x3e1   : > { %3255 = vadd.xlane.f32.xlu0 %v3105_v5  ;;  %v9139_v60 = vpop.xlane.xlu1 %3325 }
 0x3e2   : > { %13405 = vst [vmem:[#allocation122_spill] sm:$0xff] %v9139_v60  ;;  %v9141_v1 = vpop.xlane.xlu0 %3323 }
 0x3e3   : > { %13406 = vst [vmem:[#allocation123_spill] sm:$0xff] %v9141_v1  ;;  %v9159_v1 = vadd.f32 %v8668_v16, %v8505_v45 }
 0x3e4   : > { %3253 = vadd.xlane.f32.xlu1 %v3104_v20 }
 0x3e5   : > { %3251 = vadd.xlane.f32.xlu0 %v3103_v4  ;;  %v9149_v49 = vpop.xlane.xlu1 %2121  ;;  %13408 = vst [vmem:[#allocation125_spill] sm:$0xff] %v9159_v1  ;;  %v9167_v4 = vadd.f32 %v8505_v45, %v8684_v7  ;;  %v3161_v7 = vsel %vm8846_vm3, %v9159_v1, 0.0 }
 0x3e6   : > { %v9155_v5 = vpop.xlane.xlu0 %2119 }
 0x3e7   : > { %13410 = vst [vmem:[#allocation127_spill] sm:$0xff] %v9167_v4 }
 0x3e8   : > { %2265 = vmax.xlane.f32.xlu1 %v9153_v54 }
 0x3e9   : > { %2263 = vmax.xlane.f32.xlu0 %v9159_v1  ;;  %v9163_v20 = vpop.xlane.xlu1 %2117  ;;  %v9201_v1 = vadd.f32 %v8695_v63, %v8505_v45  ;;  %v9221_v63 = vadd.f32 %v8505_v45, %v8692_v36 }
 0x3ea   : > { %13409 = vst [vmem:[#allocation126_spill] sm:$0xff] %v9163_v20  ;;  %v9169_v60 = vpop.xlane.xlu0 %2115 }
 0x3eb   : > { %13411 = vst [vmem:[#allocation128_spill] sm:$0xff] %v9169_v60  ;;  %13418 = vst [vmem:[#allocation135_spill] sm:$0xff] %v9201_v1 }
 0x3ec   : > { %2261 = vmax.xlane.f32.xlu1 %v9167_v4  ;;  %13424 = vst [vmem:[#allocation141_spill] sm:$0xff] %v9221_v63 }
 0x3ed   : > { %2259 = vmax.xlane.f32.xlu0 %v9173_v33  ;;  %v9177_v16 = vpop.xlane.xlu1 %3225 }
 0x3ee   : > { %13413 = vst [vmem:[#allocation130_spill] sm:$0xff] %v9177_v16  ;;  %v9179_v52 = vpop.xlane.xlu0 %3223  ;;  %v3160_v16 = vsel %vm8846_vm3, %v9167_v4, 0.0 }
 0x3ef   : > { %13414 = vst [vmem:[#allocation131_spill] sm:$0xff] %v9179_v52  ;;  %v3159_v52 = vsel %vm8846_vm3, %v9173_v33, 0.0  ;;  %v3110_v33 = vsel %vm9025_vm4, %v9201_v1, 0.0  ;;  %vm4577_vm3 = vcmask 851712  }
 0x3f0   : > { %3369 = vadd.xlane.f32.xlu1 %v3162_v61 }
 0x3f1   : > { %3367 = vadd.xlane.f32.xlu0 %v3161_v7  ;;  %v9187_v39 = vpop.xlane.xlu1 %3221 }
 0x3f2   : > { %13415 = vst [vmem:[#allocation132_spill] sm:$0xff] %v9187_v39  ;;  %v9189_v6 = vpop.xlane.xlu0 %3219 }
 0x3f3   : > { %13416 = vst [vmem:[#allocation133_spill] sm:$0xff] %v9189_v6  ;;  %v9207_v6 = vadd.f32 %v8690_v43, %v8505_v45 }
 0x3f4   : > { %3365 = vadd.xlane.f32.xlu1 %v3160_v16 }
 0x3f5   : > { %3363 = vadd.xlane.f32.xlu0 %v3159_v52  ;;  %v9197_v61 = vpop.xlane.xlu1 %2233  ;;  %13420 = vst [vmem:[#allocation137_spill] sm:$0xff] %v9207_v6  ;;  %v3109_v24 = vsel %vm9025_vm4, %v9207_v6, 0.0 }
 0x3f6   : > { %13417 = vst [vmem:[#allocation134_spill] sm:$0xff] %v9197_v61  ;;  %v9203_v7 = vpop.xlane.xlu0 %2231 }
 0x3f7   : > { %13419 = vst [vmem:[#allocation136_spill] sm:$0xff] %v9203_v7 }
 0x3f8   : > { %2161 = vmax.xlane.f32.xlu1 %v9201_v1 }
 0x3f9   : > { %2159 = vmax.xlane.f32.xlu0 %v9207_v6  ;;  %v9211_v16 = vpop.xlane.xlu1 %2229  ;;  %v9249_v6 = vadd.f32 %v8713_v3, %v8505_v45 }
 0x3fa   : > { %13421 = vst [vmem:[#allocation138_spill] sm:$0xff] %v9211_v16  ;;  %v9217_v52 = vpop.xlane.xlu0 %2227 }
 0x3fb   : > { %13423 = vst [vmem:[#allocation140_spill] sm:$0xff] %v9217_v52  ;;  %13430 = vst [vmem:[#allocation147_spill] sm:$0xff] %v9249_v6 }
 0x3fc   : > { %2157 = vmax.xlane.f32.xlu1 %v9215_v30 }
 0x3fd   : > { %2155 = vmax.xlane.f32.xlu0 %v9221_v63  ;;  %v9225_v43 = vpop.xlane.xlu1 %3337 }
 0x3fe   : > { %13425 = vst [vmem:[#allocation142_spill] sm:$0xff] %v9225_v43  ;;  %v9227_v39 = vpop.xlane.xlu0 %3335  ;;  %v3108_v43 = vsel %vm9025_vm4, %v9215_v30, 0.0  ;;  %v13535_v30 = vld [vmem:[#allocation56_spill] sm:$0xff] }
 0x3ff   : > { %13426 = vst [vmem:[#allocation143_spill] sm:$0xff] %v9227_v39  ;;  %v3107_v39 = vsel %vm9025_vm4, %v9221_v63, 0.0  ;;  %v9271_v63 = vadd.f32 %v8505_v45, %v8710_v22 }
 0x400   : > { %3265 = vadd.xlane.f32.xlu1 %v3110_v33 }
 0x401   : > { %3263 = vadd.xlane.f32.xlu0 %v3109_v24  ;;  %v9235_v36 = vpop.xlane.xlu1 %3333  ;;  %13436 = vst [vmem:[#allocation153_spill] sm:$0xff] %v9271_v63 }
 0x402   : > { %13427 = vst [vmem:[#allocation144_spill] sm:$0xff] %v9235_v36  ;;  %v9237_v4 = vpop.xlane.xlu0 %3331  ;;  %v9265_v36 = vadd.f32 %v8505_v45, %v8716_v15 }
 0x403   : > { %13428 = vst [vmem:[#allocation145_spill] sm:$0xff] %v9237_v4  ;;  %v9255_v4 = vadd.f32 %v8708_v38, %v8505_v45 }
 0x404   : > { %3261 = vadd.xlane.f32.xlu1 %v3108_v43  ;;  %13434 = vst [vmem:[#allocation151_spill] sm:$0xff] %v9265_v36 }
 0x405   : > { %3259 = vadd.xlane.f32.xlu0 %v3107_v39  ;;  %v9245_v33 = vpop.xlane.xlu1 %2129  ;;  %13432 = vst [vmem:[#allocation149_spill] sm:$0xff] %v9255_v4  ;;  %v3044_v39 = vrot.slane %v8988_v10, %v13292_v46 }
 0x406   : > { %13429 = vst [vmem:[#allocation146_spill] sm:$0xff] %v9245_v33  ;;  %v9251_v24 = vpop.xlane.xlu0 %2127 }
 0x407   : > { %13431 = vst [vmem:[#allocation148_spill] sm:$0xff] %v9251_v24  ;;  %vm9278_vm5 = vcmp.eq.s32.totalorder %v8508_v17, %v3044_v39 }
 0x408   : > { %2273 = vmax.xlane.f32.xlu1 %v9249_v6  ;;  %v3166_v15 = vsel %vm9278_vm5, %v9249_v6, 0.0  ;;  %v3165_v22 = vsel %vm9278_vm5, %v9255_v4, 0.0  ;;  %v3164_v39 = vsel %vm9278_vm5, %v9265_v36, 0.0 }
 0x409   : > { %2271 = vmax.xlane.f32.xlu0 %v9255_v4  ;;  %v9259_v43 = vpop.xlane.xlu1 %2125  ;;  %v9304_v4 = vadd.f32 %v8728_v0, %v8505_v45  ;;  %v9324_v0 = vadd.f32 %v8505_v45, %v8723_v62 }
 0x40a   : > { %13433 = vst [vmem:[#allocation150_spill] sm:$0xff] %v9259_v43  ;;  %v9267_v3 = vpop.xlane.xlu0 %2123 }
 0x40b   : > { %13435 = vst [vmem:[#allocation152_spill] sm:$0xff] %v9267_v3  ;;  %13444 = vst [vmem:[#allocation159_spill] sm:$0xff] %v9304_v4 }
 0x40c   : > { %2269 = vmax.xlane.f32.xlu1 %v9265_v36  ;;  %13450 = vst [vmem:[#allocation165_spill] sm:$0xff] %v9324_v0  ;;  %v3114_v36 = vsel %vm9025_vm4, %v9304_v4, 0.0 }
 0x40d   : > { %2267 = vmax.xlane.f32.xlu0 %v9271_v63  ;;  %v9275_v38 = vpop.xlane.xlu1 %3233 }
 0x40e   : > { %13437 = vst [vmem:[#allocation154_spill] sm:$0xff] %v9275_v38  ;;  %v9282_v10 = vpop.xlane.xlu0 %3231 }
 0x40f   : > { %13440 = vst [vmem:[#allocation155_spill] sm:$0xff] %v9282_v10  ;;  %v3163_v10 = vsel %vm9278_vm5, %v9271_v63, 0.0 }
 0x410   : > { %3377 = vadd.xlane.f32.xlu1 %v3166_v15 }
 0x411   : > { %3375 = vadd.xlane.f32.xlu0 %v3165_v22  ;;  %v9290_v1 = vpop.xlane.xlu1 %3229 }
 0x412   : > { %13441 = vst [vmem:[#allocation156_spill] sm:$0xff] %v9290_v1  ;;  %v9292_v38 = vpop.xlane.xlu0 %3227 }
 0x413   : > { %13442 = vst [vmem:[#allocation157_spill] sm:$0xff] %v9292_v38  ;;  %v9310_v38 = vadd.f32 %v8718_v53, %v8505_v45 }
 0x414   : > { %3373 = vadd.xlane.f32.xlu1 %v3164_v39 }
 0x415   : > { %3371 = vadd.xlane.f32.xlu0 %v3163_v10  ;;  %v9300_v15 = vpop.xlane.xlu1 %2241  ;;  %13446 = vst [vmem:[#allocation161_spill] sm:$0xff] %v9310_v38  ;;  %v9318_v10 = vadd.f32 %v8505_v45, %v8730_v13  ;;  %v3113_v13 = vsel %vm9025_vm4, %v9310_v38, 0.0 }
 0x416   : > { %13443 = vst [vmem:[#allocation158_spill] sm:$0xff] %v9300_v15  ;;  %v9306_v22 = vpop.xlane.xlu0 %2239 }
 0x417   : > { %13445 = vst [vmem:[#allocation160_spill] sm:$0xff] %v9306_v22  ;;  %13448 = vst [vmem:[#allocation163_spill] sm:$0xff] %v9318_v10 }
 0x418   : > { %2169 = vmax.xlane.f32.xlu1 %v9304_v4  ;;  %v13582_v4 = vld [vmem:[#allocation66_spill] sm:$0xff] }
 0x419   : > { %2167 = vmax.xlane.f32.xlu0 %v9310_v38  ;;  %v9314_v39 = vpop.xlane.xlu1 %2237  ;;  %v9352_v38 = vadd.f32 %v8742_v58, %v8505_v45  ;;  %v9372_v58 = vadd.f32 %v8505_v45, %v8737_v9 }
 0x41a   : > { %13447 = vst [vmem:[#allocation162_spill] sm:$0xff] %v9314_v39  ;;  %v9320_v1 = vpop.xlane.xlu0 %2235 }
 0x41b   : > { %13449 = vst [vmem:[#allocation164_spill] sm:$0xff] %v9320_v1  ;;  %13456 = vst [vmem:[#allocation171_spill] sm:$0xff] %v9352_v38 }
 0x41c   : > { %2165 = vmax.xlane.f32.xlu1 %v9318_v10  ;;  %13462 = vst [vmem:[#allocation177_spill] sm:$0xff] %v9372_v58 }
 0x41d   : > { %2163 = vmax.xlane.f32.xlu0 %v9324_v0  ;;  %v9328_v53 = vpop.xlane.xlu1 %3345 }
 0x41e   : > { %13451 = vst [vmem:[#allocation166_spill] sm:$0xff] %v9328_v53  ;;  %v9330_v63 = vpop.xlane.xlu0 %3343  ;;  %v3112_v53 = vsel %vm9025_vm4, %v9318_v10, 0.0 }
 0x41f   : > { %13452 = vst [vmem:[#allocation167_spill] sm:$0xff] %v9330_v63  ;;  %v3111_v63 = vsel %vm9025_vm4, %v9324_v0, 0.0  ;;  %v3170_v0 = vsel %vm9278_vm5, %v9352_v38, 0.0  ;;  %vm13175_vm4 = vcmask 917312  }
 0x420   : > { %3273 = vadd.xlane.f32.xlu1 %v3114_v36 }
 0x421   : > { %3271 = vadd.xlane.f32.xlu0 %v3113_v13  ;;  %v9338_v62 = vpop.xlane.xlu1 %3341 }
 0x422   : > { %13453 = vst [vmem:[#allocation168_spill] sm:$0xff] %v9338_v62  ;;  %v9340_v6 = vpop.xlane.xlu0 %3339 }
 0x423   : > { %13454 = vst [vmem:[#allocation169_spill] sm:$0xff] %v9340_v6  ;;  %v9358_v6 = vadd.f32 %v8732_v2, %v8505_v45 }
 0x424   : > { %3269 = vadd.xlane.f32.xlu1 %v3112_v53 }
 0x425   : > { %3267 = vadd.xlane.f32.xlu0 %v3111_v63  ;;  %v9348_v36 = vpop.xlane.xlu1 %2137  ;;  %13458 = vst [vmem:[#allocation173_spill] sm:$0xff] %v9358_v6  ;;  %v3169_v28 = vsel %vm9278_vm5, %v9358_v6, 0.0 }
 0x426   : > { %13455 = vst [vmem:[#allocation170_spill] sm:$0xff] %v9348_v36  ;;  %v9354_v13 = vpop.xlane.xlu0 %2135 }
 0x427   : > { %13457 = vst [vmem:[#allocation172_spill] sm:$0xff] %v9354_v13 }
 0x428   : > { %2281 = vmax.xlane.f32.xlu1 %v9352_v38 }
 0x429   : > { %2279 = vmax.xlane.f32.xlu0 %v9358_v6  ;;  %v9362_v53 = vpop.xlane.xlu1 %2133  ;;  %v9400_v6 = vadd.f32 %v8759_v57, %v8505_v45 }
 0x42a   : > { %13459 = vst [vmem:[#allocation174_spill] sm:$0xff] %v9362_v53  ;;  %v9368_v63 = vpop.xlane.xlu0 %2131 }
 0x42b   : > { %13461 = vst [vmem:[#allocation176_spill] sm:$0xff] %v9368_v63  ;;  %13468 = vst [vmem:[#allocation183_spill] sm:$0xff] %v9400_v6 }
 0x42c   : > { %2277 = vmax.xlane.f32.xlu1 %v9366_v21 }
 0x42d   : > { %2275 = vmax.xlane.f32.xlu0 %v9372_v58  ;;  %v9376_v2 = vpop.xlane.xlu1 %3241 }
 0x42e   : > { %13463 = vst [vmem:[#allocation178_spill] sm:$0xff] %v9376_v2  ;;  %v9378_v62 = vpop.xlane.xlu0 %3239  ;;  %v3168_v2 = vsel %vm9278_vm5, %v9366_v21, 0.0  ;;  %v13475_v21 = vld [vmem:[#allocation37_spill] sm:$0xff] }
 0x42f   : > { %13464 = vst [vmem:[#allocation179_spill] sm:$0xff] %v9378_v62  ;;  %v3167_v62 = vsel %vm9278_vm5, %v9372_v58, 0.0  ;;  %v9422_v38 = vadd.f32 %v8505_v45, %v13475_v21 }
 0x430   : > { %3385 = vadd.xlane.f32.xlu1 %v3170_v0 }
 0x431   : > { %3383 = vadd.xlane.f32.xlu0 %v3169_v28  ;;  %v9386_v9 = vpop.xlane.xlu1 %3237  ;;  %13476 = vst [vmem:[#allocation37_spill] sm:$0xff] %v9422_v38 }
 0x432   : > { %13465 = vst [vmem:[#allocation180_spill] sm:$0xff] %v9386_v9  ;;  %v9388_v10 = vpop.xlane.xlu0 %3235  ;;  %v13472_v9 = vld [vmem:[#allocation39_spill] sm:$0xff] }
 0x433   : > { %13466 = vst [vmem:[#allocation181_spill] sm:$0xff] %v9388_v10  ;;  %v9406_v10 = vadd.f32 %v8754_v27, %v8505_v45  ;;  %v9416_v58 = vadd.f32 %v8505_v45, %v13472_v9 }
 0x434   : > { %3381 = vadd.xlane.f32.xlu1 %v3168_v2 }
 0x435   : > { %3379 = vadd.xlane.f32.xlu0 %v3167_v62  ;;  %v9396_v0 = vpop.xlane.xlu1 %2249  ;;  %13470 = vst [vmem:[#allocation185_spill] sm:$0xff] %v9406_v10  ;;  %v3023_v62 = vrot.slane %v8540_v25, %v13292_v46  ;;  %13473 = vst [vmem:[#allocation39_spill] sm:$0xff] %v9416_v58 }
 0x436   : > { %13467 = vst [vmem:[#allocation182_spill] sm:$0xff] %v9396_v0  ;;  %v9402_v28 = vpop.xlane.xlu0 %2247 }
 0x437   : > { %13469 = vst [vmem:[#allocation184_spill] sm:$0xff] %v9402_v28  ;;  %vm9429_vm6 = vcmp.eq.s32.totalorder %v8508_v17, %v3023_v62 }
 0x438   : > { %2177 = vmax.xlane.f32.xlu1 %v9400_v6  ;;  %v3118_v9 = vsel %vm9429_vm6, %v9400_v6, 0.0  ;;  %v3117_v21 = vsel %vm9429_vm6, %v9406_v10, 0.0  ;;  %v3116_v62 = vsel %vm9429_vm6, %v9416_v58, 0.0  ;;  %v13484_v6 = vld [vmem:[#allocation43_spill] sm:$0xff] }
 0x439   : > { %2175 = vmax.xlane.f32.xlu0 %v9406_v10  ;;  %v9410_v2 = vpop.xlane.xlu1 %2245  ;;  %v9455_v10 = vadd.f32 %v13484_v6, %v8505_v45  ;;  %v13493_v6 = vld [vmem:[#allocation42_spill] sm:$0xff] }
 0x43a   : > { %13471 = vst [vmem:[#allocation186_spill] sm:$0xff] %v9410_v2  ;;  %v9418_v57 = vpop.xlane.xlu0 %2243 }
 0x43b   : > { %13474 = vst [vmem:[#allocation187_spill] sm:$0xff] %v9418_v57  ;;  %13485 = vst [vmem:[#allocation43_spill] sm:$0xff] %v9455_v10 }
 0x43c   : > { %2173 = vmax.xlane.f32.xlu1 %v9416_v58 }
 0x43d   : > { %2171 = vmax.xlane.f32.xlu0 %v9422_v38  ;;  %v9426_v27 = vpop.xlane.xlu1 %3353 }
 0x43e   : > { %13477 = vst [vmem:[#allocation188_spill] sm:$0xff] %v9426_v27  ;;  %v9433_v25 = vpop.xlane.xlu0 %3351 }
 0x43f   : > { %13480 = vst [vmem:[#allocation189_spill] sm:$0xff] %v9433_v25  ;;  %v3115_v25 = vsel %vm9429_vm6, %v9422_v38, 0.0  ;;  %v13490_v38 = vld [vmem:[#allocation44_spill] sm:$0xff] }
 0x440   : > { %3281 = vadd.xlane.f32.xlu1 %v3118_v9 }
 0x441   : > { %3279 = vadd.xlane.f32.xlu0 %v3117_v21  ;;  %v9441_v54 = vpop.xlane.xlu1 %3349 }
 0x442   : > { %13481 = vst [vmem:[#allocation190_spill] sm:$0xff] %v9441_v54  ;;  %v9443_v27 = vpop.xlane.xlu0 %3347 }
 0x443   : > { %13482 = vst [vmem:[#allocation191_spill] sm:$0xff] %v9443_v27  ;;  %v13487_v27 = vld [vmem:[#allocation41_spill] sm:$0xff] }
 0x444   : > { %3277 = vadd.xlane.f32.xlu1 %v3116_v62  ;;  %v9461_v54 = vadd.f32 %v13487_v27, %v8505_v45 }
 0x445   : > { %3275 = vadd.xlane.f32.xlu0 %v3115_v25  ;;  %v9451_v9 = vpop.xlane.xlu1 %2145  ;;  %v9469_v25 = vadd.f32 %v8505_v45, %v13490_v38  ;;  %v3174_v38 = vsel %vm9278_vm5, %v9455_v10, 0.0 }
 0x446   : > { %13483 = vst [vmem:[#allocation192_spill] sm:$0xff] %v9451_v9  ;;  %v9457_v21 = vpop.xlane.xlu0 %2143  ;;  %13488 = vst [vmem:[#allocation41_spill] sm:$0xff] %v9461_v54  ;;  %v9475_v9 = vadd.f32 %v8505_v45, %v13493_v6 }
 0x447   : > { %13486 = vst [vmem:[#allocation193_spill] sm:$0xff] %v9457_v21  ;;  %13491 = vst [vmem:[#allocation44_spill] sm:$0xff] %v9469_v25 }
 0x448   : > { %2289 = vmax.xlane.f32.xlu1 %v9455_v10  ;;  %13494 = vst [vmem:[#allocation42_spill] sm:$0xff] %v9475_v9 }
 0x449   : > { %2287 = vmax.xlane.f32.xlu0 %v9461_v54  ;;  %v9465_v62 = vpop.xlane.xlu1 %2141 }
 0x44a   : > { %13489 = vst [vmem:[#allocation194_spill] sm:$0xff] %v9465_v62  ;;  %v9471_v58 = vpop.xlane.xlu0 %2139 }
 0x44b   : > { %13492 = vst [vmem:[#allocation195_spill] sm:$0xff] %v9471_v58  ;;  %v3173_v58 = vsel %vm9278_vm5, %v9461_v54, 0.0  ;;  %v9503_v54 = vadd.f32 %v8792_v51, %v8505_v45 }
 0x44c   : > { %2285 = vmax.xlane.f32.xlu1 %v9469_v25 }
 0x44d   : > { %2283 = vmax.xlane.f32.xlu0 %v9475_v9  ;;  %v9479_v27 = vpop.xlane.xlu1 %3249  ;;  %13500 = vst [vmem:[#allocation201_spill] sm:$0xff] %v9503_v54 }
 0x44e   : > { %13495 = vst [vmem:[#allocation196_spill] sm:$0xff] %v9479_v27  ;;  %v9481_v21 = vpop.xlane.xlu0 %3247  ;;  %v3172_v27 = vsel %vm9278_vm5, %v9469_v25, 0.0  ;;  %v3122_v25 = vsel %vm9429_vm6, %v9503_v54, 0.0 }
 0x44f   : > { %13496 = vst [vmem:[#allocation197_spill] sm:$0xff] %v9481_v21  ;;  %v3171_v21 = vsel %vm9278_vm5, %v9475_v9, 0.0 }
 0x450   : > { %3393 = vadd.xlane.f32.xlu1 %v3174_v38 }
 0x451   : > { %3391 = vadd.xlane.f32.xlu0 %v3173_v58  ;;  %v9489_v6 = vpop.xlane.xlu1 %3245 }
 0x452   : > { %13497 = vst [vmem:[#allocation198_spill] sm:$0xff] %v9489_v6  ;;  %v9491_v62 = vpop.xlane.xlu0 %3243  ;;  %v9508_v6 = vld [vmem:[%s7844_s25] ss:$0 sm:$0xff] }
 0x453   : > { %13498 = vst [vmem:[#allocation199_spill] sm:$0xff] %v9491_v62  ;;  %v13502_v62 = vld [vmem:[#allocation45_spill] sm:$0xff]  ;;  %v9526_v51 = vadd.f32 %v9508_v6, %v8787_v29 }
 0x454   : > { %3389 = vadd.xlane.f32.xlu1 %v3172_v27  ;;  %v9512_v10 = vadd.f32 %v9508_v6, %v13502_v62 }
 0x455   : > { %3387 = vadd.xlane.f32.xlu0 %v3171_v21  ;;  %v9499_v38 = vpop.xlane.xlu1 %2257  ;;  %v9520_v21 = vadd.f32 %v9508_v6, %v8794_v18  ;;  %13507 = vst [vmem:[#allocation206_spill] sm:$0xff] %v9526_v51 }
 0x456   : > { %13499 = vst [vmem:[#allocation200_spill] sm:$0xff] %v9499_v38  ;;  %v9505_v58 = vpop.xlane.xlu0 %2255  ;;  %13503 = vst [vmem:[#allocation45_spill] sm:$0xff] %v9512_v10  ;;  %v3121_v18 = vsel %vm9429_vm6, %v9512_v10, 0.0 }
 0x457   : > { %13501 = vst [vmem:[#allocation202_spill] sm:$0xff] %v9505_v58  ;;  %13505 = vst [vmem:[#allocation204_spill] sm:$0xff] %v9520_v21 }
 0x458   : > { %2185 = vmax.xlane.f32.xlu1 %v9503_v54  ;;  %v13513_v54 = vld [vmem:[#allocation48_spill] sm:$0xff] }
 0x459   : > { %2183 = vmax.xlane.f32.xlu0 %v9512_v10  ;;  %v9516_v27 = vpop.xlane.xlu1 %2253  ;;  %v9554_v10 = vadd.f32 %v9508_v6, %v13513_v54  ;;  %v13522_v54 = vld [vmem:[#allocation47_spill] sm:$0xff] }
 0x45a   : > { %13504 = vst [vmem:[#allocation203_spill] sm:$0xff] %v9516_v27  ;;  %v9522_v45 = vpop.xlane.xlu0 %2251 }
 0x45b   : > { %13506 = vst [vmem:[#allocation205_spill] sm:$0xff] %v9522_v45  ;;  %13514 = vst [vmem:[#allocation48_spill] sm:$0xff] %v9554_v10 }
 0x45c   : > { %2181 = vmax.xlane.f32.xlu1 %v9520_v21 }
 0x45d   : > { %2179 = vmax.xlane.f32.xlu0 %v9526_v51  ;;  %v9530_v62 = vpop.xlane.xlu1 %3361 }
 0x45e   : > { %13508 = vst [vmem:[#allocation207_spill] sm:$0xff] %v9530_v62  ;;  %v9532_v9 = vpop.xlane.xlu0 %3359  ;;  %v3120_v62 = vsel %vm9429_vm6, %v9520_v21, 0.0 }
 0x45f   : > { %13509 = vst [vmem:[#allocation208_spill] sm:$0xff] %v9532_v9  ;;  %v3119_v9 = vsel %vm9429_vm6, %v9526_v51, 0.0  ;;  %v13519_v51 = vld [vmem:[#allocation50_spill] sm:$0xff] }
 0x460   : > { %3289 = vadd.xlane.f32.xlu1 %v3122_v25 }
 0x461   : > { %3287 = vadd.xlane.f32.xlu0 %v3121_v18  ;;  %v9540_v29 = vpop.xlane.xlu1 %3357 }
 0x462   : > { %13510 = vst [vmem:[#allocation209_spill] sm:$0xff] %v9540_v29  ;;  %v9542_v45 = vpop.xlane.xlu0 %3355  ;;  %v13516_v29 = vld [vmem:[#allocation46_spill] sm:$0xff] }
 0x463   : > { %13511 = vst [vmem:[#allocation210_spill] sm:$0xff] %v9542_v45  ;;  %v9560_v45 = vadd.f32 %v9508_v6, %v13516_v29 }
 0x464   : > { %3285 = vadd.xlane.f32.xlu1 %v3120_v62 }
 0x465   : > { %3283 = vadd.xlane.f32.xlu0 %v3119_v9  ;;  %v9550_v25 = vpop.xlane.xlu1 %2153  ;;  %13517 = vst [vmem:[#allocation46_spill] sm:$0xff] %v9560_v45  ;;  %v9568_v9 = vadd.f32 %v9508_v6, %v13519_v51  ;;  %v3177_v51 = vsel %vm9278_vm5, %v9560_v45, 0.0 }
 0x466   : > { %13512 = vst [vmem:[#allocation211_spill] sm:$0xff] %v9550_v25  ;;  %v9556_v18 = vpop.xlane.xlu0 %2151  ;;  %v9574_v25 = vadd.f32 %v9508_v6, %v13522_v54 }
 0x467   : > { %13515 = vst [vmem:[#allocation212_spill] sm:$0xff] %v9556_v18  ;;  %13520 = vst [vmem:[#allocation50_spill] sm:$0xff] %v9568_v9 }
 0x468   : > { %2297 = vmax.xlane.f32.xlu1 %v9554_v10  ;;  %13523 = vst [vmem:[#allocation47_spill] sm:$0xff] %v9574_v25 }
 0x469   : > { %2295 = vmax.xlane.f32.xlu0 %v9560_v45  ;;  %v9564_v62 = vpop.xlane.xlu1 %2149 }
 0x46a   : > { %13518 = vst [vmem:[#allocation213_spill] sm:$0xff] %v9564_v62  ;;  %v9570_v21 = vpop.xlane.xlu0 %2147  ;;  %v3178_v62 = vsel %vm9278_vm5, %v9554_v10, 0.0  ;;  %v13529_v10 = vld [vmem:[#allocation54_spill] sm:$0xff] }
 0x46b   : > { %13521 = vst [vmem:[#allocation214_spill] sm:$0xff] %v9570_v21  ;;  %v9602_v45 = vadd.f32 %v9508_v6, %v13529_v10  ;;  %v13538_v10 = vld [vmem:[#allocation53_spill] sm:$0xff] }
 0x46c   : > { %2293 = vmax.xlane.f32.xlu1 %v9568_v9 }
 0x46d   : > { %2291 = vmax.xlane.f32.xlu0 %v9574_v25  ;;  %v9578_v29 = vpop.xlane.xlu1 %3257  ;;  %13530 = vst [vmem:[#allocation54_spill] sm:$0xff] %v9602_v45 }
 0x46e   : > { %13524 = vst [vmem:[#allocation215_spill] sm:$0xff] %v9578_v29  ;;  %v9580_v18 = vpop.xlane.xlu0 %3255  ;;  %v3176_v29 = vsel %vm9278_vm5, %v9568_v9, 0.0  ;;  %v9622_v9 = vadd.f32 %v9508_v6, %v13538_v10 }
 0x46f   : > { %13525 = vst [vmem:[#allocation216_spill] sm:$0xff] %v9580_v18  ;;  %v3175_v18 = vsel %vm9278_vm5, %v9574_v25, 0.0  ;;  %vm4591_vm5 = vcmask 982912  }
 0x470   : > { %3401 = vadd.xlane.f32.xlu1 %v3178_v62  ;;  %13539 = vst [vmem:[#allocation53_spill] sm:$0xff] %v9622_v9 }
 0x471   : > { %3399 = vadd.xlane.f32.xlu0 %v3177_v51  ;;  %v9588_v54 = vpop.xlane.xlu1 %3253 }
 0x472   : > { %13526 = vst [vmem:[#allocation217_spill] sm:$0xff] %v9588_v54  ;;  %v9590_v21 = vpop.xlane.xlu0 %3251  ;;  %v13532_v54 = vld [vmem:[#allocation52_spill] sm:$0xff] }
 0x473   : > { %13527 = vst [vmem:[#allocation218_spill] sm:$0xff] %v9590_v21  ;;  %v9608_v21 = vadd.f32 %v9508_v6, %v13532_v54 }
 0x474   : > { %3397 = vadd.xlane.f32.xlu1 %v3176_v29 }
 0x475   : > { %3395 = vadd.xlane.f32.xlu0 %v3175_v18  ;;  %v9598_v62 = vpop.xlane.xlu1 %2265  ;;  %13533 = vst [vmem:[#allocation52_spill] sm:$0xff] %v9608_v21  ;;  %v9616_v18 = vadd.f32 %v9508_v6, %v13535_v30  ;;  %v3125_v30 = vsel %vm9429_vm6, %v9608_v21, 0.0 }
 0x476   : > { %13528 = vst [vmem:[#allocation219_spill] sm:$0xff] %v9598_v62  ;;  %v9604_v51 = vpop.xlane.xlu0 %2263 }
 0x477   : > { %13531 = vst [vmem:[#allocation220_spill] sm:$0xff] %v9604_v51  ;;  %13536 = vst [vmem:[#allocation56_spill] sm:$0xff] %v9616_v18 }
 0x478   : > { %2193 = vmax.xlane.f32.xlu1 %v9602_v45 }
 0x479   : > { %2191 = vmax.xlane.f32.xlu0 %v9608_v21  ;;  %v9612_v29 = vpop.xlane.xlu1 %2261 }
 0x47a   : > { %13534 = vst [vmem:[#allocation221_spill] sm:$0xff] %v9612_v29  ;;  %v9618_v25 = vpop.xlane.xlu0 %2259  ;;  %v3126_v29 = vsel %vm9429_vm6, %v9602_v45, 0.0  ;;  %v13545_v45 = vld [vmem:[#allocation60_spill] sm:$0xff] }
 0x47b   : > { %13537 = vst [vmem:[#allocation222_spill] sm:$0xff] %v9618_v25  ;;  %v9650_v21 = vadd.f32 %v9508_v6, %v13545_v45 }
 0x47c   : > { %2189 = vmax.xlane.f32.xlu1 %v9616_v18 }
 0x47d   : > { %2187 = vmax.xlane.f32.xlu0 %v9622_v9  ;;  %v9626_v54 = vpop.xlane.xlu1 %3369  ;;  %13546 = vst [vmem:[#allocation60_spill] sm:$0xff] %v9650_v21 }
 0x47e   : > { %13540 = vst [vmem:[#allocation223_spill] sm:$0xff] %v9626_v54  ;;  %v9628_v51 = vpop.xlane.xlu0 %3367  ;;  %v3124_v54 = vsel %vm9429_vm6, %v9616_v18, 0.0 }
 0x47f   : > { %13541 = vst [vmem:[#allocation224_spill] sm:$0xff] %v9628_v51  ;;  %v3123_v51 = vsel %vm9429_vm6, %v9622_v9, 0.0  ;;  %v13551_v9 = vld [vmem:[#allocation61_spill] sm:$0xff] }
 0x480   : > { %3297 = vadd.xlane.f32.xlu1 %v3126_v29  ;;  %v9666_v18 = vadd.f32 %v9508_v6, %v13551_v9 }
 0x481   : > { %3295 = vadd.xlane.f32.xlu0 %v3125_v30  ;;  %v9636_v10 = vpop.xlane.xlu1 %3365 }
 0x482   : > { %13542 = vst [vmem:[#allocation225_spill] sm:$0xff] %v9636_v10  ;;  %v9638_v25 = vpop.xlane.xlu0 %3363  ;;  %v13548_v10 = vld [vmem:[#allocation58_spill] sm:$0xff]  ;;  %13552 = vst [vmem:[#allocation61_spill] sm:$0xff] %v9666_v18 }
 0x483   : > { %13543 = vst [vmem:[#allocation226_spill] sm:$0xff] %v9638_v25  ;;  %v9656_v25 = vadd.f32 %v9508_v6, %v13548_v10 }
 0x484   : > { %3293 = vadd.xlane.f32.xlu1 %v3124_v54 }
 0x485   : > { %3291 = vadd.xlane.f32.xlu0 %v3123_v51  ;;  %v9646_v29 = vpop.xlane.xlu1 %2161  ;;  %13549 = vst [vmem:[#allocation58_spill] sm:$0xff] %v9656_v25  ;;  %v3051_v51 = vrot.slane %v9010_v23, %v13292_v46 }
 0x486   : > { %13544 = vst [vmem:[#allocation227_spill] sm:$0xff] %v9646_v29  ;;  %v9652_v30 = vpop.xlane.xlu0 %2159 }
 0x487   : > { %13547 = vst [vmem:[#allocation228_spill] sm:$0xff] %v9652_v30  ;;  %v13554_v30 = vld [vmem:[#allocation59_spill] sm:$0xff]  ;;  %vm9679_vm7 = vcmp.eq.s32.totalorder %v8508_v17, %v3051_v51  ;;  %v9705_v17 = vadd.f32 %v9508_v6, %v8862_v41  ;;  %v9725_v41 = vadd.f32 %v9508_v6, %v8857_v55 }
 0x488   : > { %2305 = vmax.xlane.f32.xlu1 %v9650_v21  ;;  %v9672_v29 = vadd.f32 %v9508_v6, %v13554_v30  ;;  %v3182_v9 = vsel %vm9679_vm7, %v9650_v21, 0.0  ;;  %v3181_v30 = vsel %vm9679_vm7, %v9656_v25, 0.0  ;;  %v3180_v51 = vsel %vm9679_vm7, %v9666_v18, 0.0 }
 0x489   : > { %2303 = vmax.xlane.f32.xlu0 %v9656_v25  ;;  %v9660_v54 = vpop.xlane.xlu1 %2157  ;;  %13564 = vst [vmem:[#allocation237_spill] sm:$0xff] %v9705_v17  ;;  %13571 = vst [vmem:[#allocation242_spill] sm:$0xff] %v9725_v41 }
 0x48a   : > { %13550 = vst [vmem:[#allocation229_spill] sm:$0xff] %v9660_v54  ;;  %v9668_v45 = vpop.xlane.xlu0 %2155  ;;  %13555 = vst [vmem:[#allocation59_spill] sm:$0xff] %v9672_v29  ;;  %v13557_v54 = vmov 0 }
 0x48b   : > { %13553 = vst [vmem:[#allocation230_spill] sm:$0xff] %v9668_v45  ;;  %v13558_v54 = vsel %vm9679_vm7, 4294967295, %v13557_v54 }
 0x48c   : > { %2301 = vmax.xlane.f32.xlu1 %v9666_v18  ;;  %13559 = vst [vmem:[#allocation232_spill] sm:$0xff] %v13558_v54  ;;  %v3130_v18 = vsel %vm9429_vm6, %v9705_v17, 0.0 }
 0x48d   : > { %2299 = vmax.xlane.f32.xlu0 %v9672_v29  ;;  %v9676_v10 = vpop.xlane.xlu1 %3265 }
 0x48e   : > { %13556 = vst [vmem:[#allocation231_spill] sm:$0xff] %v9676_v10  ;;  %v9683_v23 = vpop.xlane.xlu0 %3263 }
 0x48f   : > { %13560 = vst [vmem:[#allocation233_spill] sm:$0xff] %v9683_v23  ;;  %v3179_v23 = vsel %vm9679_vm7, %v9672_v29, 0.0 }
 0x490   : > { %3409 = vadd.xlane.f32.xlu1 %v3182_v9 }
 0x491   : > { %3407 = vadd.xlane.f32.xlu0 %v3181_v30  ;;  %v9691_v46 = vpop.xlane.xlu1 %3261 }
 0x492   : > { %13561 = vst [vmem:[#allocation234_spill] sm:$0xff] %v9691_v46  ;;  %v9693_v10 = vpop.xlane.xlu0 %3259  ;;  %v13566_v46 = vld [vmem:[#allocation62_spill] sm:$0xff] }
 0x493   : > { %13562 = vst [vmem:[#allocation235_spill] sm:$0xff] %v9693_v10  ;;  %v9711_v10 = vadd.f32 %v9508_v6, %v13566_v46 }
 0x494   : > { %3405 = vadd.xlane.f32.xlu1 %v3180_v51 }
 0x495   : > { %3403 = vadd.xlane.f32.xlu0 %v3179_v23  ;;  %v9701_v9 = vpop.xlane.xlu1 %2273  ;;  %13567 = vst [vmem:[#allocation62_spill] sm:$0xff] %v9711_v10  ;;  %v9719_v23 = vadd.f32 %v9508_v6, %v8864_v59  ;;  %v3129_v59 = vsel %vm9429_vm6, %v9711_v10, 0.0 }
 0x496   : > { %13563 = vst [vmem:[#allocation236_spill] sm:$0xff] %v9701_v9  ;;  %v9707_v30 = vpop.xlane.xlu0 %2271 }
 0x497   : > { %13565 = vst [vmem:[#allocation238_spill] sm:$0xff] %v9707_v30  ;;  %13569 = vst [vmem:[#allocation240_spill] sm:$0xff] %v9719_v23 }
 0x498   : > { %2201 = vmax.xlane.f32.xlu1 %v9705_v17 }
 0x499   : > { %2199 = vmax.xlane.f32.xlu0 %v9711_v10  ;;  %v9715_v51 = vpop.xlane.xlu1 %2269  ;;  %v9753_v10 = vadd.f32 %v9508_v6, %v8876_v48  ;;  %v13585_v48 = vld [vmem:[#allocation64_spill] sm:$0xff] }
 0x49a   : > { %13568 = vst [vmem:[#allocation239_spill] sm:$0xff] %v9715_v51  ;;  %v9721_v54 = vpop.xlane.xlu0 %2267 }
 0x49b   : > { %13570 = vst [vmem:[#allocation241_spill] sm:$0xff] %v9721_v54  ;;  %13577 = vst [vmem:[#allocation248_spill] sm:$0xff] %v9753_v10 }
 0x49c   : > { %2197 = vmax.xlane.f32.xlu1 %v9719_v23 }
 0x49d   : > { %2195 = vmax.xlane.f32.xlu0 %v9725_v41  ;;  %v9729_v46 = vpop.xlane.xlu1 %3377 }
 0x49e   : > { %13572 = vst [vmem:[#allocation243_spill] sm:$0xff] %v9729_v46  ;;  %v9731_v29 = vpop.xlane.xlu0 %3375  ;;  %v3128_v46 = vsel %vm9429_vm6, %v9719_v23, 0.0  ;;  %v9773_v23 = vadd.f32 %v9508_v6, %v13585_v48 }
 0x49f   : > { %13573 = vst [vmem:[#allocation244_spill] sm:$0xff] %v9731_v29  ;;  %v3127_v29 = vsel %vm9429_vm6, %v9725_v41, 0.0  ;;  %vm4598_vm6 = vcmask 1048512  }
 0x4a0   : > { %3305 = vadd.xlane.f32.xlu1 %v3130_v18  ;;  %13586 = vst [vmem:[#allocation64_spill] sm:$0xff] %v9773_v23 }
 0x4a1   : > { %3303 = vadd.xlane.f32.xlu0 %v3129_v59  ;;  %v9739_v55 = vpop.xlane.xlu1 %3373 }
 0x4a2   : > { %13574 = vst [vmem:[#allocation245_spill] sm:$0xff] %v9739_v55  ;;  %v9741_v25 = vpop.xlane.xlu0 %3371  ;;  %v13579_v55 = vld [vmem:[#allocation63_spill] sm:$0xff] }
 0x4a3   : > { %13575 = vst [vmem:[#allocation246_spill] sm:$0xff] %v9741_v25  ;;  %v9759_v25 = vadd.f32 %v9508_v6, %v13579_v55 }
 0x4a4   : > { %3301 = vadd.xlane.f32.xlu1 %v3128_v46 }
 0x4a5   : > { %3299 = vadd.xlane.f32.xlu0 %v3127_v29  ;;  %v9749_v18 = vpop.xlane.xlu1 %2169  ;;  %13580 = vst [vmem:[#allocation63_spill] sm:$0xff] %v9759_v25  ;;  %v9767_v29 = vadd.f32 %v9508_v6, %v13582_v4  ;;  %v13591_v4 = vld [vmem:[#allocation68_spill] sm:$0xff] }
 0x4a6   : > { %13576 = vst [vmem:[#allocation247_spill] sm:$0xff] %v9749_v18  ;;  %v9755_v59 = vpop.xlane.xlu0 %2167  ;;  %v9787_v21 = vadd.f32 %v9508_v6, %v13591_v4 }
 0x4a7   : > { %13578 = vst [vmem:[#allocation249_spill] sm:$0xff] %v9755_v59  ;;  %13583 = vst [vmem:[#allocation66_spill] sm:$0xff] %v9767_v29 }
 0x4a8   : > { %2313 = vmax.xlane.f32.xlu1 %v9753_v10  ;;  %v13588_v10 = vld [vmem:[#allocation70_spill] sm:$0xff]  ;;  %13592 = vst [vmem:[#allocation68_spill] sm:$0xff] %v9787_v21 }
 0x4a9   : > { %2311 = vmax.xlane.f32.xlu0 %v9759_v25  ;;  %v9763_v46 = vpop.xlane.xlu1 %2165  ;;  %v9781_v25 = vadd.f32 %v9508_v6, %v13588_v10  ;;  %v13597_v10 = vld [vmem:[#allocation69_spill] sm:$0xff] }
 0x4aa   : > { %13581 = vst [vmem:[#allocation250_spill] sm:$0xff] %v9763_v46  ;;  %v9769_v41 = vpop.xlane.xlu0 %2163 }
 0x4ab   : > { %13584 = vst [vmem:[#allocation251_spill] sm:$0xff] %v9769_v41  ;;  %13589 = vst [vmem:[#allocation70_spill] sm:$0xff] %v9781_v25  ;;  %v9801_v41 = vadd.f32 %v9508_v6, %v13597_v10  ;;  %v3134_v46 = vsel %vm8585_vm2, %v9781_v25, 0.0 }
 0x4ac   : > { %2309 = vmax.xlane.f32.xlu1 %v9767_v29  ;;  %v13594_v29 = vld [vmem:[#allocation72_spill] sm:$0xff] }
 0x4ad   : > { %2307 = vmax.xlane.f32.xlu0 %v9773_v23  ;;  %v9777_v55 = vpop.xlane.xlu1 %3273  ;;  %v9795_v23 = vadd.f32 %v9508_v6, %v13594_v29  ;;  %13598 = vst [vmem:[#allocation69_spill] sm:$0xff] %v9801_v41  ;;  %v3133_v29 = vsel %vm8585_vm2, %v9787_v21, 0.0 }
 0x4ae   : > { %13587 = vst [vmem:[#allocation252_spill] sm:$0xff] %v9777_v55  ;;  %v9783_v17 = vpop.xlane.xlu0 %3271 }
 0x4af   : > { %13590 = vst [vmem:[#allocation253_spill] sm:$0xff] %v9783_v17  ;;  %13595 = vst [vmem:[#allocation72_spill] sm:$0xff] %v9795_v23 }
 0x4b0   : > { %2209 = vmax.xlane.f32.xlu1 %v9781_v25  ;;  %v13605_v25 = vld [vmem:[#allocation76_spill] sm:$0xff] }
 0x4b1   : > { %2207 = vmax.xlane.f32.xlu0 %v9787_v21  ;;  %v9791_v48 = vpop.xlane.xlu1 %3269  ;;  %v9829_v21 = vadd.f32 %v9508_v6, %v13605_v25  ;;  %v13614_v25 = vld [vmem:[#allocation75_spill] sm:$0xff] }
 0x4b2   : > { %13593 = vst [vmem:[#allocation254_spill] sm:$0xff] %v9791_v48  ;;  %v9797_v55 = vpop.xlane.xlu0 %3267  ;;  %v9919_v48 = vadd.f32 %v9508_v6, %v8946_v42  ;;  %v13641_v42 = vld [vmem:[#allocation84_spill] sm:$0xff] }
 0x4b3   : > { %13596 = vst [vmem:[#allocation255_spill] sm:$0xff] %v9797_v55  ;;  %13606 = vst [vmem:[#allocation76_spill] sm:$0xff] %v9829_v21 }
 0x4b4   : > { %2205 = vmax.xlane.f32.xlu1 %v9795_v23  ;;  %13635 = vst [vmem:[#allocation278_spill] sm:$0xff] %v9919_v48 }
 0x4b5   : > { %2203 = vmax.xlane.f32.xlu0 %v9801_v41  ;;  %v9805_v4 = vpop.xlane.xlu1 %2281 }
 0x4b6   : > { %13599 = vst [vmem:[#allocation256_spill] sm:$0xff] %v9805_v4  ;;  %v9807_v17 = vpop.xlane.xlu0 %2279  ;;  %v3132_v4 = vsel %vm8585_vm2, %v9795_v23, 0.0  ;;  %v9849_v23 = vadd.f32 %v9508_v6, %v13614_v25 }
 0x4b7   : > { %13600 = vst [vmem:[#allocation257_spill] sm:$0xff] %v9807_v17  ;;  %v3131_v17 = vsel %vm8585_vm2, %v9801_v41, 0.0  ;;  %v13611_v41 = vld [vmem:[#allocation77_spill] sm:$0xff] }
 0x4b8   : > { %3313 = vadd.xlane.f32.xlu1 %v3134_v46  ;;  %13615 = vst [vmem:[#allocation75_spill] sm:$0xff] %v9849_v23 }
 0x4b9   : > { %3311 = vadd.xlane.f32.xlu0 %v3133_v29  ;;  %v9815_v10 = vpop.xlane.xlu1 %2277 }
 0x4ba   : > { %13602 = vst [vmem:[#allocation26_spill] sm:$0xff] %v9815_v10  ;;  %v9817_v55 = vpop.xlane.xlu0 %2275  ;;  %v13608_v10 = vld [vmem:[#allocation74_spill] sm:$0xff] }
 0x4bb   : > { %13603 = vst [vmem:[#allocation258_spill] sm:$0xff] %v9817_v55  ;;  %v9835_v55 = vadd.f32 %v9508_v6, %v13608_v10 }
 0x4bc   : > { %3309 = vadd.xlane.f32.xlu1 %v3132_v4 }
 0x4bd   : > { %3307 = vadd.xlane.f32.xlu0 %v3131_v17  ;;  %v9825_v46 = vpop.xlane.xlu1 %3385  ;;  %13609 = vst [vmem:[#allocation74_spill] sm:$0xff] %v9835_v55  ;;  %v9843_v17 = vadd.f32 %v9508_v6, %v13611_v41  ;;  %v13619_v41 = vld [vmem:[#allocation78_spill] sm:$0xff] }
 0x4be   : > { %13604 = vst [vmem:[#allocation259_spill] sm:$0xff] %v9825_v46  ;;  %v9831_v29 = vpop.xlane.xlu0 %3383 }
 0x4bf   : > { %13607 = vst [vmem:[#allocation260_spill] sm:$0xff] %v9831_v29  ;;  %13612 = vst [vmem:[#allocation77_spill] sm:$0xff] %v9843_v17  ;;  %v9857_v29 = vadd.f32 %v9508_v6, %v8926_v26  ;;  %v9877_v26 = vadd.f32 %v9508_v6, %v8921_v35 }
 0x4c0   : > { %2321 = vmax.xlane.f32.xlu1 %v9829_v21 }
 0x4c1   : > { %2319 = vmax.xlane.f32.xlu0 %v9835_v55  ;;  %v9839_v4 = vpop.xlane.xlu1 %3381  ;;  %13617 = vst [vmem:[#allocation264_spill] sm:$0xff] %v9857_v29  ;;  %v9863_v55 = vadd.f32 %v9508_v6, %v13619_v41  ;;  %13624 = vst [vmem:[#allocation269_spill] sm:$0xff] %v9877_v26  ;;  %v3138_v21 = vsel %vm8585_vm2, %v9857_v29, 0.0 }
 0x4c2   : > { %13610 = vst [vmem:[#allocation261_spill] sm:$0xff] %v9839_v4  ;;  %v9845_v46 = vpop.xlane.xlu0 %3379 }
 0x4c3   : > { %13613 = vst [vmem:[#allocation262_spill] sm:$0xff] %v9845_v46  ;;  %13620 = vst [vmem:[#allocation78_spill] sm:$0xff] %v9863_v55  ;;  %v9871_v46 = vadd.f32 %v9508_v6, %v8928_v31  ;;  %v3137_v31 = vsel %vm8585_vm2, %v9863_v55, 0.0 }
 0x4c4   : > { %2317 = vmax.xlane.f32.xlu1 %v9843_v17 }
 0x4c5   : > { %2315 = vmax.xlane.f32.xlu0 %v9849_v23  ;;  %v9853_v10 = vpop.xlane.xlu1 %2177  ;;  %13622 = vst [vmem:[#allocation267_spill] sm:$0xff] %v9871_v46 }
 0x4c6   : > { %13616 = vst [vmem:[#allocation263_spill] sm:$0xff] %v9853_v10  ;;  %v9859_v4 = vpop.xlane.xlu0 %2175 }
 0x4c7   : > { %13618 = vst [vmem:[#allocation265_spill] sm:$0xff] %v9859_v4 }
 0x4c8   : > { %2217 = vmax.xlane.f32.xlu1 %v9857_v29 }
 0x4c9   : > { %2215 = vmax.xlane.f32.xlu0 %v9863_v55  ;;  %v9867_v25 = vpop.xlane.xlu1 %2173  ;;  %v9905_v55 = vadd.f32 %v9508_v6, %v8940_v56  ;;  %v9925_v56 = vadd.f32 %v9508_v6, %v8935_v8 }
 0x4ca   : > { %13621 = vst [vmem:[#allocation266_spill] sm:$0xff] %v9867_v25  ;;  %v9873_v23 = vpop.xlane.xlu0 %2171 }
 0x4cb   : > { %13623 = vst [vmem:[#allocation268_spill] sm:$0xff] %v9873_v23  ;;  %13630 = vst [vmem:[#allocation275_spill] sm:$0xff] %v9905_v55 }
 0x4cc   : > { %2213 = vmax.xlane.f32.xlu1 %v9871_v46  ;;  %13637 = vst [vmem:[#allocation280_spill] sm:$0xff] %v9925_v56 }
 0x4cd   : > { %2211 = vmax.xlane.f32.xlu0 %v9877_v26  ;;  %v9881_v41 = vpop.xlane.xlu1 %3281 }
 0x4ce   : > { %13625 = vst [vmem:[#allocation270_spill] sm:$0xff] %v9881_v41  ;;  %v9883_v17 = vpop.xlane.xlu0 %3279  ;;  %v3136_v41 = vsel %vm8585_vm2, %v9871_v46, 0.0 }
 0x4cf   : > { %13626 = vst [vmem:[#allocation271_spill] sm:$0xff] %v9883_v17  ;;  %v3135_v17 = vsel %vm8585_vm2, %v9877_v26, 0.0  ;;  %v9939_v26 = vadd.f32 %v9508_v6, %v13641_v42  ;;  %vm13092_vm2 = vcmask 786112  }
 0x4d0   : > { %3321 = vadd.xlane.f32.xlu1 %v3138_v21 }
 0x4d1   : > { %3319 = vadd.xlane.f32.xlu0 %v3137_v31  ;;  %v9891_v35 = vpop.xlane.xlu1 %3277  ;;  %13642 = vst [vmem:[#allocation84_spill] sm:$0xff] %v9939_v26 }
 0x4d2   : > { %13627 = vst [vmem:[#allocation272_spill] sm:$0xff] %v9891_v35  ;;  %v9893_v23 = vpop.xlane.xlu0 %3275  ;;  %v13632_v35 = vld [vmem:[#allocation79_spill] sm:$0xff] }
 0x4d3   : > { %13628 = vst [vmem:[#allocation273_spill] sm:$0xff] %v9893_v23  ;;  %v9911_v23 = vadd.f32 %v9508_v6, %v13632_v35 }
 0x4d4   : > { %3317 = vadd.xlane.f32.xlu1 %v3136_v41 }
 0x4d5   : > { %3315 = vadd.xlane.f32.xlu0 %v3135_v17  ;;  %v9901_v21 = vpop.xlane.xlu1 %2289  ;;  %13633 = vst [vmem:[#allocation79_spill] sm:$0xff] %v9911_v23 }
 0x4d6   : > { %13629 = vst [vmem:[#allocation274_spill] sm:$0xff] %v9901_v21  ;;  %v9907_v31 = vpop.xlane.xlu0 %2287 }
 0x4d7   : > { %13631 = vst [vmem:[#allocation276_spill] sm:$0xff] %v9907_v31 }
 0x4d8   : > { %2329 = vmax.xlane.f32.xlu1 %v9905_v55 }
 0x4d9   : > { %2327 = vmax.xlane.f32.xlu0 %v9911_v23  ;;  %v9915_v41 = vpop.xlane.xlu1 %2285  ;;  %v9933_v23 = vadd.f32 %v9508_v6, %v8967_v50  ;;  %v13647_v50 = vld [vmem:[#allocation85_spill] sm:$0xff] }
 0x4da   : > { %13634 = vst [vmem:[#allocation277_spill] sm:$0xff] %v9915_v41  ;;  %v9921_v17 = vpop.xlane.xlu0 %2283  ;;  %v9953_v46 = vadd.f32 %v9508_v6, %v13647_v50 }
 0x4db   : > { %13636 = vst [vmem:[#allocation279_spill] sm:$0xff] %v9921_v17  ;;  %13639 = vst [vmem:[#allocation282_spill] sm:$0xff] %v9933_v23  ;;  %v13674_v17 = vld [vmem:[#allocation95_spill] sm:$0xff] }
 0x4dc   : > { %2325 = vmax.xlane.f32.xlu1 %v9919_v48  ;;  %v13644_v48 = vld [vmem:[#allocation86_spill] sm:$0xff]  ;;  %13648 = vst [vmem:[#allocation85_spill] sm:$0xff] %v9953_v46 }
 0x4dd   : > { %2323 = vmax.xlane.f32.xlu0 %v9925_v56  ;;  %v9929_v35 = vpop.xlane.xlu1 %3393  ;;  %v9947_v56 = vadd.f32 %v9508_v6, %v13644_v48  ;;  %v13652_v48 = vld [vmem:[#allocation87_spill] sm:$0xff] }
 0x4de   : > { %13638 = vst [vmem:[#allocation281_spill] sm:$0xff] %v9929_v35  ;;  %v9935_v55 = vpop.xlane.xlu0 %3391 }
 0x4df   : > { %13640 = vst [vmem:[#allocation283_spill] sm:$0xff] %v9935_v55  ;;  %13645 = vst [vmem:[#allocation86_spill] sm:$0xff] %v9947_v56  ;;  %v9961_v55 = vadd.f32 %v9508_v6, %v8990_v34  ;;  %v13658_v34 = vld [vmem:[#allocation88_spill] sm:$0xff] }
 0x4e0   : > { %2337 = vmax.xlane.f32.xlu1 %v9933_v23  ;;  %v9981_v23 = vadd.f32 %v9508_v6, %v13658_v34  ;;  %v13666_v34 = vld [vmem:[#allocation94_spill] sm:$0xff] }
 0x4e1   : > { %2335 = vmax.xlane.f32.xlu0 %v9939_v26  ;;  %v9943_v8 = vpop.xlane.xlu1 %3389  ;;  %13650 = vst [vmem:[#allocation287_spill] sm:$0xff] %v9961_v55  ;;  %v9967_v26 = vadd.f32 %v9508_v6, %v13652_v48  ;;  %v13660_v48 = vld [vmem:[#allocation20_spill] sm:$0xff] }
 0x4e2   : > { %13643 = vst [vmem:[#allocation284_spill] sm:$0xff] %v9943_v8  ;;  %v9949_v35 = vpop.xlane.xlu0 %3387  ;;  %13659 = vst [vmem:[#allocation88_spill] sm:$0xff] %v9981_v23  ;;  %v2366_v29 = vsub.f32 %v13660_v48, %v9066_v32 }
 0x4e3   : > { %13646 = vst [vmem:[#allocation285_spill] sm:$0xff] %v9949_v35  ;;  %13653 = vst [vmem:[#allocation87_spill] sm:$0xff] %v9967_v26  ;;  %v13655_v35 = vld [vmem:[#allocation90_spill] sm:$0xff] }
 0x4e4   : > { %2333 = vmax.xlane.f32.xlu1 %v9947_v56  ;;  %v2497_v48 = vmul.f32 1.442695, %v2366_v29  ;;  %v10017_v29 = vadd.f32 %v9508_v6, %v13674_v17  ;;  %v13679_v17 = vld [vmem:[#allocation22_spill] sm:$0xff] }
 0x4e5   : > { %2331 = vmax.xlane.f32.xlu0 %v9953_v46  ;;  %v9957_v42 = vpop.xlane.xlu1 %2185  ;;  %v9975_v46 = vadd.f32 %v9508_v6, %v13655_v35  ;;  %v13664_v35 = vld [vmem:[#allocation18_spill] sm:$0xff] }
 0x4e6   : > { %13649 = vst [vmem:[#allocation286_spill] sm:$0xff] %v9957_v42  ;;  %v9963_v8 = vpop.xlane.xlu0 %2183  ;;  %v9999_v42 = vadd.f32 %v9508_v6, %v13666_v34  ;;  %13675 = vst [vmem:[#allocation95_spill] sm:$0xff] %v10017_v29  ;;  %7105 = vpow2.f32 %v2497_v48  ;;  %v13681_v48 = vld [vmem:[#allocation99_spill] sm:$0xff] }
 0x4e7   : > { %13651 = vst [vmem:[#allocation288_spill] sm:$0xff] %v9963_v8  ;;  %13656 = vst [vmem:[#allocation90_spill] sm:$0xff] %v9975_v46 }
 0x4e8   : > { %2345 = vmax.xlane.f32.xlu1 %v9961_v55  ;;  %v13662_v55 = vld [vmem:[#allocation96_spill] sm:$0xff]  ;;  %13667 = vst [vmem:[#allocation94_spill] sm:$0xff] %v9999_v42 }
 0x4e9   : > { %2343 = vmax.xlane.f32.xlu0 %v9967_v26  ;;  %v9971_v50 = vpop.xlane.xlu1 %2181 }
 0x4ea   : > { %13654 = vst [vmem:[#allocation289_spill] sm:$0xff] %v9971_v50  ;;  %v9977_v56 = vpop.xlane.xlu0 %2179  ;;  %v9991_v50 = vadd.f32 %v9508_v6, %v13662_v55  ;;  %v13670_v55 = vld [vmem:[#allocation97_spill] sm:$0xff] }
 0x4eb   : > { %13657 = vst [vmem:[#allocation290_spill] sm:$0xff] %v9977_v56  ;;  %v2365_v56 = vsub.f32 %v13664_v35, %v9051_v12  ;;  %v10009_v32 = vadd.f32 %v9508_v6, %v13670_v55 }
 0x4ec   : > { %2341 = vmax.xlane.f32.xlu1 %v9975_v46  ;;  %13663 = vst [vmem:[#allocation96_spill] sm:$0xff] %v9991_v50 }
 0x4ed   : > { %2339 = vmax.xlane.f32.xlu0 %v9981_v23  ;;  %v9987_v26 = vpop.xlane.xlu1 %3289  ;;  %v13668_v23 = vld [vmem:[#allocation21_spill] sm:$0xff]  ;;  %13671 = vst [vmem:[#allocation97_spill] sm:$0xff] %v10009_v32  ;;  %v2495_v35 = vmul.f32 1.442695, %v2365_v56  ;;  %v10027_v56 = vadd.f32 %v9508_v6, %v9049_v37 }
 0x4ee   : > { %13661 = vst [vmem:[#allocation291_spill] sm:$0xff] %v9987_v26  ;;  %v9995_v8 = vpop.xlane.xlu0 %3287  ;;  %v2364_v46 = vsub.f32 %v13668_v23, %v9083_v11 }
 0x4ef   : > { %13665 = vst [vmem:[#allocation292_spill] sm:$0xff] %v9995_v8  ;;  %v13672_v8 = vld [vmem:[#allocation19_spill] sm:$0xff]  ;;  %13678 = vst [vmem:[#allocation296_spill] sm:$0xff] %v10027_v56  ;;  %7107 = vpow2.f32 %v2495_v35 }
 0x4f0   : > { %2353 = vmax.xlane.f32.xlu1 %v9991_v50  ;;  %v2363_v12 = vsub.f32 %v13672_v8, %v9059_v14  ;;  %v2493_v23 = vmul.f32 1.442695, %v2364_v46  ;;  %v2421_v8 = vsub.f32 %v13679_v17, %v9093_v19  ;;  %v10035_v46 = vadd.f32 %v9508_v6, %v13681_v48  ;;  %v13687_v48 = vld [vmem:[#allocation25_spill] sm:$0xff] }
 0x4f1   : > { %2351 = vmax.xlane.f32.xlu0 %v9999_v42  ;;  %v10005_v26 = vpop.xlane.xlu1 %3285  ;;  %v2419_v19 = vsub.f32 %v13687_v48, %v9121_v40 }
 0x4f2   : > { %13669 = vst [vmem:[#allocation293_spill] sm:$0xff] %v10005_v26  ;;  %v10013_v34 = vpop.xlane.xlu0 %3283  ;;  %v13676_v26 = vld [vmem:[#allocation23_spill] sm:$0xff]  ;;  %13682 = vst [vmem:[#allocation99_spill] sm:$0xff] %v10035_v46  ;;  %7109 = vpow2.f32 %v2493_v23  ;;  %v2607_v17 = vmul.f32 1.442695, %v2421_v8  ;;  %v13689_v23 = vld [vmem:[#allocation100_spill] sm:$0xff] }
 0x4f3   : > { %13673 = vst [vmem:[#allocation294_spill] sm:$0xff] %v10013_v34  ;;  %v2422_v42 = vsub.f32 %v13676_v26, %v9101_v44  ;;  %v2491_v34 = vmul.f32 1.442695, %v2363_v12  ;;  %v13683_v44 = vld [vmem:[#allocation24_spill] sm:$0xff]  ;;  %v13685_v12 = vld [vmem:[#allocation103_spill] sm:$0xff] }
 0x4f4   : > { %2349 = vmax.xlane.f32.xlu1 %v10009_v32  ;;  %v10045_v35 = vadd.f32 %v9508_v6, %v13685_v12  ;;  %v2603_v8 = vmul.f32 1.442695, %v2419_v19  ;;  %v13693_v12 = vld [vmem:[#allocation28_spill] sm:$0xff]  ;;  %v13697_v19 = vld [vmem:[#allocation30_spill] sm:$0xff] }
 0x4f5   : > { %2347 = vmax.xlane.f32.xlu0 %v10017_v29  ;;  %v10023_v55 = vpop.xlane.xlu1 %2297  ;;  %v2609_v26 = vmul.f32 1.442695, %v2422_v42  ;;  %v2420_v29 = vsub.f32 %v13683_v44, %v9115_v47  ;;  %7111 = vpow2.f32 %v2491_v34  ;;  %v10053_v42 = vadd.f32 %v9508_v6, %v13689_v23  ;;  %v13691_v47 = vld [vmem:[#allocation27_spill] sm:$0xff]  ;;  %v7106_v6 = vpop.eup %7105 }
 0x4f6   : > { %13677 = vst [vmem:[#allocation295_spill] sm:$0xff] %v10023_v55  ;;  %v10031_v50 = vpop.xlane.xlu0 %2295  ;;  %13686 = vst [vmem:[#allocation103_spill] sm:$0xff] %v10045_v35  ;;  %v2369_v48 = vsub.f32 %v13693_v12, %v9155_v5 }
 0x4f7   : > { %13680 = vst [vmem:[#allocation297_spill] sm:$0xff] %v10031_v50  ;;  %13690 = vst [vmem:[#allocation100_spill] sm:$0xff] %v10053_v42  ;;  %7113 = vpow2.f32 %v2609_v26  ;;  %v2605_v44 = vmul.f32 1.442695, %v2420_v29  ;;  %v13695_v29 = vld [vmem:[#allocation29_spill] sm:$0xff] }
 0x4f8   : > { %2361 = vmax.xlane.f32.xlu1 %v10027_v56  ;;  %7115 = vpow2.f32 %v2607_v17  ;;  %v2367_v17 = vsub.f32 %v13697_v19, %v9169_v60 }
 0x4f9   : > { %2359 = vmax.xlane.f32.xlu0 %v10035_v46  ;;  %v10041_v37 = vpop.xlane.xlu1 %2293  ;;  %v2370_v46 = vsub.f32 %v13691_v47, %v9149_v49  ;;  %v7108_v23 = vpop.eup %7107  ;;  %7117 = vpow2.f32 %v2605_v44  ;;  %v13699_v44 = vld [vmem:[#allocation31_spill] sm:$0xff] }
 0x4fa   : > { %13684 = vst [vmem:[#allocation298_spill] sm:$0xff] %v10041_v37  ;;  %v10049_v32 = vpop.xlane.xlu0 %2291  ;;  %7119 = vpow2.f32 %v2603_v8 }
 0x4fb   : > { %13688 = vst [vmem:[#allocation299_spill] sm:$0xff] %v10049_v32  ;;  %v2505_v26 = vmul.f32 1.442695, %v2370_v46  ;;  %v2426_v46 = vsub.f32 %v13699_v44, %v9197_v61 }
 0x4fc   : > { %2357 = vmax.xlane.f32.xlu1 %v10045_v35  ;;  %v2368_v35 = vsub.f32 %v13695_v29, %v9163_v20  ;;  %v7110_v12 = vpop.eup %7109  ;;  %v13848_v20 = vld [vmem:[#allocation290_spill] sm:$0xff] }
 0x4fd   : > { %2355 = vmax.xlane.f32.xlu0 %v10053_v42  ;;  %v10059_v34 = vpop.xlane.xlu1 %3401  ;;  %7121 = vpow2.f32 %v2505_v26 }
 0x4fe   : > { %13692 = vst [vmem:[#allocation300_spill] sm:$0xff] %v10059_v34  ;;  %v10063_v40 = vpop.xlane.xlu0 %3399  ;;  %v2503_v34 = vmul.f32 1.442695, %v2369_v48  ;;  %v13701_v48 = vld [vmem:[#allocation32_spill] sm:$0xff] }
 0x4ff   : > { %13694 = vst [vmem:[#allocation301_spill] sm:$0xff] %v10063_v40  ;;  %v7112_v40 = vpop.eup %7111  ;;  %v2425_v8 = vsub.f32 %v13701_v48, %v9203_v7 }
 0x500   : > { %2753 = vadd.xlane.f32.xlu1 %v7106_v6  ;;  %v2501_v6 = vmul.f32 1.442695, %v2368_v35  ;;  %7123 = vpow2.f32 %v2503_v34  ;;  %v13703_v35 = vld [vmem:[#allocation33_spill] sm:$0xff]  ;;  %v13705_v34 = vld [vmem:[#allocation34_spill] sm:$0xff] }
 0x501   : > { %2751 = vadd.xlane.f32.xlu0 %v7108_v23  ;;  %v10067_v47 = vpop.xlane.xlu1 %3397  ;;  %v2499_v23 = vmul.f32 1.442695, %v2367_v17  ;;  %v7114_v19 = vpop.eup %7113  ;;  %v2424_v26 = vsub.f32 %v13703_v35, %v9211_v16  ;;  %v2423_v17 = vsub.f32 %v13705_v34, %v9217_v52 }
 0x502   : > { %13696 = vst [vmem:[#allocation302_spill] sm:$0xff] %v10067_v47  ;;  %v10071_v42 = vpop.xlane.xlu0 %3395  ;;  %7125 = vpow2.f32 %v2501_v6  ;;  %v13707_v6 = vld [vmem:[#allocation35_spill] sm:$0xff] }
 0x503   : > { %13698 = vst [vmem:[#allocation303_spill] sm:$0xff] %v10071_v42  ;;  %v7116_v42 = vpop.eup %7115  ;;  %7127 = vpow2.f32 %v2499_v23  ;;  %v13709_v23 = vld [vmem:[#allocation36_spill] sm:$0xff] }
 0x504   : > { %2749 = vadd.xlane.f32.xlu1 %v7110_v12  ;;  %v2617_v12 = vmul.f32 1.442695, %v2426_v46  ;;  %v7118_v48 = vpop.eup %7117  ;;  %v2374_v46 = vsub.f32 %v13707_v6, %v9245_v33 }
 0x505   : > { %2747 = vadd.xlane.f32.xlu0 %v7112_v40  ;;  %v10075_v29 = vpop.xlane.xlu1 %2193  ;;  %v2615_v40 = vmul.f32 1.442695, %v2425_v8  ;;  %v7120_v7 = vpop.eup %7119  ;;  %v2373_v8 = vsub.f32 %v13709_v23, %v9251_v24 }
 0x506   : > { %13700 = vst [vmem:[#allocation304_spill] sm:$0xff] %v10075_v29  ;;  %v10079_v47 = vpop.xlane.xlu0 %2191  ;;  %7129 = vpow2.f32 %v2617_v12  ;;  %v13711_v12 = vld [vmem:[#allocation38_spill] sm:$0xff] }
 0x507   : > { %13702 = vst [vmem:[#allocation305_spill] sm:$0xff] %v10079_v47  ;;  %7131 = vpow2.f32 %v2615_v40  ;;  %v7122_v34 = vpop.eup %7121  ;;  %v13713_v40 = vld [vmem:[#allocation40_spill] sm:$0xff] }
 0x508   : > { %2865 = vadd.xlane.f32.xlu1 %v7114_v19  ;;  %v2613_v19 = vmul.f32 1.442695, %v2424_v26  ;;  %v2372_v26 = vsub.f32 %v13711_v12, %v9259_v43 }
 0x509   : > { %2863 = vadd.xlane.f32.xlu0 %v7116_v42  ;;  %v10083_v44 = vpop.xlane.xlu1 %2189  ;;  %v2611_v42 = vmul.f32 1.442695, %v2423_v17  ;;  %v2371_v17 = vsub.f32 %v13713_v40, %v9267_v3 }
 0x50a   : > { %13704 = vst [vmem:[#allocation306_spill] sm:$0xff] %v10083_v44  ;;  %v10087_v61 = vpop.xlane.xlu0 %2187  ;;  %v7124_v52 = vpop.eup %7123  ;;  %7133 = vpow2.f32 %v2613_v19  ;;  %v13715_v19 = vld [vmem:[#allocation49_spill] sm:$0xff] }
 0x50b   : > { %13706 = vst [vmem:[#allocation307_spill] sm:$0xff] %v10087_v61  ;;  %7135 = vpow2.f32 %v2611_v42  ;;  %v13717_v42 = vld [vmem:[#allocation51_spill] sm:$0xff] }
 0x50c   : > { %2861 = vadd.xlane.f32.xlu1 %v7118_v48  ;;  %v2513_v48 = vmul.f32 1.442695, %v2374_v46  ;;  %v7126_v23 = vpop.eup %7125  ;;  %v2430_v46 = vsub.f32 %v13715_v19, %v9300_v15 }
 0x50d   : > { %2859 = vadd.xlane.f32.xlu0 %v7120_v7  ;;  %v10091_v35 = vpop.xlane.xlu1 %3297  ;;  %v2511_v7 = vmul.f32 1.442695, %v2373_v8  ;;  %v2429_v8 = vsub.f32 %v13717_v42, %v9306_v22 }
 0x50e   : > { %13708 = vst [vmem:[#allocation308_spill] sm:$0xff] %v10091_v35  ;;  %v10095_v16 = vpop.xlane.xlu0 %3295  ;;  %7137 = vpow2.f32 %v2513_v48  ;;  %v13719_v48 = vld [vmem:[#allocation55_spill] sm:$0xff] }
 0x50f   : > { %13710 = vst [vmem:[#allocation309_spill] sm:$0xff] %v10095_v16  ;;  %v7128_v16 = vpop.eup %7127  ;;  %7139 = vpow2.f32 %v2511_v7  ;;  %v13721_v7 = vld [vmem:[#allocation57_spill] sm:$0xff] }
 0x510   : > { %2761 = vadd.xlane.f32.xlu1 %v7122_v34  ;;  %v2509_v34 = vmul.f32 1.442695, %v2372_v26  ;;  %v7130_v40 = vpop.eup %7129  ;;  %v2428_v26 = vsub.f32 %v13719_v48, %v9314_v39 }
 0x511   : > { %2759 = vadd.xlane.f32.xlu0 %v7124_v52  ;;  %v10099_v6 = vpop.xlane.xlu1 %3293  ;;  %v2507_v52 = vmul.f32 1.442695, %v2371_v17  ;;  %v2427_v17 = vsub.f32 %v13721_v7, %v9320_v1 }
 0x512   : > { %13712 = vst [vmem:[#allocation310_spill] sm:$0xff] %v10099_v6  ;;  %v10103_v35 = vpop.xlane.xlu0 %3291  ;;  %7141 = vpow2.f32 %v2509_v34  ;;  %v13723_v34 = vld [vmem:[#allocation65_spill] sm:$0xff] }
 0x513   : > { %13714 = vst [vmem:[#allocation311_spill] sm:$0xff] %v10103_v35  ;;  %v7132_v35 = vpop.eup %7131  ;;  %7143 = vpow2.f32 %v2507_v52  ;;  %v13725_v52 = vld [vmem:[#allocation67_spill] sm:$0xff] }
 0x514   : > { %2757 = vadd.xlane.f32.xlu1 %v7126_v23  ;;  %v2625_v23 = vmul.f32 1.442695, %v2430_v46  ;;  %v7134_v42 = vpop.eup %7133  ;;  %v2378_v46 = vsub.f32 %v13723_v34, %v9348_v36 }
 0x515   : > { %2755 = vadd.xlane.f32.xlu0 %v7128_v16  ;;  %v10107_v12 = vpop.xlane.xlu1 %2305  ;;  %v2623_v16 = vmul.f32 1.442695, %v2429_v8  ;;  %v7136_v15 = vpop.eup %7135  ;;  %v2377_v8 = vsub.f32 %v13725_v52, %v9354_v13 }
 0x516   : > { %13716 = vst [vmem:[#allocation312_spill] sm:$0xff] %v10107_v12  ;;  %v10111_v6 = vpop.xlane.xlu0 %2303  ;;  %7145 = vpow2.f32 %v2625_v23  ;;  %v13727_v23 = vld [vmem:[#allocation71_spill] sm:$0xff] }
 0x517   : > { %13718 = vst [vmem:[#allocation313_spill] sm:$0xff] %v10111_v6  ;;  %7147 = vpow2.f32 %v2623_v16  ;;  %v13729_v16 = vld [vmem:[#allocation73_spill] sm:$0xff] }
 0x518   : > { %2873 = vadd.xlane.f32.xlu1 %v7130_v40  ;;  %v2621_v40 = vmul.f32 1.442695, %v2428_v26  ;;  %v7138_v7 = vpop.eup %7137  ;;  %v2376_v26 = vsub.f32 %v13727_v23, %v9362_v53 }
 0x519   : > { %2871 = vadd.xlane.f32.xlu0 %v7132_v35  ;;  %v10115_v19 = vpop.xlane.xlu1 %2301  ;;  %v2619_v35 = vmul.f32 1.442695, %v2427_v17  ;;  %v7140_v1 = vpop.eup %7139  ;;  %v2375_v17 = vsub.f32 %v13729_v16, %v9368_v63 }
 0x51a   : > { %13720 = vst [vmem:[#allocation314_spill] sm:$0xff] %v10115_v19  ;;  %v10119_v56 = vpop.xlane.xlu0 %2299  ;;  %7149 = vpow2.f32 %v2621_v40  ;;  %v13731_v40 = vld [vmem:[#allocation80_spill] sm:$0xff] }
 0x51b   : > { %13722 = vst [vmem:[#allocation315_spill] sm:$0xff] %v10119_v56  ;;  %7151 = vpow2.f32 %v2619_v35  ;;  %v13733_v35 = vld [vmem:[#allocation81_spill] sm:$0xff] }
 0x51c   : > { %2869 = vadd.xlane.f32.xlu1 %v7134_v42  ;;  %v2521_v42 = vmul.f32 1.442695, %v2378_v46  ;;  %v7142_v52 = vpop.eup %7141  ;;  %v2434_v46 = vsub.f32 %v13731_v40, %v9396_v0 }
 0x51d   : > { %2867 = vadd.xlane.f32.xlu0 %v7136_v15  ;;  %v10123_v48 = vpop.xlane.xlu1 %3409  ;;  %v2519_v15 = vmul.f32 1.442695, %v2377_v8  ;;  %v2433_v8 = vsub.f32 %v13733_v35, %v9402_v28 }
 0x51e   : > { %13724 = vst [vmem:[#allocation316_spill] sm:$0xff] %v10123_v48  ;;  %v10127_v39 = vpop.xlane.xlu0 %3407  ;;  %7153 = vpow2.f32 %v2521_v42  ;;  %v13735_v42 = vld [vmem:[#allocation82_spill] sm:$0xff] }
 0x51f   : > { %13726 = vst [vmem:[#allocation317_spill] sm:$0xff] %v10127_v39  ;;  %v7144_v39 = vpop.eup %7143  ;;  %7155 = vpow2.f32 %v2519_v15  ;;  %v13737_v15 = vld [vmem:[#allocation83_spill] sm:$0xff] }
 0x520   : > { %2769 = vadd.xlane.f32.xlu1 %v7138_v7  ;;  %v2517_v7 = vmul.f32 1.442695, %v2376_v26  ;;  %v7146_v16 = vpop.eup %7145  ;;  %v2432_v26 = vsub.f32 %v13735_v42, %v9410_v2 }
 0x521   : > { %2767 = vadd.xlane.f32.xlu0 %v7140_v1  ;;  %v10131_v34 = vpop.xlane.xlu1 %3405  ;;  %v2515_v1 = vmul.f32 1.442695, %v2375_v17  ;;  %v2431_v17 = vsub.f32 %v13737_v15, %v9418_v57 }
 0x522   : > { %13728 = vst [vmem:[#allocation318_spill] sm:$0xff] %v10131_v34  ;;  %v10135_v48 = vpop.xlane.xlu0 %3403  ;;  %7157 = vpow2.f32 %v2517_v7  ;;  %v13739_v7 = vld [vmem:[#allocation192_spill] sm:$0xff] }
 0x523   : > { %13730 = vst [vmem:[#allocation319_spill] sm:$0xff] %v10135_v48  ;;  %v7148_v48 = vpop.eup %7147  ;;  %7159 = vpow2.f32 %v2515_v1  ;;  %v13742_v1 = vld [vmem:[#allocation193_spill] sm:$0xff] }
 0x524   : > { %2765 = vadd.xlane.f32.xlu1 %v7142_v52  ;;  %v2633_v52 = vmul.f32 1.442695, %v2434_v46  ;;  %v7150_v35 = vpop.eup %7149  ;;  %v13740_v46 = vld [vmem:[#allocation89_spill] sm:$0xff] }
 0x525   : > { %2763 = vadd.xlane.f32.xlu0 %v7144_v39  ;;  %v10139_v23 = vpop.xlane.xlu1 %2201  ;;  %v2631_v39 = vmul.f32 1.442695, %v2433_v8  ;;  %v7152_v28 = vpop.eup %7151  ;;  %v2382_v63 = vsub.f32 %v13740_v46, %v13739_v7  ;;  %v13743_v8 = vld [vmem:[#allocation91_spill] sm:$0xff] }
 0x526   : > { %13732 = vst [vmem:[#allocation320_spill] sm:$0xff] %v10139_v23  ;;  %v10143_v34 = vpop.xlane.xlu0 %2199  ;;  %7161 = vpow2.f32 %v2633_v52  ;;  %v2381_v2 = vsub.f32 %v13743_v8, %v13742_v1  ;;  %v13745_v52 = vld [vmem:[#allocation194_spill] sm:$0xff] }
 0x527   : > { %13734 = vst [vmem:[#allocation321_spill] sm:$0xff] %v10143_v34  ;;  %7163 = vpow2.f32 %v2631_v39  ;;  %v13748_v39 = vld [vmem:[#allocation195_spill] sm:$0xff] }
 0x528   : > { %2881 = vadd.xlane.f32.xlu1 %v7146_v16  ;;  %v2629_v16 = vmul.f32 1.442695, %v2432_v26  ;;  %v7154_v15 = vpop.eup %7153  ;;  %v13746_v26 = vld [vmem:[#allocation92_spill] sm:$0xff] }
 0x529   : > { %2879 = vadd.xlane.f32.xlu0 %v7148_v48  ;;  %v10147_v40 = vpop.xlane.xlu1 %2197  ;;  %v2627_v48 = vmul.f32 1.442695, %v2431_v17  ;;  %v7156_v57 = vpop.eup %7155  ;;  %v2380_v13 = vsub.f32 %v13746_v26, %v13745_v52  ;;  %v13749_v17 = vld [vmem:[#allocation93_spill] sm:$0xff] }
 0x52a   : > { %13736 = vst [vmem:[#allocation322_spill] sm:$0xff] %v10147_v40  ;;  %v10151_v0 = vpop.xlane.xlu0 %2195  ;;  %7165 = vpow2.f32 %v2629_v16 }
 0x52b   : > { %13738 = vst [vmem:[#allocation323_spill] sm:$0xff] %v10151_v0  ;;  %7167 = vpow2.f32 %v2627_v48 }
 0x52c   : > { %2877 = vadd.xlane.f32.xlu1 %v7150_v35  ;;  %v2529_v35 = vmul.f32 1.442695, %v2382_v63  ;;  %v7158_v8 = vpop.eup %7157  ;;  %v13751_v63 = vld [vmem:[#allocation102_spill] sm:$0xff] }
 0x52d   : > { %2875 = vadd.xlane.f32.xlu0 %v7152_v28  ;;  %v10155_v42 = vpop.xlane.xlu1 %3305  ;;  %v2527_v28 = vmul.f32 1.442695, %v2381_v2  ;;  %v2438_v16 = vsub.f32 %v13751_v63, %v9499_v38  ;;  %v13753_v2 = vld [vmem:[#allocation104_spill] sm:$0xff] }
 0x52e   : > { %13741 = vst [vmem:[#allocation324_spill] sm:$0xff] %v10155_v42  ;;  %v10159_v53 = vpop.xlane.xlu0 %3303  ;;  %v2379_v42 = vsub.f32 %v13749_v17, %v13748_v39  ;;  %7169 = vpow2.f32 %v2529_v35  ;;  %v2437_v48 = vsub.f32 %v13753_v2, %v9505_v58 }
 0x52f   : > { %13744 = vst [vmem:[#allocation325_spill] sm:$0xff] %v10159_v53  ;;  %v7160_v53 = vpop.eup %7159  ;;  %7171 = vpow2.f32 %v2527_v28  ;;  %v13757_v28 = vld [vmem:[#allocation205_spill] sm:$0xff] }
 0x530   : > { %2777 = vadd.xlane.f32.xlu1 %v7154_v15  ;;  %v2525_v15 = vmul.f32 1.442695, %v2380_v13  ;;  %v7162_v17 = vpop.eup %7161  ;;  %v13755_v13 = vld [vmem:[#allocation106_spill] sm:$0xff] }
 0x531   : > { %2775 = vadd.xlane.f32.xlu0 %v7156_v57  ;;  %v10163_v46 = vpop.xlane.xlu1 %3301  ;;  %v2523_v57 = vmul.f32 1.442695, %v2379_v42  ;;  %v2436_v35 = vsub.f32 %v13755_v13, %v9516_v27  ;;  %v13758_v42 = vld [vmem:[#allocation108_spill] sm:$0xff] }
 0x532   : > { %13747 = vst [vmem:[#allocation326_spill] sm:$0xff] %v10163_v46  ;;  %v10167_v7 = vpop.xlane.xlu0 %3299  ;;  %7173 = vpow2.f32 %v2525_v15  ;;  %v2435_v38 = vsub.f32 %v13758_v42, %v13757_v28  ;;  %v13760_v15 = vld [vmem:[#allocation211_spill] sm:$0xff] }
 0x533   : > { %13750 = vst [vmem:[#allocation327_spill] sm:$0xff] %v10167_v7  ;;  %v7164_v7 = vpop.eup %7163  ;;  %7175 = vpow2.f32 %v2523_v57  ;;  %v13763_v57 = vld [vmem:[#allocation212_spill] sm:$0xff] }
 0x534   : > { %2773 = vadd.xlane.f32.xlu1 %v7158_v8  ;;  %v2641_v8 = vmul.f32 1.442695, %v2438_v16  ;;  %v7166_v2 = vpop.eup %7165  ;;  %v13761_v16 = vld [vmem:[#allocation113_spill] sm:$0xff] }
 0x535   : > { %2771 = vadd.xlane.f32.xlu0 %v7160_v53  ;;  %v10171_v26 = vpop.xlane.xlu1 %2313  ;;  %v2639_v53 = vmul.f32 1.442695, %v2437_v48  ;;  %v7168_v58 = vpop.eup %7167  ;;  %v2386_v52 = vsub.f32 %v13761_v16, %v13760_v15  ;;  %v13764_v48 = vld [vmem:[#allocation115_spill] sm:$0xff] }
 0x536   : > { %13752 = vst [vmem:[#allocation328_spill] sm:$0xff] %v10171_v26  ;;  %v10175_v46 = vpop.xlane.xlu0 %2311  ;;  %7177 = vpow2.f32 %v2641_v8  ;;  %v2385_v27 = vsub.f32 %v13764_v48, %v13763_v57  ;;  %v13766_v8 = vld [vmem:[#allocation213_spill] sm:$0xff] }
 0x537   : > { %13754 = vst [vmem:[#allocation329_spill] sm:$0xff] %v10175_v46  ;;  %7179 = vpow2.f32 %v2639_v53  ;;  %v13769_v53 = vld [vmem:[#allocation214_spill] sm:$0xff] }
 0x538   : > { %2889 = vadd.xlane.f32.xlu1 %v7162_v17  ;;  %v2637_v17 = vmul.f32 1.442695, %v2436_v35  ;;  %v7170_v42 = vpop.eup %7169  ;;  %v13767_v35 = vld [vmem:[#allocation117_spill] sm:$0xff] }
 0x539   : > { %2887 = vadd.xlane.f32.xlu0 %v7164_v7  ;;  %v10179_v63 = vpop.xlane.xlu1 %2309  ;;  %v2635_v7 = vmul.f32 1.442695, %v2435_v38  ;;  %v7172_v28 = vpop.eup %7171  ;;  %v2384_v36 = vsub.f32 %v13767_v35, %v13766_v8  ;;  %v13770_v38 = vld [vmem:[#allocation119_spill] sm:$0xff] }
 0x53a   : > { %13756 = vst [vmem:[#allocation330_spill] sm:$0xff] %v10179_v63  ;;  %v10183_v39 = vpop.xlane.xlu0 %2307  ;;  %7181 = vpow2.f32 %v2637_v17  ;;  %v2383_v15 = vsub.f32 %v13770_v38, %v13769_v53 }
 0x53b   : > { %13759 = vst [vmem:[#allocation331_spill] sm:$0xff] %v10183_v39  ;;  %7183 = vpow2.f32 %v2635_v7  ;;  %v13774_v7 = vld [vmem:[#allocation220_spill] sm:$0xff] }
 0x53c   : > { %2885 = vadd.xlane.f32.xlu1 %v7166_v2  ;;  %v2537_v2 = vmul.f32 1.442695, %v2386_v52  ;;  %v7174_v48 = vpop.eup %7173  ;;  %v13772_v52 = vld [vmem:[#allocation124_spill] sm:$0xff] }
 0x53d   : > { %2883 = vadd.xlane.f32.xlu0 %v7168_v58  ;;  %v10187_v13 = vpop.xlane.xlu1 %2209  ;;  %v2535_v58 = vmul.f32 1.442695, %v2385_v27  ;;  %v7176_v57 = vpop.eup %7175  ;;  %v2442_v17 = vsub.f32 %v13772_v52, %v9598_v62  ;;  %v13775_v27 = vld [vmem:[#allocation125_spill] sm:$0xff] }
 0x53e   : > { %13762 = vst [vmem:[#allocation332_spill] sm:$0xff] %v10187_v13  ;;  %v10191_v1 = vpop.xlane.xlu0 %2207  ;;  %7185 = vpow2.f32 %v2537_v2  ;;  %v2441_v8 = vsub.f32 %v13775_v27, %v13774_v7  ;;  %v13777_v2 = vld [vmem:[#allocation221_spill] sm:$0xff] }
 0x53f   : > { %13765 = vst [vmem:[#allocation333_spill] sm:$0xff] %v10191_v1  ;;  %7187 = vpow2.f32 %v2535_v58  ;;  %v13780_v58 = vld [vmem:[#allocation222_spill] sm:$0xff] }
 0x540   : > { %2785 = vadd.xlane.f32.xlu1 %v7170_v42  ;;  %v2533_v42 = vmul.f32 1.442695, %v2384_v36  ;;  %v7178_v38 = vpop.eup %7177  ;;  %v13778_v36 = vld [vmem:[#allocation127_spill] sm:$0xff] }
 0x541   : > { %2783 = vadd.xlane.f32.xlu0 %v7172_v28  ;;  %v10195_v16 = vpop.xlane.xlu1 %2205  ;;  %v2531_v28 = vmul.f32 1.442695, %v2383_v15  ;;  %v7180_v53 = vpop.eup %7179  ;;  %v2440_v43 = vsub.f32 %v13778_v36, %v13777_v2  ;;  %v13781_v15 = vld [vmem:[#allocation129_spill] sm:$0xff] }
 0x542   : > { %13768 = vst [vmem:[#allocation334_spill] sm:$0xff] %v10195_v16  ;;  %v10199_v22 = vpop.xlane.xlu0 %2203  ;;  %7189 = vpow2.f32 %v2533_v42  ;;  %v13783_v42 = vld [vmem:[#allocation227_spill] sm:$0xff] }
 0x543   : > { %13771 = vst [vmem:[#allocation335_spill] sm:$0xff] %v10199_v22  ;;  %7191 = vpow2.f32 %v2531_v28  ;;  %v13786_v28 = vld [vmem:[#allocation228_spill] sm:$0xff] }
 0x544   : > { %2781 = vadd.xlane.f32.xlu1 %v7174_v48  ;;  %v2649_v48 = vmul.f32 1.442695, %v2442_v17  ;;  %v7182_v27 = vpop.eup %7181  ;;  %v13784_v17 = vld [vmem:[#allocation135_spill] sm:$0xff] }
 0x545   : > { %2779 = vadd.xlane.f32.xlu0 %v7176_v57  ;;  %v10203_v35 = vpop.xlane.xlu1 %3313  ;;  %v2647_v57 = vmul.f32 1.442695, %v2441_v8  ;;  %v2390_v7 = vsub.f32 %v13784_v17, %v13783_v42  ;;  %v13787_v8 = vld [vmem:[#allocation137_spill] sm:$0xff] }
 0x546   : > { %13773 = vst [vmem:[#allocation336_spill] sm:$0xff] %v10203_v35  ;;  %v10207_v3 = vpop.xlane.xlu0 %3311  ;;  %v2439_v35 = vsub.f32 %v13781_v15, %v13780_v58  ;;  %7193 = vpow2.f32 %v2649_v48  ;;  %v13789_v48 = vld [vmem:[#allocation229_spill] sm:$0xff] }
 0x547   : > { %13776 = vst [vmem:[#allocation337_spill] sm:$0xff] %v10207_v3  ;;  %v7184_v3 = vpop.eup %7183  ;;  %7195 = vpow2.f32 %v2647_v57 }
 0x548   : > { %2897 = vadd.xlane.f32.xlu1 %v7178_v38  ;;  %v2645_v38 = vmul.f32 1.442695, %v2440_v43  ;;  %v7186_v15 = vpop.eup %7185  ;;  %v13790_v43 = vld [vmem:[#allocation139_spill] sm:$0xff] }
 0x549   : > { %2895 = vadd.xlane.f32.xlu0 %v7180_v53  ;;  %v10211_v52 = vpop.xlane.xlu1 %3309  ;;  %v2643_v53 = vmul.f32 1.442695, %v2439_v35  ;;  %v2388_v58 = vsub.f32 %v13790_v43, %v13789_v48  ;;  %v13792_v35 = vld [vmem:[#allocation141_spill] sm:$0xff] }
 0x54a   : > { %13779 = vst [vmem:[#allocation338_spill] sm:$0xff] %v10211_v52  ;;  %v10215_v62 = vpop.xlane.xlu0 %3307  ;;  %v2389_v52 = vsub.f32 %v13787_v8, %v13786_v28  ;;  %7197 = vpow2.f32 %v2645_v38  ;;  %v2387_v57 = vsub.f32 %v13792_v35, %v9668_v45 }
 0x54b   : > { %13782 = vst [vmem:[#allocation339_spill] sm:$0xff] %v10215_v62  ;;  %v7188_v62 = vpop.eup %7187  ;;  %7199 = vpow2.f32 %v2643_v53 }
 0x54c   : > { %2893 = vadd.xlane.f32.xlu1 %v7182_v27  ;;  %v2545_v27 = vmul.f32 1.442695, %v2390_v7  ;;  %v7190_v8 = vpop.eup %7189  ;;  %v13794_v7 = vld [vmem:[#allocation147_spill] sm:$0xff] }
 0x54d   : > { %2891 = vadd.xlane.f32.xlu0 %v7184_v3  ;;  %v10219_v36 = vpop.xlane.xlu1 %2321  ;;  %v2543_v3 = vmul.f32 1.442695, %v2389_v52  ;;  %v7192_v28 = vpop.eup %7191  ;;  %v2446_v38 = vsub.f32 %v13794_v7, %v9701_v9  ;;  %v13796_v52 = vld [vmem:[#allocation149_spill] sm:$0xff] }
 0x54e   : > { %13785 = vst [vmem:[#allocation340_spill] sm:$0xff] %v10219_v36  ;;  %v10223_v2 = vpop.xlane.xlu0 %2319  ;;  %7201 = vpow2.f32 %v2545_v27  ;;  %v2445_v53 = vsub.f32 %v13796_v52, %v9707_v30 }
 0x54f   : > { %13788 = vst [vmem:[#allocation341_spill] sm:$0xff] %v10223_v2  ;;  %7203 = vpow2.f32 %v2543_v3  ;;  %v13800_v3 = vld [vmem:[#allocation153_spill] sm:$0xff] }
 0x550   : > { %2793 = vadd.xlane.f32.xlu1 %v7186_v15  ;;  %v2541_v15 = vmul.f32 1.442695, %v2388_v58  ;;  %v7194_v35 = vpop.eup %7193  ;;  %v13798_v58 = vld [vmem:[#allocation151_spill] sm:$0xff] }
 0x551   : > { %2791 = vadd.xlane.f32.xlu0 %v7188_v62  ;;  %v10227_v17 = vpop.xlane.xlu1 %2317  ;;  %v2539_v62 = vmul.f32 1.442695, %v2387_v57  ;;  %v7196_v45 = vpop.eup %7195  ;;  %v2444_v27 = vsub.f32 %v13798_v58, %v9715_v51  ;;  %v2443_v57 = vsub.f32 %v13800_v3, %v9721_v54 }
 0x552   : > { %13791 = vst [vmem:[#allocation342_spill] sm:$0xff] %v10227_v17  ;;  %v10231_v42 = vpop.xlane.xlu0 %2315  ;;  %7205 = vpow2.f32 %v2541_v15  ;;  %v13802_v15 = vld [vmem:[#allocation159_spill] sm:$0xff] }
 0x553   : > { %13793 = vst [vmem:[#allocation343_spill] sm:$0xff] %v10231_v42  ;;  %7207 = vpow2.f32 %v2539_v62  ;;  %v13804_v62 = vld [vmem:[#allocation161_spill] sm:$0xff] }
 0x554   : > { %2789 = vadd.xlane.f32.xlu1 %v7190_v8  ;;  %v2657_v8 = vmul.f32 1.442695, %v2446_v38  ;;  %v7198_v52 = vpop.eup %7197  ;;  %v2394_v38 = vsub.f32 %v13802_v15, %v9749_v18 }
 0x555   : > { %2787 = vadd.xlane.f32.xlu0 %v7192_v28  ;;  %v10235_v43 = vpop.xlane.xlu1 %2217  ;;  %v2655_v28 = vmul.f32 1.442695, %v2445_v53  ;;  %v7200_v30 = vpop.eup %7199  ;;  %v2393_v53 = vsub.f32 %v13804_v62, %v9755_v59 }
 0x556   : > { %13795 = vst [vmem:[#allocation344_spill] sm:$0xff] %v10235_v43  ;;  %v10239_v48 = vpop.xlane.xlu0 %2215  ;;  %7209 = vpow2.f32 %v2657_v8  ;;  %v13806_v8 = vld [vmem:[#allocation250_spill] sm:$0xff] }
 0x557   : > { %13797 = vst [vmem:[#allocation345_spill] sm:$0xff] %v10239_v48  ;;  %7211 = vpow2.f32 %v2655_v28  ;;  %v13809_v28 = vld [vmem:[#allocation251_spill] sm:$0xff] }
 0x558   : > { %2905 = vadd.xlane.f32.xlu1 %v7194_v35  ;;  %v2653_v35 = vmul.f32 1.442695, %v2444_v27  ;;  %v7202_v3 = vpop.eup %7201  ;;  %v13807_v27 = vld [vmem:[#allocation163_spill] sm:$0xff] }
 0x559   : > { %2903 = vadd.xlane.f32.xlu0 %v7196_v45  ;;  %v10243_v7 = vpop.xlane.xlu1 %2213  ;;  %v2651_v45 = vmul.f32 1.442695, %v2443_v57  ;;  %v7204_v54 = vpop.eup %7203  ;;  %v2392_v33 = vsub.f32 %v13807_v27, %v13806_v8  ;;  %v13810_v57 = vld [vmem:[#allocation165_spill] sm:$0xff] }
 0x55a   : > { %13799 = vst [vmem:[#allocation346_spill] sm:$0xff] %v10243_v7  ;;  %v10247_v9 = vpop.xlane.xlu0 %2211  ;;  %7213 = vpow2.f32 %v2653_v35  ;;  %v13812_v35 = vld [vmem:[#allocation256_spill] sm:$0xff] }
 0x55b   : > { %13801 = vst [vmem:[#allocation347_spill] sm:$0xff] %v10247_v9  ;;  %7215 = vpow2.f32 %v2651_v45  ;;  %v13815_v45 = vld [vmem:[#allocation257_spill] sm:$0xff] }
 0x55c   : > { %2901 = vadd.xlane.f32.xlu1 %v7198_v52  ;;  %v2553_v52 = vmul.f32 1.442695, %v2394_v38  ;;  %v7206_v62 = vpop.eup %7205  ;;  %v13813_v38 = vld [vmem:[#allocation171_spill] sm:$0xff] }
 0x55d   : > { %2899 = vadd.xlane.f32.xlu0 %v7200_v30  ;;  %v10251_v58 = vpop.xlane.xlu1 %3321  ;;  %v2551_v30 = vmul.f32 1.442695, %v2393_v53  ;;  %v2450_v59 = vsub.f32 %v13813_v38, %v13812_v35  ;;  %v13816_v53 = vld [vmem:[#allocation173_spill] sm:$0xff] }
 0x55e   : > { %13803 = vst [vmem:[#allocation348_spill] sm:$0xff] %v10251_v58  ;;  %v10255_v51 = vpop.xlane.xlu0 %3319  ;;  %v2391_v58 = vsub.f32 %v13810_v57, %v13809_v28  ;;  %7217 = vpow2.f32 %v2553_v52  ;;  %v13818_v52 = vld [vmem:[#allocation26_spill] sm:$0xff] }
 0x55f   : > { %13805 = vst [vmem:[#allocation349_spill] sm:$0xff] %v10255_v51  ;;  %v7208_v51 = vpop.eup %7207  ;;  %7219 = vpow2.f32 %v2551_v30  ;;  %v13821_v30 = vld [vmem:[#allocation258_spill] sm:$0xff] }
 0x560   : > { %2801 = vadd.xlane.f32.xlu1 %v7202_v3  ;;  %v2549_v3 = vmul.f32 1.442695, %v2392_v33  ;;  %v7210_v57 = vpop.eup %7209  ;;  %v13819_v33 = vld [vmem:[#allocation175_spill] sm:$0xff] }
 0x561   : > { %2799 = vadd.xlane.f32.xlu0 %v7204_v54  ;;  %v10259_v15 = vpop.xlane.xlu1 %3317  ;;  %v2547_v54 = vmul.f32 1.442695, %v2391_v58  ;;  %v2448_v28 = vsub.f32 %v13819_v33, %v13818_v52  ;;  %v13822_v58 = vld [vmem:[#allocation177_spill] sm:$0xff] }
 0x562   : > { %13808 = vst [vmem:[#allocation350_spill] sm:$0xff] %v10259_v15  ;;  %v10263_v18 = vpop.xlane.xlu0 %3315  ;;  %v2449_v15 = vsub.f32 %v13816_v53, %v13815_v45  ;;  %7221 = vpow2.f32 %v2549_v3  ;;  %v2447_v35 = vsub.f32 %v13822_v58, %v13821_v30 }
 0x563   : > { %13811 = vst [vmem:[#allocation351_spill] sm:$0xff] %v10263_v18  ;;  %v7212_v18 = vpop.eup %7211  ;;  %7223 = vpow2.f32 %v2547_v54 }
 0x564   : > { %2797 = vadd.xlane.f32.xlu1 %v7206_v62  ;;  %v2665_v62 = vmul.f32 1.442695, %v2450_v59  ;;  %v7214_v53 = vpop.eup %7213  ;;  %v13824_v59 = vld [vmem:[#allocation183_spill] sm:$0xff] }
 0x565   : > { %2795 = vadd.xlane.f32.xlu0 %v7208_v51  ;;  %v10267_v27 = vpop.xlane.xlu1 %2329  ;;  %v2663_v51 = vmul.f32 1.442695, %v2449_v15  ;;  %v7216_v45 = vpop.eup %7215  ;;  %v2398_v3 = vsub.f32 %v13824_v59, %v9853_v10  ;;  %v13826_v15 = vld [vmem:[#allocation185_spill] sm:$0xff] }
 0x566   : > { %13814 = vst [vmem:[#allocation352_spill] sm:$0xff] %v10267_v27  ;;  %v10271_v8 = vpop.xlane.xlu0 %2327  ;;  %7225 = vpow2.f32 %v2665_v62  ;;  %v2397_v54 = vsub.f32 %v13826_v15, %v9859_v4 }
 0x567   : > { %13817 = vst [vmem:[#allocation353_spill] sm:$0xff] %v10271_v8  ;;  %7227 = vpow2.f32 %v2663_v51  ;;  %v13830_v51 = vld [vmem:[#allocation268_spill] sm:$0xff] }
 0x568   : > { %2913 = vadd.xlane.f32.xlu1 %v7210_v57  ;;  %v2661_v57 = vmul.f32 1.442695, %v2448_v28  ;;  %v7218_v58 = vpop.eup %7217  ;;  %v13828_v28 = vld [vmem:[#allocation39_spill] sm:$0xff] }
 0x569   : > { %2911 = vadd.xlane.f32.xlu0 %v7212_v18  ;;  %v10275_v38 = vpop.xlane.xlu1 %2325  ;;  %v2659_v18 = vmul.f32 1.442695, %v2447_v35  ;;  %v7220_v30 = vpop.eup %7219  ;;  %v2396_v62 = vsub.f32 %v13828_v28, %v9867_v25  ;;  %v13831_v35 = vld [vmem:[#allocation37_spill] sm:$0xff] }
 0x56a   : > { %13820 = vst [vmem:[#allocation354_spill] sm:$0xff] %v10275_v38  ;;  %v10279_v24 = vpop.xlane.xlu0 %2323  ;;  %7229 = vpow2.f32 %v2661_v57  ;;  %v2395_v10 = vsub.f32 %v13831_v35, %v13830_v51 }
 0x56b   : > { %13823 = vst [vmem:[#allocation355_spill] sm:$0xff] %v10279_v24  ;;  %7231 = vpow2.f32 %v2659_v18  ;;  %v2557_v57 = vmul.f32 1.442695, %v2396_v62  ;;  %v13840_v62 = vld [vmem:[#allocation286_spill] sm:$0xff] }
 0x56c   : > { %2909 = vadd.xlane.f32.xlu1 %v7214_v53  ;;  %v2561_v53 = vmul.f32 1.442695, %v2398_v3  ;;  %v7222_v15 = vpop.eup %7221  ;;  %v13834_v3 = vld [vmem:[#allocation41_spill] sm:$0xff]  ;;  %v2555_v18 = vmul.f32 1.442695, %v2395_v10 }
 0x56d   : > { %2907 = vadd.xlane.f32.xlu0 %v7216_v45  ;;  %v10283_v33 = vpop.xlane.xlu1 %2337  ;;  %v2559_v45 = vmul.f32 1.442695, %v2397_v54  ;;  %v7224_v4 = vpop.eup %7223  ;;  %v13836_v54 = vld [vmem:[#allocation44_spill] sm:$0xff] }
 0x56e   : > { %13825 = vst [vmem:[#allocation356_spill] sm:$0xff] %v10283_v33  ;;  %v10287_v52 = vpop.xlane.xlu0 %2335  ;;  %7233 = vpow2.f32 %v2561_v53  ;;  %v2452_v35 = vsub.f32 %v13836_v54, %v9915_v41  ;;  %v13845_v41 = vld [vmem:[#allocation289_spill] sm:$0xff] }
 0x56f   : > { %13827 = vst [vmem:[#allocation357_spill] sm:$0xff] %v10287_v52  ;;  %v13833_v52 = vld [vmem:[#allocation43_spill] sm:$0xff]  ;;  %7235 = vpow2.f32 %v2559_v45  ;;  %v13843_v45 = vld [vmem:[#allocation45_spill] sm:$0xff] }
 0x570   : > { %2809 = vadd.xlane.f32.xlu1 %v7218_v58  ;;  %v2454_v58 = vsub.f32 %v13833_v52, %v9901_v21  ;;  %v7226_v25 = vpop.eup %7225  ;;  %v13841_v21 = vld [vmem:[#allocation201_spill] sm:$0xff]  ;;  %7237 = vpow2.f32 %v2557_v57  ;;  %v2669_v54 = vmul.f32 1.442695, %v2452_v35  ;;  %v13851_v35 = vld [vmem:[#allocation46_spill] sm:$0xff] }
 0x571   : > { %2807 = vadd.xlane.f32.xlu0 %v7220_v30  ;;  %v10291_v59 = vpop.xlane.xlu1 %2333  ;;  %v2453_v30 = vsub.f32 %v13834_v3, %v9907_v31  ;;  %v2402_v33 = vsub.f32 %v13841_v21, %v13840_v62  ;;  %v13842_v3 = vld [vmem:[#allocation288_spill] sm:$0xff]  ;;  %7239 = vpow2.f32 %v2555_v18  ;;  %v13849_v21 = vld [vmem:[#allocation206_spill] sm:$0xff]  ;;  %v2457_v62 = vsub.f32 %v13851_v35, %v10031_v50 }
 0x572   : > { %13829 = vst [vmem:[#allocation358_spill] sm:$0xff] %v10291_v59  ;;  %v10295_v60 = vpop.xlane.xlu0 %2331  ;;  %v13839_v59 = vld [vmem:[#allocation42_spill] sm:$0xff]  ;;  %v2673_v53 = vmul.f32 1.442695, %v2454_v58  ;;  %v2401_v10 = vsub.f32 %v13843_v45, %v13842_v3  ;;  %v13850_v45 = vld [vmem:[#allocation48_spill] sm:$0xff] }
 0x573   : > { %13832 = vst [vmem:[#allocation359_spill] sm:$0xff] %v10295_v60  ;;  %v13838_v60 = vld [vmem:[#allocation279_spill] sm:$0xff]  ;;  %v13853_v3 = vld [vmem:[#allocation50_spill] sm:$0xff] }
 0x574   : > { %2805 = vadd.xlane.f32.xlu1 %v7222_v15  ;;  %v2451_v52 = vsub.f32 %v13839_v59, %v13838_v60  ;;  %v7228_v15 = vpop.eup %7227  ;;  %7241 = vpow2.f32 %v2673_v53  ;;  %v2567_v18 = vmul.f32 1.442695, %v2401_v10 }
 0x575   : > { %2803 = vadd.xlane.f32.xlu0 %v7224_v4  ;;  %v10301_v28 = vpop.xlane.xlu1 %2345  ;;  %v2671_v4 = vmul.f32 1.442695, %v2453_v30  ;;  %v7230_v58 = vpop.eup %7229  ;;  %v2569_v30 = vmul.f32 1.442695, %v2402_v33 }
 0x576   : > { %13835 = vst [vmem:[#allocation360_spill] sm:$0xff] %v10301_v28  ;;  %v10305_v51 = vpop.xlane.xlu0 %2343  ;;  %v2667_v60 = vmul.f32 1.442695, %v2451_v52  ;;  %v7232_v57 = vpop.eup %7231 }
 0x577   : > { %13837 = vst [vmem:[#allocation361_spill] sm:$0xff] %v10305_v51  ;;  %v13846_v51 = vld [vmem:[#allocation204_spill] sm:$0xff]  ;;  %7243 = vpow2.f32 %v2671_v4 }
 0x578   : > { %2921 = vadd.xlane.f32.xlu1 %v7226_v25  ;;  %v2400_v28 = vsub.f32 %v13846_v51, %v13845_v41  ;;  %v2399_v25 = vsub.f32 %v13849_v21, %v13848_v20  ;;  %7245 = vpow2.f32 %v2669_v54  ;;  %v2456_v21 = vsub.f32 %v13853_v3, %v10041_v37  ;;  %v7234_v33 = vpop.eup %7233  ;;  %v13857_v54 = vld [vmem:[#allocation52_spill] sm:$0xff] }
 0x579   : > { %2919 = vadd.xlane.f32.xlu0 %v7228_v15  ;;  %v10313_v31 = vpop.xlane.xlu1 %2341  ;;  %v2458_v15 = vsub.f32 %v13850_v45, %v10023_v55  ;;  %7247 = vpow2.f32 %v2667_v60  ;;  %v7236_v10 = vpop.eup %7235  ;;  %v2405_v3 = vsub.f32 %v13857_v54, %v10079_v47 }
 0x57a   : > { %13844 = vst [vmem:[#allocation362_spill] sm:$0xff] %v10313_v31  ;;  %v10317_v59 = vpop.xlane.xlu0 %2339  ;;  %v2565_v52 = vmul.f32 1.442695, %v2400_v28  ;;  %v2563_v53 = vmul.f32 1.442695, %v2399_v25  ;;  %7249 = vpow2.f32 %v2569_v30  ;;  %v13859_v25 = vld [vmem:[#allocation56_spill] sm:$0xff]  ;;  %v7238_v30 = vpop.eup %7237 }
 0x57b   : > { %13847 = vst [vmem:[#allocation363_spill] sm:$0xff] %v10317_v59  ;;  %v2681_v45 = vmul.f32 1.442695, %v2458_v15  ;;  %7251 = vpow2.f32 %v2567_v18  ;;  %v2679_v28 = vmul.f32 1.442695, %v2457_v62  ;;  %v7240_v62 = vpop.eup %7239 }
 0x57c   : > { %2917 = vadd.xlane.f32.xlu1 %v7230_v58  ;;  %v13855_v58 = vld [vmem:[#allocation47_spill] sm:$0xff]  ;;  %7253 = vpow2.f32 %v2565_v52  ;;  %v2677_v60 = vmul.f32 1.442695, %v2456_v21  ;;  %v2575_v21 = vmul.f32 1.442695, %v2405_v3  ;;  %v13863_v52 = vld [vmem:[#allocation58_spill] sm:$0xff] }
 0x57d   : > { %2915 = vadd.xlane.f32.xlu0 %v7232_v57  ;;  %v10325_v51 = vpop.xlane.xlu1 %2353  ;;  %v2455_v4 = vsub.f32 %v13855_v58, %v10049_v32  ;;  %v13856_v57 = vld [vmem:[#allocation54_spill] sm:$0xff]  ;;  %v2404_v58 = vsub.f32 %v13859_v25, %v10083_v44  ;;  %7255 = vpow2.f32 %v2563_v53  ;;  %v2461_v25 = vsub.f32 %v13863_v52, %v10111_v6 }
 0x57e   : > { %13852 = vst [vmem:[#allocation364_spill] sm:$0xff] %v10325_v51  ;;  %v10329_v41 = vpop.xlane.xlu0 %2351  ;;  %v2406_v35 = vsub.f32 %v13856_v57, %v10075_v29  ;;  %7257 = vpow2.f32 %v2681_v45  ;;  %v7242_v53 = vpop.eup %7241 }
 0x57f   : > { %13854 = vst [vmem:[#allocation365_spill] sm:$0xff] %v10329_v41  ;;  %v2675_v15 = vmul.f32 1.442695, %v2455_v4  ;;  %7259 = vpow2.f32 %v2679_v28  ;;  %v2573_v4 = vmul.f32 1.442695, %v2404_v58  ;;  %v13867_v28 = vld [vmem:[#allocation59_spill] sm:$0xff] }
 0x580   : > { %2817 = vadd.xlane.f32.xlu1 %v7234_v33  ;;  %v13861_v33 = vld [vmem:[#allocation53_spill] sm:$0xff]  ;;  %v2577_v57 = vmul.f32 1.442695, %v2406_v35  ;;  %7261 = vpow2.f32 %v2677_v60  ;;  %v2459_v3 = vsub.f32 %v13867_v28, %v10119_v56 }
 0x581   : > { %2815 = vadd.xlane.f32.xlu0 %v7236_v10  ;;  %v10337_v55 = vpop.xlane.xlu1 %2349  ;;  %v2403_v18 = vsub.f32 %v13861_v33, %v10087_v61  ;;  %v13862_v10 = vld [vmem:[#allocation60_spill] sm:$0xff]  ;;  %v13865_v33 = vld [vmem:[#allocation61_spill] sm:$0xff]  ;;  %v7244_v35 = vpop.eup %7243  ;;  %7263 = vpow2.f32 %v2675_v15  ;;  %v13884_v61 = vld [vmem:[#allocation15_spill] sm:$0xff] }
 0x582   : > { %13858 = vst [vmem:[#allocation366_spill] sm:$0xff] %v10337_v55  ;;  %v10341_v50 = vpop.xlane.xlu0 %2347  ;;  %v2462_v54 = vsub.f32 %v13862_v10, %v10107_v12  ;;  %v2460_v29 = vsub.f32 %v13865_v33, %v10115_v19  ;;  %7265 = vpow2.f32 %v2577_v57  ;;  %v2687_v12 = vmul.f32 1.442695, %v2461_v25  ;;  %v13870_v57 = vld [vmem:[#allocation237_spill] sm:$0xff]  ;;  %v13871_v25 = vld [vmem:[#allocation62_spill] sm:$0xff] }
 0x583   : > { %13860 = vst [vmem:[#allocation367_spill] sm:$0xff] %v10341_v50  ;;  %v2571_v10 = vmul.f32 1.442695, %v2403_v18  ;;  %7267 = vpow2.f32 %v2575_v21  ;;  %v2683_v18 = vmul.f32 1.442695, %v2459_v3  ;;  %v2409_v21 = vsub.f32 %v13871_v25, %v10143_v34  ;;  %v13875_v25 = vld [vmem:[#allocation63_spill] sm:$0xff] }
 0x584   : > { %2813 = vadd.xlane.f32.xlu1 %v7238_v30  ;;  %v7246_v30 = vpop.eup %7245  ;;  %v2689_v52 = vmul.f32 1.442695, %v2462_v54  ;;  %7269 = vpow2.f32 %v2573_v4  ;;  %v2685_v33 = vmul.f32 1.442695, %v2460_v29  ;;  %v2410_v54 = vsub.f32 %v13870_v57, %v10139_v23  ;;  %v13872_v29 = vld [vmem:[#allocation240_spill] sm:$0xff] }
 0x585   : > { %2811 = vadd.xlane.f32.xlu0 %v7240_v62  ;;  %v10349_v37 = vpop.xlane.xlu1 %2361  ;;  %v7248_v62 = vpop.eup %7247  ;;  %7271 = vpow2.f32 %v2571_v10  ;;  %v2408_v28 = vsub.f32 %v13872_v29, %v10147_v40  ;;  %v2465_v29 = vsub.f32 %v13875_v25, %v10175_v46  ;;  %v13876_v40 = vld [vmem:[#allocation66_spill] sm:$0xff] }
 0x586   : > { %13864 = vst [vmem:[#allocation368_spill] sm:$0xff] %v10349_v37  ;;  %v10353_v45 = vpop.xlane.xlu0 %2359  ;;  %v7250_v60 = vpop.eup %7249  ;;  %7273 = vpow2.f32 %v2689_v52  ;;  %v13873_v52 = vld [vmem:[#allocation242_spill] sm:$0xff] }
 0x587   : > { %13866 = vst [vmem:[#allocation369_spill] sm:$0xff] %v10353_v45  ;;  %v7252_v15 = vpop.eup %7251  ;;  %7275 = vpow2.f32 %v2687_v12  ;;  %v2407_v56 = vsub.f32 %v13873_v52, %v10151_v0  ;;  %v13874_v12 = vld [vmem:[#allocation248_spill] sm:$0xff]  ;;  %v2581_v52 = vmul.f32 1.442695, %v2408_v28 }
 0x588   : > { %2929 = vadd.xlane.f32.xlu1 %v7242_v53  ;;  %v7254_v19 = vpop.eup %7253  ;;  %7277 = vpow2.f32 %v2685_v33  ;;  %v2466_v23 = vsub.f32 %v13874_v12, %v10171_v26  ;;  %v2583_v33 = vmul.f32 1.442695, %v2409_v21  ;;  %v13904_v12 = vld [vmem:[#allocation109_spill] sm:$0xff] }
 0x589   : > { %2927 = vadd.xlane.f32.xlu0 %v7244_v35  ;;  %v10357_v58 = vpop.xlane.xlu1 %2357  ;;  %v7256_v53 = vpop.eup %7255  ;;  %7279 = vpow2.f32 %v2683_v18 }
 0x58a   : > { %13868 = vst [vmem:[#allocation370_spill] sm:$0xff] %v10357_v58  ;;  %v10359_v6 = vpop.xlane.xlu0 %2355  ;;  %v7258_v4 = vpop.eup %7257 }
 0x58b   : > { %13869 = vst [vmem:[#allocation371_spill] sm:$0xff] %v10359_v6  ;;  %v7260_v3 = vpop.eup %7259 }
 0x58c   : > { %2925 = vadd.xlane.f32.xlu1 %v7246_v30  ;;  %v10369_v57 = vpop.eup %7261  ;;  %v2585_v30 = vmul.f32 1.442695, %v2410_v54  ;;  %v2464_v54 = vsub.f32 %v13876_v40, %v10179_v63  ;;  %v13879_v63 = vld [vmem:[#allocation68_spill] sm:$0xff] }
 0x58d   : > { %2923 = vadd.xlane.f32.xlu0 %v7248_v62  ;;  %v2754_v35 = vpop.xlane.xlu1 %2753  ;;  %v10373_v62 = vpop.eup %7263  ;;  %v2413_v47 = vsub.f32 %v13879_v63, %v10191_v1 }
 0x58e   : > { %v2752_v10 = vpop.xlane.xlu0 %2751  ;;  %7281 = vlog2.f32 %v2754_v35  ;;  %v10377_v34 = vpop.eup %7265  ;;  %v13877_v35 = vld [vmem:[#allocation64_spill] sm:$0xff] }
 0x58f   : > { %7283 = vlog2.f32 %v2752_v10  ;;  %v10381_v26 = vpop.eup %7267  ;;  %v2463_v21 = vsub.f32 %v13877_v35, %v10183_v39  ;;  %v13878_v10 = vld [vmem:[#allocation70_spill] sm:$0xff] }
 0x590   : > { %2825 = vadd.xlane.f32.xlu1 %v7250_v60  ;;  %v2579_v60 = vmul.f32 1.442695, %v2407_v56  ;;  %v10385_v32 = vpop.eup %7269  ;;  %v2414_v46 = vsub.f32 %v13878_v10, %v10187_v13 }
 0x591   : > { %2823 = vadd.xlane.f32.xlu0 %v7252_v15  ;;  %v2750_v18 = vpop.xlane.xlu1 %2749  ;;  %v2697_v15 = vmul.f32 1.442695, %v2466_v23  ;;  %v10389_v28 = vpop.eup %7271 }
 0x592   : > { %7285 = vlog2.f32 %v2750_v18  ;;  %v2748_v0 = vpop.xlane.xlu0 %2747  ;;  %v2695_v18 = vmul.f32 1.442695, %v2465_v29  ;;  %v10395_v39 = vpop.eup %7273  ;;  %v2691_v29 = vmul.f32 1.442695, %v2463_v21 }
 0x593   : > { %7287 = vlog2.f32 %v2748_v0  ;;  %v2693_v0 = vmul.f32 1.442695, %v2464_v54 }
 0x594   : > { %7289 = vpow2.f32 %v2585_v30  ;;  %2821 = vadd.xlane.f32.xlu1 %v7254_v19  ;;  %v13881_v30 = vld [vmem:[#allocation17_spill] sm:$0xff]  ;;  %v10401_v19 = vpop.eup %7275 }
 0x595   : > { %7291 = vpow2.f32 %v2583_v33  ;;  %2819 = vadd.xlane.f32.xlu0 %v7256_v53  ;;  %v10393_v56 = vpop.xlane.xlu1 %2865  ;;  %v4509_v23 = vadd.s32 4294967272, %v13881_v30  ;;  %v4502_v44 = vadd.s32 4294967280, %v13881_v30  ;;  %v4495_v33 = vadd.s32 4294967288, %v13881_v30  ;;  %v10404_v63 = vpop.eup %7277 }
 0x596   : > { %13880 = vst [vmem:[#allocation372_spill] sm:$0xff] %v10393_v56  ;;  %7293 = vpow2.f32 %v2581_v52  ;;  %v10399_v10 = vpop.xlane.xlu0 %2863  ;;  %v2593_v53 = vmul.f32 1.442695, %v2414_v46  ;;  %v10406_v13 = vpop.eup %7279  ;;  %v2591_v52 = vmul.f32 1.442695, %v2413_v47  ;;  %v10418_v21 = vsub.s32 %v13881_v30, %v13884_v61 }
 0x597   : > { %13882 = vst [vmem:[#allocation17_spill] sm:$0xff] %v10399_v10  ;;  %7295 = vpow2.f32 %v2579_v60  ;;  %v10411_v20 = vsub.s32 %v4509_v23, %v13884_v61  ;;  %v10414_v60 = vsub.s32 %v4502_v44, %v13884_v61  ;;  %v13888_v44 = vld [vmem:[#allocation72_spill] sm:$0xff]  ;;  %v13889_v23 = vld [vmem:[#allocation69_spill] sm:$0xff] }
 0x598   : > { %7297 = vpow2.f32 %v2697_v15  ;;  %2937 = vadd.xlane.f32.xlu1 %v7258_v4  ;;  %v7282_v1 = vpop.eup %7281  ;;  %v10426_v15 = vadd.s32 4294967208, %v13881_v30 }
 0x599   : > { %7299 = vpow2.f32 %v2695_v18  ;;  %2935 = vadd.xlane.f32.xlu0 %v7260_v3  ;;  %v10408_v54 = vpop.xlane.xlu1 %2861  ;;  %13885 = vst [vmem:[#allocation15_spill] sm:$0xff] %v10411_v20  ;;  %13886 = vst [vmem:[#allocation374_spill] sm:$0xff] %v10414_v60  ;;  %v7284_v4 = vpop.eup %7283  ;;  %v3474_v47 = vmul.f32 0.6931472, %v7282_v1  ;;  %v10423_v3 = vsub.s32 %v4495_v33, %v13884_v61 }
 0x59a   : > { %13883 = vst [vmem:[#allocation373_spill] sm:$0xff] %v10408_v54  ;;  %7301 = vpow2.f32 %v2693_v0  ;;  %v10420_v46 = vpop.xlane.xlu0 %2859  ;;  %v2412_v0 = vsub.f32 %v13888_v44, %v10195_v16  ;;  %v2411_v54 = vsub.f32 %v13889_v23, %v10199_v22  ;;  %v3472_v10 = vmul.f32 0.6931472, %v7284_v4  ;;  %v13891_v16 = vld [vmem:[#allocation105_spill] sm:$0xff] }
 0x59b   : > { %13887 = vst [vmem:[#allocation375_spill] sm:$0xff] %v10420_v46  ;;  %7303 = vpow2.f32 %v2691_v29  ;;  %v13890_v29 = vld [vmem:[#allocation76_spill] sm:$0xff]  ;;  %v10442_v23 = vadd.f32 %v3474_v47, %v13891_v16  ;;  %v13893_v4 = vld [vmem:[#allocation101_spill] sm:$0xff] }
 0x59c   : > { %v7286_v18 = vpop.eup %7285  ;;  %7305 = vpow2.f32 %v2593_v53  ;;  %2933 = vadd.xlane.f32.xlu1 %v10369_v57  ;;  %v2470_v33 = vsub.f32 %v13890_v29, %v10219_v36  ;;  %v10437_v53 = vadd.s32 4294967240, %v13881_v30  ;;  %v10445_v22 = vadd.f32 %v3472_v10, %v13893_v4  ;;  %v13897_v10 = vld [vmem:[#allocation77_spill] sm:$0xff] }
 0x59d   : > { %v7288_v1 = vpop.eup %7287  ;;  %7307 = vpow2.f32 %v2591_v52  ;;  %v3470_v46 = vmul.f32 0.6931472, %v7286_v18  ;;  %2931 = vadd.xlane.f32.xlu0 %v10373_v62  ;;  %v2762_v56 = vpop.xlane.xlu1 %2761  ;;  %13892 = vst [vmem:[#allocation105_spill] sm:$0xff] %v10442_v23  ;;  %v13895_v18 = vld [vmem:[#allocation74_spill] sm:$0xff]  ;;  %v2589_v16 = vmul.f32 1.442695, %v2412_v0  ;;  %v2468_v4 = vsub.f32 %v13897_v10, %v10227_v17 }
 0x59e   : > { %v10439_v44 = vpop.eup %7289  ;;  %13894 = vst [vmem:[#allocation101_spill] sm:$0xff] %v10445_v22  ;;  %v3468_v57 = vmul.f32 0.6931472, %v7288_v1  ;;  %7309 = vlog2.f32 %v2762_v56  ;;  %v2760_v52 = vpop.xlane.xlu0 %2759  ;;  %v2469_v62 = vsub.f32 %v13895_v18, %v10223_v2  ;;  %v2587_v47 = vmul.f32 1.442695, %v2411_v54  ;;  %v13901_v0 = vld [vmem:[#allocation114_spill] sm:$0xff] }
 0x59f   : > { %v10447_v25 = vpop.eup %7291  ;;  %v10452_v36 = vadd.f32 %v3470_v46, %v9083_v11  ;;  %7311 = vlog2.f32 %v2760_v52  ;;  %v2705_v2 = vmul.f32 1.442695, %v2470_v33  ;;  %v13899_v11 = vld [vmem:[#allocation75_spill] sm:$0xff] }
 0x5a0   : > { %v10454_v29 = vpop.eup %7293  ;;  %v10459_v56 = vadd.f32 %v3468_v57, %v9059_v14  ;;  %2833 = vadd.xlane.f32.xlu1 %v10377_v34  ;;  %v2467_v46 = vsub.f32 %v13899_v11, %v10231_v42  ;;  %v13900_v52 = vld [vmem:[#allocation107_spill] sm:$0xff]  ;;  %v13902_v14 = vld [vmem:[#allocation264_spill] sm:$0xff]  ;;  %v13903_v57 = vld [vmem:[#allocation110_spill] sm:$0xff] }
 0x5a1   : > { %13896 = vst [vmem:[#allocation376_spill] sm:$0xff] %v10452_v36  ;;  %v10462_v1 = vpop.eup %7295  ;;  %v5171_v18 = vsub.f32 %v13900_v52, %v10445_v22  ;;  %v5170_v54 = vsub.f32 %v13901_v0, %v10452_v36  ;;  %2831 = vadd.xlane.f32.xlu0 %v10381_v26  ;;  %v2758_v17 = vpop.xlane.xlu1 %2757  ;;  %v2418_v34 = vsub.f32 %v13902_v14, %v10235_v43  ;;  %v2703_v22 = vmul.f32 1.442695, %v2469_v62  ;;  %v13905_v0 = vld [vmem:[#allocation78_spill] sm:$0xff] }
 0x5a2   : > { %13898 = vst [vmem:[#allocation377_spill] sm:$0xff] %v10459_v56  ;;  %v10471_v10 = vpop.eup %7297  ;;  %v5172_v33 = vsub.f32 %v13903_v57, %v10442_v23  ;;  %v5169_v42 = vsub.f32 %v13904_v12, %v10459_v56  ;;  %7313 = vlog2.f32 %v2758_v17  ;;  %v2756_v11 = vpop.xlane.xlu0 %2755  ;;  %v2417_v26 = vsub.f32 %v13905_v0, %v10239_v48  ;;  %v13906_v57 = vld [vmem:[#allocation267_spill] sm:$0xff]  ;;  %v13907_v0 = vld [vmem:[#allocation269_spill] sm:$0xff] }
 0x5a3   : > { %v10479_v52 = vpop.eup %7299  ;;  %v5432_v36 = vrot.slane %v5170_v54, %v10423_v3  ;;  %7315 = vlog2.f32 %v2756_v11  ;;  %v2701_v14 = vmul.f32 1.442695, %v2468_v4  ;;  %v2416_v43 = vsub.f32 %v13906_v57, %v10243_v7 }
 0x5a4   : > { %v10484_v35 = vpop.eup %7301  ;;  %7317 = vpow2.f32 %v2589_v16  ;;  %v5428_v12 = vrot.slane %v5169_v42, %v10418_v21  ;;  %2829 = vadd.xlane.f32.xlu1 %v10385_v32  ;;  %v2699_v62 = vmul.f32 1.442695, %v2467_v46  ;;  %v2415_v48 = vsub.f32 %v13907_v0, %v10247_v9 }
 0x5a5   : > { %v10490_v17 = vpop.eup %7303  ;;  %7319 = vpow2.f32 %v2587_v47  ;;  %v5437_v11 = vrot.slane %v5171_v18, %v10414_v60  ;;  %2827 = vadd.xlane.f32.xlu0 %v10389_v28  ;;  %v10496_v16 = vpop.xlane.xlu1 %2873  ;;  %v2601_v54 = vmul.f32 1.442695, %v2418_v34  ;;  %v5442_v42 = vrot.slane %v5172_v33, %v10411_v20 }
 0x5a6   : > { %13908 = vst [vmem:[#allocation107_spill] sm:$0xff] %v10496_v16  ;;  %v10498_v4 = vpop.eup %7305  ;;  %7321 = vpow2.f32 %v2705_v2  ;;  %v5433_v32 = vsel %vm4500_vm8, %v5432_v36, %v5428_v12  ;;  %v10502_v57 = vpop.xlane.xlu0 %2871  ;;  %v2599_v46 = vmul.f32 1.442695, %v2417_v26  ;;  %v4530_v28 = vadd.s32 4294967248, %v13881_v30  ;;  %v13910_v2 = vld [vmem:[#allocation275_spill] sm:$0xff] }
 0x5a7   : > { %13909 = vst [vmem:[#allocation114_spill] sm:$0xff] %v10502_v57  ;;  %v10504_v47 = vpop.eup %7307  ;;  %7323 = vpow2.f32 %v2703_v22  ;;  %v5438_v18 = vsel %vm4507_vm9, %v5437_v11, %v5433_v32  ;;  %v2597_v9 = vmul.f32 1.442695, %v2416_v43  ;;  %v2474_v34 = vsub.f32 %v13910_v2, %v10267_v27  ;;  %v13911_v22 = vld [vmem:[#allocation79_spill] sm:$0xff] }
 0x5a8   : > { %v7310_v0 = vpop.eup %7309  ;;  %7325 = vpow2.f32 %v2701_v14  ;;  %v10511_v33 = vsel %vm4514_vm10, %v5442_v42, %v5438_v18  ;;  %2945 = vadd.xlane.f32.xlu1 %v10395_v39  ;;  %v2595_v12 = vmul.f32 1.442695, %v2415_v48  ;;  %v2473_v26 = vsub.f32 %v13911_v22, %v10271_v8 }
 0x5a9   : > { %v7312_v36 = vpop.eup %7311  ;;  %7327 = vpow2.f32 %v2699_v62  ;;  %v10517_v11 = vadd.s32 4294967216, %v13881_v30  ;;  %2943 = vadd.xlane.f32.xlu0 %v10401_v19  ;;  %v10520_v43 = vpop.xlane.xlu1 %2869  ;;  %v10523_v14 = vadd.s32 4294967224, %v13881_v30  ;;  %v4523_v39 = vadd.s32 4294967256, %v13881_v30 }
 0x5aa   : > { %13912 = vst [vmem:[#allocation110_spill] sm:$0xff] %v10520_v43  ;;  %7329 = vpow2.f32 %v2601_v54  ;;  %v3480_v42 = vmul.f32 0.6931472, %v7312_v36  ;;  %v10526_v32 = vpop.xlane.xlu0 %2867  ;;  %v10530_v48 = vsub.s32 %v10437_v53, %v13884_v61  ;;  %v3482_v62 = vmul.f32 0.6931472, %v7310_v0  ;;  %v13915_v54 = vld [vmem:[#allocation278_spill] sm:$0xff] }
 0x5ab   : > { %13913 = vst [vmem:[#allocation109_spill] sm:$0xff] %v10526_v32  ;;  %7331 = vpow2.f32 %v2599_v46  ;;  %v4516_v18 = vadd.s32 4294967264, %v13881_v30  ;;  %v2713_v27 = vmul.f32 1.442695, %v2474_v34  ;;  %v2472_v8 = vsub.f32 %v13915_v54, %v10275_v38  ;;  %v13916_v53 = vld [vmem:[#allocation280_spill] sm:$0xff] }
 0x5ac   : > { %13914 = vst [vmem:[#allocation378_spill] sm:$0xff] %v10530_v48  ;;  %v7314_v19 = vpop.eup %7313  ;;  %7333 = vpow2.f32 %v2597_v9  ;;  %v10536_v36 = vsub.s32 %v4530_v28, %v13884_v61  ;;  %2941 = vadd.xlane.f32.xlu1 %v10404_v63  ;;  %v2711_v46 = vmul.f32 1.442695, %v2473_v26  ;;  %v2471_v23 = vsub.f32 %v13916_v53, %v10279_v24  ;;  %v13923_v32 = vld [vmem:[#allocation128_spill] sm:$0xff] }
 0x5ad   : > { %v7316_v7 = vpop.eup %7315  ;;  %7335 = vpow2.f32 %v2595_v12  ;;  %v3478_v0 = vmul.f32 0.6931472, %v7314_v19  ;;  %2939 = vadd.xlane.f32.xlu0 %v10406_v13  ;;  %v2770_v56 = vpop.xlane.xlu1 %2769  ;;  %v10545_v34 = vadd.f32 %v3480_v42, %v9155_v5  ;;  %v10548_v28 = vsub.s32 %v4523_v39, %v13884_v61  ;;  %v13919_v19 = vld [vmem:[#allocation126_spill] sm:$0xff]  ;;  %v13921_v39 = vld [vmem:[#allocation356_spill] sm:$0xff] }
 0x5ae   : > { %v10542_v9 = vpop.eup %7317  ;;  %v3476_v38 = vmul.f32 0.6931472, %v7316_v7  ;;  %7337 = vlog2.f32 %v2770_v56  ;;  %v2768_v63 = vpop.xlane.xlu0 %2767  ;;  %v10553_v26 = vadd.f32 %v3482_v62, %v9149_v49  ;;  %v10559_v13 = vsub.s32 %v4516_v18, %v13884_v61  ;;  %v13922_v7 = vld [vmem:[#allocation282_spill] sm:$0xff]  ;;  %v13926_v18 = vld [vmem:[#allocation84_spill] sm:$0xff] }
 0x5af   : > { %13917 = vst [vmem:[#allocation379_spill] sm:$0xff] %v10545_v34  ;;  %v10550_v12 = vpop.eup %7319  ;;  %v10556_v24 = vadd.f32 %v3478_v0, %v13919_v19  ;;  %7339 = vlog2.f32 %v2768_v63  ;;  %v2709_v42 = vmul.f32 1.442695, %v2472_v8  ;;  %v2478_v56 = vsub.f32 %v13922_v7, %v13921_v39  ;;  %v13925_v0 = vld [vmem:[#allocation357_spill] sm:$0xff]  ;;  %v13927_v63 = vld [vmem:[#allocation132_spill] sm:$0xff] }
 0x5b0   : > { %13918 = vst [vmem:[#allocation380_spill] sm:$0xff] %v10553_v26  ;;  %v10561_v5 = vpop.eup %7321  ;;  %7341 = vpow2.f32 %v2713_v27  ;;  %v10566_v43 = vadd.f32 %v3476_v38, %v13923_v32  ;;  %2841 = vadd.xlane.f32.xlu1 %v10439_v44  ;;  %v2707_v62 = vmul.f32 1.442695, %v2471_v23  ;;  %v2477_v19 = vsub.f32 %v13926_v18, %v13925_v0  ;;  %v13928_v38 = vld [vmem:[#allocation131_spill] sm:$0xff]  ;;  %v13929_v44 = vld [vmem:[#allocation133_spill] sm:$0xff]  ;;  %v13930_v0 = vld [vmem:[#allocation130_spill] sm:$0xff] }
 0x5b1   : > { %13920 = vst [vmem:[#allocation126_spill] sm:$0xff] %v10556_v24  ;;  %v10569_v49 = vpop.eup %7323  ;;  %7343 = vpow2.f32 %v2711_v46  ;;  %v5174_v57 = vsub.f32 %v13927_v63, %v10556_v24  ;;  %2839 = vadd.xlane.f32.xlu0 %v10447_v25  ;;  %v2766_v8 = vpop.xlane.xlu1 %2765  ;;  %v5175_v32 = vsub.f32 %v13928_v38, %v10545_v34  ;;  %v5176_v16 = vsub.f32 %v13930_v0, %v10553_v26  ;;  %v13931_v24 = vld [vmem:[#allocation358_spill] sm:$0xff]  ;;  %v13934_v0 = vld [vmem:[#allocation85_spill] sm:$0xff] }
 0x5b2   : > { %13924 = vst [vmem:[#allocation128_spill] sm:$0xff] %v10566_v43  ;;  %v10576_v27 = vpop.eup %7325  ;;  %v5173_v39 = vsub.f32 %v13929_v44, %v10566_v43  ;;  %7345 = vlog2.f32 %v2766_v8  ;;  %v2764_v23 = vpop.xlane.xlu0 %2763  ;;  %v2721_v63 = vmul.f32 1.442695, %v2478_v56  ;;  %v13932_v38 = vld [vmem:[#allocation86_spill] sm:$0xff]  ;;  %v2719_v44 = vmul.f32 1.442695, %v2477_v19 }
 0x5b3   : > { %v10582_v46 = vpop.eup %7327  ;;  %7347 = vlog2.f32 %v2764_v23  ;;  %v2476_v34 = vsub.f32 %v13932_v38, %v13931_v24  ;;  %v13933_v43 = vld [vmem:[#allocation359_spill] sm:$0xff]  ;;  %v5452_v23 = vrot.slane %v5174_v57, %v10548_v28  ;;  %v5457_v24 = vrot.slane %v5175_v32, %v10536_v36 }
 0x5b4   : > { %v10586_v25 = vpop.eup %7329  ;;  %7349 = vpow2.f32 %v2709_v42  ;;  %v5447_v18 = vrot.slane %v5173_v39, %v10559_v13  ;;  %2837 = vadd.xlane.f32.xlu1 %v10454_v29  ;;  %v2475_v26 = vsub.f32 %v13934_v0, %v13933_v43  ;;  %v10607_v19 = vsub.s32 %v10426_v15, %v13884_v61  ;;  %v13936_v0 = vld [vmem:[#allocation360_spill] sm:$0xff]  ;;  %v13937_v15 = vld [vmem:[#allocation287_spill] sm:$0xff] }
 0x5b5   : > { %v10592_v8 = vpop.eup %7331  ;;  %7351 = vpow2.f32 %v2707_v62  ;;  %2835 = vadd.xlane.f32.xlu0 %v10462_v1  ;;  %v2882_v42 = vpop.xlane.xlu1 %2881  ;;  %v5462_v57 = vrot.slane %v5176_v16, %v10530_v48  ;;  %v2717_v32 = vmul.f32 1.442695, %v2476_v34  ;;  %v4544_v7 = vadd.s32 4294967232, %v13881_v30 }
 0x5b6   : > { %v10598_v56 = vpop.eup %7333  ;;  %v5448_v39 = vsel %vm4521_vm11, %v5447_v18, %v10511_v33  ;;  %7353 = vlog2.f32 %v2882_v42  ;;  %v2880_v29 = vpop.xlane.xlu0 %2879  ;;  %13935 = vst [vmem:[#allocation132_spill] sm:$0xff] %v10607_v19  ;;  %v2715_v42 = vmul.f32 1.442695, %v2475_v26  ;;  %v2482_v38 = vsub.f32 %v13937_v15, %v13936_v0 }
 0x5b7   : > { %v10603_v62 = vpop.eup %7335  ;;  %v5453_v1 = vsel %vm4528_vm12, %v5452_v23, %v5448_v39  ;;  %7355 = vlog2.f32 %v2880_v29  ;;  %v4593_v34 = vadd.s32 4294967176, %v13881_v30  ;;  %v10628_v26 = vsub.s32 %v10517_v11, %v13884_v61 }
 0x5b8   : > { %v7338_v43 = vpop.eup %7337  ;;  %7357 = vpow2.f32 %v2721_v63  ;;  %v5458_v33 = vsel %vm4535_vm13, %v5457_v24, %v5453_v1  ;;  %2953 = vadd.xlane.f32.xlu1 %v10471_v10  ;;  %v4586_v24 = vadd.s32 4294967184, %v13881_v30  ;;  %v10632_v29 = vsub.s32 %v10523_v14, %v13884_v61  ;;  %v13940_v1 = vld [vmem:[#allocation361_spill] sm:$0xff]  ;;  %v13943_v14 = vld [vmem:[#allocation148_spill] sm:$0xff] }
 0x5b9   : > { %v7340_v18 = vpop.eup %7339  ;;  %7359 = vpow2.f32 %v2719_v44  ;;  %v10617_v16 = vsel %vm4542_vm14, %v5462_v57, %v5458_v33  ;;  %2951 = vadd.xlane.f32.xlu0 %v10479_v52  ;;  %v2878_v23 = vpop.xlane.xlu1 %2877  ;;  %13938 = vst [vmem:[#allocation131_spill] sm:$0xff] %v10628_v26  ;;  %v3490_v52 = vmul.f32 0.6931472, %v7338_v43  ;;  %v13941_v33 = vld [vmem:[#allocation87_spill] sm:$0xff]  ;;  %v2729_v15 = vmul.f32 1.442695, %v2482_v38 }
 0x5ba   : > { %v10620_v63 = vpop.eup %7341  ;;  %v3488_v39 = vmul.f32 0.6931472, %v7340_v18  ;;  %7361 = vlog2.f32 %v2878_v23  ;;  %v2876_v10 = vpop.xlane.xlu0 %2875  ;;  %13939 = vst [vmem:[#allocation133_spill] sm:$0xff] %v10632_v29  ;;  %v2481_v0 = vsub.f32 %v13941_v33, %v13940_v1  ;;  %v10637_v18 = vsub.s32 %v4544_v7, %v13884_v61  ;;  %v13947_v38 = vld [vmem:[#allocation146_spill] sm:$0xff] }
 0x5bb   : > { %v10624_v44 = vpop.eup %7343  ;;  %7363 = vlog2.f32 %v2876_v10  ;;  %v10640_v23 = vadd.s32 4294967192, %v13881_v30  ;;  %v10650_v7 = vsub.s32 %v4593_v34, %v13884_v61  ;;  %v10653_v1 = vsub.s32 %v4586_v24, %v13884_v61  ;;  %v13951_v34 = vld [vmem:[#allocation90_spill] sm:$0xff]  ;;  %v13952_v24 = vld [vmem:[#allocation88_spill] sm:$0xff] }
 0x5bc   : > { %v7346_v57 = vpop.eup %7345  ;;  %7365 = vpow2.f32 %v2717_v32  ;;  %13942 = vst [vmem:[#allocation130_spill] sm:$0xff] %v10637_v18  ;;  %2949 = vadd.xlane.f32.xlu1 %v10484_v35  ;;  %v10644_v22 = vadd.f32 %v3488_v39, %v13943_v14  ;;  %v10658_v39 = vadd.f32 %v3490_v52, %v13947_v38  ;;  %v2727_v2 = vmul.f32 1.442695, %v2481_v0 }
 0x5bd   : > { %v7348_v11 = vpop.eup %7347  ;;  %7367 = vpow2.f32 %v2715_v42  ;;  %v3486_v43 = vmul.f32 0.6931472, %v7346_v57  ;;  %2947 = vadd.xlane.f32.xlu0 %v10490_v17  ;;  %v2778_v32 = vpop.xlane.xlu1 %2777  ;;  %13945 = vst [vmem:[#allocation381_spill] sm:$0xff] %v10650_v7  ;;  %13946 = vst [vmem:[#allocation382_spill] sm:$0xff] %v10653_v1  ;;  %v13949_v57 = vld [vmem:[#allocation150_spill] sm:$0xff]  ;;  %v2480_v53 = vsub.f32 %v13951_v34, %v10313_v31 }
 0x5be   : > { %13944 = vst [vmem:[#allocation148_spill] sm:$0xff] %v10644_v22  ;;  %v10647_v10 = vpop.eup %7349  ;;  %v3484_v33 = vmul.f32 0.6931472, %v7348_v11  ;;  %7369 = vlog2.f32 %v2778_v32  ;;  %v2776_v35 = vpop.xlane.xlu0 %2775  ;;  %13948 = vst [vmem:[#allocation146_spill] sm:$0xff] %v10658_v39  ;;  %v2479_v11 = vsub.f32 %v13952_v24, %v10317_v59  ;;  %v13953_v32 = vld [vmem:[#allocation152_spill] sm:$0xff]  ;;  %v13957_v59 = vld [vmem:[#allocation157_spill] sm:$0xff] }
 0x5bf   : > { %v10655_v42 = vpop.eup %7351  ;;  %v10661_v14 = vadd.f32 %v3486_v43, %v13949_v57  ;;  %7371 = vlog2.f32 %v2776_v35  ;;  %v13955_v43 = vld [vmem:[#allocation155_spill] sm:$0xff]  ;;  %v13956_v35 = vld [vmem:[#allocation156_spill] sm:$0xff] }
 0x5c0   : > { %v7354_v17 = vpop.eup %7353  ;;  %v10668_v54 = vadd.f32 %v3484_v33, %v13953_v32  ;;  %2849 = vadd.xlane.f32.xlu1 %v10498_v4  ;;  %7373 = vpow2.f32 %v2729_v15  ;;  %v5179_v38 = vsub.f32 %v13955_v43, %v10644_v22  ;;  %v13958_v43 = vld [vmem:[#allocation154_spill] sm:$0xff] }
 0x5c1   : > { %13950 = vst [vmem:[#allocation150_spill] sm:$0xff] %v10661_v14  ;;  %v7356_v52 = vpop.eup %7355  ;;  %v5178_v57 = vsub.f32 %v13956_v35, %v10661_v14  ;;  %2847 = vadd.xlane.f32.xlu0 %v10504_v47  ;;  %v2774_v0 = vpop.xlane.xlu1 %2773  ;;  %v3602_v32 = vmul.f32 0.6931472, %v7354_v17  ;;  %v5180_v22 = vsub.f32 %v13958_v43, %v10658_v39  ;;  %v2725_v47 = vmul.f32 1.442695, %v2480_v53  ;;  %v13961_v53 = vld [vmem:[#allocation158_spill] sm:$0xff] }
 0x5c2   : > { %13954 = vst [vmem:[#allocation152_spill] sm:$0xff] %v10668_v54  ;;  %v10676_v31 = vpop.eup %7357  ;;  %v5177_v33 = vsub.f32 %v13957_v59, %v10668_v54  ;;  %v3600_v24 = vmul.f32 0.6931472, %v7356_v52  ;;  %7375 = vlog2.f32 %v2774_v0  ;;  %v2772_v4 = vpop.xlane.xlu0 %2771  ;;  %v2723_v14 = vmul.f32 1.442695, %v2479_v11  ;;  %v13959_v0 = vld [vmem:[#allocation160_spill] sm:$0xff] }
 0x5c3   : > { %v10680_v15 = vpop.eup %7359  ;;  %7377 = vlog2.f32 %v2772_v4  ;;  %v5477_v17 = vrot.slane %v5179_v38, %v10628_v26  ;;  %v5472_v52 = vrot.slane %v5178_v57, %v10632_v29  ;;  %v10697_v11 = vadd.f32 %v3602_v32, %v13961_v53  ;;  %v13966_v32 = vld [vmem:[#allocation164_spill] sm:$0xff] }
 0x5c4   : > { %v7362_v35 = vpop.eup %7361  ;;  %7379 = vpow2.f32 %v2727_v2  ;;  %v5467_v34 = vrot.slane %v5177_v33, %v10637_v18  ;;  %2845 = vadd.xlane.f32.xlu1 %v10542_v9  ;;  %v10689_v54 = vadd.f32 %v3600_v24, %v13959_v0  ;;  %v5482_v24 = vrot.slane %v5180_v22, %v10607_v19  ;;  %v13968_v22 = vld [vmem:[#allocation167_spill] sm:$0xff] }
 0x5c5   : > { %v7364_v59 = vpop.eup %7363  ;;  %v3598_v43 = vmul.f32 0.6931472, %v7362_v35  ;;  %2843 = vadd.xlane.f32.xlu0 %v10550_v12  ;;  %v2890_v4 = vpop.xlane.xlu1 %2889  ;;  %13962 = vst [vmem:[#allocation156_spill] sm:$0xff] %v10697_v11  ;;  %v13963_v35 = vld [vmem:[#allocation162_spill] sm:$0xff] }
 0x5c6   : > { %13960 = vst [vmem:[#allocation155_spill] sm:$0xff] %v10689_v54  ;;  %v10692_v39 = vpop.eup %7365  ;;  %v5468_v2 = vsel %vm4549_vm15, %v5467_v34, %v10617_v16  ;;  %v3596_v9 = vmul.f32 0.6931472, %v7364_v59  ;;  %7381 = vlog2.f32 %v2890_v4  ;;  %v2888_v38 = vpop.xlane.xlu0 %2887  ;;  %v13965_v16 = vld [vmem:[#allocation96_spill] sm:$0xff] }
 0x5c7   : > { %v10699_v33 = vpop.eup %7367  ;;  %v5473_v57 = vsel %vm4556_vm0, %v5472_v52, %v5468_v2  ;;  %v10704_v12 = vadd.f32 %v3598_v43, %v13963_v35  ;;  %7383 = vlog2.f32 %v2888_v38  ;;  %v2486_v34 = vsub.f32 %v13965_v16, %v10325_v51  ;;  %v13969_v43 = vld [vmem:[#allocation168_spill] sm:$0xff] }
 0x5c8   : > { %v7370_v0 = vpop.eup %7369  ;;  %7385 = vpow2.f32 %v2725_v47  ;;  %v10709_v53 = vadd.f32 %v3596_v9, %v13966_v32  ;;  %v5478_v59 = vsel %vm13174_vm1, %v5477_v17, %v5473_v57  ;;  %2961 = vadd.xlane.f32.xlu1 %v10561_v5  ;;  %v5235_v52 = vsub.f32 %v13968_v22, %v10689_v54  ;;  %v13970_v9 = vld [vmem:[#allocation166_spill] sm:$0xff]  ;;  %v13971_v17 = vld [vmem:[#allocation169_spill] sm:$0xff] }
 0x5c9   : > { %13964 = vst [vmem:[#allocation157_spill] sm:$0xff] %v10704_v12  ;;  %v7372_v4 = vpop.eup %7371  ;;  %v5234_v2 = vsub.f32 %v13969_v43, %v10704_v12  ;;  %v3498_v38 = vmul.f32 0.6931472, %v7370_v0  ;;  %v10718_v47 = vsel %vm13092_vm2, %v5482_v24, %v5478_v59  ;;  %2959 = vadd.xlane.f32.xlu0 %v10569_v49  ;;  %v2886_v35 = vpop.xlane.xlu1 %2885  ;;  %v5236_v32 = vsub.f32 %v13970_v9, %v10697_v11  ;;  %v13973_v9 = vld [vmem:[#allocation170_spill] sm:$0xff] }
 0x5ca   : > { %13967 = vst [vmem:[#allocation154_spill] sm:$0xff] %v10709_v53  ;;  %v5233_v5 = vsub.f32 %v13971_v17, %v10709_v53  ;;  %v3496_v57 = vmul.f32 0.6931472, %v7372_v4  ;;  %7387 = vlog2.f32 %v2886_v35  ;;  %v2884_v51 = vpop.xlane.xlu0 %2883  ;;  %v10725_v22 = vpop.eup %7373  ;;  %v10729_v0 = vsub.s32 %v10640_v23, %v13884_v61  ;;  %v13975_v4 = vld [vmem:[#allocation172_spill] sm:$0xff]  ;;  %v13977_v12 = vld [vmem:[#allocation94_spill] sm:$0xff] }
 0x5cb   : > { %v4572_v24 = vadd.s32 4294967200, %v13881_v30  ;;  %v5748_v49 = vrot.slane %v5234_v2, %v10423_v3  ;;  %7389 = vlog2.f32 %v2884_v51  ;;  %v10735_v17 = vadd.f32 %v3498_v38, %v13973_v9 }
 0x5cc   : > { %13972 = vst [vmem:[#allocation160_spill] sm:$0xff] %v10729_v0  ;;  %v7376_v59 = vpop.eup %7375  ;;  %7391 = vpow2.f32 %v2723_v14  ;;  %v5744_v43 = vrot.slane %v5233_v5, %v10418_v21  ;;  %v10738_v35 = vadd.f32 %v3496_v57, %v13975_v4  ;;  %2957 = vadd.xlane.f32.xlu1 %v10576_v27  ;;  %v2737_v23 = vmul.f32 1.442695, %v2486_v34  ;;  %v13978_v34 = vld [vmem:[#allocation97_spill] sm:$0xff] }
 0x5cd   : > { %13974 = vst [vmem:[#allocation158_spill] sm:$0xff] %v10735_v17  ;;  %v7378_v11 = vpop.eup %7377  ;;  %v2485_v54 = vsub.f32 %v13977_v12, %v10329_v41  ;;  %v5753_v2 = vrot.slane %v5235_v52, %v10414_v60  ;;  %v3494_v51 = vmul.f32 0.6931472, %v7376_v59  ;;  %2955 = vadd.xlane.f32.xlu0 %v10582_v46  ;;  %v2786_v14 = vpop.xlane.xlu1 %2785  ;;  %v5758_v38 = vrot.slane %v5236_v32, %v10411_v20  ;;  %v13979_v41 = vld [vmem:[#allocation174_spill] sm:$0xff]  ;;  %v13982_v32 = vld [vmem:[#allocation179_spill] sm:$0xff] }
 0x5ce   : > { %13976 = vst [vmem:[#allocation162_spill] sm:$0xff] %v10738_v35  ;;  %v10745_v5 = vpop.eup %7379  ;;  %v5749_v57 = vsel %vm4500_vm8, %v5748_v49, %v5744_v43  ;;  %v3492_v9 = vmul.f32 0.6931472, %v7378_v11  ;;  %7393 = vlog2.f32 %v2786_v14  ;;  %v2784_v27 = vpop.xlane.xlu0 %2783  ;;  %v2484_v4 = vsub.f32 %v13978_v34, %v10337_v55  ;;  %v13981_v59 = vld [vmem:[#allocation178_spill] sm:$0xff]  ;;  %v13983_v49 = vld [vmem:[#allocation176_spill] sm:$0xff] }
 0x5cf   : > { %v5754_v53 = vsel %vm4507_vm9, %v5753_v2, %v5749_v57  ;;  %v10753_v52 = vadd.f32 %v3494_v51, %v13979_v41  ;;  %7395 = vlog2.f32 %v2784_v27  ;;  %v5184_v12 = vsub.f32 %v13981_v59, %v10735_v17  ;;  %v13986_v51 = vld [vmem:[#allocation180_spill] sm:$0xff]  ;;  %v14220_v17 = vld [vmem:[#allocation119_spill] sm:$0xff] }
 0x5d0   : > { %v7382_v46 = vpop.eup %7381  ;;  %v5183_v16 = vsub.f32 %v13982_v32, %v10738_v35  ;;  %v10760_v11 = vadd.f32 %v3492_v9, %v13983_v49  ;;  %v10763_v43 = vsel %vm4514_vm10, %v5758_v38, %v5754_v53  ;;  %2857 = vadd.xlane.f32.xlu1 %v10586_v25  ;;  %7397 = vpow2.f32 %v2737_v23  ;;  %v13987_v53 = vld [vmem:[#allocation181_spill] sm:$0xff]  ;;  %v13995_v35 = vld [vmem:[#allocation187_spill] sm:$0xff] }
 0x5d1   : > { %13980 = vst [vmem:[#allocation164_spill] sm:$0xff] %v10753_v52  ;;  %v7384_v2 = vpop.eup %7383  ;;  %v10767_v41 = vsub.s32 %v4572_v24, %v13884_v61  ;;  %v5182_v14 = vsub.f32 %v13986_v51, %v10753_v52  ;;  %2855 = vadd.xlane.f32.xlu0 %v10592_v8  ;;  %v2782_v57 = vpop.xlane.xlu1 %2781  ;;  %v2735_v23 = vmul.f32 1.442695, %v2485_v54  ;;  %v13988_v61 = vld [vmem:[#allocation95_spill] sm:$0xff]  ;;  %v3610_v59 = vmul.f32 0.6931472, %v7382_v46 }
 0x5d2   : > { %13984 = vst [vmem:[#allocation167_spill] sm:$0xff] %v10760_v11  ;;  %v10772_v27 = vpop.eup %7385  ;;  %v5181_v38 = vsub.f32 %v13987_v53, %v10760_v11  ;;  %v3608_v9 = vmul.f32 0.6931472, %v7384_v2  ;;  %7399 = vlog2.f32 %v2782_v57  ;;  %v2780_v25 = vpop.xlane.xlu0 %2779  ;;  %v2483_v24 = vsub.f32 %v13988_v61, %v10341_v50 }
 0x5d3   : > { %13985 = vst [vmem:[#allocation168_spill] sm:$0xff] %v10767_v41  ;;  %7401 = vlog2.f32 %v2780_v25  ;;  %v2733_v49 = vmul.f32 1.442695, %v2484_v4  ;;  %v5502_v8 = vrot.slane %v5184_v12, %v10650_v7  ;;  %v5497_v51 = vrot.slane %v5183_v16, %v10653_v1  ;;  %v13989_v4 = vld [vmem:[#allocation184_spill] sm:$0xff] }
 0x5d4   : > { %v7388_v32 = vpop.eup %7387  ;;  %v5487_v55 = vrot.slane %v5181_v38, %v10767_v41  ;;  %2853 = vadd.xlane.f32.xlu1 %v10598_v56  ;;  %v5492_v2 = vrot.slane %v5182_v14, %v10729_v0  ;;  %v10789_v16 = vadd.f32 %v3608_v9, %v13989_v4  ;;  %v13991_v14 = vld [vmem:[#allocation182_spill] sm:$0xff]  ;;  %v2731_v11 = vmul.f32 1.442695, %v2483_v24  ;;  %v13999_v24 = vld [vmem:[#allocation191_spill] sm:$0xff]  ;;  %v14000_v4 = vld [vmem:[#allocation188_spill] sm:$0xff] }
 0x5d5   : > { %v7390_v53 = vpop.eup %7389  ;;  %v3606_v57 = vmul.f32 0.6931472, %v7388_v32  ;;  %2851 = vadd.xlane.f32.xlu0 %v10603_v62  ;;  %v2898_v54 = vpop.xlane.xlu1 %2897  ;;  %v10793_v32 = vadd.f32 %v3610_v59, %v13991_v14  ;;  %v13993_v62 = vld [vmem:[#allocation186_spill] sm:$0xff] }
 0x5d6   : > { %v10784_v46 = vpop.eup %7391  ;;  %v5488_v12 = vsel %vm4577_vm3, %v5487_v55, %v10718_v47  ;;  %13990 = vst [vmem:[#allocation166_spill] sm:$0xff] %v10789_v16  ;;  %v3604_v38 = vmul.f32 0.6931472, %v7390_v53  ;;  %7403 = vlog2.f32 %v2898_v54  ;;  %v2896_v56 = vpop.xlane.xlu0 %2895  ;;  %v13997_v53 = vld [vmem:[#allocation190_spill] sm:$0xff] }
 0x5d7   : > { %v5493_v25 = vsel %vm13175_vm4, %v5492_v2, %v5488_v12  ;;  %13992 = vst [vmem:[#allocation169_spill] sm:$0xff] %v10793_v32  ;;  %v10796_v50 = vadd.f32 %v3606_v57, %v13993_v62  ;;  %7405 = vlog2.f32 %v2896_v56 }
 0x5d8   : > { %v7394_v52 = vpop.eup %7393  ;;  %7407 = vpow2.f32 %v2735_v23  ;;  %v10799_v55 = vadd.f32 %v3604_v38, %v13995_v35  ;;  %2969 = vadd.xlane.f32.xlu1 %v10620_v63  ;;  %v5498_v47 = vsel %vm4591_vm5, %v5497_v51, %v5493_v25  ;;  %v13998_v23 = vld [vmem:[#allocation189_spill] sm:$0xff]  ;;  %v14002_v25 = vld [vmem:[#allocation192_spill] sm:$0xff] }
 0x5d9   : > { %13994 = vst [vmem:[#allocation170_spill] sm:$0xff] %v10796_v50  ;;  %v7396_v9 = vpop.eup %7395  ;;  %7409 = vpow2.f32 %v2733_v49  ;;  %v5238_v59 = vsub.f32 %v13997_v53, %v10796_v50  ;;  %v3506_v2 = vmul.f32 0.6931472, %v7394_v52  ;;  %2967 = vadd.xlane.f32.xlu0 %v10624_v44  ;;  %v2894_v57 = vpop.xlane.xlu1 %2893  ;;  %v10807_v54 = vsel %vm4598_vm6, %v5502_v8, %v5498_v47  ;;  %v14001_v8 = vld [vmem:[#allocation296_spill] sm:$0xff]  ;;  %v14004_v47 = vld [vmem:[#allocation99_spill] sm:$0xff] }
 0x5da   : > { %13996 = vst [vmem:[#allocation172_spill] sm:$0xff] %v10799_v55  ;;  %v5239_v35 = vsub.f32 %v13998_v23, %v10789_v16  ;;  %v5237_v63 = vsub.f32 %v13999_v24, %v10799_v55  ;;  %v3504_v12 = vmul.f32 0.6931472, %v7396_v9  ;;  %7411 = vlog2.f32 %v2894_v57  ;;  %v2892_v51 = vpop.xlane.xlu0 %2891  ;;  %v10813_v49 = vpop.eup %7397  ;;  %v14005_v57 = vld [vmem:[#allocation193_spill] sm:$0xff]  ;;  %v14015_v16 = vld [vmem:[#allocation202_spill] sm:$0xff] }
 0x5db   : > { %v5240_v52 = vsub.f32 %v14000_v4, %v10793_v32  ;;  %7413 = vlog2.f32 %v2892_v51  ;;  %v2490_v38 = vsub.f32 %v14001_v8, %v10349_v37  ;;  %v10821_v14 = vadd.f32 %v3506_v2, %v14002_v25  ;;  %v14020_v37 = vld [vmem:[#allocation205_spill] sm:$0xff] }
 0x5dc   : > { %v7400_v44 = vpop.eup %7399  ;;  %7415 = vpow2.f32 %v2731_v11  ;;  %v5763_v56 = vrot.slane %v5237_v63, %v10559_v13  ;;  %2965 = vadd.xlane.f32.xlu1 %v10647_v10  ;;  %v2489_v9 = vsub.f32 %v14004_v47, %v10353_v45  ;;  %v5768_v53 = vrot.slane %v5238_v59, %v10548_v28  ;;  %v14006_v59 = vld [vmem:[#allocation194_spill] sm:$0xff] }
 0x5dd   : > { %14003 = vst [vmem:[#allocation174_spill] sm:$0xff] %v10821_v14  ;;  %v7402_v62 = vpop.eup %7401  ;;  %v10828_v23 = vadd.f32 %v3504_v12, %v14005_v57  ;;  %v3502_v11 = vmul.f32 0.6931472, %v7400_v44  ;;  %2963 = vadd.xlane.f32.xlu0 %v10655_v42  ;;  %v2794_v24 = vpop.xlane.xlu1 %2793  ;;  %v5773_v63 = vrot.slane %v5239_v35, %v10536_v36  ;;  %v5778_v4 = vrot.slane %v5240_v52, %v10530_v48  ;;  %v14007_v42 = vld [vmem:[#allocation196_spill] sm:$0xff]  ;;  %v14008_v35 = vld [vmem:[#allocation195_spill] sm:$0xff]  ;;  %v14009_v52 = vld [vmem:[#allocation197_spill] sm:$0xff] }
 0x5de   : > { %v5764_v2 = vsel %vm4521_vm11, %v5763_v56, %v10763_v43  ;;  %v3500_v51 = vmul.f32 0.6931472, %v7402_v62  ;;  %7417 = vlog2.f32 %v2794_v24  ;;  %v2792_v10 = vpop.xlane.xlu0 %2791  ;;  %v2745_v44 = vmul.f32 1.442695, %v2490_v38 }
 0x5df   : > { %v5769_v25 = vsel %vm4528_vm12, %v5768_v53, %v5764_v2  ;;  %v10837_v32 = vadd.f32 %v3502_v11, %v14006_v59  ;;  %7419 = vlog2.f32 %v2792_v10  ;;  %v5188_v57 = vsub.f32 %v14007_v42, %v10821_v14  ;;  %v14010_v53 = vld [vmem:[#allocation198_spill] sm:$0xff] }
 0x5e0   : > { %v7404_v12 = vpop.eup %7403  ;;  %v10842_v50 = vadd.f32 %v3500_v51, %v14008_v35  ;;  %v5774_v43 = vsel %vm4535_vm13, %v5773_v63, %v5769_v25  ;;  %2977 = vadd.xlane.f32.xlu1 %v10676_v31  ;;  %v5187_v62 = vsub.f32 %v14009_v52, %v10828_v23  ;;  %v14011_v63 = vld [vmem:[#allocation199_spill] sm:$0xff] }
 0x5e1   : > { %v7406_v56 = vpop.eup %7405  ;;  %v5186_v11 = vsub.f32 %v14010_v53, %v10837_v32  ;;  %v3618_v24 = vmul.f32 0.6931472, %v7404_v12  ;;  %v10851_v38 = vsel %vm4542_vm14, %v5778_v4, %v5774_v43  ;;  %2975 = vadd.xlane.f32.xlu0 %v10680_v15  ;;  %v2790_v2 = vpop.xlane.xlu1 %2789  ;;  %v2743_v4 = vmul.f32 1.442695, %v2489_v9  ;;  %v14012_v35 = vld [vmem:[#allocation103_spill] sm:$0xff] }
 0x5e2   : > { %v10854_v51 = vpop.eup %7407  ;;  %v5185_v10 = vsub.f32 %v14011_v63, %v10842_v50  ;;  %v3616_v31 = vmul.f32 0.6931472, %v7406_v56  ;;  %7421 = vlog2.f32 %v2790_v2  ;;  %v2788_v25 = vpop.xlane.xlu0 %2787  ;;  %v2488_v15 = vsub.f32 %v14012_v35, %v10357_v58  ;;  %v14013_v2 = vld [vmem:[#allocation200_spill] sm:$0xff] }
 0x5e3   : > { %v10858_v59 = vpop.eup %7409  ;;  %v5511_v42 = vrot.slane %v5186_v11, %v10423_v3  ;;  %7423 = vlog2.f32 %v2788_v25  ;;  %v5521_v56 = vrot.slane %v5188_v57, %v10411_v20  ;;  %v5516_v53 = vrot.slane %v5187_v62, %v10414_v60  ;;  %v14017_v62 = vld [vmem:[#allocation203_spill] sm:$0xff] }
 0x5e4   : > { %v7412_v12 = vpop.eup %7411  ;;  %7425 = vpow2.f32 %v2745_v44  ;;  %v5507_v43 = vrot.slane %v5185_v10, %v10418_v21  ;;  %2973 = vadd.xlane.f32.xlu1 %v10692_v39  ;;  %v10868_v63 = vadd.f32 %v3618_v24, %v14013_v2  ;;  %v10875_v10 = vadd.f32 %v3616_v31, %v14015_v16 }
 0x5e5   : > { %v7414_v52 = vpop.eup %7413  ;;  %v3614_v11 = vmul.f32 0.6931472, %v7412_v12  ;;  %2971 = vadd.xlane.f32.xlu0 %v10699_v33  ;;  %v2906_v44 = vpop.xlane.xlu1 %2905  ;;  %v2741_v12 = vmul.f32 1.442695, %v2488_v15  ;;  %v14019_v33 = vld [vmem:[#allocation100_spill] sm:$0xff] }
 0x5e6   : > { %14014 = vst [vmem:[#allocation178_spill] sm:$0xff] %v10868_v63  ;;  %v10871_v9 = vpop.eup %7415  ;;  %v5512_v25 = vsel %vm4500_vm8, %v5511_v42, %v5507_v43  ;;  %14016 = vst [vmem:[#allocation179_spill] sm:$0xff] %v10875_v10  ;;  %v3612_v39 = vmul.f32 0.6931472, %v7414_v52  ;;  %7427 = vlog2.f32 %v2906_v44  ;;  %v2904_v55 = vpop.xlane.xlu0 %2903  ;;  %v2487_v2 = vsub.f32 %v14019_v33, %v10359_v6  ;;  %v14022_v42 = vld [vmem:[#allocation207_spill] sm:$0xff] }
 0x5e7   : > { %v5517_v57 = vsel %vm4507_vm9, %v5516_v53, %v5512_v25  ;;  %v10879_v45 = vadd.f32 %v3614_v11, %v14017_v62  ;;  %7429 = vlog2.f32 %v2904_v55  ;;  %v5244_v43 = vsub.f32 %v14022_v42, %v10868_v63  ;;  %v14023_v55 = vld [vmem:[#allocation209_spill] sm:$0xff]  ;;  %v14024_v53 = vld [vmem:[#allocation208_spill] sm:$0xff]  ;;  %v14025_v11 = vld [vmem:[#allocation210_spill] sm:$0xff] }
 0x5e8   : > { %v7418_v24 = vpop.eup %7417  ;;  %v10884_v58 = vadd.f32 %v3612_v39, %v14020_v37  ;;  %v10887_v16 = vsel %vm4514_vm10, %v5521_v56, %v5517_v57  ;;  %2985 = vadd.xlane.f32.xlu1 %v10725_v22  ;;  %7431 = vpow2.f32 %v2743_v4  ;;  %v5243_v37 = vsub.f32 %v14024_v53, %v10875_v10  ;;  %v14071_v10 = vld [vmem:[#allocation241_spill] sm:$0xff] }
 0x5e9   : > { %14018 = vst [vmem:[#allocation176_spill] sm:$0xff] %v10879_v45  ;;  %v7420_v31 = vpop.eup %7419  ;;  %v5242_v52 = vsub.f32 %v14023_v55, %v10879_v45  ;;  %2983 = vadd.xlane.f32.xlu0 %v10745_v5  ;;  %v2902_v15 = vpop.xlane.xlu1 %2901  ;;  %v3514_v25 = vmul.f32 0.6931472, %v7418_v24  ;;  %v2739_v39 = vmul.f32 1.442695, %v2487_v2  ;;  %v5798_v62 = vrot.slane %v5244_v43, %v10607_v19  ;;  %v14026_v55 = vld [vmem:[#allocation212_spill] sm:$0xff] }
 0x5ea   : > { %14021 = vst [vmem:[#allocation180_spill] sm:$0xff] %v10884_v58  ;;  %v5241_v56 = vsub.f32 %v14025_v11, %v10884_v58  ;;  %v3512_v44 = vmul.f32 0.6931472, %v7420_v31  ;;  %7433 = vlog2.f32 %v2902_v15  ;;  %v2900_v22 = vpop.xlane.xlu0 %2899 }
 0x5eb   : > { %7435 = vlog2.f32 %v2900_v22  ;;  %v5788_v42 = vrot.slane %v5242_v52, %v10632_v29 }
 0x5ec   : > { %v7422_v4 = vpop.eup %7421  ;;  %7437 = vpow2.f32 %v2741_v12  ;;  %v5783_v57 = vrot.slane %v5241_v56, %v10637_v18  ;;  %2981 = vadd.xlane.f32.xlu1 %v10772_v27  ;;  %v10904_v53 = vadd.f32 %v3512_v44, %v14026_v55  ;;  %v5793_v12 = vrot.slane %v5243_v37, %v10628_v26  ;;  %v14028_v56 = vld [vmem:[#allocation211_spill] sm:$0xff]  ;;  %v14030_v44 = vld [vmem:[#allocation213_spill] sm:$0xff] }
 0x5ed   : > { %v7424_v5 = vpop.eup %7423  ;;  %v3510_v31 = vmul.f32 0.6931472, %v7422_v4  ;;  %2979 = vadd.xlane.f32.xlu0 %v10784_v46  ;;  %v2802_v24 = vpop.xlane.xlu1 %2801  ;;  %v10912_v52 = vadd.f32 %v3514_v25, %v14028_v56  ;;  %v14032_v4 = vld [vmem:[#allocation214_spill] sm:$0xff]  ;;  %v14034_v25 = vld [vmem:[#allocation217_spill] sm:$0xff] }
 0x5ee   : > { %14027 = vst [vmem:[#allocation181_spill] sm:$0xff] %v10904_v53  ;;  %v7426_v15 = vpop.eup %7425  ;;  %v5784_v2 = vsel %vm4549_vm15, %v5783_v57, %v10851_v38  ;;  %v3508_v11 = vmul.f32 0.6931472, %v7424_v5  ;;  %7439 = vlog2.f32 %v2802_v24  ;;  %v2800_v27 = vpop.xlane.xlu0 %2799  ;;  %v14033_v57 = vld [vmem:[#allocation216_spill] sm:$0xff] }
 0x5ef   : > { %v5789_v43 = vsel %vm4556_vm0, %v5788_v42, %v5784_v2  ;;  %14029 = vst [vmem:[#allocation184_spill] sm:$0xff] %v10912_v52  ;;  %v10915_v22 = vadd.f32 %v3510_v31, %v14030_v44  ;;  %7441 = vlog2.f32 %v2800_v27  ;;  %v5191_v5 = vsub.f32 %v14033_v57, %v10904_v53  ;;  %v14035_v2 = vld [vmem:[#allocation218_spill] sm:$0xff] }
 0x5f0   : > { %v7428_v46 = vpop.eup %7427  ;;  %7443 = vpow2.f32 %v2739_v39  ;;  %v10918_v55 = vadd.f32 %v3508_v11, %v14032_v4  ;;  %v5794_v37 = vsel %vm13174_vm1, %v5793_v12, %v5789_v43  ;;  %2993 = vadd.xlane.f32.xlu1 %v10813_v49  ;;  %v14036_v43 = vld [vmem:[#allocation215_spill] sm:$0xff] }
 0x5f1   : > { %14031 = vst [vmem:[#allocation182_spill] sm:$0xff] %v10915_v22  ;;  %v7430_v38 = vpop.eup %7429  ;;  %v5190_v42 = vsub.f32 %v14034_v25, %v10915_v22  ;;  %v3626_v24 = vmul.f32 0.6931472, %v7428_v46  ;;  %v5799_v31 = vsel %vm13092_vm2, %v5798_v62, %v5794_v37  ;;  %2991 = vadd.xlane.f32.xlu0 %v10854_v51  ;;  %v2798_v39 = vpop.xlane.xlu1 %2797  ;;  %v5192_v56 = vsub.f32 %v14036_v43, %v10912_v52  ;;  %v14037_v37 = vld [vmem:[#allocation219_spill] sm:$0xff] }
 0x5f2   : > { %v5189_v11 = vsub.f32 %v14035_v2, %v10918_v55  ;;  %v3624_v27 = vmul.f32 0.6931472, %v7430_v38  ;;  %7445 = vlog2.f32 %v2798_v39  ;;  %v2796_v12 = vpop.xlane.xlu0 %2795  ;;  %v7432_v49 = vpop.eup %7431  ;;  %v5536_v51 = vrot.slane %v5191_v5, %v10536_v36 }
 0x5f3   : > { %7447 = vlog2.f32 %v2796_v12  ;;  %v5531_v46 = vrot.slane %v5190_v42, %v10548_v28  ;;  %v10937_v57 = vadd.f32 %v3626_v24, %v14037_v37  ;;  %v14039_v12 = vld [vmem:[#allocation220_spill] sm:$0xff]  ;;  %v5541_v5 = vrot.slane %v5192_v56, %v10530_v48  ;;  %v14041_v24 = vld [vmem:[#allocation221_spill] sm:$0xff] }
 0x5f4   : > { %v7434_v44 = vpop.eup %7433  ;;  %v5526_v4 = vrot.slane %v5189_v11, %v10559_v13  ;;  %2989 = vadd.xlane.f32.xlu1 %v10858_v59  ;;  %v10943_v11 = vadd.f32 %v3624_v27, %v14039_v12  ;;  %v14047_v12 = vld [vmem:[#allocation224_spill] sm:$0xff]  ;;  %v14152_v48 = vld [vmem:[#allocation105_spill] sm:$0xff] }
 0x5f5   : > { %v7436_v62 = vpop.eup %7435  ;;  %14038 = vst [vmem:[#allocation186_spill] sm:$0xff] %v10937_v57  ;;  %v3622_v38 = vmul.f32 0.6931472, %v7434_v44  ;;  %2987 = vadd.xlane.f32.xlu0 %v10871_v9  ;;  %v2914_v25 = vpop.xlane.xlu1 %2913  ;;  %v14043_v44 = vld [vmem:[#allocation222_spill] sm:$0xff] }
 0x5f6   : > { %v7438_v39 = vpop.eup %7437  ;;  %v5527_v2 = vsel %vm4521_vm11, %v5526_v4, %v10887_v16  ;;  %14040 = vst [vmem:[#allocation187_spill] sm:$0xff] %v10943_v11  ;;  %v3620_v59 = vmul.f32 0.6931472, %v7436_v62  ;;  %7449 = vlog2.f32 %v2914_v25  ;;  %v2912_v43 = vpop.xlane.xlu0 %2911  ;;  %v14045_v4 = vld [vmem:[#allocation223_spill] sm:$0xff]  ;;  %v14046_v25 = vld [vmem:[#allocation225_spill] sm:$0xff] }
 0x5f7   : > { %v5532_v42 = vsel %vm4528_vm12, %v5531_v46, %v5527_v2  ;;  %v10948_v37 = vadd.f32 %v3622_v38, %v14041_v24  ;;  %7451 = vlog2.f32 %v2912_v43  ;;  %v5248_v62 = vsub.f32 %v14045_v4, %v10937_v57  ;;  %v14050_v57 = vld [vmem:[#allocation228_spill] sm:$0xff] }
 0x5f8   : > { %v7440_v9 = vpop.eup %7439  ;;  %v10951_v63 = vadd.f32 %v3620_v59, %v14043_v44  ;;  %v5537_v16 = vsel %vm4535_vm13, %v5536_v51, %v5532_v42  ;;  %3001 = vadd.xlane.f32.xlu1 %v7426_v15  ;;  %v5247_v43 = vsub.f32 %v14047_v12, %v10943_v11  ;;  %v14048_v59 = vld [vmem:[#allocation226_spill] sm:$0xff] }
 0x5f9   : > { %14042 = vst [vmem:[#allocation190_spill] sm:$0xff] %v10948_v37  ;;  %v7442_v27 = vpop.eup %7441  ;;  %v5246_v56 = vsub.f32 %v14046_v25, %v10948_v37  ;;  %v5542_v46 = vsel %vm4542_vm14, %v5541_v5, %v5537_v16  ;;  %2999 = vadd.xlane.f32.xlu0 %v7432_v49  ;;  %v2910_v38 = vpop.xlane.xlu1 %2909  ;;  %v3522_v42 = vmul.f32 0.6931472, %v7440_v9  ;;  %v3184_v49 = vsel %vm9679_vm7, %v13876_v40, 0.0  ;;  %v14051_v37 = vld [vmem:[#allocation227_spill] sm:$0xff] }
 0x5fa   : > { %14044 = vst [vmem:[#allocation189_spill] sm:$0xff] %v10951_v63  ;;  %v7444_v2 = vpop.eup %7443  ;;  %v5245_v24 = vsub.f32 %v14048_v59, %v10951_v63  ;;  %v3520_v51 = vmul.f32 0.6931472, %v7442_v27  ;;  %7453 = vlog2.f32 %v2910_v38  ;;  %v2908_v15 = vpop.xlane.xlu0 %2907  ;;  %v5818_v25 = vrot.slane %v5248_v62, %v10650_v7  ;;  %v14053_v62 = vld [vmem:[#allocation229_spill] sm:$0xff] }
 0x5fb   : > { %7455 = vlog2.f32 %v2908_v15  ;;  %v5808_v12 = vrot.slane %v5246_v56, %v10729_v0  ;;  %v5813_v38 = vrot.slane %v5247_v43, %v10653_v1  ;;  %v10976_v11 = vadd.f32 %v3522_v42, %v14051_v37  ;;  %v14056_v43 = vld [vmem:[#allocation64_spill] sm:$0xff]  ;;  %v14058_v42 = vld [vmem:[#allocation234_spill] sm:$0xff] }
 0x5fc   : > { %v7446_v44 = vpop.eup %7445  ;;  %v5803_v4 = vrot.slane %v5245_v24, %v10767_v41  ;;  %2997 = vadd.xlane.f32.xlu1 %v7438_v39  ;;  %v10970_v59 = vadd.f32 %v3520_v51, %v14050_v57  ;;  %v14055_v51 = vld [vmem:[#allocation230_spill] sm:$0xff] }
 0x5fd   : > { %v7448_v16 = vpop.eup %7447  ;;  %v3518_v27 = vmul.f32 0.6931472, %v7446_v44  ;;  %2995 = vadd.xlane.f32.xlu0 %v7444_v2  ;;  %v2810_v9 = vpop.xlane.xlu1 %2809  ;;  %14052 = vst [vmem:[#allocation191_spill] sm:$0xff] %v10976_v11 }
 0x5fe   : > { %v5804_v24 = vsel %vm4577_vm3, %v5803_v4, %v5799_v31  ;;  %v3516_v39 = vmul.f32 0.6931472, %v7448_v16  ;;  %7457 = vlog2.f32 %v2810_v9  ;;  %v2808_v15 = vpop.xlane.xlu0 %2807  ;;  %v3183_v31 = vsel %vm9679_vm7, %v14056_v43, 0.0  ;;  %v14057_v16 = vld [vmem:[#allocation233_spill] sm:$0xff] }
 0x5ff   : > { %v5809_v40 = vsel %vm13175_vm4, %v5808_v12, %v5804_v24  ;;  %v10979_v56 = vadd.f32 %v3518_v27, %v14053_v62  ;;  %7459 = vlog2.f32 %v2808_v15  ;;  %v5195_v37 = vsub.f32 %v14057_v16, %v10970_v59 }
 0x600   : > { %v7450_v57 = vpop.eup %7449  ;;  %v10982_v2 = vadd.f32 %v3516_v39, %v14055_v51  ;;  %3413 = vadd.xlane.f32.xlu1 %v3184_v49  ;;  %v5814_v44 = vsel %vm4591_vm5, %v5813_v38, %v5809_v40  ;;  %v14060_v49 = vld [vmem:[#allocation235_spill] sm:$0xff]  ;;  %v14062_v51 = vld [vmem:[#allocation248_spill] sm:$0xff] }
 0x601   : > { %14054 = vst [vmem:[#allocation188_spill] sm:$0xff] %v10979_v56  ;;  %v7452_v4 = vpop.eup %7451  ;;  %v5194_v12 = vsub.f32 %v14058_v42, %v10979_v56  ;;  %3411 = vadd.xlane.f32.xlu0 %v3183_v31  ;;  %v2806_v27 = vpop.xlane.xlu1 %2805  ;;  %v10993_v9 = vsel %vm4598_vm6, %v5818_v25, %v5814_v44  ;;  %v3634_v39 = vmul.f32 0.6931472, %v7450_v57  ;;  %v14061_v40 = vld [vmem:[#allocation231_spill] sm:$0xff]  ;;  %v3186_v16 = vsel %vm9679_vm7, %v14062_v51, 0.0 }
 0x602   : > { %14059 = vst [vmem:[#allocation192_spill] sm:$0xff] %v10993_v9  ;;  %v5193_v24 = vsub.f32 %v14060_v49, %v10982_v2  ;;  %v3632_v15 = vmul.f32 0.6931472, %v7452_v4  ;;  %7461 = vlog2.f32 %v2806_v27  ;;  %v2804_v62 = vpop.xlane.xlu0 %2803  ;;  %v5196_v38 = vsub.f32 %v14061_v40, %v10976_v11  ;;  %v14063_v25 = vld [vmem:[#allocation63_spill] sm:$0xff]  ;;  %v14064_v27 = vld [vmem:[#allocation238_spill] sm:$0xff] }
 0x603   : > { %7463 = vlog2.f32 %v2804_v62  ;;  %v3185_v44 = vsel %vm9679_vm7, %v14063_v25, 0.0  ;;  %v5551_v4 = vrot.slane %v5194_v12, %v10632_v29  ;;  %v5556_v51 = vrot.slane %v5195_v37, %v10628_v26  ;;  %v14087_v11 = vld [vmem:[#allocation251_spill] sm:$0xff] }
 0x604   : > { %v7454_v31 = vpop.eup %7453  ;;  %v5546_v42 = vrot.slane %v5193_v24, %v10637_v18  ;;  %3417 = vadd.xlane.f32.xlu1 %v3186_v16  ;;  %v11008_v49 = vadd.f32 %v3632_v15, %v14064_v27  ;;  %v14066_v24 = vld [vmem:[#allocation236_spill] sm:$0xff]  ;;  %v5561_v25 = vrot.slane %v5196_v38, %v10607_v19  ;;  %v14068_v15 = vld [vmem:[#allocation239_spill] sm:$0xff] }
 0x605   : > { %v7456_v57 = vpop.eup %7455  ;;  %v3630_v40 = vmul.f32 0.6931472, %v7454_v31  ;;  %3415 = vadd.xlane.f32.xlu0 %v3185_v44  ;;  %v11010_v62 = vpop.xlane.xlu1 %2921  ;;  %v11015_v16 = vadd.f32 %v3634_v39, %v14066_v24  ;;  %v14070_v31 = vld [vmem:[#allocation77_spill] sm:$0xff] }
 0x606   : > { %14065 = vst [vmem:[#allocation193_spill] sm:$0xff] %v11008_v49  ;;  %v5547_v43 = vsel %vm4549_vm15, %v5546_v42, %v5542_v46  ;;  %v3628_v63 = vmul.f32 0.6931472, %v7456_v57  ;;  %v11017_v45 = vpop.xlane.xlu0 %2919  ;;  %v3188_v44 = vsel %vm9679_vm7, %v14070_v31, 0.0  ;;  %v14073_v42 = vld [vmem:[#allocation75_spill] sm:$0xff] }
 0x607   : > { %14067 = vst [vmem:[#allocation194_spill] sm:$0xff] %v11015_v16  ;;  %v5552_v12 = vsel %vm4556_vm0, %v5551_v4, %v5547_v43  ;;  %v11022_v27 = vadd.f32 %v3630_v40, %v14068_v15  ;;  %v3187_v38 = vsel %vm9679_vm7, %v14073_v42, 0.0  ;;  %v14074_v43 = vld [vmem:[#allocation244_spill] sm:$0xff]  ;;  %v14075_v40 = vld [vmem:[#allocation245_spill] sm:$0xff] }
 0x608   : > { %v7458_v37 = vpop.eup %7457  ;;  %v11028_v46 = vadd.f32 %v3628_v63, %v14071_v10  ;;  %v5557_v39 = vsel %vm13174_vm1, %v5556_v51, %v5552_v12  ;;  %3421 = vadd.xlane.f32.xlu1 %v3188_v44  ;;  %v5251_v4 = vsub.f32 %v14074_v43, %v11008_v49  ;;  %v14076_v63 = vld [vmem:[#allocation243_spill] sm:$0xff]  ;;  %v14077_v51 = vld [vmem:[#allocation246_spill] sm:$0xff]  ;;  %v14078_v49 = vld [vmem:[#allocation76_spill] sm:$0xff] }
 0x609   : > { %14069 = vst [vmem:[#allocation196_spill] sm:$0xff] %v11022_v27  ;;  %v7460_v57 = vpop.eup %7459  ;;  %v5250_v24 = vsub.f32 %v14075_v40, %v11022_v27  ;;  %v5562_v15 = vsel %vm13092_vm2, %v5561_v25, %v5557_v39  ;;  %3419 = vadd.xlane.f32.xlu0 %v3187_v38  ;;  %v11039_v31 = vpop.xlane.xlu1 %2917  ;;  %v5252_v10 = vsub.f32 %v14076_v63, %v11015_v16  ;;  %v3530_v43 = vmul.f32 0.6931472, %v7458_v37  ;;  %v14079_v38 = vld [vmem:[#allocation74_spill] sm:$0xff] }
 0x60a   : > { %14072 = vst [vmem:[#allocation195_spill] sm:$0xff] %v11028_v46  ;;  %v5249_v12 = vsub.f32 %v14077_v51, %v11028_v46  ;;  %v3528_v44 = vmul.f32 0.6931472, %v7460_v57  ;;  %v11045_v42 = vpop.xlane.xlu0 %2915  ;;  %v3190_v40 = vsel %vm9679_vm7, %v14078_v49, 0.0  ;;  %v3189_v63 = vsel %vm9679_vm7, %v14079_v38, 0.0  ;;  %v14080_v49 = vld [vmem:[#allocation249_spill] sm:$0xff] }
 0x60b   : > { %v5827_v58 = vrot.slane %v5250_v24, %v10423_v3  ;;  %v5832_v57 = vrot.slane %v5251_v4, %v10414_v60  ;;  %v5837_v37 = vrot.slane %v5252_v10, %v10411_v20  ;;  %v14082_v38 = vld [vmem:[#allocation247_spill] sm:$0xff]  ;;  %v14084_v4 = vld [vmem:[#allocation250_spill] sm:$0xff] }
 0x60c   : > { %v7462_v25 = vpop.eup %7461  ;;  %v5823_v39 = vrot.slane %v5249_v12, %v10418_v21  ;;  %3425 = vadd.xlane.f32.xlu1 %v3190_v40  ;;  %v11061_v46 = vadd.f32 %v3528_v44, %v14080_v49  ;;  %v11067_v9 = vadd.f32 %v3530_v43, %v14082_v38  ;;  %v14090_v43 = vld [vmem:[#allocation254_spill] sm:$0xff] }
 0x60d   : > { %v7464_v16 = vpop.eup %7463  ;;  %v3526_v51 = vmul.f32 0.6931472, %v7462_v25  ;;  %3423 = vadd.xlane.f32.xlu0 %v3189_v63  ;;  %v11056_v27 = vpop.xlane.xlu1 %2817  ;;  %v14086_v63 = vld [vmem:[#allocation278_spill] sm:$0xff] }
 0x60e   : > { %v5828_v24 = vsel %vm4500_vm8, %v5827_v58, %v5823_v39  ;;  %14081 = vst [vmem:[#allocation197_spill] sm:$0xff] %v11061_v46  ;;  %v3524_v12 = vmul.f32 0.6931472, %v7464_v16  ;;  %v11063_v40 = vpop.xlane.xlu0 %2815  ;;  %14083 = vst [vmem:[#allocation198_spill] sm:$0xff] %v11067_v9  ;;  %v3192_v10 = vsel %vm9679_vm7, %v14086_v63, 0.0  ;;  %v14089_v16 = vld [vmem:[#allocation280_spill] sm:$0xff] }
 0x60f   : > { %v5833_v6 = vsel %vm4507_vm9, %v5832_v57, %v5828_v24  ;;  %v11070_v25 = vadd.f32 %v3526_v51, %v14084_v4  ;;  %v3191_v44 = vsel %vm9679_vm7, %v14089_v16, 0.0  ;;  %v14091_v57 = vld [vmem:[#allocation16_spill] sm:$0xff]  ;;  %v14092_v51 = vld [vmem:[#allocation98_spill] sm:$0xff]  ;;  %v14096_v16 = vld [vmem:[#allocation275_spill] sm:$0xff] }
 0x610   : > { %v11076_v58 = vadd.f32 %v3524_v12, %v14087_v11  ;;  %v11079_v49 = vsel %vm4514_vm10, %v5837_v37, %v5833_v6  ;;  %3429 = vadd.xlane.f32.xlu1 %v3192_v10  ;;  %v3058_v24 = vrot.slane %v14092_v51, %v14091_v57  ;;  %v14093_v11 = vld [vmem:[#allocation253_spill] sm:$0xff]  ;;  %v14094_v6 = vld [vmem:[#allocation255_spill] sm:$0xff]  ;;  %v14095_v10 = vld [vmem:[#allocation252_spill] sm:$0xff] }
 0x611   : > { %14085 = vst [vmem:[#allocation199_spill] sm:$0xff] %v11070_v25  ;;  %v5198_v39 = vsub.f32 %v14090_v43, %v11070_v25  ;;  %3427 = vadd.xlane.f32.xlu0 %v3191_v44  ;;  %v11086_v38 = vpop.xlane.xlu1 %2813  ;;  %v5199_v12 = vsub.f32 %v14093_v11, %v11061_v46  ;;  %v5200_v63 = vsub.f32 %v14095_v10, %v11067_v9  ;;  %v3194_v44 = vsel %vm9679_vm7, %v14096_v16, 0.0  ;;  %v14097_v25 = vld [vmem:[#allocation79_spill] sm:$0xff]  ;;  %v14119_v46 = vld [vmem:[#allocation96_spill] sm:$0xff] }
 0x612   : > { %14088 = vst [vmem:[#allocation200_spill] sm:$0xff] %v11076_v58  ;;  %v5197_v37 = vsub.f32 %v14094_v6, %v11076_v58  ;;  %v11094_v4 = vpop.xlane.xlu0 %2811  ;;  %v3193_v57 = vsel %vm9679_vm7, %v14097_v25, 0.0  ;;  %vm11109_vm2 = vcmp.eq.s32.totalorder %v13881_v30, %v3058_v24  ;;  %v14100_v25 = vld [vmem:[#allocation86_spill] sm:$0xff]  ;;  %vm13171_vm7 = vcmask 1041409   ;;  %v14123_v58 = vld [vmem:[#allocation109_spill] sm:$0xff] }
 0x613   : > { %v5571_v51 = vrot.slane %v5198_v39, %v10729_v0  ;;  %v5576_v10 = vrot.slane %v5199_v12, %v10653_v1  ;;  %v3196_v39 = vsel %vm11109_vm2, %v14100_v25, 0.0  ;;  %v14107_v25 = vld [vmem:[#allocation287_spill] sm:$0xff]  ;;  %v3204_v9 = vsel %vm11109_vm2, %v13978_v34, 0.0 }
 0x614   : > { %v5566_v43 = vrot.slane %v5197_v37, %v10767_v41  ;;  %3433 = vadd.xlane.f32.xlu1 %v3194_v44  ;;  %v5581_v44 = vrot.slane %v5200_v63, %v10650_v7 }
 0x615   : > { %3431 = vadd.xlane.f32.xlu0 %v3193_v57  ;;  %v11106_v11 = vpop.xlane.xlu1 %2929  ;;  %v14101_v57 = vld [vmem:[#allocation85_spill] sm:$0xff] }
 0x616   : > { %v5567_v16 = vsel %vm4577_vm3, %v5566_v43, %v5562_v15  ;;  %v11115_v37 = vpop.xlane.xlu0 %2927  ;;  %v3195_v30 = vsel %vm11109_vm2, %v14101_v57, 0.0 }
 0x617   : > { %v5572_v5 = vsel %vm13175_vm4, %v5571_v51, %v5567_v16  ;;  %v14102_v16 = vld [vmem:[#allocation282_spill] sm:$0xff] }
 0x618   : > { %3437 = vadd.xlane.f32.xlu1 %v3196_v39  ;;  %v5577_v24 = vsel %vm4591_vm5, %v5576_v10, %v5572_v5  ;;  %v3198_v43 = vsel %vm11109_vm2, %v14102_v16, 0.0  ;;  %v14104_v39 = vld [vmem:[#allocation84_spill] sm:$0xff] }
 0x619   : > { %3435 = vadd.xlane.f32.xlu0 %v3195_v30  ;;  %v11126_v15 = vpop.xlane.xlu1 %2925  ;;  %v5582_v12 = vsel %vm4598_vm6, %v5581_v44, %v5577_v24  ;;  %v3197_v10 = vsel %vm11109_vm2, %v14104_v39, 0.0  ;;  %v14105_v44 = vld [vmem:[#allocation90_spill] sm:$0xff]  ;;  %v14106_v16 = vld [vmem:[#allocation88_spill] sm:$0xff]  ;;  %v14108_v39 = vld [vmem:[#allocation87_spill] sm:$0xff] }
 0x61a   : > { %v11129_v63 = vpop.xlane.xlu0 %2923  ;;  %v11136_v51 = vsel %vm13171_vm7, %v5582_v12, %v10807_v54  ;;  %v3200_v24 = vsel %vm11109_vm2, %v14105_v44, 0.0  ;;  %v3199_v54 = vsel %vm11109_vm2, %v14106_v16, 0.0  ;;  %v3201_v57 = vsel %vm11109_vm2, %v14108_v39, 0.0  ;;  %v14110_v44 = vld [vmem:[#allocation372_spill] sm:$0xff] }
 0x61b   : > { %14103 = vst [vmem:[#allocation202_spill] sm:$0xff] %v11136_v51  ;;  %7465 = vlog2.f32 %v14110_v44  ;;  %v14113_v51 = vld [vmem:[#allocation373_spill] sm:$0xff]  ;;  %v14116_v44 = vld [vmem:[#allocation107_spill] sm:$0xff]  ;;  %vm5155_vm7 = vcmask 1042434  }
 0x61c   : > { %3441 = vadd.xlane.f32.xlu1 %v3198_v43 }
 0x61d   : > { %3439 = vadd.xlane.f32.xlu0 %v3197_v10  ;;  %v11141_v5 = vpop.xlane.xlu1 %2825  ;;  %v3202_v10 = vsel %vm11109_vm2, %v14107_v25, 0.0 }
 0x61e   : > { %v11143_v30 = vpop.xlane.xlu0 %2823 }
 0x620   : > { %3445 = vadd.xlane.f32.xlu1 %v3200_v24 }
 0x621   : > { %3443 = vadd.xlane.f32.xlu0 %v3199_v54  ;;  %v11151_v12 = vpop.xlane.xlu1 %2821  ;;  %v14112_v54 = vld [vmem:[#allocation17_spill] sm:$0xff] }
 0x622   : > { %v11153_v43 = vpop.xlane.xlu0 %2819  ;;  %7467 = vlog2.f32 %v14112_v54  ;;  %v14118_v54 = vld [vmem:[#allocation114_spill] sm:$0xff] }
 0x623   : > { %7469 = vlog2.f32 %v14113_v51  ;;  %v3206_v51 = vsel %vm11109_vm2, %v14119_v46, 0.0 }
 0x624   : > { %3449 = vadd.xlane.f32.xlu1 %v3202_v10  ;;  %v3203_v10 = vsel %vm11109_vm2, %v13988_v61, 0.0  ;;  %v14122_v61 = vld [vmem:[#allocation110_spill] sm:$0xff] }
 0x625   : > { %3447 = vadd.xlane.f32.xlu0 %v3201_v57  ;;  %v11161_v24 = vpop.xlane.xlu1 %2937  ;;  %v14114_v57 = vld [vmem:[#allocation375_spill] sm:$0xff] }
 0x626   : > { %14109 = vst [vmem:[#allocation203_spill] sm:$0xff] %v11161_v24  ;;  %v11164_v16 = vpop.xlane.xlu0 %2935  ;;  %7471 = vlog2.f32 %v14114_v57 }
 0x627   : > { %14111 = vst [vmem:[#allocation205_spill] sm:$0xff] %v11164_v16  ;;  %7473 = vlog2.f32 %v14116_v44  ;;  %v3208_v44 = vsel %vm11109_vm2, %v14012_v35, 0.0  ;;  %v3210_v35 = vsel %vm11109_vm2, %v14001_v8, 0.0 }
 0x628   : > { %3453 = vadd.xlane.f32.xlu1 %v3204_v9  ;;  %7475 = vlog2.f32 %v14118_v54  ;;  %v14120_v9 = vld [vmem:[#allocation94_spill] sm:$0xff]  ;;  %v7466_v54 = vpop.eup %7465 }
 0x629   : > { %3451 = vadd.xlane.f32.xlu0 %v3203_v10  ;;  %v11175_v25 = vpop.xlane.xlu1 %2933  ;;  %v3205_v34 = vsel %vm11109_vm2, %v14120_v9, 0.0  ;;  %7477 = vlog2.f32 %v14122_v61 }
 0x62a   : > { %14115 = vst [vmem:[#allocation207_spill] sm:$0xff] %v11175_v25  ;;  %v11178_v39 = vpop.xlane.xlu0 %2931  ;;  %7479 = vlog2.f32 %v14123_v58 }
 0x62b   : > { %14117 = vst [vmem:[#allocation209_spill] sm:$0xff] %v11178_v39  ;;  %7481 = vlog2.f32 %v11045_v42  ;;  %v14153_v39 = vld [vmem:[#allocation20_spill] sm:$0xff] }
 0x62c   : > { %3457 = vadd.xlane.f32.xlu1 %v3206_v51  ;;  %v3207_v51 = vsel %vm11109_vm2, %v14019_v33, 0.0  ;;  %v7468_v46 = vpop.eup %7467  ;;  %7483 = vlog2.f32 %v11039_v31  ;;  %v14136_v31 = vld [vmem:[#allocation134_spill] sm:$0xff] }
 0x62d   : > { %3455 = vadd.xlane.f32.xlu0 %v3205_v34  ;;  %v11187_v57 = vpop.xlane.xlu1 %2833  ;;  %v7470_v9 = vpop.eup %7469  ;;  %v3584_v24 = vmul.f32 0.6931472, %v7468_v46  ;;  %7485 = vlog2.f32 %v11017_v45  ;;  %v14131_v46 = vld [vmem:[#allocation116_spill] sm:$0xff] }
 0x62e   : > { %14121 = vst [vmem:[#allocation208_spill] sm:$0xff] %v11187_v57  ;;  %v11189_v10 = vpop.xlane.xlu0 %2831  ;;  %v3582_v25 = vmul.f32 0.6931472, %v7470_v9  ;;  %7487 = vlog2.f32 %v11086_v38  ;;  %v14142_v38 = vld [vmem:[#allocation121_spill] sm:$0xff] }
 0x62f   : > { %7489 = vlog2.f32 %v11094_v4  ;;  %v14143_v4 = vld [vmem:[#allocation122_spill] sm:$0xff] }
 0x630   : > { %3461 = vadd.xlane.f32.xlu1 %v3208_v44  ;;  %v7472_v61 = vpop.eup %7471  ;;  %v3209_v44 = vsel %vm11109_vm2, %v14004_v47, 0.0  ;;  %v11225_v9 = vadd.f32 %v3582_v25, %v14131_v46  ;;  %7491 = vlog2.f32 %v11010_v62  ;;  %v14150_v62 = vld [vmem:[#allocation377_spill] sm:$0xff]  ;;  %vm14347_vm2 = vcmask 786112  }
 0x631   : > { %3459 = vadd.xlane.f32.xlu0 %v3207_v51  ;;  %v11199_v34 = vpop.xlane.xlu1 %2829  ;;  %v7474_v58 = vpop.eup %7473  ;;  %v3586_v51 = vmul.f32 0.6931472, %v7466_v54  ;;  %v3580_v16 = vmul.f32 0.6931472, %v7472_v61  ;;  %v14133_v61 = vld [vmem:[#allocation118_spill] sm:$0xff]  ;;  %7493 = vlog2.f32 %v11063_v40 }
 0x632   : > { %v11201_v0 = vpop.xlane.xlu0 %2827  ;;  %v7476_v33 = vpop.eup %7475  ;;  %v3594_v42 = vmul.f32 0.6931472, %v7474_v58  ;;  %14132 = vst [vmem:[#allocation216_spill] sm:$0xff] %v11225_v9  ;;  %7495 = vlog2.f32 %v11056_v27  ;;  %v14165_v27 = vld [vmem:[#allocation379_spill] sm:$0xff] }
 0x633   : > { %v3592_v60 = vmul.f32 0.6931472, %v7476_v33  ;;  %v7478_v8 = vpop.eup %7477  ;;  %v11228_v58 = vadd.f32 %v3580_v16, %v14133_v61  ;;  %7497 = vlog2.f32 %v11129_v63 }
 0x634   : > { %3465 = vadd.xlane.f32.xlu1 %v3210_v35  ;;  %v14126_v35 = vld [vmem:[#allocation112_spill] sm:$0xff]  ;;  %v7480_v54 = vpop.eup %7479  ;;  %v11235_v45 = vadd.f32 %v3594_v42, %v14136_v31  ;;  %v3590_v46 = vmul.f32 0.6931472, %v7478_v8  ;;  %v5226_v42 = vsub.f32 %v14143_v4, %v11225_v9  ;;  %v14144_v31 = vld [vmem:[#allocation123_spill] sm:$0xff]  ;;  %v14148_v8 = vld [vmem:[#allocation101_spill] sm:$0xff]  ;;  %7499 = vlog2.f32 %v11153_v43 }
 0x635   : > { %3463 = vadd.xlane.f32.xlu0 %v3209_v44  ;;  %v11210_v41 = vpop.xlane.xlu1 %2945  ;;  %v11216_v57 = vadd.f32 %v3586_v51, %v14126_v35  ;;  %v14129_v44 = vld [vmem:[#allocation111_spill] sm:$0xff]  ;;  %14134 = vst [vmem:[#allocation217_spill] sm:$0xff] %v11228_v58  ;;  %v14138_v51 = vld [vmem:[#allocation136_spill] sm:$0xff]  ;;  %7501 = vlog2.f32 %v11115_v37  ;;  %v14190_v37 = vld [vmem:[#allocation262_spill] sm:$0xff] }
 0x636   : > { %14124 = vst [vmem:[#allocation210_spill] sm:$0xff] %v11210_v41  ;;  %v11212_v20 = vpop.xlane.xlu0 %2943  ;;  %v11222_v47 = vadd.f32 %v3584_v24, %v14129_v44  ;;  %14137 = vst [vmem:[#allocation215_spill] sm:$0xff] %v11235_v45  ;;  %v11238_v35 = vadd.f32 %v3592_v60, %v14138_v51  ;;  %v7482_v24 = vpop.eup %7481  ;;  %v14140_v44 = vld [vmem:[#allocation120_spill] sm:$0xff]  ;;  %v3588_v41 = vmul.f32 0.6931472, %v7480_v54  ;;  %v5225_v60 = vsub.f32 %v14144_v31, %v11228_v58  ;;  %v14149_v54 = vld [vmem:[#allocation18_spill] sm:$0xff] }
 0x637   : > { %14125 = vst [vmem:[#allocation212_spill] sm:$0xff] %v11212_v20  ;;  %14127 = vst [vmem:[#allocation211_spill] sm:$0xff] %v11216_v57  ;;  %v5228_v25 = vsub.f32 %v14140_v44, %v11216_v57  ;;  %v14146_v20 = vld [vmem:[#allocation376_spill] sm:$0xff]  ;;  %v3853_v57 = vsub.f32 %v14149_v54, %v14148_v8  ;;  %v14155_v9 = vld [vmem:[#allocation143_spill] sm:$0xff]  ;;  %v3636_v58 = vmul.f32 0.6931472, %v7482_v24  ;;  %7503 = vlog2.f32 %v11126_v15 }
 0x638   : > { %14130 = vst [vmem:[#allocation214_spill] sm:$0xff] %v11222_v47  ;;  %14139 = vst [vmem:[#allocation219_spill] sm:$0xff] %v11238_v35  ;;  %v5227_v61 = vsub.f32 %v14142_v38, %v11222_v47  ;;  %v14154_v47 = vld [vmem:[#allocation142_spill] sm:$0xff]  ;;  %v5231_v31 = vsub.f32 %v14155_v9, %v11238_v35  ;;  %v14159_v54 = vld [vmem:[#allocation140_spill] sm:$0xff]  ;;  %v11282_v9 = vrot.slane %v5226_v42, %v10632_v29  ;;  %7505 = vlog2.f32 %v11151_v12 }
 0x639   : > { %v11219_v6 = vpop.xlane.xlu1 %2941  ;;  %v5232_v4 = vsub.f32 %v14154_v47, %v11235_v45  ;;  %v7484_v47 = vpop.eup %7483  ;;  %v11285_v40 = vrot.slane %v5225_v60, %v10637_v18  ;;  %v14169_v45 = vld [vmem:[#allocation380_spill] sm:$0xff]  ;;  %v14170_v35 = vld [vmem:[#allocation27_spill] sm:$0xff]  ;;  %7507 = vlog2.f32 %v11143_v30  ;;  %v14200_v12 = vld [vmem:[#allocation257_spill] sm:$0xff] }
 0x63a   : > { %14128 = vst [vmem:[#allocation213_spill] sm:$0xff] %v11219_v6  ;;  %v11231_v33 = vpop.xlane.xlu0 %2939  ;;  %v14151_v6 = vld [vmem:[#allocation19_spill] sm:$0xff]  ;;  %v11279_v38 = vrot.slane %v5227_v61, %v10628_v26  ;;  %14163 = vst [vmem:[#allocation232_spill] sm:$0xff] %v11282_v9  ;;  %v11301_v63 = vrot.slane %v5231_v31, %v10653_v1  ;;  %v14175_v43 = vld [vmem:[#allocation128_spill] sm:$0xff]  ;;  %v3638_v29 = vmul.f32 0.6931472, %v7484_v47  ;;  %7509 = vlog2.f32 %v11106_v11 }
 0x63b   : > { %14135 = vst [vmem:[#allocation218_spill] sm:$0xff] %v11231_v33  ;;  %v14147_v33 = vld [vmem:[#allocation21_spill] sm:$0xff]  ;;  %14164 = vst [vmem:[#allocation228_spill] sm:$0xff] %v11285_v40  ;;  %v11298_v60 = vrot.slane %v5232_v4, %v10650_v7  ;;  %v14176_v40 = vld [vmem:[#allocation30_spill] sm:$0xff]  ;;  %7511 = vlog2.f32 %v11141_v5 }
 0x63c   : > { %v3852_v44 = vsub.f32 %v14147_v33, %v14146_v20  ;;  %v11267_v20 = vrot.slane %v5228_v25, %v10607_v19  ;;  %v14157_v33 = vld [vmem:[#allocation138_spill] sm:$0xff]  ;;  %14162 = vst [vmem:[#allocation226_spill] sm:$0xff] %v11279_v38  ;;  %v14166_v25 = vld [vmem:[#allocation28_spill] sm:$0xff]  ;;  %14172 = vst [vmem:[#allocation229_spill] sm:$0xff] %v11301_v63  ;;  %v3855_v19 = vsub.f32 %v14176_v40, %v14175_v43  ;;  %7513 = vlog2.f32 %v11201_v0 }
 0x63d   : > { %v11243_v16 = vpop.xlane.xlu1 %2841  ;;  %v11270_v8 = vadd.f32 %v3590_v46, %v14157_v33  ;;  %v14167_v33 = vld [vmem:[#allocation126_spill] sm:$0xff]  ;;  %14171 = vst [vmem:[#allocation227_spill] sm:$0xff] %v11298_v60  ;;  %v14184_v40 = vld [vmem:[#allocation36_spill] sm:$0xff]  ;;  %7515 = vlog2.f32 %v11199_v34  ;;  %v14225_v53 = vsub.f32 %v14166_v25, %v14165_v27  ;;  %v14229_v27 = vld [vmem:[#allocation279_spill] sm:$0xff] }
 0x63e   : > { %14141 = vst [vmem:[#allocation220_spill] sm:$0xff] %v11243_v16  ;;  %v11251_v51 = vpop.xlane.xlu0 %2839  ;;  %v3851_v16 = vsub.f32 %v14151_v6, %v14150_v62  ;;  %14156 = vst [vmem:[#allocation222_spill] sm:$0xff] %v11267_v20  ;;  %v11273_v6 = vadd.f32 %v3588_v41, %v14159_v54  ;;  %v7486_v41 = vpop.eup %7485  ;;  %v14168_v54 = vld [vmem:[#allocation29_spill] sm:$0xff]  ;;  %v14173_v38 = vld [vmem:[#allocation258_spill] sm:$0xff] }
 0x63f   : > { %14145 = vst [vmem:[#allocation221_spill] sm:$0xff] %v11251_v51  ;;  %14158 = vst [vmem:[#allocation223_spill] sm:$0xff] %v11270_v8  ;;  %v7488_v20 = vpop.eup %7487  ;;  %v11304_v9 = vadd.f32 %v3636_v58, %v14173_v38  ;;  %v3640_v7 = vmul.f32 0.6931472, %v7486_v41  ;;  %v14183_v38 = vld [vmem:[#allocation148_spill] sm:$0xff]  ;;  %v14185_v1 = vld [vmem:[#allocation150_spill] sm:$0xff] }
 0x640   : > { %14160 = vst [vmem:[#allocation225_spill] sm:$0xff] %v11273_v6  ;;  %v7490_v46 = vpop.eup %7489  ;;  %v14186_v61 = vld [vmem:[#allocation38_spill] sm:$0xff]  ;;  %v3534_v42 = vmul.f32 0.6931472, %v7488_v20  ;;  %v14188_v47 = vld [vmem:[#allocation40_spill] sm:$0xff]  ;;  %v14192_v51 = vld [vmem:[#allocation67_spill] sm:$0xff] }
 0x641   : > { %v11276_v62 = vpop.xlane.xlu1 %2837  ;;  %14174 = vst [vmem:[#allocation230_spill] sm:$0xff] %v11304_v9  ;;  %v7492_v26 = vpop.eup %7491  ;;  %v5253_v6 = vsub.f32 %v14190_v37, %v11304_v9  ;;  %v14193_v8 = vld [vmem:[#allocation26_spill] sm:$0xff]  ;;  %v14196_v20 = vld [vmem:[#allocation167_spill] sm:$0xff]  ;;  %v14206_v41 = vld [vmem:[#allocation93_spill] sm:$0xff] }
 0x642   : > { %14161 = vst [vmem:[#allocation224_spill] sm:$0xff] %v11276_v62  ;;  %v11288_v24 = vpop.xlane.xlu0 %2835  ;;  %v11334_v31 = vadd.f32 %v3638_v29, %v14193_v8  ;;  %v3642_v9 = vmul.f32 0.6931472, %v7492_v26  ;;  %v11344_v62 = vadd.f32 %v3640_v7, %v14200_v12  ;;  %v14204_v60 = vld [vmem:[#allocation266_spill] sm:$0xff]  ;;  %v14207_v26 = vld [vmem:[#allocation91_spill] sm:$0xff]  ;;  %v14208_v7 = vld [vmem:[#allocation92_spill] sm:$0xff] }
 0x643   : > { %v14209_v63 = vld [vmem:[#allocation268_spill] sm:$0xff] }
 0x644   : > { %14194 = vst [vmem:[#allocation235_spill] sm:$0xff] %v11334_v31  ;;  %14201 = vst [vmem:[#allocation238_spill] sm:$0xff] %v11344_v62  ;;  %v14216_v5 = vld [vmem:[#allocation260_spill] sm:$0xff] }
 0x645   : > { %4111 = vperm.xlu1 %6831, %v3852_v44   ;;  %v11312_v4 = vpop.xlane.xlu1 %2953  ;;  %v14187_v44 = vld [vmem:[#allocation152_spill] sm:$0xff]  ;;  %v5255_v30 = vsub.f32 %v14216_v5, %v11344_v62 }
 0x646   : > { %14179 = vst [vmem:[#allocation233_spill] sm:$0xff] %v11312_v4  ;;  %v11317_v58 = vpop.xlane.xlu0 %2951  ;;  %v14197_v4 = vld [vmem:[#allocation73_spill] sm:$0xff] }
 0x647   : > { %14182 = vst [vmem:[#allocation234_spill] sm:$0xff] %v11317_v58  ;;  %v3532_v58 = vmul.f32 0.6931472, %v7490_v46  ;;  %v7494_v46 = vpop.eup %7493 }
 0x648   : > { %v7496_v8 = vpop.eup %7495  ;;  %v3536_v14 = vmul.f32 0.6931472, %v7494_v46  ;;  %v14218_v46 = vld [vmem:[#allocation272_spill] sm:$0xff] }
 0x649   : > { %4114 = vperm.xlu1 %6831, %v3853_v57   ;;  %v11337_v15 = vpop.xlane.xlu1 %2949  ;;  %v7498_v11 = vpop.eup %7497  ;;  %v11362_v43 = vadd.f32 %v3532_v58, %v14209_v63  ;;  %v14212_v57 = vld [vmem:[#allocation261_spill] sm:$0xff]  ;;  %v14214_v63 = vld [vmem:[#allocation256_spill] sm:$0xff] }
 0x64a   : > { %14195 = vst [vmem:[#allocation231_spill] sm:$0xff] %v11337_v15  ;;  %v11347_v29 = vpop.xlane.xlu0 %2947  ;;  %v11352_v15 = vadd.f32 %v3534_v42, %v14204_v60  ;;  %v7500_v60 = vpop.eup %7499  ;;  %v5254_v37 = vsub.f32 %v14212_v57, %v11334_v31  ;;  %v11375_v58 = vadd.f32 %v3642_v9, %v14214_v63  ;;  %v14217_v42 = vld [vmem:[#allocation117_spill] sm:$0xff]  ;;  %v14219_v31 = vsub.f32 %v14153_v39, %v14152_v48  ;;  %v14227_v9 = vld [vmem:[#allocation259_spill] sm:$0xff] }
 0x64b   : > { %14202 = vst [vmem:[#allocation236_spill] sm:$0xff] %v11347_v29  ;;  %4108 = vperm.xlu0 %6830, %v3851_v16   ;;  %v5842_v29 = vrot.slane %v5253_v6, %v10559_v13  ;;  %14210 = vst [vmem:[#allocation241_spill] sm:$0xff] %v11362_v43  ;;  %v14213_v6 = vld [vmem:[#allocation115_spill] sm:$0xff]  ;;  %v3538_v16 = vmul.f32 0.6931472, %v7496_v8  ;;  %v14221_v63 = vld [vmem:[#allocation137_spill] sm:$0xff]  ;;  %v7502_v5 = vpop.eup %7501 }
 0x64c   : > { %14205 = vst [vmem:[#allocation239_spill] sm:$0xff] %v11352_v15  ;;  %14215 = vst [vmem:[#allocation244_spill] sm:$0xff] %v11375_v58  ;;  %v5202_v0 = vsub.f32 %v14218_v46, %v11352_v15  ;;  %v14222_v57 = vld [vmem:[#allocation273_spill] sm:$0xff]  ;;  %v3540_v22 = vmul.f32 0.6931472, %v7500_v60  ;;  %v7504_v15 = vpop.eup %7503  ;;  %v5847_v48 = vrot.slane %v5254_v37, %v10548_v28  ;;  %v5256_v46 = vsub.f32 %v14227_v9, %v11375_v58  ;;  %v14228_v37 = vld [vmem:[#allocation263_spill] sm:$0xff] }
 0x64d   : > { %4120 = vperm.xlu1 %6831, %v3855_v19   ;;  %v11370_v12 = vpop.xlane.xlu1 %2849  ;;  %v3644_v19 = vmul.f32 0.6931472, %v7498_v11  ;;  %v5843_v8 = vsel %vm4521_vm11, %v5842_v29, %v11079_v49  ;;  %v5201_v62 = vsub.f32 %v14222_v57, %v11362_v43  ;;  %v14223_v11 = vld [vmem:[#allocation139_spill] sm:$0xff]  ;;  %v14224_v39 = vld [vmem:[#allocation265_spill] sm:$0xff]  ;;  %v7506_v60 = vpop.eup %7505  ;;  %v5852_v43 = vrot.slane %v5255_v30, %v10536_v36 }
 0x64e   : > { %v2848_v52 = vpop.xlane.xlu0 %2847  ;;  %v14226_v29 = vld [vmem:[#allocation141_spill] sm:$0xff]  ;;  %v11410_v56 = vadd.f32 %v3538_v16, %v14228_v37  ;;  %v7508_v34 = vpop.eup %7507  ;;  %v14231_v57 = vsub.f32 %v14168_v54, %v14167_v33  ;;  %v3646_v16 = vmul.f32 0.6931472, %v7504_v15  ;;  %v14232_v37 = vld [vmem:[#allocation290_spill] sm:$0xff]  ;;  %v14235_v33 = vsub.f32 %v14188_v47, %v14187_v44 }
 0x64f   : > { %4117 = vperm.xlu0 %6830, %v14219_v31   ;;  %v11398_v31 = vadd.f32 %v3536_v14, %v14224_v39  ;;  %v5848_v39 = vsel %vm4528_vm12, %v5847_v48, %v5843_v8  ;;  %v11415_v25 = vadd.f32 %v3644_v19, %v14229_v27  ;;  %v7510_v9 = vpop.eup %7509  ;;  %v5586_v30 = vrot.slane %v5201_v62, %v10418_v21  ;;  %v14233_v8 = vld [vmem:[#allocation271_spill] sm:$0xff]  ;;  %v14234_v27 = vld [vmem:[#allocation209_spill] sm:$0xff]  ;;  %v14236_v15 = vld [vmem:[#allocation378_spill] sm:$0xff] }
 0x650   : > { %v3648_v48 = vmul.f32 0.6931472, %v7502_v5  ;;  %v3542_v19 = vmul.f32 0.6931472, %v7506_v60  ;;  %v7512_v62 = vpop.eup %7511  ;;  %v3650_v60 = vmul.f32 0.6931472, %v7510_v9  ;;  %v5853_v44 = vsel %vm4535_vm13, %v5852_v43, %v5848_v39 }
 0x651   : > { %4126 = vperm.xlu1 %6831, %v14225_v53   ;;  %v2846_v49 = vpop.xlane.xlu1 %2845  ;;  %v5590_v53 = vrot.slane %v5202_v0, %v10423_v3  ;;  %14230 = vst [vmem:[#allocation245_spill] sm:$0xff] %v11415_v25  ;;  %v5203_v0 = vsub.f32 %v14233_v8, %v11398_v31  ;;  %v7514_v5 = vpop.eup %7513  ;;  %v14241_v47 = vsub.f32 %v14170_v35, %v14169_v45  ;;  %v14245_v9 = vld [vmem:[#allocation374_spill] sm:$0xff]  ;;  %v14248_v43 = vld [vmem:[#allocation289_spill] sm:$0xff] }
 0x652   : > { %7517 = vlog2.f32 %v2846_v49  ;;  %v2844_v14 = vpop.xlane.xlu0 %2843  ;;  %v11422_v49 = vadd.f32 %v3540_v22, %v14232_v37  ;;  %v14237_v22 = vld [vmem:[#allocation270_spill] sm:$0xff]  ;;  %v14238_v37 = vld [vmem:[#allocation208_spill] sm:$0xff]  ;;  %v11457_v39 = vadd.f32 %v3542_v19, %v14248_v43  ;;  %v14250_v45 = vsub.f32 %v14184_v40, %v14183_v38  ;;  %v14253_v40 = vld [vmem:[#allocation205_spill] sm:$0xff] }
 0x653   : > { %7519 = vlog2.f32 %v2844_v14  ;;  %4123 = vperm.xlu0 %6830, %v14231_v57   ;;  %v5857_v57 = vrot.slane %v5256_v46, %v14236_v15  ;;  %v5204_v14 = vsub.f32 %v14237_v22, %v11410_v56  ;;  %v5591_v46 = vsel %vm4500_vm8, %v5590_v53, %v5586_v30  ;;  %v14244_v22 = vld [vmem:[#allocation294_spill] sm:$0xff]  ;;  %v14251_v53 = vld [vmem:[#allocation15_spill] sm:$0xff] }
 0x654   : > { %7521 = vlog2.f32 %v11189_v10  ;;  %v3544_v10 = vmul.f32 0.6931472, %v7508_v34  ;;  %14249 = vst [vmem:[#allocation247_spill] sm:$0xff] %v11457_v39 }
 0x655   : > { %7523 = vlog2.f32 %v14234_v27  ;;  %4132 = vperm.xlu1 %6831, %v14235_v33   ;;  %v11431_v54 = vpop.xlane.xlu1 %2961  ;;  %v14240_v27 = vld [vmem:[#allocation285_spill] sm:$0xff]  ;;  %v5600_v30 = vrot.slane %v5204_v14, %v14251_v53  ;;  %v14254_v14 = vsub.f32 %v14186_v61, %v14185_v1 }
 0x656   : > { %7525 = vlog2.f32 %v14238_v37  ;;  %v11437_v8 = vpop.xlane.xlu0 %2959  ;;  %v5257_v58 = vsub.f32 %v14240_v27, %v11415_v25  ;;  %v14242_v33 = vld [vmem:[#allocation277_spill] sm:$0xff]  ;;  %v5205_v37 = vsub.f32 %v14244_v22, %v11422_v49  ;;  %v14246_v27 = vld [vmem:[#allocation276_spill] sm:$0xff] }
 0x657   : > { %14239 = vst [vmem:[#allocation243_spill] sm:$0xff] %v11437_v8  ;;  %7527 = vlog2.f32 %v2848_v52  ;;  %4129 = vperm.xlu0 %6830, %v14241_v47   ;;  %v11447_v34 = vadd.f32 %v3646_v16, %v14242_v33  ;;  %v5595_v8 = vrot.slane %v5203_v0, %v14245_v9  ;;  %v11454_v25 = vadd.f32 %v3648_v48, %v14246_v27  ;;  %v14252_v16 = vld [vmem:[#allocation288_spill] sm:$0xff]  ;;  %v7516_v48 = vpop.eup %7515  ;;  %v14255_v33 = vld [vmem:[#allocation274_spill] sm:$0xff]  ;;  %v14262_v1 = vld [vmem:[#allocation293_spill] sm:$0xff] }
 0x658   : > { %7529 = vlog2.f32 %v11288_v24  ;;  %v3546_v52 = vmul.f32 0.6931472, %v7512_v62  ;;  %v11466_v47 = vadd.f32 %v3544_v10, %v14252_v16  ;;  %v3548_v24 = vmul.f32 0.6931472, %v7514_v5 }
 0x659   : > { %14243 = vst [vmem:[#allocation246_spill] sm:$0xff] %v11447_v34  ;;  %14247 = vst [vmem:[#allocation249_spill] sm:$0xff] %v11454_v25  ;;  %4138 = vperm.xlu1 %6831, %v14250_v45   ;;  %v11462_v35 = vpop.xlane.xlu1 %2957  ;;  %7531 = vlog2.f32 %v11370_v12  ;;  %v5596_v19 = vsel %vm4507_vm9, %v5595_v8, %v5591_v46  ;;  %v5858_v62 = vsel %vm4542_vm14, %v5857_v57, %v5853_v44  ;;  %v14257_v12 = vld [vmem:[#allocation284_spill] sm:$0xff]  ;;  %v14258_v8 = vld [vmem:[#allocation207_spill] sm:$0xff] }
 0x65a   : > { %v11469_v0 = vpop.xlane.xlu0 %2955  ;;  %v5862_v38 = vrot.slane %v5257_v58, %v10637_v18  ;;  %7533 = vlog2.f32 %v14253_v40  ;;  %v11479_v5 = vadd.f32 %v3650_v60, %v14255_v33  ;;  %v5258_v22 = vsub.f32 %v14257_v12, %v11447_v34  ;;  %v14259_v58 = vld [vmem:[#allocation283_spill] sm:$0xff]  ;;  %v14260_v46 = vld [vmem:[#allocation286_spill] sm:$0xff]  ;;  %v14263_v45 = vld [vmem:[#allocation224_spill] sm:$0xff] }
 0x65b   : > { %4135 = vperm.xlu0 %6830, %v14254_v14   ;;  %v5605_v27 = vrot.slane %v5205_v37, %v10559_v13  ;;  %7535 = vlog2.f32 %v14258_v8  ;;  %v5259_v44 = vsub.f32 %v14259_v58, %v11454_v25  ;;  %v11488_v43 = vadd.f32 %v3546_v52, %v14260_v46  ;;  %v14265_v40 = vld [vmem:[#allocation292_spill] sm:$0xff]  ;;  %v14266_v12 = vld [vmem:[#allocation307_spill] sm:$0xff]  ;;  %v14271_v25 = vld [vmem:[#allocation133_spill] sm:$0xff] }
 0x65c   : > { %v7518_v10 = vpop.eup %7517  ;;  %14256 = vst [vmem:[#allocation250_spill] sm:$0xff] %v11479_v5  ;;  %v5206_v61 = vsub.f32 %v14262_v1, %v11457_v39  ;;  %7537 = vlog2.f32 %v14263_v45  ;;  %v14264_v60 = vsub.f32 %v14197_v4, %v14196_v20  ;;  %v5207_v14 = vsub.f32 %v14265_v40, %v11466_v47  ;;  %v14268_v4 = vld [vmem:[#allocation35_spill] sm:$0xff]  ;;  %v14269_v20 = vld [vmem:[#allocation146_spill] sm:$0xff] }
 0x65d   : > { %v7520_v57 = vpop.eup %7519  ;;  %14261 = vst [vmem:[#allocation251_spill] sm:$0xff] %v11488_v43  ;;  %v2858_v16 = vpop.xlane.xlu1 %2857  ;;  %v5601_v33 = vsel %vm4514_vm10, %v5600_v30, %v5596_v19  ;;  %v11500_v8 = vadd.f32 %v3548_v24, %v14266_v12  ;;  %v5863_v46 = vsel %vm4549_vm15, %v5862_v38, %v5858_v62  ;;  %v3566_v1 = vmul.f32 0.6931472, %v7518_v10  ;;  %v14272_v24 = vld [vmem:[#allocation221_spill] sm:$0xff]  ;;  %v14273_v12 = vld [vmem:[#allocation291_spill] sm:$0xff]  ;;  %v14274_v10 = vld [vmem:[#allocation220_spill] sm:$0xff] }
 0x65e   : > { %4144 = vperm.xlu1 %6831, %v14264_v60   ;;  %v7522_v37 = vpop.eup %7521  ;;  %7539 = vlog2.f32 %v2858_v16  ;;  %v2856_v52 = vpop.xlane.xlu0 %2855  ;;  %v3564_v45 = vmul.f32 0.6931472, %v7520_v57  ;;  %v14270_v60 = vsub.f32 %v14268_v4, %v14269_v20  ;;  %v5867_v40 = vrot.slane %v5258_v22, %v14271_v25  ;;  %v14275_v57 = vld [vmem:[#allocation162_spill] sm:$0xff] }
 0x65f   : > { %14267 = vst [vmem:[#allocation254_spill] sm:$0xff] %v11500_v8  ;;  %v7524_v58 = vpop.eup %7523  ;;  %7541 = vlog2.f32 %v2856_v52  ;;  %v5606_v30 = vsel %vm4521_vm11, %v5605_v27, %v5601_v33  ;;  %v3550_v19 = vmul.f32 0.6931472, %v7516_v48  ;;  %v5208_v39 = vsub.f32 %v14273_v12, %v11488_v43  ;;  %v14277_v33 = vld [vmem:[#allocation311_spill] sm:$0xff]  ;;  %v14285_v43 = vld [vmem:[#allocation306_spill] sm:$0xff] }
 0x660   : > { %4141 = vperm.xlu0 %6830, %v14270_v60   ;;  %v7526_v34 = vpop.eup %7525  ;;  %7543 = vlog2.f32 %v14272_v24  ;;  %v5610_v62 = vrot.slane %v5206_v61, %v10548_v28  ;;  %v3552_v38 = vmul.f32 0.6931472, %v7522_v37  ;;  %v14276_v52 = vsub.f32 %v14192_v51, %v14275_v57  ;;  %v14278_v37 = vld [vmem:[#allocation334_spill] sm:$0xff]  ;;  %v14280_v12 = vld [vmem:[#allocation335_spill] sm:$0xff]  ;;  %v14283_v57 = vld [vmem:[#allocation164_spill] sm:$0xff] }
 0x661   : > { %v7528_v16 = vpop.eup %7527  ;;  %7545 = vlog2.f32 %v14274_v10  ;;  %v2854_v4 = vpop.xlane.xlu1 %2853  ;;  %v5868_v27 = vsel %vm4556_vm0, %v5867_v40, %v5863_v46  ;;  %v5615_v48 = vrot.slane %v5207_v14, %v10536_v36  ;;  %v5209_v20 = vsub.f32 %v14277_v33, %v11500_v8  ;;  %v14282_v51 = vld [vmem:[#allocation71_spill] sm:$0xff] }
 0x662   : > { %4150 = vperm.xlu1 %6831, %v14276_v52   ;;  %v7530_v22 = vpop.eup %7529  ;;  %7547 = vlog2.f32 %v2854_v4  ;;  %v2852_v60 = vpop.xlane.xlu0 %2851  ;;  %v5611_v61 = vsel %vm4528_vm12, %v5610_v62, %v5606_v30  ;;  %v11522_v24 = vadd.f32 %v3566_v1, %v14278_v37  ;;  %v11525_v10 = vadd.f32 %v3564_v45, %v14280_v12  ;;  %v14287_v30 = vld [vmem:[#allocation281_spill] sm:$0xff]  ;;  %v14288_v62 = vld [vmem:[#allocation131_spill] sm:$0xff]  ;;  %v14297_v1 = vld [vmem:[#allocation158_spill] sm:$0xff] }
 0x663   : > { %7549 = vlog2.f32 %v2852_v60  ;;  %v14284_v52 = vsub.f32 %v14282_v51, %v14283_v57  ;;  %v7532_v46 = vpop.eup %7531  ;;  %v3652_v14 = vmul.f32 0.6931472, %v7524_v58  ;;  %v3554_v40 = vmul.f32 0.6931472, %v7526_v34  ;;  %v14289_v45 = vld [vmem:[#allocation305_spill] sm:$0xff] }
 0x664   : > { %14279 = vst [vmem:[#allocation16_spill] sm:$0xff] %v11522_v24  ;;  %14281 = vst [vmem:[#allocation98_spill] sm:$0xff] %v11525_v10  ;;  %v11531_v33 = vadd.f32 %v3550_v19, %v14285_v43  ;;  %v3568_v4 = vmul.f32 0.6931472, %v7528_v16  ;;  %v7534_v8 = vpop.eup %7533  ;;  %v5872_v37 = vrot.slane %v5259_v44, %v14288_v62  ;;  %v11537_v12 = vadd.f32 %v3552_v38, %v14289_v45  ;;  %v14292_v19 = vld [vmem:[#allocation203_spill] sm:$0xff] }
 0x665   : > { %4147 = vperm.xlu0 %6830, %v14284_v52   ;;  %v3556_v60 = vmul.f32 0.6931472, %v7530_v22  ;;  %v14290_v51 = vsub.f32 %v14206_v41, %v10842_v50  ;;  %v11542_v58 = vpop.xlane.xlu1 %2969  ;;  %v7536_v34 = vpop.eup %7535  ;;  %v5620_v43 = vrot.slane %v5208_v39, %v14236_v15  ;;  %7551 = vlog2.f32 %v14292_v19  ;;  %v14294_v50 = vld [vmem:[#allocation338_spill] sm:$0xff]  ;;  %v14295_v45 = vld [vmem:[#allocation339_spill] sm:$0xff]  ;;  %v14296_v39 = vld [vmem:[#allocation65_spill] sm:$0xff] }
 0x666   : > { %14286 = vst [vmem:[#allocation253_spill] sm:$0xff] %v11531_v33  ;;  %14291 = vst [vmem:[#allocation255_spill] sm:$0xff] %v11542_v58  ;;  %v5616_v16 = vsel %vm4535_vm13, %v5615_v48, %v5611_v61  ;;  %v5625_v57 = vrot.slane %v5209_v20, %v10637_v18  ;;  %v11548_v44 = vpop.xlane.xlu0 %2967  ;;  %v7538_v38 = vpop.eup %7537  ;;  %v11551_v22 = vsel %vm13174_vm1, %v5872_v37, %v5868_v27  ;;  %v3570_v52 = vmul.f32 0.6931472, %v7532_v46  ;;  %v14299_v61 = vld [vmem:[#allocation299_spill] sm:$0xff]  ;;  %v14301_v18 = vld [vmem:[#allocation304_spill] sm:$0xff] }
 0x667   : > { %4156 = vperm.xlu1 %6831, %v14290_v51   ;;  %14293 = vst [vmem:[#allocation252_spill] sm:$0xff] %v11548_v44  ;;  %v5218_v41 = vsub.f32 %v14294_v50, %v11522_v24  ;;  %v5217_v51 = vsub.f32 %v14295_v45, %v11525_v10  ;;  %v14298_v19 = vsub.f32 %v14296_v39, %v14297_v1  ;;  %v14303_v27 = vld [vmem:[#allocation310_spill] sm:$0xff]  ;;  %v14304_v37 = vld [vmem:[#allocation333_spill] sm:$0xff]  ;;  %v3656_v24 = vmul.f32 0.6931472, %v7534_v8  ;;  %v14307_v39 = vld [vmem:[#allocation323_spill] sm:$0xff] }
 0x668   : > { %v7540_v48 = vpop.eup %7539  ;;  %v11561_v20 = vadd.f32 %v3652_v14, %v14299_v61  ;;  %v11564_v44 = vadd.f32 %v3554_v40, %v14301_v18  ;;  %v5210_v46 = vsub.f32 %v14303_v27, %v11531_v33  ;;  %v11569_v58 = vadd.f32 %v3568_v4, %v14304_v37  ;;  %v14306_v45 = vld [vmem:[#allocation309_spill] sm:$0xff]  ;;  %v14310_v33 = vld [vmem:[#allocation332_spill] sm:$0xff] }
 0x669   : > { %4153 = vperm.xlu0 %6830, %v14298_v19   ;;  %v7542_v50 = vpop.eup %7541  ;;  %v5211_v10 = vsub.f32 %v14306_v45, %v11537_v12  ;;  %v5621_v1 = vsel %vm4542_vm14, %v5620_v43, %v5616_v16  ;;  %v11575_v19 = vadd.f32 %v3556_v60, %v14307_v39  ;;  %v14309_v18 = vsub.f32 %v14207_v26, %v10828_v23  ;;  %v11580_v14 = vpop.xlane.xlu1 %2965 }
 0x66a   : > { %14300 = vst [vmem:[#allocation372_spill] sm:$0xff] %v11561_v20  ;;  %14302 = vst [vmem:[#allocation17_spill] sm:$0xff] %v11564_v44  ;;  %v7544_v40 = vpop.eup %7543  ;;  %v3654_v61 = vmul.f32 0.6931472, %v7536_v34  ;;  %v5626_v4 = vsel %vm4549_vm15, %v5625_v57, %v5621_v1  ;;  %v3558_v27 = vmul.f32 0.6931472, %v7538_v38  ;;  %v11583_v37 = vpop.xlane.xlu0 %2963  ;;  %v11586_v43 = vadd.f32 %v3570_v52, %v14310_v33 }
 0x66b   : > { %14305 = vst [vmem:[#allocation373_spill] sm:$0xff] %v11569_v58  ;;  %14308 = vst [vmem:[#allocation375_spill] sm:$0xff] %v11575_v19  ;;  %4162 = vperm.xlu1 %6831, %v14309_v18   ;;  %v3576_v8 = vmul.f32 0.6931472, %v7542_v50  ;;  %v7546_v45 = vpop.eup %7545  ;;  %v5669_v60 = vrot.slane %v5218_v41, %v10423_v3  ;;  %v5665_v16 = vrot.slane %v5217_v51, %v10418_v21  ;;  %v3578_v23 = vmul.f32 0.6931472, %v7540_v48 }
 0x66c   : > { %v14311_v26 = vsub.f32 %v14208_v7, %v10837_v32  ;;  %v7548_v34 = vpop.eup %7547  ;;  %v14312_v57 = vld [vmem:[#allocation303_spill] sm:$0xff]  ;;  %v14313_v50 = vld [vmem:[#allocation308_spill] sm:$0xff]  ;;  %v5630_v39 = vrot.slane %v5210_v46, %v14271_v25  ;;  %v14314_v33 = vld [vmem:[#allocation337_spill] sm:$0xff]  ;;  %v5635_v51 = vrot.slane %v5211_v10, %v14288_v62  ;;  %v3560_v48 = vmul.f32 0.6931472, %v7544_v40 }
 0x66d   : > { %v5261_v38 = vsub.f32 %v14312_v57, %v11561_v20  ;;  %v5212_v1 = vsub.f32 %v14313_v50, %v11564_v44  ;;  %v5219_v52 = vsub.f32 %v14314_v33, %v11569_v58  ;;  %v7550_v41 = vpop.eup %7549  ;;  %v14315_v18 = vld [vmem:[#allocation327_spill] sm:$0xff]  ;;  %v3574_v7 = vmul.f32 0.6931472, %v7548_v34  ;;  %v11606_v57 = vpop.xlane.xlu1 %2977  ;;  %v14317_v46 = vld [vmem:[#allocation322_spill] sm:$0xff]  ;;  %v14318_v33 = vld [vmem:[#allocation345_spill] sm:$0xff] }
 0x66e   : > { %4159 = vperm.xlu0 %6830, %v14311_v26   ;;  %v5213_v32 = vsub.f32 %v14315_v18, %v11575_v19  ;;  %v14316_v26 = vsub.f32 %v14220_v17, %v10918_v55  ;;  %v5631_v50 = vsel %vm4556_vm0, %v5630_v39, %v5626_v4  ;;  %v11610_v20 = vadd.f32 %v3558_v27, %v14317_v46  ;;  %v11615_v40 = vpop.xlane.xlu0 %2975  ;;  %v14320_v18 = vld [vmem:[#allocation336_spill] sm:$0xff]  ;;  %v14325_v4 = vld [vmem:[#allocation89_spill] sm:$0xff]  ;;  %v14326_v27 = vld [vmem:[#allocation174_spill] sm:$0xff] }
 0x66f   : > { %v11613_v25 = vadd.f32 %v3576_v8, %v14318_v33  ;;  %v3572_v10 = vmul.f32 0.6931472, %v7550_v41  ;;  %v5220_v34 = vsub.f32 %v14320_v18, %v11586_v43  ;;  %v5670_v62 = vsel %vm4500_vm8, %v5669_v60, %v5665_v16  ;;  %v14321_v17 = vld [vmem:[#allocation344_spill] sm:$0xff]  ;;  %v7552_v8 = vpop.eup %7551  ;;  %v14329_v19 = vld [vmem:[#allocation347_spill] sm:$0xff]  ;;  %v14331_v60 = vld [vmem:[#allocation321_spill] sm:$0xff] }
 0x670   : > { %4168 = vperm.xlu1 %6831, %v14316_v26   ;;  %v11621_v55 = vadd.f32 %v3578_v23, %v14321_v17  ;;  %v14323_v26 = vld [vmem:[#allocation346_spill] sm:$0xff]  ;;  %v14327_v39 = vsub.f32 %v14325_v4, %v14326_v27  ;;  %v14328_v46 = vld [vmem:[#allocation132_spill] sm:$0xff]  ;;  %v3562_v33 = vmul.f32 0.6931472, %v7546_v45  ;;  %v5674_v44 = vrot.slane %v5219_v52, %v14245_v9  ;;  %v14334_v27 = vld [vmem:[#allocation181_spill] sm:$0xff] }
 0x671   : > { %14319 = vst [vmem:[#allocation107_spill] sm:$0xff] %v11613_v25  ;;  %v11624_v58 = vadd.f32 %v3574_v7, %v14323_v26  ;;  %v5640_v41 = vrot.slane %v5212_v1, %v14328_v46  ;;  %v11632_v18 = vadd.f32 %v3572_v10, %v14329_v19  ;;  %v11635_v16 = vadd.f32 %v3560_v48, %v14331_v60  ;;  %v14332_v7 = vld [vmem:[#allocation168_spill] sm:$0xff]  ;;  %v14333_v26 = vld [vmem:[#allocation350_spill] sm:$0xff]  ;;  %v11644_v45 = vpop.xlane.xlu1 %2973  ;;  %v14337_v48 = vld [vmem:[#allocation349_spill] sm:$0xff] }
 0x672   : > { %14322 = vst [vmem:[#allocation114_spill] sm:$0xff] %v11621_v55  ;;  %4165 = vperm.xlu0 %6830, %v14327_v39   ;;  %v5636_v23 = vsel %vm13174_vm1, %v5635_v51, %v5631_v50  ;;  %v5645_v17 = vrot.slane %v5213_v32, %v14332_v7  ;;  %v14335_v39 = vsub.f32 %v14213_v6, %v14334_v27  ;;  %v14336_v1 = vld [vmem:[#allocation326_spill] sm:$0xff]  ;;  %v14338_v51 = vld [vmem:[#allocation351_spill] sm:$0xff]  ;;  %v11653_v50 = vpop.xlane.xlu0 %2971  ;;  %v3658_v60 = vmul.f32 0.6931472, %v7552_v8  ;;  %v14341_v27 = vld [vmem:[#allocation348_spill] sm:$0xff] }
 0x673   : > { %14324 = vst [vmem:[#allocation110_spill] sm:$0xff] %v11624_v58  ;;  %14330 = vst [vmem:[#allocation109_spill] sm:$0xff] %v11632_v18  ;;  %v5222_v4 = vsub.f32 %v14333_v26, %v11624_v58  ;;  %v5214_v19 = vsub.f32 %v14336_v1, %v11610_v20  ;;  %v5675_v52 = vsel %vm4507_vm9, %v5674_v44, %v5670_v62  ;;  %v14339_v26 = vld [vmem:[#allocation298_spill] sm:$0xff]  ;;  %v14344_v44 = vld [vmem:[#allocation297_spill] sm:$0xff] }
 0x674   : > { %4174 = vperm.xlu1 %6831, %v14335_v39   ;;  %v5223_v10 = vsub.f32 %v14337_v48, %v11613_v25  ;;  %v5221_v32 = vsub.f32 %v14338_v51, %v11632_v18  ;;  %v11656_v58 = vadd.f32 %v3654_v61, %v14339_v26  ;;  %v5679_v6 = vrot.slane %v5220_v34, %v14251_v53  ;;  %v14342_v1 = vld [vmem:[#allocation182_spill] sm:$0xff]  ;;  %v14346_v25 = vld [vmem:[#allocation320_spill] sm:$0xff]  ;;  %v14348_v26 = vld [vmem:[#allocation325_spill] sm:$0xff] }
 0x675   : > { %v5224_v39 = vsub.f32 %v14341_v27, %v11621_v55  ;;  %v14343_v62 = vsub.f32 %v14217_v42, %v14342_v1  ;;  %v11665_v48 = vadd.f32 %v3656_v24, %v14344_v44  ;;  %v11668_v51 = vadd.f32 %v3562_v33, %v14346_v25  ;;  %v11680_v1 = vpop.xlane.xlu1 %2985 }
 0x676   : > { %14340 = vst [vmem:[#allocation112_spill] sm:$0xff] %v11656_v58  ;;  %v5641_v8 = vsel %vm14347_vm2, %v5640_v41, %v5636_v23  ;;  %v5684_v61 = vrot.slane %v5221_v32, %v10559_v13  ;;  %v5215_v34 = vsub.f32 %v14348_v26, %v11635_v16  ;;  %v5689_v27 = vrot.slane %v5222_v4, %v10548_v28  ;;  %v14350_v41 = vld [vmem:[#allocation160_spill] sm:$0xff] }
 0x677   : > { %4171 = vperm.xlu0 %6830, %v14343_v62   ;;  %14345 = vst [vmem:[#allocation111_spill] sm:$0xff] %v11665_v48  ;;  %v5646_v18 = vsel %vm4577_vm3, %v5645_v17, %v5641_v8  ;;  %v5680_v42 = vsel %vm4514_vm10, %v5679_v6, %v5675_v52  ;;  %v14349_v24 = vsub.f32 %v14226_v29, %v10982_v2  ;;  %v11686_v62 = vpop.xlane.xlu0 %2983  ;;  %v14352_v2 = vld [vmem:[#allocation302_spill] sm:$0xff]  ;;  %v14353_v6 = vld [vmem:[#allocation113_spill] sm:$0xff] }
 0x678   : > { %v5882_v25 = vrot.slane %v5261_v38, %v14332_v7  ;;  %v5650_v33 = vrot.slane %v5214_v19, %v14350_v41  ;;  %v5694_v23 = vrot.slane %v5223_v10, %v10536_v36  ;;  %v5685_v32 = vsel %vm4521_vm11, %v5684_v61, %v5680_v42  ;;  %v14354_v19 = vld [vmem:[#allocation184_spill] sm:$0xff]  ;;  %v14358_v42 = vld [vmem:[#allocation165_spill] sm:$0xff] }
 0x679   : > { %4180 = vperm.xlu1 %6831, %v14349_v24   ;;  %v14351_v17 = vsub.f32 %v14287_v30, %v11479_v5  ;;  %v5262_v29 = vsub.f32 %v14352_v2, %v11656_v58  ;;  %v5699_v52 = vrot.slane %v5224_v39, %v14236_v15  ;;  %v5690_v38 = vsel %vm4528_vm12, %v5689_v27, %v5685_v32  ;;  %v14356_v10 = vld [vmem:[#allocation324_spill] sm:$0xff]  ;;  %v14361_v27 = vld [vmem:[#allocation382_spill] sm:$0xff] }
 0x67a   : > { %v14355_v44 = vsub.f32 %v14353_v6, %v14354_v19  ;;  %v5216_v8 = vsub.f32 %v14356_v10, %v11668_v51  ;;  %v5651_v61 = vsel %vm13175_vm4, %v5650_v33, %v5646_v18  ;;  %v5695_v26 = vsel %vm4535_vm13, %v5694_v23, %v5690_v38  ;;  %v14357_v30 = vld [vmem:[#allocation200_spill] sm:$0xff]  ;;  %v11715_v18 = vpop.xlane.xlu1 %2981  ;;  %v14363_v33 = vld [vmem:[#allocation301_spill] sm:$0xff]  ;;  %v14443_v5 = vld [vmem:[#allocation242_spill] sm:$0xff] }
 0x67b   : > { %v5877_v4 = vrot.slane %v14351_v17, %v14328_v46  ;;  %v3879_v24 = vsub.f32 %v14358_v42, %v14357_v30  ;;  %v14359_v17 = vld [vmem:[#allocation295_spill] sm:$0xff]  ;;  %v5655_v32 = vrot.slane %v5215_v34, %v14361_v27  ;;  %v5700_v6 = vsel %vm4542_vm14, %v5699_v52, %v5695_v26  ;;  %v14366_v52 = vld [vmem:[#allocation218_spill] sm:$0xff]  ;;  %v14368_v10 = vld [vmem:[#allocation188_spill] sm:$0xff] }
 0x67c   : > { %4177 = vperm.xlu0 %6830, %v14355_v44   ;;  %v11706_v2 = vadd.f32 %v3658_v60, %v14359_v17  ;;  %v14362_v19 = vsub.f32 %v14221_v63, %v10970_v59  ;;  %v5263_v23 = vsub.f32 %v14363_v33, %v11665_v48  ;;  %v14364_v60 = vld [vmem:[#allocation213_spill] sm:$0xff]  ;;  %v14365_v44 = vld [vmem:[#allocation228_spill] sm:$0xff]  ;;  %v5887_v34 = vrot.slane %v5262_v29, %v14350_v41  ;;  %v14371_v42 = vld [vmem:[#allocation223_spill] sm:$0xff] }
 0x67d   : > { %v5878_v39 = vsel %vm14347_vm2, %v5877_v4, %v11551_v22  ;;  %7553 = vlog2.f32 %v14364_v60  ;;  %v5705_v22 = vsel %vm4549_vm15, %v14365_v44, %v5700_v6  ;;  %v11723_v4 = vpop.xlane.xlu0 %2979  ;;  %v14367_v59 = vld [vmem:[#allocation232_spill] sm:$0xff]  ;;  %v14369_v26 = vsub.f32 %v14223_v11, %v14368_v10  ;;  %v14373_v6 = vld [vmem:[#allocation145_spill] sm:$0xff]  ;;  %v14379_v10 = vld [vmem:[#allocation191_spill] sm:$0xff] }
 0x67e   : > { %14360 = vst [vmem:[#allocation116_spill] sm:$0xff] %v11706_v2  ;;  %4186 = vperm.xlu1 %6831, %v14362_v19   ;;  %v5883_v38 = vsel %vm4577_vm3, %v5882_v25, %v5878_v39  ;;  %7555 = vlog2.f32 %v14366_v52  ;;  %v5710_v63 = vsel %vm4556_vm0, %v14367_v59, %v5705_v22  ;;  %v5656_v25 = vsel %vm4591_vm5, %v5655_v32, %v5651_v61  ;;  %v14370_v30 = vld [vmem:[#allocation144_spill] sm:$0xff]  ;;  %v14374_v19 = vld [vmem:[#allocation225_spill] sm:$0xff]  ;;  %v14377_v52 = vld [vmem:[#allocation226_spill] sm:$0xff]  ;;  %v11747_v32 = vpop.xlane.xlu1 %2993 }
 0x67f   : > { %v14372_v17 = vsub.f32 %v14370_v30, %v14371_v42  ;;  %v14375_v29 = vsub.f32 %v14373_v6, %v14374_v19  ;;  %v14376_v60 = vld [vmem:[#allocation381_spill] sm:$0xff]  ;;  %v5715_v22 = vsel %vm13174_vm1, %v14377_v52, %v5710_v63  ;;  %v14378_v11 = vld [vmem:[#allocation300_spill] sm:$0xff]  ;;  %v5888_v61 = vsel %vm13175_vm4, %v5887_v34, %v5883_v38 }
 0x680   : > { %4183 = vperm.xlu0 %6830, %v14369_v26   ;;  %v5660_v44 = vrot.slane %v5216_v8, %v14376_v60  ;;  %v5264_v59 = vsub.f32 %v14378_v11, %v11706_v2  ;;  %v14380_v26 = vld [vmem:[#allocation135_spill] sm:$0xff]  ;;  %v14382_v38 = vld [vmem:[#allocation197_spill] sm:$0xff]  ;;  %vm13195_vm1 = vcmask 1043459  }
 0x681   : > { %v5729_v39 = vrot.slane %v14372_v17, %v14350_v41  ;;  %v5724_v33 = vrot.slane %v14375_v29, %v14332_v7  ;;  %v3878_v30 = vsub.f32 %v14380_v26, %v14379_v10  ;;  %v14381_v17 = vld [vmem:[#allocation222_spill] sm:$0xff]  ;;  %v5892_v29 = vrot.slane %v5263_v23, %v14361_v27  ;;  %v11754_v8 = vpop.xlane.xlu0 %2991  ;;  %v14384_v11 = vld [vmem:[#allocation199_spill] sm:$0xff]  ;;  %v14387_v23 = vld [vmem:[#allocation229_spill] sm:$0xff] }
 0x682   : > { %4192 = vperm.xlu1 %6831, %v3879_v24   ;;  %v5720_v6 = vsel %vm14347_vm2, %v14381_v17, %v5715_v22  ;;  %v5661_v63 = vsel %vm4598_vm6, %v5660_v44, %v5656_v25  ;;  %v14383_v24 = vld [vmem:[#allocation161_spill] sm:$0xff]  ;;  %v14385_v2 = vld [vmem:[#allocation163_spill] sm:$0xff]  ;;  %v14386_v22 = vld [vmem:[#allocation212_spill] sm:$0xff]  ;;  %vm13194_vm2 = vcmask 1044484   ;;  %v11768_v44 = vpop.xlane.xlu1 %2989 }
 0x683   : > { %v5725_v52 = vsel %vm4577_vm3, %v5724_v33, %v5720_v6  ;;  %v3881_v34 = vsub.f32 %v14383_v24, %v14382_v38  ;;  %v3880_v58 = vsub.f32 %v14385_v2, %v14384_v11  ;;  %7557 = vlog2.f32 %v14386_v22  ;;  %v14389_v2 = vld [vmem:[#allocation227_spill] sm:$0xff]  ;;  %v14393_v24 = vld [vmem:[#allocation192_spill] sm:$0xff]  ;;  %v14453_v19 = vld [vmem:[#allocation329_spill] sm:$0xff] }
 0x684   : > { %4189 = vperm.xlu0 %6830, %v3878_v30   ;;  %v5730_v10 = vsel %vm13175_vm4, %v5729_v39, %v5725_v52  ;;  %v5893_v25 = vsel %vm4591_vm5, %v5892_v29, %v5888_v61  ;;  %v5897_v33 = vrot.slane %v5264_v59, %v14376_v60  ;;  %v14388_v30 = vld [vmem:[#allocation202_spill] sm:$0xff]  ;;  %vm13193_vm4 = vcmask 1045509   ;;  %v14391_v61 = vld [vmem:[#allocation241_spill] sm:$0xff] }
 0x685   : > { %v5735_v26 = vsel %vm4591_vm5, %v14387_v23, %v5730_v10  ;;  %v6058_v17 = vsel %vm5155_vm7, %v5661_v63, %v14388_v30  ;;  %v14390_v39 = vld [vmem:[#allocation210_spill] sm:$0xff]  ;;  %v11775_v52 = vpop.xlane.xlu0 %2987  ;;  %v14392_v29 = vld [vmem:[#allocation37_spill] sm:$0xff]  ;;  %v14396_v30 = vld [vmem:[#allocation159_spill] sm:$0xff] }
 0x686   : > { %4198 = vperm.xlu1 %6831, %v3881_v34   ;;  %v5740_v6 = vsel %vm4598_vm6, %v14389_v2, %v5735_v26  ;;  %7559 = vlog2.f32 %v14390_v39  ;;  %v3883_v59 = vsub.f32 %v14392_v29, %v14391_v61  ;;  %v5898_v11 = vsel %vm4598_vm6, %v5897_v33, %v5893_v25  ;;  %v11786_v23 = vpop.xlane.xlu1 %3001  ;;  %v14395_v26 = vld [vmem:[#allocation198_spill] sm:$0xff]  ;;  %v14397_v2 = vld [vmem:[#allocation185_spill] sm:$0xff]  ;;  %v14398_v33 = vld [vmem:[#allocation239_spill] sm:$0xff] }
 0x687   : > { %v6059_v38 = vsel %vm13195_vm1, %v5740_v6, %v6058_v17  ;;  %v7554_v63 = vpop.eup %7553  ;;  %v3882_v17 = vsub.f32 %v14396_v30, %v14395_v26  ;;  %v3885_v6 = vsub.f32 %v14397_v2, %v11398_v31  ;;  %v14399_v61 = vld [vmem:[#allocation39_spill] sm:$0xff]  ;;  %v14402_v26 = vld [vmem:[#allocation206_spill] sm:$0xff]  ;;  %vm13208_vm1 = vcmask 1047559  }
 0x688   : > { %4195 = vperm.xlu0 %6830, %v3880_v58   ;;  %v6060_v34 = vsel %vm13194_vm2, %v14393_v24, %v6059_v38  ;;  %v7556_v22 = vpop.eup %7555  ;;  %v3662_v39 = vmul.f32 0.6931472, %v7554_v63  ;;  %v3884_v29 = vsub.f32 %v14399_v61, %v14398_v33  ;;  %v14400_v24 = vld [vmem:[#allocation233_spill] sm:$0xff]  ;;  %v3887_v30 = vsub.f32 %v14402_v26, %v11422_v49  ;;  %v14403_v63 = vld [vmem:[#allocation314_spill] sm:$0xff]  ;;  %v14408_v61 = vld [vmem:[#allocation236_spill] sm:$0xff] }
 0x689   : > { %v11784_v10 = vsel %vm13193_vm4, %v5898_v11, %v6060_v34  ;;  %v11790_v58 = vpop.xlane.xlu0 %2999  ;;  %v3660_v38 = vmul.f32 0.6931472, %v7556_v22  ;;  %7561 = vlog2.f32 %v14400_v24  ;;  %v14401_v11 = vld [vmem:[#allocation234_spill] sm:$0xff]  ;;  %v14410_v26 = vld [vmem:[#allocation243_spill] sm:$0xff]  ;;  %vm14516_vm4 = vcmask 720512  }
 0x68a   : > { %14394 = vst [vmem:[#allocation118_spill] sm:$0xff] %v11784_v10  ;;  %4204 = vperm.xlu1 %6831, %v3883_v59   ;;  %v11794_v25 = vpop.xlane.xlu1 %2997  ;;  %7563 = vlog2.f32 %v14401_v11  ;;  %v11805_v22 = vadd.f32 %v3662_v39, %v14403_v63  ;;  %vm14544_vm2 = vcmask 917312  }
 0x68c   : > { %4201 = vperm.xlu0 %6830, %v3882_v17   ;;  %14404 = vst [vmem:[#allocation134_spill] sm:$0xff] %v11805_v22  ;;  %v14405_v17 = vld [vmem:[#allocation315_spill] sm:$0xff] }
 0x68d   : > { %v7558_v59 = vpop.eup %7557  ;;  %v11799_v34 = vpop.xlane.xlu0 %2995  ;;  %v11808_v2 = vadd.f32 %v3660_v38, %v14405_v17  ;;  %v14411_v38 = vld [vmem:[#allocation45_spill] sm:$0xff] }
 0x68e   : > { %4210 = vperm.xlu1 %6831, %v3885_v6   ;;  %v14407_v6 = vld [vmem:[#allocation231_spill] sm:$0xff]  ;;  %v3664_v33 = vmul.f32 0.6931472, %v7558_v59  ;;  %v11812_v24 = vpop.xlane.xlu1 %3413  ;;  %v3889_v63 = vsub.f32 %v14411_v38, %v11466_v47  ;;  %v14412_v59 = vld [vmem:[#allocation318_spill] sm:$0xff]  ;;  %v14419_v38 = vld [vmem:[#allocation312_spill] sm:$0xff] }
 0x68f   : > { %14406 = vst [vmem:[#allocation136_spill] sm:$0xff] %v11808_v2  ;;  %7565 = vlog2.f32 %v14407_v6  ;;  %v5266_v17 = vsub.f32 %v14412_v59, %v11805_v22  ;;  %v14418_v47 = vld [vmem:[#allocation255_spill] sm:$0xff]  ;;  %v14424_v22 = vld [vmem:[#allocation252_spill] sm:$0xff] }
 0x690   : > { %4207 = vperm.xlu0 %6830, %v3884_v29   ;;  %v7560_v31 = vpop.eup %7559  ;;  %7567 = vlog2.f32 %v14408_v61  ;;  %v14409_v29 = vld [vmem:[#allocation183_spill] sm:$0xff] }
 0x691   : > { %v3886_v11 = vsub.f32 %v14409_v29, %v11410_v56  ;;  %7569 = vlog2.f32 %v11431_v54  ;;  %v11817_v49 = vpop.xlane.xlu0 %3411  ;;  %v3666_v39 = vmul.f32 0.6931472, %v7560_v31  ;;  %v14414_v56 = vld [vmem:[#allocation313_spill] sm:$0xff]  ;;  %v14416_v31 = vld [vmem:[#allocation247_spill] sm:$0xff]  ;;  %v14417_v29 = vld [vmem:[#allocation204_spill] sm:$0xff] }
 0x692   : > { %4216 = vperm.xlu1 %6831, %v3887_v30   ;;  %7571 = vlog2.f32 %v14410_v26  ;;  %v14413_v30 = vld [vmem:[#allocation319_spill] sm:$0xff]  ;;  %v11828_v61 = vadd.f32 %v3664_v33, %v14414_v56  ;;  %v11831_v54 = vpop.xlane.xlu1 %3417  ;;  %v14422_v33 = vld [vmem:[#allocation53_spill] sm:$0xff] }
 0x693   : > { %v5265_v6 = vsub.f32 %v14413_v30, %v11808_v2  ;;  %7573 = vlog2.f32 %v11462_v35  ;;  %v11839_v59 = vadd.f32 %v3666_v39, %v14419_v38  ;;  %v14421_v35 = vld [vmem:[#allocation254_spill] sm:$0xff] }
 0x694   : > { %4213 = vperm.xlu0 %6830, %v3886_v11   ;;  %14415 = vst [vmem:[#allocation120_spill] sm:$0xff] %v11828_v61  ;;  %7575 = vlog2.f32 %v11469_v0  ;;  %v3888_v11 = vsub.f32 %v14417_v29, %v14416_v31  ;;  %v3891_v30 = vsub.f32 %v14422_v33, %v14421_v35  ;;  %v7562_v0 = vpop.eup %7561  ;;  %v14423_v29 = vld [vmem:[#allocation317_spill] sm:$0xff] }
 0x695   : > { %7577 = vlog2.f32 %v14418_v47  ;;  %v11836_v26 = vpop.xlane.xlu0 %3415  ;;  %14420 = vst [vmem:[#allocation121_spill] sm:$0xff] %v11839_v59  ;;  %v5902_v56 = vrot.slane %v5265_v6, %v10418_v21  ;;  %v7564_v31 = vpop.eup %7563  ;;  %v5267_v47 = vsub.f32 %v14423_v29, %v11828_v61  ;;  %v3674_v46 = vmul.f32 0.6931472, %v7562_v0 }
 0x696   : > { %4222 = vperm.xlu1 %6831, %v3889_v63   ;;  %7579 = vlog2.f32 %v11644_v45  ;;  %v5906_v63 = vrot.slane %v5266_v17, %v10423_v3  ;;  %v11850_v39 = vpop.xlane.xlu1 %3421  ;;  %v14425_v45 = vld [vmem:[#allocation251_spill] sm:$0xff]  ;;  %v3672_v10 = vmul.f32 0.6931472, %v7564_v31 }
 0x697   : > { %7581 = vlog2.f32 %v11653_v50  ;;  %v14427_v50 = vld [vmem:[#allocation316_spill] sm:$0xff]  ;;  %v5911_v48 = vrot.slane %v5267_v47, %v14245_v9 }
 0x698   : > { %4219 = vperm.xlu0 %6830, %v3888_v11   ;;  %7583 = vlog2.f32 %v14424_v22  ;;  %v14426_v11 = vld [vmem:[#allocation201_spill] sm:$0xff]  ;;  %v5268_v33 = vsub.f32 %v14427_v50, %v11839_v59  ;;  %v14428_v22 = vld [vmem:[#allocation52_spill] sm:$0xff] }
 0x699   : > { %v3890_v38 = vsub.f32 %v14426_v11, %v14425_v45  ;;  %v7566_v35 = vpop.eup %7565  ;;  %7585 = vlog2.f32 %v11580_v14  ;;  %v11855_v17 = vpop.xlane.xlu0 %3419  ;;  %v5907_v45 = vsel %vm4500_vm8, %v5906_v63, %v5902_v56  ;;  %v14436_v56 = vld [vmem:[#allocation217_spill] sm:$0xff] }
 0x69a   : > { %4228 = vperm.xlu1 %6831, %v3891_v30   ;;  %v7568_v6 = vpop.eup %7567  ;;  %7587 = vlog2.f32 %v11606_v57  ;;  %v3893_v30 = vsub.f32 %v14428_v22, %v11537_v12  ;;  %v11868_v50 = vpop.xlane.xlu1 %3425  ;;  %v14432_v57 = vld [vmem:[#allocation253_spill] sm:$0xff]  ;;  %v3670_v7 = vmul.f32 0.6931472, %v7566_v35 }
 0x69b   : > { %v7570_v29 = vpop.eup %7569  ;;  %7589 = vlog2.f32 %v11615_v40  ;;  %14431 = vst [vmem:[#allocation122_spill] sm:$0xff] %v11868_v50  ;;  %v14437_v14 = vld [vmem:[#allocation25_spill] sm:$0xff]  ;;  %v3668_v47 = vmul.f32 0.6931472, %v7568_v6 }
 0x69c   : > { %4225 = vperm.xlu0 %6830, %v3890_v38   ;;  %v7572_v2 = vpop.eup %7571  ;;  %7591 = vlog2.f32 %v11583_v37  ;;  %v14433_v38 = vld [vmem:[#allocation56_spill] sm:$0xff]  ;;  %v3682_v0 = vmul.f32 0.6931472, %v7570_v29 }
 0x69d   : > { %v3892_v59 = vsub.f32 %v14433_v38, %v14432_v57  ;;  %v7574_v40 = vpop.eup %7573  ;;  %7593 = vlog2.f32 %v11680_v1  ;;  %v11875_v63 = vpop.xlane.xlu0 %3423  ;;  %v5916_v57 = vrot.slane %v5268_v33, %v14251_v53  ;;  %v5912_v38 = vsel %vm4507_vm9, %v5911_v48, %v5907_v45  ;;  %v14442_v1 = vld [vmem:[#allocation375_spill] sm:$0xff]  ;;  %v14445_v33 = vld [vmem:[#allocation17_spill] sm:$0xff] }
 0x69e   : > { %4234 = vperm.xlu1 %6831, %v3893_v30   ;;  %v7576_v61 = vpop.eup %7575  ;;  %7595 = vlog2.f32 %v11715_v18  ;;  %v3895_v41 = vsub.f32 %v14443_v5, %v14442_v1  ;;  %v11889_v11 = vpop.xlane.xlu1 %3429  ;;  %v14446_v30 = vld [vmem:[#allocation54_spill] sm:$0xff]  ;;  %v14447_v48 = vld [vmem:[#allocation237_spill] sm:$0xff]  ;;  %v3680_v31 = vmul.f32 0.6931472, %v7572_v2  ;;  %v3678_v60 = vmul.f32 0.6931472, %v7574_v40 }
 0x69f   : > { %v7578_v27 = vpop.eup %7577  ;;  %7597 = vlog2.f32 %v11723_v4  ;;  %14444 = vst [vmem:[#allocation123_spill] sm:$0xff] %v11889_v11  ;;  %v3894_v18 = vsub.f32 %v14446_v30, %v14445_v33  ;;  %v11898_v35 = vsel %vm4514_vm10, %v5916_v57, %v5912_v38  ;;  %v3676_v30 = vmul.f32 0.6931472, %v7576_v61  ;;  %v14451_v2 = vld [vmem:[#allocation330_spill] sm:$0xff]  ;;  %v14452_v57 = vld [vmem:[#allocation328_spill] sm:$0xff]  ;;  %v14454_v61 = vld [vmem:[#allocation331_spill] sm:$0xff] }
 0x6a0   : > { %4231 = vperm.xlu0 %6830, %v3892_v59   ;;  %v7580_v37 = vpop.eup %7579  ;;  %v3898_v59 = vsub.f32 %v14447_v48, %v11668_v51  ;;  %7599 = vlog2.f32 %v11686_v62  ;;  %v14450_v51 = vld [vmem:[#allocation240_spill] sm:$0xff]  ;;  %v11908_v5 = vadd.f32 %v3670_v7, %v14451_v2  ;;  %v11911_v38 = vadd.f32 %v3674_v46, %v14452_v57  ;;  %v14459_v7 = vld [vmem:[#allocation70_spill] sm:$0xff] }
 0x6a1   : > { %v7582_v1 = vpop.eup %7581  ;;  %v11900_v4 = vpop.xlane.xlu0 %3427  ;;  %v3896_v33 = vsub.f32 %v14450_v51, %v11610_v20  ;;  %v3694_v29 = vmul.f32 0.6931472, %v7580_v37  ;;  %v11914_v45 = vadd.f32 %v3672_v10, %v14453_v19  ;;  %v14457_v20 = vld [vmem:[#allocation373_spill] sm:$0xff]  ;;  %v14460_v46 = vld [vmem:[#allocation340_spill] sm:$0xff]  ;;  %7601 = vlog2.f32 %v11768_v44  ;;  %v14469_v51 = vld [vmem:[#allocation343_spill] sm:$0xff] }
 0x6a2   : > { %4240 = vperm.xlu1 %6831, %v3895_v41   ;;  %v14449_v41 = vld [vmem:[#allocation62_spill] sm:$0xff]  ;;  %v7584_v42 = vpop.eup %7583  ;;  %v3692_v40 = vmul.f32 0.6931472, %v7582_v1  ;;  %v11919_v62 = vpop.xlane.xlu1 %3433  ;;  %v11926_v57 = vadd.f32 %v3682_v0, %v14460_v46  ;;  %v14462_v19 = vld [vmem:[#allocation341_spill] sm:$0xff]  ;;  %v14466_v11 = vld [vmem:[#allocation16_spill] sm:$0xff]  ;;  %v11942_v0 = vadd.f32 %v3676_v30, %v14469_v51  ;;  %7603 = vlog2.f32 %v11775_v52 }
 0x6a3   : > { %v3897_v6 = vsub.f32 %v14449_v41, %v11635_v16  ;;  %v7586_v48 = vpop.eup %7585  ;;  %v11917_v41 = vadd.f32 %v3668_v47, %v14454_v61  ;;  %14456 = vst [vmem:[#allocation21_spill] sm:$0xff] %v11919_v62  ;;  %v11929_v10 = vadd.f32 %v3680_v31, %v14462_v19  ;;  %v14464_v47 = vld [vmem:[#allocation98_spill] sm:$0xff]  ;;  %v14465_v61 = vld [vmem:[#allocation69_spill] sm:$0xff]  ;;  %v14467_v62 = vld [vmem:[#allocation72_spill] sm:$0xff]  ;;  %v11955_v55 = vmul.f32 0.6931472, %v7578_v27 }
 0x6a4   : > { %4237 = vperm.xlu0 %6830, %v3894_v18   ;;  %v7588_v16 = vpop.eup %7587  ;;  %v14458_v18 = vld [vmem:[#allocation68_spill] sm:$0xff]  ;;  %14461 = vst [vmem:[#allocation101_spill] sm:$0xff] %v11926_v57  ;;  %v3900_v12 = vsub.f32 %v14467_v62, %v14466_v11  ;;  %v3686_v50 = vmul.f32 0.6931472, %v7586_v48  ;;  %v14476_v51 = vld [vmem:[#allocation78_spill] sm:$0xff]  ;;  %7605 = vlog2.f32 %v11747_v32  ;;  %v14482_v32 = vld [vmem:[#allocation353_spill] sm:$0xff] }
 0x6a5   : > { %14455 = vst [vmem:[#allocation376_spill] sm:$0xff] %v11917_v41  ;;  %v3901_v37 = vsub.f32 %v14458_v18, %v14457_v20  ;;  %v7590_v2 = vpop.eup %7589  ;;  %v11931_v1 = vpop.xlane.xlu0 %3431  ;;  %v14468_v20 = vld [vmem:[#allocation342_spill] sm:$0xff]  ;;  %v14470_v31 = vld [vmem:[#allocation264_spill] sm:$0xff]  ;;  %v3698_v44 = vmul.f32 0.6931472, %v7588_v16  ;;  %14477 = vst [vmem:[#allocation105_spill] sm:$0xff] %v11955_v55  ;;  %7607 = vlog2.f32 %v11754_v8 }
 0x6a6   : > { %4246 = vperm.xlu1 %6831, %v3897_v6   ;;  %14463 = vst [vmem:[#allocation18_spill] sm:$0xff] %v11931_v1  ;;  %v3899_v6 = vsub.f32 %v14465_v61, %v14464_v47  ;;  %v7592_v22 = vpop.eup %7591  ;;  %v11939_v18 = vadd.f32 %v3678_v60, %v14468_v20  ;;  %v3688_v1 = vmul.f32 0.6931472, %v7584_v42  ;;  %v14471_v47 = vld [vmem:[#allocation358_spill] sm:$0xff]  ;;  %v3696_v61 = vmul.f32 0.6931472, %v7590_v2  ;;  %v3438_v60 = vpop.xlane.xlu1 %3437 }
 0x6a7   : > { %v7594_v19 = vpop.eup %7593  ;;  %v11948_v11 = vadd.f32 %v3694_v29, %v14471_v47  ;;  %v14473_v20 = vld [vmem:[#allocation359_spill] sm:$0xff]  ;;  %v5269_v42 = vsub.f32 %v11817_v49, %v11917_v41  ;;  %v3684_v29 = vmul.f32 0.6931472, %v7592_v22  ;;  %v14480_v27 = vld [vmem:[#allocation354_spill] sm:$0xff]  ;;  %v14484_v49 = vld [vmem:[#allocation109_spill] sm:$0xff]  ;;  %7609 = vlog2.f32 %v11794_v25 }
 0x6a8   : > { %4243 = vperm.xlu0 %6830, %v3896_v33   ;;  %v7596_v62 = vpop.eup %7595  ;;  %v11951_v30 = vadd.f32 %v3692_v40, %v14473_v20  ;;  %v14475_v33 = vld [vmem:[#allocation107_spill] sm:$0xff]  ;;  %v14478_v40 = vld [vmem:[#allocation110_spill] sm:$0xff]  ;;  %v3706_v47 = vmul.f32 0.6931472, %v7594_v19  ;;  %v11966_v20 = vadd.f32 %v3686_v50, %v14480_v27  ;;  %v11969_v57 = vadd.f32 %v3688_v1, %v14482_v32  ;;  %v14485_v41 = vld [vmem:[#allocation269_spill] sm:$0xff] }
 0x6a9   : > { %14472 = vst [vmem:[#allocation377_spill] sm:$0xff] %v11948_v11  ;;  %v7598_v46 = vpop.eup %7597  ;;  %v5282_v52 = vsub.f32 %v3438_v60, %v11948_v11  ;;  %v3436_v48 = vpop.xlane.xlu0 %3435  ;;  %v14479_v2 = vld [vmem:[#allocation267_spill] sm:$0xff]  ;;  %v3903_v60 = vsub.f32 %v14485_v41, %v14484_v49  ;;  %v3702_v22 = vmul.f32 0.6931472, %v7596_v62  ;;  %v14486_v8 = vld [vmem:[#allocation356_spill] sm:$0xff]  ;;  %v5921_v50 = vrot.slane %v5269_v42, %v10559_v13 }
 0x6aa   : > { %4252 = vperm.xlu1 %6831, %v3899_v6   ;;  %14474 = vst [vmem:[#allocation19_spill] sm:$0xff] %v11951_v30  ;;  %v5281_v16 = vsub.f32 %v3436_v48, %v11951_v30  ;;  %14481 = vst [vmem:[#allocation20_spill] sm:$0xff] %v11966_v20  ;;  %v7600_v11 = vpop.eup %7599  ;;  %v3700_v55 = vmul.f32 0.6931472, %v7598_v46  ;;  %v11974_v48 = vadd.f32 %v3698_v44, %v14486_v8  ;;  %v14487_v30 = vld [vmem:[#allocation357_spill] sm:$0xff]  ;;  %v14488_v46 = vld [vmem:[#allocation355_spill] sm:$0xff]  ;;  %7611 = vlog2.f32 %v11799_v34 }
 0x6ab   : > { %14483 = vst [vmem:[#allocation142_spill] sm:$0xff] %v11969_v57  ;;  %v11977_v6 = vadd.f32 %v3696_v61, %v14487_v30  ;;  %v5271_v1 = vsub.f32 %v11836_v26, %v11914_v45  ;;  %v5985_v19 = vrot.slane %v5282_v52, %v10423_v3  ;;  %v11988_v62 = vadd.f32 %v3684_v29, %v14488_v46  ;;  %v14490_v30 = vld [vmem:[#allocation360_spill] sm:$0xff]  ;;  %v7602_v52 = vpop.eup %7601  ;;  %v14493_v32 = vld [vmem:[#allocation363_spill] sm:$0xff] }
 0x6ac   : > { %4249 = vperm.xlu0 %6830, %v3898_v59   ;;  %v3442_v59 = vpop.xlane.xlu1 %3441  ;;  %v5981_v41 = vrot.slane %v5281_v16, %v10418_v21  ;;  %v3704_v61 = vmul.f32 0.6931472, %v7600_v11  ;;  %v11994_v42 = vadd.f32 %v3706_v47, %v14490_v30  ;;  %7613 = vlog2.f32 %v11786_v23  ;;  %v7604_v11 = vpop.eup %7603 }
 0x6ad   : > { %v3440_v27 = vpop.xlane.xlu0 %3439  ;;  %14489 = vst [vmem:[#allocation143_spill] sm:$0xff] %v11988_v62  ;;  %v5284_v26 = vsub.f32 %v3442_v59, %v11974_v48  ;;  %v5922_v34 = vsel %vm4521_vm11, %v5921_v50, %v11898_v35  ;;  %v5931_v47 = vrot.slane %v5271_v1, %v10536_v36  ;;  %v5273_v49 = vsub.f32 %v11855_v17, %v11942_v0 }
 0x6ae   : > { %4258 = vperm.xlu1 %6831, %v3901_v37   ;;  %v5270_v37 = vsub.f32 %v11812_v24, %v11908_v5  ;;  %v5283_v44 = vsub.f32 %v3440_v27, %v11977_v6  ;;  %14491 = vst [vmem:[#allocation138_spill] sm:$0xff] %v11994_v42  ;;  %v14492_v24 = vld [vmem:[#allocation362_spill] sm:$0xff]  ;;  %v5986_v23 = vsel %vm4500_vm8, %v5985_v19, %v5981_v41  ;;  %v7606_v50 = vpop.eup %7605  ;;  %7615 = vlog2.f32 %v11790_v58  ;;  %v14495_v19 = vld [vmem:[#allocation361_spill] sm:$0xff] }
 0x6af   : > { %v11999_v29 = vadd.f32 %v3702_v22, %v14492_v24  ;;  %v5272_v22 = vsub.f32 %v11831_v54, %v11911_v38  ;;  %v14494_v35 = vsub.f32 %v14459_v7, %v11586_v43  ;;  %v5995_v17 = vrot.slane %v5284_v26, %v14251_v53  ;;  %v7608_v27 = vpop.eup %7607  ;;  %v14497_v26 = vld [vmem:[#allocation130_spill] sm:$0xff] }
 0x6b0   : > { %4255 = vperm.xlu0 %6830, %v3900_v12   ;;  %v5990_v25 = vrot.slane %v5283_v44, %v14245_v9  ;;  %v3446_v16 = vpop.xlane.xlu1 %3445  ;;  %v12002_v12 = vadd.f32 %v3700_v55, %v14493_v32  ;;  %v12022_v41 = vadd.f32 %v3704_v61, %v14495_v19  ;;  %v3710_v54 = vmul.f32 0.6931472, %v7602_v52 }
 0x6b1   : > { %v3444_v8 = vpop.xlane.xlu0 %3443  ;;  %v5286_v1 = vsub.f32 %v3446_v16, %v11999_v29  ;;  %v14496_v43 = vsub.f32 %v14476_v51, %v14475_v33  ;;  %v5941_v30 = vrot.slane %v5273_v49, %v14497_v26  ;;  %v5275_v61 = vsub.f32 %v11875_v63, %v11929_v10  ;;  %v7610_v49 = vpop.eup %7609 }
 0x6b2   : > { %4264 = vperm.xlu1 %6831, %v3903_v60   ;;  %v5926_v60 = vrot.slane %v5270_v37, %v10548_v28  ;;  %v5991_v55 = vsel %vm4507_vm9, %v5990_v25, %v5986_v23  ;;  %v5285_v59 = vsub.f32 %v3444_v8, %v12002_v12  ;;  %v3708_v37 = vmul.f32 0.6931472, %v7604_v11 }
 0x6b3   : > { %v5996_v25 = vsel %vm4514_vm10, %v5995_v17, %v5991_v55  ;;  %v5936_v24 = vrot.slane %v5272_v22, %v14236_v15  ;;  %v5274_v16 = vsub.f32 %v11850_v39, %v11939_v18  ;;  %v14498_v51 = vsub.f32 %v14479_v2, %v14478_v40  ;;  %v14502_v2 = vld [vmem:[#allocation367_spill] sm:$0xff] }
 0x6b4   : > { %4261 = vperm.xlu0 %6830, %v14494_v35   ;;  %v5927_v46 = vsel %vm4528_vm12, %v5926_v60, %v5922_v34  ;;  %v6000_v44 = vrot.slane %v5285_v59, %v10559_v13  ;;  %v3450_v7 = vpop.xlane.xlu1 %3449  ;;  %v3714_v11 = vmul.f32 0.6931472, %v7606_v50  ;;  %v3712_v34 = vmul.f32 0.6931472, %v7608_v27  ;;  %v14500_v60 = vld [vmem:[#allocation366_spill] sm:$0xff]  ;;  %v7612_v59 = vpop.eup %7611  ;;  %v14503_v50 = vld [vmem:[#allocation131_spill] sm:$0xff] }
 0x6b5   : > { %v5932_v58 = vsel %vm4535_vm13, %v5931_v47, %v5927_v46  ;;  %v3448_v52 = vpop.xlane.xlu0 %3447  ;;  %v6005_v63 = vrot.slane %v5286_v1, %v10548_v28  ;;  %v5288_v47 = vsub.f32 %v3450_v7, %v11994_v42  ;;  %v14499_v39 = vsub.f32 %v14437_v14, %v14436_v56  ;;  %v14504_v56 = vld [vmem:[#allocation133_spill] sm:$0xff] }
 0x6b6   : > { %4270 = vperm.xlu1 %6831, %v14496_v43   ;;  %v6001_v32 = vsel %vm4521_vm11, %v6000_v44, %v5996_v25  ;;  %v5287_v33 = vsub.f32 %v3448_v52, %v12022_v41  ;;  %v5937_v23 = vsel %vm4542_vm14, %v5936_v24, %v5932_v58  ;;  %v12050_v22 = vadd.f32 %v3710_v54, %v14500_v60  ;;  %v7614_v14 = vpop.eup %7613  ;;  %v14505_v54 = vld [vmem:[#allocation101_spill] sm:$0xff]  ;;  %v14506_v44 = vld [vmem:[#allocation122_spill] sm:$0xff]  ;;  %v14509_v25 = vld [vmem:[#allocation364_spill] sm:$0xff] }
 0x6b7   : > { %v12053_v55 = vadd.f32 %v3708_v37, %v14502_v2  ;;  %v5942_v35 = vsel %vm4549_vm15, %v5941_v30, %v5937_v23  ;;  %v5951_v17 = vrot.slane %v5275_v61, %v14503_v50  ;;  %v5277_v1 = vsub.f32 %v11900_v4, %v11988_v62  ;;  %v14507_v58 = vld [vmem:[#allocation114_spill] sm:$0xff]  ;;  %v14511_v24 = vld [vmem:[#allocation365_spill] sm:$0xff] }
 0x6b8   : > { %4267 = vperm.xlu0 %6830, %v14498_v51   ;;  %v6010_v8 = vrot.slane %v5287_v33, %v10536_v36  ;;  %14501 = vst [vmem:[#allocation140_spill] sm:$0xff] %v12050_v22  ;;  %v3454_v40 = vpop.xlane.xlu1 %3453  ;;  %v6006_v19 = vsel %vm4528_vm12, %v6005_v63, %v6001_v32  ;;  %v5946_v46 = vrot.slane %v5274_v16, %v14504_v56  ;;  %v3718_v32 = vmul.f32 0.6931472, %v7610_v49  ;;  %v14513_v23 = vld [vmem:[#allocation22_spill] sm:$0xff] }
 0x6b9   : > { %v3452_v27 = vpop.xlane.xlu0 %3451  ;;  %v5276_v43 = vsub.f32 %v14506_v44, %v14505_v54  ;;  %v14508_v30 = vsub.f32 %v14470_v31, %v14507_v58  ;;  %v6015_v61 = vrot.slane %v5288_v47, %v14236_v15  ;;  %v5290_v4 = vsub.f32 %v3454_v40, %v12050_v22  ;;  %v7616_v47 = vpop.eup %7615  ;;  %v14517_v40 = vld [vmem:[#allocation168_spill] sm:$0xff]  ;;  %v14518_v2 = vld [vmem:[#allocation18_spill] sm:$0xff] }
 0x6ba   : > { %4276 = vperm.xlu1 %6831, %v14499_v39   ;;  %v6011_v37 = vsel %vm4535_vm13, %v6010_v8, %v6006_v19  ;;  %v5289_v7 = vsub.f32 %v3452_v27, %v12053_v55  ;;  %v12071_v52 = vadd.f32 %v3714_v11, %v14509_v25  ;;  %v12074_v16 = vadd.f32 %v3712_v34, %v14511_v24  ;;  %v14514_v8 = vld [vmem:[#allocation214_spill] sm:$0xff]  ;;  %v14519_v19 = vld [vmem:[#allocation132_spill] sm:$0xff]  ;;  %v14520_v27 = vld [vmem:[#allocation123_spill] sm:$0xff] }
 0x6bb   : > { %v3716_v33 = vmul.f32 0.6931472, %v7612_v59  ;;  %v5947_v51 = vsel %vm4556_vm0, %v5946_v46, %v5942_v35  ;;  %v14515_v31 = vsub.f32 %v14513_v23, %v14514_v8  ;;  %v5961_v11 = vrot.slane %v5277_v1, %v14517_v40  ;;  %v14521_v58 = vld [vmem:[#allocation24_spill] sm:$0xff]  ;;  %v14525_v24 = vld [vmem:[#allocation105_spill] sm:$0xff]  ;;  %v14528_v8 = vld [vmem:[#allocation34_spill] sm:$0xff] }
 0x6bc   : > { %4273 = vperm.xlu0 %6830, %v14508_v30   ;;  %14510 = vst [vmem:[#allocation379_spill] sm:$0xff] %v12071_v52  ;;  %14512 = vst [vmem:[#allocation28_spill] sm:$0xff] %v12074_v16  ;;  %v6020_v63 = vrot.slane %v5289_v7, %v14497_v26  ;;  %v3458_v39 = vpop.xlane.xlu1 %3457  ;;  %v5952_v60 = vsel %vm14516_vm4, %v5951_v17, %v5947_v51  ;;  %v5279_v34 = vsub.f32 %v14518_v2, %v11969_v57  ;;  %v14522_v30 = vld [vmem:[#allocation216_spill] sm:$0xff]  ;;  %vm14527_vm4 = vcmask 786112   ;;  %v14598_v22 = vld [vmem:[#allocation194_spill] sm:$0xff] }
 0x6bd   : > { %v6016_v49 = vsel %vm4542_vm14, %v6015_v61, %v6011_v37  ;;  %v3456_v59 = vpop.xlane.xlu0 %3455  ;;  %v5956_v35 = vrot.slane %v5276_v43, %v14519_v19  ;;  %v5278_v46 = vsub.f32 %v14520_v27, %v11966_v20  ;;  %v14523_v17 = vsub.f32 %v14521_v58, %v14522_v30  ;;  %v14524_v25 = vld [vmem:[#allocation352_spill] sm:$0xff]  ;;  %v14533_v58 = vld [vmem:[#allocation382_spill] sm:$0xff] }
 0x6be   : > { %4282 = vperm.xlu1 %6831, %v14515_v31   ;;  %v6021_v44 = vsel %vm4549_vm15, %v6020_v63, %v6016_v49  ;;  %v5291_v7 = vsub.f32 %v3456_v59, %v12074_v16  ;;  %v3722_v1 = vmul.f32 0.6931472, %v7614_v14  ;;  %v12096_v51 = vadd.f32 %v14525_v24, %v14524_v25  ;;  %v14529_v31 = vld [vmem:[#allocation225_spill] sm:$0xff]  ;;  %v14531_v59 = vld [vmem:[#allocation371_spill] sm:$0xff] }
 0x6bf   : > { %v6025_v37 = vrot.slane %v5290_v4, %v14504_v56  ;;  %v5292_v43 = vsub.f32 %v3458_v39, %v12071_v52  ;;  %v3720_v61 = vmul.f32 0.6931472, %v7616_v47  ;;  %v5957_v23 = vsel %vm14527_vm4, %v5956_v35, %v5952_v60  ;;  %v14534_v39 = vld [vmem:[#allocation370_spill] sm:$0xff]  ;;  %v14536_v35 = vld [vmem:[#allocation160_spill] sm:$0xff] }
 0x6c0   : > { %4279 = vperm.xlu0 %6830, %v14523_v17   ;;  %14526 = vst [vmem:[#allocation126_spill] sm:$0xff] %v12096_v51  ;;  %v6030_v63 = vrot.slane %v5291_v7, %v14503_v50  ;;  %v14530_v2 = vsub.f32 %v14528_v8, %v14529_v31  ;;  %v3462_v49 = vpop.xlane.xlu1 %3461  ;;  %v12106_v14 = vadd.f32 %v3716_v33, %v14531_v59  ;;  %v14537_v17 = vld [vmem:[#allocation21_spill] sm:$0xff]  ;;  %vm14538_vm4 = vcmask 720512   ;;  %v14539_v8 = vld [vmem:[#allocation23_spill] sm:$0xff] }
 0x6c1   : > { %v5962_v27 = vsel %vm4577_vm3, %v5961_v11, %v5957_v23  ;;  %v5971_v30 = vrot.slane %v5279_v34, %v14533_v58  ;;  %v6026_v4 = vsel %vm4556_vm0, %v6025_v37, %v6021_v44  ;;  %v12112_v47 = vadd.f32 %v3718_v32, %v14534_v39  ;;  %v3460_v60 = vpop.xlane.xlu0 %3459  ;;  %v14540_v31 = vld [vmem:[#allocation211_spill] sm:$0xff]  ;;  %v14542_v32 = vld [vmem:[#allocation368_spill] sm:$0xff]  ;;  %v14548_v39 = vld [vmem:[#allocation369_spill] sm:$0xff] }
 0x6c2   : > { %4288 = vperm.xlu1 %6831, %v14530_v2   ;;  %14532 = vst [vmem:[#allocation29_spill] sm:$0xff] %v12106_v14  ;;  %v5966_v7 = vrot.slane %v5278_v46, %v14536_v35  ;;  %v5280_v25 = vsub.f32 %v14537_v17, %v12096_v51  ;;  %v6031_v24 = vsel %vm14538_vm4, %v6030_v63, %v6026_v4  ;;  %v14545_v2 = vld [vmem:[#allocation32_spill] sm:$0xff]  ;;  %v14546_v59 = vld [vmem:[#allocation219_spill] sm:$0xff]  ;;  %vm14552_vm4 = vcmask 786112  }
 0x6c3   : > { %14535 = vst [vmem:[#allocation380_spill] sm:$0xff] %v12112_v47  ;;  %v5293_v33 = vsub.f32 %v3460_v60, %v12106_v14  ;;  %v14541_v11 = vsub.f32 %v14539_v8, %v14540_v31  ;;  %v6035_v34 = vrot.slane %v5292_v43, %v14519_v19  ;;  %v5294_v44 = vsub.f32 %v3462_v49, %v12112_v47  ;;  %v14550_v17 = vld [vmem:[#allocation223_spill] sm:$0xff]  ;;  %v14551_v8 = vld [vmem:[#allocation33_spill] sm:$0xff]  ;;  %v14591_v47 = vld [vmem:[#allocation124_spill] sm:$0xff] }
 0x6c4   : > { %v12125_v37 = vadd.f32 %v3722_v1, %v14542_v32  ;;  %v5967_v46 = vsel %vm14544_vm2, %v5966_v7, %v5962_v27  ;;  %v14547_v63 = vsub.f32 %v14545_v2, %v14546_v59  ;;  %v3466_v4 = vpop.xlane.xlu1 %3465  ;;  %v12133_v60 = vadd.f32 %v3720_v61, %v14548_v39  ;;  %v14553_v7 = vld [vmem:[#allocation381_spill] sm:$0xff]  ;;  %v14554_v2 = vld [vmem:[#allocation154_spill] sm:$0xff] }
 0x6c5   : > { %4285 = vperm.xlu0 %6830, %v14541_v11   ;;  %v6040_v23 = vrot.slane %v5293_v33, %v14517_v40  ;;  %v3912_v43 = vsub.f32 %v14551_v8, %v14550_v17  ;;  %v5972_v49 = vsel %vm4591_vm5, %v5971_v30, %v5967_v46  ;;  %v6036_v1 = vsel %vm14552_vm4, %v6035_v34, %v6031_v24  ;;  %v3464_v27 = vpop.xlane.xlu0 %3463  ;;  %v14555_v61 = vld [vmem:[#allocation57_spill] sm:$0xff]  ;;  %v14556_v34 = vld [vmem:[#allocation215_spill] sm:$0xff] }
 0x6c6   : > { %14543 = vst [vmem:[#allocation27_spill] sm:$0xff] %v12125_v37  ;;  %4294 = vperm.xlu1 %6831, %v14547_v63   ;;  %14549 = vst [vmem:[#allocation258_spill] sm:$0xff] %v12133_v60  ;;  %v5296_v31 = vsub.f32 %v3466_v4, %v12125_v37  ;;  %v5976_v33 = vrot.slane %v5280_v25, %v14553_v7  ;;  %v5295_v32 = vsub.f32 %v3464_v27, %v12133_v60  ;;  %v14557_v46 = vld [vmem:[#allocation31_spill] sm:$0xff]  ;;  %vm13209_vm2 = vcmask 1046534  }
 0x6c7   : > { %v6041_v11 = vsel %vm4577_vm3, %v6040_v23, %v6036_v1  ;;  %v3915_v59 = vsub.f32 %v14555_v61, %v14554_v2  ;;  %v6045_v63 = vrot.slane %v5294_v44, %v14536_v35  ;;  %v3914_v25 = vsub.f32 %v14557_v46, %v14556_v34  ;;  %v14559_v44 = vld [vmem:[#allocation155_spill] sm:$0xff]  ;;  %v14561_v1 = vld [vmem:[#allocation118_spill] sm:$0xff]  ;;  %v14566_v46 = vld [vmem:[#allocation156_spill] sm:$0xff] }
 0x6c8   : > { %v5977_v39 = vsel %vm4598_vm6, %v5976_v33, %v5972_v49  ;;  %v6050_v30 = vrot.slane %v5295_v32, %v14533_v58  ;;  %v12148_v24 = vpop.permute.xlu1 %4111  ;;  %v6055_v23 = vrot.slane %v5296_v31, %v14553_v7  ;;  %vm14558_vm4 = vcmask 917312   ;;  %v14560_v8 = vld [vmem:[#allocation51_spill] sm:$0xff]  ;;  %v14562_v32 = vld [vmem:[#allocation157_spill] sm:$0xff] }
 0x6c9   : > { %4291 = vperm.xlu0 %6830, %v3912_v43   ;;  %v6046_v4 = vsel %vm14558_vm4, %v6045_v63, %v6041_v11  ;;  %v3917_v43 = vsub.f32 %v14560_v8, %v14559_v44  ;;  %v6062_v27 = vsel %vm13209_vm2, %v5977_v39, %v14561_v1  ;;  %v14563_v2 = vld [vmem:[#allocation55_spill] sm:$0xff]  ;;  %v14567_v39 = vld [vmem:[#allocation49_spill] sm:$0xff]  ;;  %vm14618_vm4 = vcmask 720512  }
 0x6ca   : > { %4300 = vperm.xlu1 %6831, %v3915_v59   ;;  %v6051_v17 = vsel %vm4591_vm5, %v6050_v30, %v6046_v4  ;;  %v3916_v31 = vsub.f32 %v14563_v2, %v14562_v32  ;;  %v12165_v61 = vpop.permute.xlu0 %4108  ;;  %v14564_v59 = vld [vmem:[#allocation172_spill] sm:$0xff]  ;;  %v14565_v63 = vld [vmem:[#allocation83_spill] sm:$0xff]  ;;  %v14568_v4 = vld [vmem:[#allocation166_spill] sm:$0xff]  ;;  %vm14624_vm2 = vcmask 917312  }
 0x6cb   : > { %v6056_v49 = vsel %vm4598_vm6, %v6055_v23, %v6051_v17  ;;  %v3919_v30 = vsub.f32 %v14565_v63, %v14564_v59  ;;  %v14569_v17 = vld [vmem:[#allocation81_spill] sm:$0xff]  ;;  %v14572_v32 = vld [vmem:[#allocation180_spill] sm:$0xff] }
 0x6cc   : > { %v12160_v33 = vpop.permute.xlu1 %4114  ;;  %v6063_v11 = vsel %vm13208_vm1, %v6056_v49, %v6062_v27  ;;  %v3921_v44 = vsub.f32 %v14569_v17, %v14568_v4  ;;  %v14571_v49 = vld [vmem:[#allocation82_spill] sm:$0xff]  ;;  %v14573_v2 = vld [vmem:[#allocation108_spill] sm:$0xff]  ;;  %v14574_v59 = vld [vmem:[#allocation169_spill] sm:$0xff]  ;;  %vm14619_vm1 = vcmask 786112  }
 0x6cd   : > { %4297 = vperm.xlu0 %6830, %v3914_v25   ;;  %6065 = vst [vmem:[%s7867_s19] sm:$0xff] %v6063_v11  ;;  %v3918_v25 = vsub.f32 %v14567_v39, %v14566_v46  ;;  %v14575_v63 = vld [vmem:[#allocation80_spill] sm:$0xff]  ;;  %v14576_v39 = vld [vmem:[#allocation179_spill] sm:$0xff] }
 0x6ce   : > { %4306 = vperm.xlu1 %6831, %v3917_v43   ;;  %v12174_v23 = vpop.permute.xlu0 %4117  ;;  %v14570_v43 = vld [vmem:[#allocation170_spill] sm:$0xff] }
 0x6cf   : > { %v3920_v1 = vsub.f32 %v14571_v49, %v14570_v43  ;;  %v14579_v43 = vld [vmem:[#allocation106_spill] sm:$0xff] }
 0x6d0   : > { %v12170_v34 = vpop.permute.xlu1 %4120 }
 0x6d1   : > { %4303 = vperm.xlu0 %6830, %v3916_v31   ;;  %v3923_v31 = vsub.f32 %v14573_v2, %v14572_v32  ;;  %v14580_v32 = vld [vmem:[#allocation189_spill] sm:$0xff] }
 0x6d2   : > { %4312 = vperm.xlu1 %6831, %v3919_v30   ;;  %v12182_v27 = vpop.permute.xlu0 %4123  ;;  %v3922_v30 = vsub.f32 %v14575_v63, %v14574_v59  ;;  %v14581_v2 = vld [vmem:[#allocation129_spill] sm:$0xff]  ;;  %v14582_v63 = vld [vmem:[#allocation178_spill] sm:$0xff] }
 0x6d4   : > { %v12178_v8 = vpop.permute.xlu1 %4126 }
 0x6d5   : > { %4309 = vperm.xlu0 %6830, %v3918_v25   ;;  %v14577_v25 = vld [vmem:[#allocation104_spill] sm:$0xff] }
 0x6d6   : > { %4318 = vperm.xlu1 %6831, %v3921_v44   ;;  %v12190_v46 = vpop.permute.xlu0 %4129  ;;  %v3925_v4 = vsub.f32 %v14577_v25, %v14576_v39  ;;  %v14578_v44 = vld [vmem:[#allocation176_spill] sm:$0xff]  ;;  %v14584_v39 = vld [vmem:[#allocation187_spill] sm:$0xff]  ;;  %v14585_v25 = vld [vmem:[#allocation125_spill] sm:$0xff] }
 0x6d7   : > { %v3924_v49 = vsub.f32 %v14579_v43, %v14578_v44  ;;  %v14586_v43 = vld [vmem:[#allocation190_spill] sm:$0xff] }
 0x6d8   : > { %v12186_v11 = vpop.permute.xlu1 %4132 }
 0x6d9   : > { %4315 = vperm.xlu0 %6830, %v3920_v1  }
 0x6da   : > { %4324 = vperm.xlu1 %6831, %v3923_v31   ;;  %v12198_v1 = vpop.permute.xlu0 %4135  ;;  %v3927_v31 = vsub.f32 %v14581_v2, %v14580_v32  ;;  %v14588_v32 = vld [vmem:[#allocation195_spill] sm:$0xff]  ;;  %v14589_v2 = vld [vmem:[#allocation153_spill] sm:$0xff] }
 0x6dc   : > { %v12194_v17 = vpop.permute.xlu1 %4138 }
 0x6dd   : > { %4321 = vperm.xlu0 %6830, %v3922_v30   ;;  %v14583_v30 = vld [vmem:[#allocation102_spill] sm:$0xff] }
 0x6de   : > { %4330 = vperm.xlu1 %6831, %v3925_v4   ;;  %v3926_v37 = vsub.f32 %v14583_v30, %v14582_v63  ;;  %v3929_v4 = vsub.f32 %v14585_v25, %v14584_v39  ;;  %v14590_v30 = vld [vmem:[#allocation186_spill] sm:$0xff]  ;;  %v14592_v39 = vld [vmem:[#allocation193_spill] sm:$0xff] }
 0x6df   : > { %v12206_v51 = vpop.permute.xlu0 %4141  ;;  %v14593_v25 = vld [vmem:[#allocation149_spill] sm:$0xff] }
 0x6e0   : > { %v12202_v59 = vpop.permute.xlu1 %4144 }
 0x6e1   : > { %4327 = vperm.xlu0 %6830, %v3924_v49   ;;  %v14587_v49 = vld [vmem:[#allocation127_spill] sm:$0xff] }
 0x6e2   : > { %4336 = vperm.xlu1 %6831, %v3927_v31   ;;  %v3928_v60 = vsub.f32 %v14587_v49, %v14586_v43  ;;  %v3931_v31 = vsub.f32 %v14589_v2, %v14588_v32  ;;  %v14594_v43 = vld [vmem:[#allocation196_spill] sm:$0xff]  ;;  %v14595_v49 = vld [vmem:[#allocation151_spill] sm:$0xff]  ;;  %v14596_v2 = vld [vmem:[#allocation230_spill] sm:$0xff] }
 0x6e3   : > { %v3932_v62 = vsub.f32 %v14595_v49, %v14594_v43  ;;  %v14601_v49 = vld [vmem:[#allocation173_spill] sm:$0xff] }
 0x6e4   : > { %v12210_v44 = vpop.permute.xlu1 %4150  ;;  %v12214_v57 = vpop.permute.xlu0 %4147 }
 0x6e5   : > { %4333 = vperm.xlu0 %6830, %v3926_v37   ;;  %v3930_v37 = vsub.f32 %v14591_v47, %v14590_v30 }
 0x6e6   : > { %4342 = vperm.xlu1 %6831, %v3929_v4   ;;  %v3933_v4 = vsub.f32 %v14593_v25, %v14592_v39  ;;  %v14599_v39 = vld [vmem:[#allocation147_spill] sm:$0xff] }
 0x6e7   : > { %v3934_v25 = vsub.f32 %v14599_v39, %v14598_v22 }
 0x6e8   : > { %v4157_v63 = vpop.permute.xlu1 %4156  ;;  %v12220_v20 = vpop.permute.xlu0 %4153 }
 0x6e9   : > { %4339 = vperm.xlu0 %6830, %v3928_v60   ;;  %v4603_v52 = vrot.slane %v4157_v63, %v10418_v21  ;;  %v14600_v63 = vld [vmem:[#allocation238_spill] sm:$0xff] }
 0x6ea   : > { %4348 = vperm.xlu1 %6831, %v3931_v31   ;;  %v14597_v31 = vld [vmem:[#allocation177_spill] sm:$0xff] }
 0x6eb   : > { %v3935_v47 = vsub.f32 %v14597_v31, %v14596_v2  ;;  %v14603_v31 = vld [vmem:[#allocation175_spill] sm:$0xff] }
 0x6ec   : > { %v4163_v14 = vpop.permute.xlu1 %4162 }
 0x6ed   : > { %4345 = vperm.xlu0 %6830, %v3930_v37   ;;  %v4160_v60 = vpop.permute.xlu0 %4159 }
 0x6ee   : > { %4354 = vperm.xlu1 %6831, %v3933_v4   ;;  %v4607_v32 = vrot.slane %v4160_v60, %v10423_v3  ;;  %v4612_v4 = vrot.slane %v4163_v14, %v14245_v9  ;;  %v3937_v60 = vsub.f32 %v14601_v49, %v14600_v63  ;;  %v14607_v49 = vld [vmem:[#allocation171_spill] sm:$0xff] }
 0x6f0   : > { %v4608_v30 = vsel %vm4500_vm8, %v4607_v32, %v4603_v52  ;;  %v4169_v37 = vpop.permute.xlu1 %4168  ;;  %v14602_v32 = vld [vmem:[#allocation235_spill] sm:$0xff] }
 0x6f1   : > { %4351 = vperm.xlu0 %6830, %v3932_v62   ;;  %v4166_v16 = vpop.permute.xlu0 %4165  ;;  %v4613_v62 = vsel %vm4507_vm9, %v4612_v4, %v4608_v30  ;;  %v4622_v22 = vrot.slane %v4169_v37, %v10559_v13 }
 0x6f2   : > { %4360 = vperm.xlu1 %6831, %v3935_v47   ;;  %v4617_v43 = vrot.slane %v4166_v16, %v14251_v53  ;;  %v3936_v47 = vsub.f32 %v14603_v31, %v14602_v32  ;;  %v14604_v16 = vld [vmem:[#allocation245_spill] sm:$0xff] }
 0x6f3   : > { %v14608_v31 = vld [vmem:[#allocation249_spill] sm:$0xff] }
 0x6f4   : > { %v4618_v2 = vsel %vm4514_vm10, %v4617_v43, %v4613_v62  ;;  %v4175_v52 = vpop.permute.xlu1 %4174  ;;  %v14606_v43 = vld [vmem:[#allocation244_spill] sm:$0xff] }
 0x6f5   : > { %4357 = vperm.xlu0 %6830, %v3934_v25   ;;  %v14605_v25 = vld [vmem:[#allocation42_spill] sm:$0xff]  ;;  %v4623_v63 = vsel %vm4521_vm11, %v4622_v22, %v4618_v2  ;;  %v4632_v62 = vrot.slane %v4175_v52, %v10536_v36 }
 0x6f6   : > { %4366 = vperm.xlu1 %6831, %v3937_v60   ;;  %v4172_v39 = vpop.permute.xlu0 %4171  ;;  %v3939_v42 = vsub.f32 %v14605_v25, %v14604_v16  ;;  %v3938_v60 = vsub.f32 %v14607_v49, %v14606_v43  ;;  %v14612_v49 = vld [vmem:[#allocation372_spill] sm:$0xff] }
 0x6f7   : > { %v4627_v14 = vrot.slane %v4172_v39, %v10548_v28 }
 0x6f8   : > { %v4181_v4 = vpop.permute.xlu1 %4180 }
 0x6f9   : > { %4363 = vperm.xlu0 %6830, %v3936_v47   ;;  %v4628_v30 = vsel %vm4528_vm12, %v4627_v14, %v4623_v63  ;;  %v14609_v47 = vld [vmem:[#allocation41_spill] sm:$0xff]  ;;  %v14611_v14 = vld [vmem:[#allocation44_spill] sm:$0xff]  ;;  %v4642_v63 = vrot.slane %v4181_v4, %v14497_v26 }
 0x6fa   : > { %4372 = vperm.xlu1 %6831, %v3939_v42   ;;  %v3941_v39 = vsub.f32 %v14609_v47, %v14608_v31  ;;  %v4633_v16 = vsel %vm4535_vm13, %v4632_v62, %v4628_v30  ;;  %v14610_v42 = vld [vmem:[#allocation246_spill] sm:$0xff]  ;;  %v14615_v47 = vld [vmem:[#allocation43_spill] sm:$0xff] }
 0x6fb   : > { %v4178_v32 = vpop.permute.xlu0 %4177  ;;  %v3940_v25 = vsub.f32 %v14611_v14, %v14610_v42  ;;  %v14616_v14 = vld [vmem:[#allocation111_spill] sm:$0xff] }
 0x6fc   : > { %v4637_v37 = vrot.slane %v4178_v32, %v14236_v15 }
 0x6fd   : > { %4369 = vperm.xlu0 %6830, %v3938_v60   ;;  %v4187_v22 = vpop.permute.xlu1 %4186  ;;  %v14613_v60 = vld [vmem:[#allocation47_spill] sm:$0xff] }
 0x6fe   : > { %v4638_v2 = vsel %vm4542_vm14, %v4637_v37, %v4633_v16  ;;  %4378 = vperm.xlu1 %6831, %v3941_v39   ;;  %v3943_v32 = vsub.f32 %v14613_v60, %v14612_v49  ;;  %v14614_v37 = vld [vmem:[#allocation250_spill] sm:$0xff]  ;;  %v4652_v16 = vrot.slane %v4187_v22, %v14503_v50 }
 0x6ff   : > { %v4184_v43 = vpop.permute.xlu0 %4183  ;;  %v4643_v31 = vsel %vm4549_vm15, %v4642_v63, %v4638_v2  ;;  %v3942_v39 = vsub.f32 %v14615_v47, %v14614_v37  ;;  %v14621_v60 = vld [vmem:[#allocation50_spill] sm:$0xff]  ;;  %v14622_v47 = vld [vmem:[#allocation136_spill] sm:$0xff] }
 0x700   : > { %v4647_v52 = vrot.slane %v4184_v43, %v14504_v56 }
 0x701   : > { %4375 = vperm.xlu0 %6830, %v3940_v25   ;;  %v4193_v62 = vpop.permute.xlu1 %4192  ;;  %v14617_v25 = vld [vmem:[#allocation46_spill] sm:$0xff] }
 0x702   : > { %v4648_v30 = vsel %vm4556_vm0, %v4647_v52, %v4643_v31  ;;  %4384 = vperm.xlu1 %6831, %v3943_v32   ;;  %v3945_v43 = vsub.f32 %v14617_v25, %v14616_v14  ;;  %v14620_v52 = vld [vmem:[#allocation112_spill] sm:$0xff]  ;;  %v4662_v31 = vrot.slane %v4193_v62, %v14517_v40 }
 0x703   : > { %v4190_v42 = vpop.permute.xlu0 %4189  ;;  %v4653_v49 = vsel %vm14618_vm4, %v4652_v16, %v4648_v30  ;;  %v3944_v32 = vsub.f32 %v14621_v60, %v14620_v52  ;;  %v14626_v25 = vld [vmem:[#allocation48_spill] sm:$0xff] }
 0x704   : > { %v4657_v4 = vrot.slane %v4190_v42, %v14519_v19  ;;  %v14627_v60 = vld [vmem:[#allocation120_spill] sm:$0xff] }
 0x705   : > { %4381 = vperm.xlu0 %6830, %v3942_v39   ;;  %v4199_v63 = vpop.permute.xlu1 %4198  ;;  %v14623_v39 = vld [vmem:[#allocation59_spill] sm:$0xff] }
 0x706   : > { %v4658_v2 = vsel %vm14619_vm1, %v4657_v4, %v4653_v49  ;;  %4390 = vperm.xlu1 %6831, %v3945_v43   ;;  %v3947_v42 = vsub.f32 %v14623_v39, %v14622_v47  ;;  %v14625_v4 = vld [vmem:[#allocation116_spill] sm:$0xff]  ;;  %v4672_v49 = vrot.slane %v4199_v63, %v14533_v58  ;;  %v4494_v47 = vrot.slane %v12165_v61, %v10418_v21  ;;  %v14629_v39 = vld [vmem:[#allocation134_spill] sm:$0xff]  ;;  %vm14644_vm1 = vmmov %vm14618_vm4 }
 0x707   : > { %v4196_v37 = vpop.permute.xlu0 %4195  ;;  %v4663_v14 = vsel %vm4577_vm3, %v4662_v31, %v4658_v2  ;;  %v3946_v43 = vsub.f32 %v14626_v25, %v14625_v4  ;;  %v14631_v25 = vld [vmem:[#allocation376_spill] sm:$0xff]  ;;  %vm14647_vm4 = vcmask 786112  }
 0x708   : > { %v4667_v22 = vrot.slane %v4196_v37, %v14536_v35 }
 0x709   : > { %4387 = vperm.xlu0 %6830, %v3944_v32   ;;  %v4205_v16 = vpop.permute.xlu1 %4204  ;;  %v14628_v32 = vld [vmem:[#allocation58_spill] sm:$0xff] }
 0x70a   : > { %v4668_v30 = vsel %vm14624_vm2, %v4667_v22, %v4663_v14  ;;  %4396 = vperm.xlu1 %6831, %v3947_v42   ;;  %v3949_v37 = vsub.f32 %v14628_v32, %v14627_v60  ;;  %v14630_v42 = vld [vmem:[#allocation61_spill] sm:$0xff]  ;;  %v4499_v14 = vrot.slane %v12148_v24, %v10423_v3  ;;  %v4682_v60 = vrot.slane %v4205_v16, %v10418_v21  ;;  %vm14646_vm2 = vmmov %vm14644_vm1 }
 0x70b   : > { %v4202_v52 = vpop.permute.xlu0 %4201  ;;  %v4673_v2 = vsel %vm4591_vm5, %v4672_v49, %v4668_v30  ;;  %v3948_v63 = vsub.f32 %v14630_v42, %v14629_v39  ;;  %v4513_v49 = vrot.slane %v12174_v23, %v14251_v53  ;;  %v4506_v32 = vrot.slane %v12160_v33, %v14245_v9  ;;  %v14634_v39 = vld [vmem:[#allocation60_spill] sm:$0xff] }
 0x70c   : > { %v4677_v62 = vrot.slane %v4202_v52, %v14553_v7  ;;  %v4501_v30 = vsel %vm4500_vm8, %v4499_v14, %v4494_v47  ;;  %v14635_v47 = vld [vmem:[#allocation63_spill] sm:$0xff] }
 0x70d   : > { %4393 = vperm.xlu0 %6830, %v3946_v43   ;;  %v4211_v22 = vpop.permute.xlu1 %4210  ;;  %v14632_v43 = vld [vmem:[#allocation64_spill] sm:$0xff]  ;;  %v3953_v14 = vsub.f32 %v14635_v47, %v11914_v45  ;;  %v4508_v23 = vsel %vm4507_vm9, %v4506_v32, %v4501_v30 }
 0x70e   : > { %v12289_v31 = vsel %vm4598_vm6, %v4677_v62, %v4673_v2  ;;  %4402 = vperm.xlu1 %6831, %v3949_v37   ;;  %v3951_v52 = vsub.f32 %v14632_v43, %v14631_v25  ;;  %v4691_v62 = vrot.slane %v4211_v22, %v14245_v9  ;;  %v14633_v2 = vld [vmem:[#allocation121_spill] sm:$0xff]  ;;  %v4515_v33 = vsel %vm4514_vm10, %v4513_v49, %v4508_v23  ;;  %v14636_v43 = vld [vmem:[#allocation66_spill] sm:$0xff]  ;;  %v14637_v49 = vld [vmem:[#allocation75_spill] sm:$0xff] }
 0x70f   : > { %v4208_v4 = vpop.permute.xlu0 %4207  ;;  %v3950_v16 = vsub.f32 %v14634_v39, %v14633_v2  ;;  %v3955_v32 = vsub.f32 %v14637_v49, %v11942_v0  ;;  %v14638_v2 = vld [vmem:[#allocation248_spill] sm:$0xff] }
 0x710   : > { %v4686_v61 = vrot.slane %v4208_v4, %v10423_v3  ;;  %v4527_v4 = vrot.slane %v12182_v27, %v10548_v28  ;;  %v3954_v39 = vsub.f32 %v14638_v2, %v11911_v38 }
 0x711   : > { %4399 = vperm.xlu0 %6830, %v3948_v63   ;;  %v4217_v37 = vpop.permute.xlu1 %4216 }
 0x712   : > { %v4687_v24 = vsel %vm4500_vm8, %v4686_v61, %v4682_v60  ;;  %4408 = vperm.xlu1 %6831, %v3951_v52   ;;  %v4701_v25 = vrot.slane %v4217_v37, %v10559_v13  ;;  %v3952_v52 = vsub.f32 %v14636_v43, %v11908_v5  ;;  %v4520_v60 = vrot.slane %v12170_v34, %v10559_v13 }
 0x713   : > { %v4214_v42 = vpop.permute.xlu0 %4213  ;;  %v4692_v63 = vsel %vm4507_vm9, %v4691_v62, %v4687_v24  ;;  %v4541_v34 = vrot.slane %v12190_v46, %v14236_v15  ;;  %v4548_v43 = vrot.slane %v12186_v11, %v14497_v26  ;;  %v4569_v11 = vrot.slane %v12206_v51, %v14519_v19 }
 0x714   : > { %v4696_v22 = vrot.slane %v4214_v42, %v14251_v53  ;;  %v4522_v27 = vsel %vm4521_vm11, %v4520_v60, %v4515_v33 }
 0x715   : > { %4405 = vperm.xlu0 %6830, %v3950_v16   ;;  %v4223_v61 = vpop.permute.xlu1 %4222  ;;  %v4529_v5 = vsel %vm4528_vm12, %v4527_v4, %v4522_v27  ;;  %v4534_v16 = vrot.slane %v12178_v8, %v10536_v36  ;;  %v4555_v8 = vrot.slane %v12198_v1, %v14504_v56  ;;  %v14640_v4 = vld [vmem:[#allocation77_spill] sm:$0xff]  ;;  %v14643_v27 = vld [vmem:[#allocation76_spill] sm:$0xff] }
 0x716   : > { %v4697_v45 = vsel %vm4514_vm10, %v4696_v22, %v4692_v63  ;;  %4414 = vperm.xlu1 %6831, %v3953_v14   ;;  %v4711_v37 = vrot.slane %v4223_v61, %v10536_v36  ;;  %v14639_v14 = vld [vmem:[#allocation74_spill] sm:$0xff]  ;;  %v14641_v61 = vld [vmem:[#allocation19_spill] sm:$0xff] }
 0x717   : > { %v4220_v30 = vpop.permute.xlu0 %4219  ;;  %v4702_v62 = vsel %vm4521_vm11, %v4701_v25, %v4697_v45  ;;  %v3957_v23 = vsub.f32 %v14639_v14, %v11929_v10  ;;  %v4536_v46 = vsel %vm4535_vm13, %v4534_v16, %v4529_v5  ;;  %v3956_v25 = vsub.f32 %v14640_v4, %v11939_v18  ;;  %v14645_v16 = vld [vmem:[#allocation84_spill] sm:$0xff]  ;;  %v14649_v14 = vld [vmem:[#allocation86_spill] sm:$0xff] }
 0x718   : > { %v4706_v24 = vrot.slane %v4220_v30, %v10548_v28  ;;  %v4543_v38 = vsel %vm4542_vm14, %v4541_v34, %v4536_v46  ;;  %v14642_v30 = vld [vmem:[#allocation85_spill] sm:$0xff]  ;;  %v4562_v5 = vrot.slane %v12194_v17, %v14503_v50  ;;  %v4583_v17 = vrot.slane %v12214_v57, %v14536_v35 }
 0x719   : > { %4411 = vperm.xlu0 %6830, %v3952_v52   ;;  %v4229_v42 = vpop.permute.xlu1 %4228  ;;  %v4550_v1 = vsel %vm4549_vm15, %v4548_v43, %v4543_v38  ;;  %v4576_v46 = vrot.slane %v12202_v59, %v14517_v40  ;;  %v4597_v59 = vrot.slane %v12220_v20, %v14553_v7 }
 0x71a   : > { %v4707_v0 = vsel %vm4528_vm12, %v4706_v24, %v4702_v62  ;;  %4420 = vperm.xlu1 %6831, %v3955_v32   ;;  %v4721_v33 = vrot.slane %v4229_v42, %v14497_v26  ;;  %v3963_v62 = vsub.f32 %v14642_v30, %v14641_v61  ;;  %v4557_v18 = vsel %vm4556_vm0, %v4555_v8, %v4550_v1  ;;  %v14655_v1 = vld [vmem:[#allocation87_spill] sm:$0xff] }
 0x71b   : > { %v4226_v63 = vpop.permute.xlu0 %4225  ;;  %v4712_v47 = vsel %vm4535_vm13, %v4711_v37, %v4707_v0  ;;  %v3958_v24 = vsub.f32 %v14643_v27, %v14505_v54  ;;  %v3965_v0 = vsub.f32 %v14645_v16, %v11977_v6  ;;  %v4564_v51 = vsel %vm14646_vm2, %v4562_v5, %v4557_v18  ;;  %v14659_v16 = vld [vmem:[#allocation138_spill] sm:$0xff] }
 0x71c   : > { %v4716_v22 = vrot.slane %v4226_v63, %v14236_v15  ;;  %v4571_v54 = vsel %vm14647_vm4, %v4569_v11, %v4564_v51  ;;  %vm14652_vm2 = vcmask 917312   ;;  %v14656_v11 = vld [vmem:[#allocation90_spill] sm:$0xff] }
 0x71d   : > { %4417 = vperm.xlu0 %6830, %v3954_v39   ;;  %v4235_v52 = vpop.permute.xlu1 %4234  ;;  %v4578_v57 = vsel %vm4577_vm3, %v4576_v46, %v4571_v54  ;;  %v14663_v46 = vld [vmem:[#allocation140_spill] sm:$0xff] }
 0x71e   : > { %v4717_v10 = vsel %vm4542_vm14, %v4716_v22, %v4712_v47  ;;  %4426 = vperm.xlu1 %6831, %v3957_v23   ;;  %v4731_v32 = vrot.slane %v4235_v52, %v14503_v50  ;;  %v14648_v47 = vld [vmem:[#allocation377_spill] sm:$0xff]  ;;  %v4585_v43 = vsel %vm14652_vm2, %v4583_v17, %v4578_v57  ;;  %v14653_v52 = vld [vmem:[#allocation282_spill] sm:$0xff]  ;;  %v14665_v57 = vld [vmem:[#allocation379_spill] sm:$0xff] }
 0x71f   : > { %v4232_v60 = vpop.permute.xlu0 %4231  ;;  %v4722_v45 = vsel %vm4549_vm15, %v4721_v33, %v4717_v10  ;;  %v3964_v23 = vsub.f32 %v14649_v14, %v14648_v47  ;;  %v14651_v33 = vld [vmem:[#allocation88_spill] sm:$0xff]  ;;  %v14662_v47 = vld [vmem:[#allocation94_spill] sm:$0xff] }
 0x720   : > { %v4726_v49 = vrot.slane %v4232_v60, %v14504_v56  ;;  %v3967_v4 = vsub.f32 %v14651_v33, %v12002_v12  ;;  %v3966_v60 = vsub.f32 %v14653_v52, %v11974_v48  ;;  %v14667_v52 = vld [vmem:[#allocation143_spill] sm:$0xff] }
 0x721   : > { %4423 = vperm.xlu0 %6830, %v3956_v25   ;;  %v4241_v37 = vpop.permute.xlu1 %4240 }
 0x722   : > { %v4727_v34 = vsel %vm4556_vm0, %v4726_v49, %v4722_v45  ;;  %4444 = vperm.xlu1 %6831, %v3963_v62   ;;  %v4741_v63 = vrot.slane %v4241_v37, %v14517_v40  ;;  %v4590_v45 = vrot.slane %v12210_v44, %v14533_v58  ;;  %v3969_v49 = vsub.f32 %v14655_v1, %v12022_v41  ;;  %v14669_v1 = vld [vmem:[#allocation29_spill] sm:$0xff] }
 0x723   : > { %v4238_v2 = vpop.permute.xlu0 %4237  ;;  %v4732_v39 = vsel %vm14644_vm1, %v4731_v32, %v4727_v34  ;;  %vm14650_vm1 = vmmov %vm14647_vm4  ;;  %v3968_v44 = vsub.f32 %v14656_v11, %v11999_v29  ;;  %v14658_v34 = vld [vmem:[#allocation95_spill] sm:$0xff]  ;;  %v14671_v11 = vld [vmem:[#allocation20_spill] sm:$0xff] }
 0x724   : > { %v4736_v42 = vrot.slane %v4238_v2, %v14519_v19  ;;  %vm14654_vm4 = vmmov %vm14652_vm2  ;;  %v4592_v20 = vsel %vm4591_vm5, %v4590_v45, %v4585_v43  ;;  %v3971_v37 = vsub.f32 %v14658_v34, %v12053_v55  ;;  %vm14682_vm2 = vcmask 786112  }
 0x725   : > { %4429 = vperm.xlu0 %6830, %v3958_v24   ;;  %v4247_v22 = vpop.permute.xlu1 %4246  ;;  %v4599_v48 = vsel %vm4598_vm6, %v4597_v59, %v4592_v20 }
 0x726   : > { %v4737_v6 = vsel %vm14650_vm1, %v4736_v42, %v4732_v39  ;;  %4450 = vperm.xlu1 %6831, %v3965_v0   ;;  %v4751_v10 = vrot.slane %v4247_v22, %v14533_v58  ;;  %vm14657_vm1 = vcmask 1041409  }
 0x727   : > { %v4244_v38 = vpop.permute.xlu0 %4243  ;;  %v4742_v8 = vsel %vm4577_vm3, %v4741_v63, %v4737_v6  ;;  %v5154_v32 = vsel %vm14657_vm1, %v12289_v31, %v4599_v48  ;;  %v14660_v31 = vld [vmem:[#allocation287_spill] sm:$0xff]  ;;  %v14661_v63 = vld [vmem:[#allocation28_spill] sm:$0xff]  ;;  %v14664_v6 = vld [vmem:[#allocation97_spill] sm:$0xff]  ;;  %vm14685_vm1 = vcmask 1043459  }
 0x728   : > { %v4746_v25 = vrot.slane %v4244_v38, %v14536_v35  ;;  %v3970_v0 = vsub.f32 %v14660_v31, %v14659_v16  ;;  %v3973_v55 = vsub.f32 %v14662_v47, %v14661_v63  ;;  %v3972_v22 = vsub.f32 %v14664_v6, %v14663_v46  ;;  %v14675_v31 = vld [vmem:[#allocation142_spill] sm:$0xff] }
 0x729   : > { %4447 = vperm.xlu0 %6830, %v3964_v23   ;;  %v4253_v61 = vpop.permute.xlu1 %4252  ;;  %v14678_v47 = vld [vmem:[#allocation258_spill] sm:$0xff] }
 0x72a   : > { %v4747_v12 = vsel %vm14654_vm4, %v4746_v25, %v4742_v8  ;;  %4456 = vperm.xlu1 %6831, %v3967_v4   ;;  %v4761_v2 = vrot.slane %v4253_v61, %v10418_v21  ;;  %v14666_v25 = vld [vmem:[#allocation96_spill] sm:$0xff]  ;;  %v14680_v6 = vld [vmem:[#allocation126_spill] sm:$0xff] }
 0x72b   : > { %v4250_v30 = vpop.permute.xlu0 %4249  ;;  %v4752_v62 = vsel %vm4591_vm5, %v4751_v10, %v4747_v12  ;;  %v3974_v43 = vsub.f32 %v14666_v25, %v14665_v57 }
 0x72c   : > { %v4756_v18 = vrot.slane %v4250_v30, %v14553_v7 }
 0x72d   : > { %4453 = vperm.xlu0 %6830, %v3966_v60   ;;  %v4259_v24 = vpop.permute.xlu1 %4258  ;;  %v14668_v60 = vld [vmem:[#allocation280_spill] sm:$0xff] }
 0x72e   : > { %v4757_v27 = vsel %vm4598_vm6, %v4756_v18, %v4752_v62  ;;  %4462 = vperm.xlu1 %6831, %v3969_v49   ;;  %v4770_v29 = vrot.slane %v4259_v24, %v14245_v9  ;;  %v3959_v45 = vsub.f32 %v14668_v60, %v14667_v52  ;;  %v14670_v49 = vld [vmem:[#allocation100_spill] sm:$0xff] }
 0x72f   : > { %v12404_v5 = vsel %vm5155_vm7, %v4757_v27, %v5154_v32  ;;  %v4256_v41 = vpop.permute.xlu0 %4255  ;;  %v3975_v20 = vsub.f32 %v14670_v49, %v14669_v1  ;;  %vm14677_vm7 = vcmask 720512  }
 0x730   : > { %v4765_v39 = vrot.slane %v4256_v41, %v10423_v3 }
 0x731   : > { %4459 = vperm.xlu0 %6830, %v3968_v44   ;;  %v4265_v42 = vpop.permute.xlu1 %4264  ;;  %v14672_v44 = vld [vmem:[#allocation278_spill] sm:$0xff] }
 0x732   : > { %v4766_v51 = vsel %vm4500_vm8, %v4765_v39, %v4761_v2  ;;  %4468 = vperm.xlu1 %6831, %v3971_v37   ;;  %v4780_v23 = vrot.slane %v4265_v42, %v10559_v13  ;;  %v3960_v32 = vsub.f32 %v14672_v44, %v14671_v11  ;;  %v14673_v37 = vld [vmem:[#allocation380_spill] sm:$0xff]  ;;  %v14674_v2 = vld [vmem:[#allocation103_spill] sm:$0xff] }
 0x733   : > { %v4262_v54 = vpop.permute.xlu0 %4261  ;;  %v4771_v17 = vsel %vm4507_vm9, %v4770_v29, %v4766_v51  ;;  %v3976_v39 = vsub.f32 %v14674_v2, %v14673_v37 }
 0x734   : > { %v4775_v14 = vrot.slane %v4262_v54, %v14251_v53 }
 0x735   : > { %4465 = vperm.xlu0 %6830, %v3970_v0   ;;  %v4271_v8 = vpop.permute.xlu1 %4270  ;;  %v14676_v0 = vld [vmem:[#allocation79_spill] sm:$0xff] }
 0x736   : > { %v4776_v38 = vsel %vm4514_vm10, %v4775_v14, %v4771_v17  ;;  %4474 = vperm.xlu1 %6831, %v3973_v55   ;;  %v4790_v10 = vrot.slane %v4271_v8, %v10536_v36  ;;  %v3961_v51 = vsub.f32 %v14676_v0, %v14675_v31  ;;  %v14679_v55 = vld [vmem:[#allocation99_spill] sm:$0xff] }
 0x737   : > { %v4268_v33 = vpop.permute.xlu0 %4267  ;;  %v4781_v4 = vsel %vm4521_vm11, %v4780_v23, %v4776_v38  ;;  %v3977_v14 = vsub.f32 %v14679_v55, %v14678_v47 }
 0x738   : > { %v4785_v59 = vrot.slane %v4268_v33, %v10548_v28 }
 0x739   : > { %4471 = vperm.xlu0 %6830, %v3972_v22   ;;  %v4277_v61 = vpop.permute.xlu1 %4276  ;;  %v14681_v22 = vld [vmem:[#allocation275_spill] sm:$0xff] }
 0x73a   : > { %v4786_v12 = vsel %vm4528_vm12, %v4785_v59, %v4781_v4  ;;  %4477 = vperm.xlu1 %6831, %v3974_v43   ;;  %v4800_v48 = vrot.slane %v4277_v61, %v14497_v26  ;;  %v3962_v38 = vsub.f32 %v14681_v22, %v14680_v6  ;;  %v14683_v59 = vld [vmem:[#allocation27_spill] sm:$0xff] }
 0x73b   : > { %v4274_v30 = vpop.permute.xlu0 %4273  ;;  %v4791_v62 = vsel %vm4535_vm13, %v4790_v10, %v4786_v12  ;;  %v14684_v10 = vld [vmem:[#allocation296_spill] sm:$0xff] }
 0x73c   : > { %v4795_v18 = vrot.slane %v4274_v30, %v14236_v15  ;;  %v3978_v52 = vsub.f32 %v14684_v10, %v14683_v59 }
 0x73d   : > { %4432 = vperm.xlu0 %6830, %v3959_v45   ;;  %v4283_v24 = vpop.permute.xlu1 %4282 }
 0x73e   : > { %v4796_v27 = vsel %vm4542_vm14, %v4795_v18, %v4791_v62  ;;  %4480 = vperm.xlu1 %6831, %v3975_v20   ;;  %v4810_v16 = vrot.slane %v4283_v24, %v14503_v50 }
 0x73f   : > { %v4280_v41 = vpop.permute.xlu0 %4279  ;;  %v4801_v34 = vsel %vm4549_vm15, %v4800_v48, %v4796_v27 }
 0x740   : > { %v4805_v29 = vrot.slane %v4280_v41, %v14504_v56 }
 0x741   : > { %4435 = vperm.xlu0 %6830, %v3960_v32   ;;  %v4289_v54 = vpop.permute.xlu1 %4288 }
 0x742   : > { %v4806_v42 = vsel %vm4556_vm0, %v4805_v29, %v4801_v34  ;;  %4483 = vperm.xlu1 %6831, %v3976_v39   ;;  %v4820_v46 = vrot.slane %v4289_v54, %v14517_v40 }
 0x743   : > { %v4811_v63 = vsel %vm14677_vm7, %v4810_v16, %v4806_v42 }
 0x744   : > { %v4286_v17 = vpop.permute.xlu0 %4285 }
 0x745   : > { %v4815_v23 = vrot.slane %v4286_v17, %v14519_v19  ;;  %4438 = vperm.xlu0 %6830, %v3961_v51   ;;  %v4295_v33 = vpop.permute.xlu1 %4294 }
 0x746   : > { %4486 = vperm.xlu1 %6831, %v3977_v14   ;;  %v4830_v43 = vrot.slane %v4295_v33, %v14533_v58 }
 0x747   : > { %v4816_v8 = vsel %vm14682_vm2, %v4815_v23, %v4811_v63 }
 0x748   : > { %v4292_v4 = vpop.permute.xlu0 %4291  ;;  %v4821_v57 = vsel %vm4577_vm3, %v4820_v46, %v4816_v8 }
 0x749   : > { %v4825_v25 = vrot.slane %v4292_v4, %v14536_v35  ;;  %4441 = vperm.xlu0 %6830, %v3962_v38   ;;  %v4301_v45 = vpop.permute.xlu1 %4300 }
 0x74a   : > { %v4840_v18 = vrot.slane %v4301_v45, %v10418_v21 }
 0x74b   : > { %v4826_v60 = vsel %vm14654_vm4, %v4825_v25, %v4821_v57 }
 0x74c   : > { %v4298_v12 = vpop.permute.xlu0 %4297  ;;  %v4831_v61 = vsel %vm4591_vm5, %v4830_v43, %v4826_v60 }
 0x74d   : > { %v4835_v30 = vrot.slane %v4298_v12, %v14553_v7  ;;  %4489 = vperm.xlu0 %6830, %v3978_v52   ;;  %v4307_v1 = vpop.permute.xlu1 %4306 }
 0x74e   : > { %v4849_v11 = vrot.slane %v4307_v1, %v14245_v9 }
 0x74f   : > { %v4836_v62 = vsel %vm4598_vm6, %v4835_v30, %v4831_v61 }
 0x750   : > { %v5158_v49 = vsel %vm14685_vm1, %v4836_v62, %v12404_v5  ;;  %v4304_v20 = vpop.permute.xlu0 %4303  ;;  %vm14686_vm1 = vcmask 1044484  }
 0x751   : > { %v4844_v48 = vrot.slane %v4304_v20, %v10423_v3  ;;  %v4313_v32 = vpop.permute.xlu1 %4312 }
 0x752   : > { %v4859_v34 = vrot.slane %v4313_v32, %v10559_v13 }
 0x753   : > { %v4845_v44 = vsel %vm4500_vm8, %v4844_v48, %v4840_v18 }
 0x754   : > { %v4310_v27 = vpop.permute.xlu0 %4309  ;;  %v4850_v24 = vsel %vm4507_vm9, %v4849_v11, %v4845_v44 }
 0x755   : > { %v4854_v41 = vrot.slane %v4310_v27, %v14251_v53  ;;  %v4319_v5 = vpop.permute.xlu1 %4318 }
 0x756   : > { %v4869_v16 = vrot.slane %v4319_v5, %v10536_v36 }
 0x757   : > { %v4855_v37 = vsel %vm4514_vm10, %v4854_v41, %v4850_v24 }
 0x758   : > { %v4316_v2 = vpop.permute.xlu0 %4315  ;;  %v4860_v39 = vsel %vm4521_vm11, %v4859_v34, %v4855_v37 }
 0x759   : > { %v4864_v29 = vrot.slane %v4316_v2, %v10548_v28  ;;  %v4325_v0 = vpop.permute.xlu1 %4324 }
 0x75a   : > { %v4879_v17 = vrot.slane %v4325_v0, %v14497_v26 }
 0x75b   : > { %v4865_v31 = vsel %vm4528_vm12, %v4864_v29, %v4860_v39 }
 0x75c   : > { %v4322_v51 = vpop.permute.xlu0 %4321  ;;  %v4870_v42 = vsel %vm4535_vm13, %v4869_v16, %v4865_v31 }
 0x75d   : > { %v4874_v54 = vrot.slane %v4322_v51, %v14236_v15  ;;  %v4331_v47 = vpop.permute.xlu1 %4330 }
 0x75e   : > { %v4889_v46 = vrot.slane %v4331_v47, %v14503_v50 }
 0x75f   : > { %v4875_v63 = vsel %vm4542_vm14, %v4874_v54, %v4870_v42 }
 0x760   : > { %v4328_v55 = vpop.permute.xlu0 %4327  ;;  %v4880_v14 = vsel %vm4549_vm15, %v4879_v17, %v4875_v63 }
 0x761   : > { %v4884_v23 = vrot.slane %v4328_v55, %v14504_v56  ;;  %v4337_v22 = vpop.permute.xlu1 %4336 }
 0x762   : > { %v4899_v4 = vrot.slane %v4337_v22, %v14517_v40 }
 0x763   : > { %v4885_v6 = vsel %vm4556_vm0, %v4884_v23, %v4880_v14 }
 0x764   : > { %v4334_v38 = vpop.permute.xlu0 %4333  ;;  %v4890_v8 = vsel %vm14677_vm7, %v4889_v46, %v4885_v6 }
 0x765   : > { %v4894_v33 = vrot.slane %v4334_v38, %v14519_v19  ;;  %v4343_v25 = vpop.permute.xlu1 %4342 }
 0x766   : > { %v4909_v52 = vrot.slane %v4343_v25, %v14533_v58 }
 0x767   : > { %v4895_v57 = vsel %vm14682_vm2, %v4894_v33, %v4890_v8 }
 0x768   : > { %v4340_v43 = vpop.permute.xlu0 %4339  ;;  %v4900_v59 = vsel %vm4577_vm3, %v4899_v4, %v4895_v57 }
 0x769   : > { %v4904_v10 = vrot.slane %v4340_v43, %v14536_v35  ;;  %v4349_v45 = vpop.permute.xlu1 %4348 }
 0x76a   : > { %v4919_v48 = vrot.slane %v4349_v45, %v10418_v21 }
 0x76b   : > { %v4905_v60 = vsel %vm14654_vm4, %v4904_v10, %v4900_v59 }
 0x76c   : > { %v4346_v12 = vpop.permute.xlu0 %4345  ;;  %v4910_v61 = vsel %vm4591_vm5, %v4909_v52, %v4905_v60 }
 0x76d   : > { %v4914_v30 = vrot.slane %v4346_v12, %v14553_v7  ;;  %v4355_v1 = vpop.permute.xlu1 %4354 }
 0x76e   : > { %v4928_v44 = vrot.slane %v4355_v1, %v14245_v9 }
 0x76f   : > { %v4915_v62 = vsel %vm4598_vm6, %v4914_v30, %v4910_v61 }
 0x770   : > { %v5160_v20 = vsel %vm14686_vm1, %v4915_v62, %v5158_v49  ;;  %v4352_v18 = vpop.permute.xlu0 %4351  ;;  %vm14687_vm1 = vcmask 1045509  }
 0x771   : > { %v4923_v11 = vrot.slane %v4352_v18, %v10423_v3  ;;  %v4361_v27 = vpop.permute.xlu1 %4360 }
 0x772   : > { %v4938_v37 = vrot.slane %v4361_v27, %v10559_v13 }
 0x773   : > { %v4924_v32 = vsel %vm4500_vm8, %v4923_v11, %v4919_v48 }
 0x774   : > { %v4358_v24 = vpop.permute.xlu0 %4357  ;;  %v4929_v41 = vsel %vm4507_vm9, %v4928_v44, %v4924_v32 }
 0x775   : > { %v4933_v34 = vrot.slane %v4358_v24, %v14251_v53  ;;  %v4367_v49 = vpop.permute.xlu1 %4366 }
 0x776   : > { %v4948_v16 = vrot.slane %v4367_v49, %v10536_v36 }
 0x777   : > { %v4934_v5 = vsel %vm4514_vm10, %v4933_v34, %v4929_v41 }
 0x778   : > { %v4364_v2 = vpop.permute.xlu0 %4363  ;;  %v4939_v39 = vsel %vm4521_vm11, %v4938_v37, %v4934_v5 }
 0x779   : > { %v4943_v29 = vrot.slane %v4364_v2, %v10548_v28  ;;  %v4373_v0 = vpop.permute.xlu1 %4372 }
 0x77a   : > { %v4958_v17 = vrot.slane %v4373_v0, %v14497_v26 }
 0x77b   : > { %v4944_v31 = vsel %vm4528_vm12, %v4943_v29, %v4939_v39 }
 0x77c   : > { %v4370_v51 = vpop.permute.xlu0 %4369  ;;  %v4949_v42 = vsel %vm4535_vm13, %v4948_v16, %v4944_v31 }
 0x77d   : > { %v4953_v54 = vrot.slane %v4370_v51, %v14236_v15  ;;  %v4379_v47 = vpop.permute.xlu1 %4378 }
 0x77e   : > { %v4968_v46 = vrot.slane %v4379_v47, %v14503_v50 }
 0x77f   : > { %v4954_v63 = vsel %vm4542_vm14, %v4953_v54, %v4949_v42 }
 0x780   : > { %v4376_v55 = vpop.permute.xlu0 %4375  ;;  %v4959_v14 = vsel %vm4549_vm15, %v4958_v17, %v4954_v63 }
 0x781   : > { %v4963_v23 = vrot.slane %v4376_v55, %v14504_v56  ;;  %v4385_v22 = vpop.permute.xlu1 %4384 }
 0x782   : > { %v4978_v4 = vrot.slane %v4385_v22, %v14517_v40 }
 0x783   : > { %v4964_v6 = vsel %vm4556_vm0, %v4963_v23, %v4959_v14 }
 0x784   : > { %v4382_v38 = vpop.permute.xlu0 %4381  ;;  %v4969_v8 = vsel %vm14677_vm7, %v4968_v46, %v4964_v6 }
 0x785   : > { %v4973_v33 = vrot.slane %v4382_v38, %v14519_v19  ;;  %v4391_v25 = vpop.permute.xlu1 %4390 }
 0x786   : > { %v4988_v45 = vrot.slane %v4391_v25, %v14533_v58 }
 0x787   : > { %v4974_v57 = vsel %vm14682_vm2, %v4973_v33, %v4969_v8 }
 0x788   : > { %v4388_v43 = vpop.permute.xlu0 %4387  ;;  %v4979_v59 = vsel %vm4577_vm3, %v4978_v4, %v4974_v57 }
 0x789   : > { %v4983_v10 = vrot.slane %v4388_v43, %v14536_v35  ;;  %v4397_v60 = vpop.permute.xlu1 %4396 }
 0x78a   : > { %v4998_v42 = vrot.slane %v4397_v60, %v10418_v21 }
 0x78b   : > { %v4984_v52 = vsel %vm14654_vm4, %v4983_v10, %v4979_v59 }
 0x78c   : > { %v4394_v12 = vpop.permute.xlu0 %4393  ;;  %v4989_v30 = vsel %vm4591_vm5, %v4988_v45, %v4984_v52 }
 0x78d   : > { %v4993_v61 = vrot.slane %v4394_v12, %v14553_v7  ;;  %v4403_v1 = vpop.permute.xlu1 %4402 }
 0x78e   : > { %v5007_v14 = vrot.slane %v4403_v1, %v14245_v9 }
 0x78f   : > { %v4994_v62 = vsel %vm4598_vm6, %v4993_v61, %v4989_v30 }
 0x790   : > { %v12529_v18 = vsel %vm14687_vm1, %v4994_v62, %v5160_v20  ;;  %v4400_v48 = vpop.permute.xlu0 %4399 }
 0x791   : > { %v4409_v11 = vpop.permute.xlu1 %4408  ;;  %v5002_v20 = vrot.slane %v4400_v48, %v10423_v3 }
 0x792   : > { %v5017_v4 = vrot.slane %v4409_v11, %v10559_v13 }
 0x793   : > { %v5003_v63 = vsel %vm4500_vm8, %v5002_v20, %v4998_v42 }
 0x794   : > { %v4406_v44 = vpop.permute.xlu0 %4405 }
 0x795   : > { %v4415_v32 = vpop.permute.xlu1 %4414  ;;  %v5012_v47 = vrot.slane %v4406_v44, %v14251_v53 }
 0x796   : > { %v5027_v45 = vrot.slane %v4415_v32, %v10536_v36 }
 0x798   : > { %v4412_v27 = vpop.permute.xlu0 %4411 }
 0x799   : > { %v4421_v24 = vpop.permute.xlu1 %4420 }
 0x79a   : > { %v5037_v44 = vrot.slane %v4421_v24, %v14497_v26 }
 0x79c   : > { %v4418_v41 = vpop.permute.xlu0 %4417 }
 0x79d   : > { %v12531_v34 = vpop.permute.xlu1 %4426  ;;  %v5032_v10 = vrot.slane %v4418_v41, %v14236_v15 }
 0x79e   : > { %v5047_v24 = vrot.slane %v12531_v34, %v14503_v50 }
 0x7a0   : > { %v4424_v37 = vpop.permute.xlu0 %4423 }
 0x7a1   : > { %v4445_v5 = vpop.permute.xlu1 %4444  ;;  %v5042_v1 = vrot.slane %v4424_v37, %v14504_v56 }
 0x7a2   : > { %v5077_v54 = vrot.slane %v4445_v5, %v10418_v21  ;;  %v5022_v21 = vrot.slane %v4412_v27, %v10548_v28 }
 0x7a4   : > { %v12533_v49 = vpop.permute.xlu0 %4429 }
 0x7a5   : > { %v4451_v2 = vpop.permute.xlu1 %4450 }
 0x7a6   : > { %v5086_v6 = vrot.slane %v4451_v2, %v14245_v9  ;;  %v5052_v2 = vrot.slane %v12533_v49, %v14519_v19 }
 0x7a8   : > { %v4448_v39 = vpop.permute.xlu0 %4447 }
 0x7a9   : > { %v4457_v29 = vpop.permute.xlu1 %4456  ;;  %v5081_v51 = vrot.slane %v4448_v39, %v10423_v3  ;;  %v5008_v3 = vsel %vm4507_vm9, %v5007_v14, %v5003_v63 }
 0x7aa   : > { %v5013_v38 = vsel %vm4514_vm10, %v5012_v47, %v5008_v3 }
 0x7ab   : > { %v5082_v23 = vsel %vm4500_vm8, %v5081_v51, %v5077_v54  ;;  %v5018_v9 = vsel %vm4521_vm11, %v5017_v4, %v5013_v38  ;;  %vm14688_vm8 = vmmov %vm14677_vm7 }
 0x7ac   : > { %v4454_v16 = vpop.permute.xlu0 %4453  ;;  %v5087_v8 = vsel %vm4507_vm9, %v5086_v6, %v5082_v23  ;;  %v5023_v59 = vsel %vm4528_vm12, %v5022_v21, %v5018_v9  ;;  %vm14689_vm9 = vmmov %vm14682_vm2 }
 0x7ad   : > { %v4463_v31 = vpop.permute.xlu1 %4462  ;;  %v5091_v46 = vrot.slane %v4454_v16, %v14251_v53  ;;  %v5096_v53 = vrot.slane %v4457_v29, %v10559_v13  ;;  %v5028_v13 = vsel %vm4535_vm13, %v5027_v45, %v5023_v59 }
 0x7ae   : > { %v5033_v62 = vsel %vm4542_vm14, %v5032_v10, %v5028_v13 }
 0x7af   : > { %v5092_v57 = vsel %vm4514_vm10, %v5091_v46, %v5087_v8  ;;  %vm14690_vm10 = vmmov %vm14677_vm7 }
 0x7b0   : > { %v4460_v0 = vpop.permute.xlu0 %4459  ;;  %v5097_v52 = vsel %vm4521_vm11, %v5096_v53, %v5092_v57  ;;  %vm14691_vm11 = vmmov %vm14654_vm4 }
 0x7b1   : > { %v4469_v17 = vpop.permute.xlu1 %4468  ;;  %v5101_v25 = vrot.slane %v4460_v0, %v10548_v28  ;;  %v5106_v28 = vrot.slane %v4463_v31, %v10536_v36  ;;  %v5038_v36 = vsel %vm4549_vm15, %v5037_v44, %v5033_v62 }
 0x7b2   : > { %v5043_v5 = vsel %vm4556_vm0, %v5042_v1, %v5038_v36 }
 0x7b3   : > { %v5102_v12 = vsel %vm4528_vm12, %v5101_v25, %v5097_v52  ;;  %v5048_v31 = vsel %vm14688_vm8, %v5047_v24, %v5043_v5  ;;  %vm14692_vm12 = vmmov %vm14682_vm2 }
 0x7b4   : > { %v4466_v55 = vpop.permute.xlu0 %4465  ;;  %v5107_v48 = vsel %vm4535_vm13, %v5106_v28, %v5102_v12  ;;  %v5053_v51 = vsel %vm14689_vm9, %v5052_v2, %v5048_v31  ;;  %vm14693_vm13 = vmmov %vm14654_vm4 }
 0x7b5   : > { %v4475_v22 = vpop.permute.xlu1 %4474  ;;  %v5111_v61 = vrot.slane %v4466_v55, %v14236_v15  ;;  %v5116_v15 = vrot.slane %v4469_v17, %v14497_v26 }
 0x7b6   : > { %v5126_v26 = vrot.slane %v4475_v22, %v14503_v50 }
 0x7b7   : > { %v5112_v32 = vsel %vm4542_vm14, %v5111_v61, %v5107_v48  ;;  %vm14694_vm14 = vcmask 1046534  }
 0x7b8   : > { %v4472_v33 = vpop.permute.xlu0 %4471  ;;  %v5117_v37 = vsel %vm4549_vm15, %v5116_v15, %v5112_v32  ;;  %vm14695_vm15 = vcmask 1047559  }
 0x7b9   : > { %v4478_v43 = vpop.permute.xlu1 %4477  ;;  %v5121_v27 = vrot.slane %v4472_v33, %v14504_v56 }
 0x7ba   : > { %v5131_v20 = vrot.slane %v4478_v43, %v14519_v19 }
 0x7bb   : > { %v5122_v29 = vsel %vm4556_vm0, %v5121_v27, %v5117_v37 }
 0x7bc   : > { %v4433_v60 = vpop.permute.xlu0 %4432  ;;  %v5127_v42 = vsel %vm14690_vm10, %v5126_v26, %v5122_v29 }
 0x7bd   : > { %v4481_v30 = vpop.permute.xlu1 %4480  ;;  %v5057_v56 = vrot.slane %v4433_v60, %v14517_v40  ;;  %v5132_v55 = vsel %vm14692_vm12, %v5131_v20, %v5127_v42 }
 0x7be   : > { %v5136_v34 = vrot.slane %v4481_v30, %v14517_v40 }
 0x7bf   : > { %v5058_v17 = vsel %vm4577_vm3, %v5057_v56, %v5053_v51 }
 0x7c0   : > { %v4436_v11 = vpop.permute.xlu0 %4435  ;;  %v5137_v23 = vsel %vm4577_vm3, %v5136_v34, %v5132_v55 }
 0x7c1   : > { %v4484_v41 = vpop.permute.xlu1 %4483  ;;  %v5062_v16 = vrot.slane %v4436_v11, %v14536_v35 }
 0x7c2   : > { %v5141_v50 = vrot.slane %v4484_v41, %v14536_v35 }
 0x7c3   : > { %v5063_v47 = vsel %vm14691_vm11, %v5062_v16, %v5058_v17 }
 0x7c4   : > { %v4439_v39 = vpop.permute.xlu0 %4438  ;;  %v5142_v6 = vsel %vm14693_vm13, %v5141_v50, %v5137_v23 }
 0x7c5   : > { %v5067_v49 = vrot.slane %v4439_v39, %v14533_v58  ;;  %v4487_v0 = vpop.permute.xlu1 %4486 }
 0x7c6   : > { %v5146_v19 = vrot.slane %v4487_v0, %v14533_v58 }
 0x7c7   : > { %v5068_v14 = vsel %vm4591_vm5, %v5067_v49, %v5063_v47 }
 0x7c8   : > { %v4442_v54 = vpop.permute.xlu0 %4441  ;;  %v5147_v35 = vsel %vm4591_vm5, %v5146_v19, %v5142_v6 }
 0x7c9   : > { %v5072_v63 = vrot.slane %v4442_v54, %v14553_v7 }
 0x7cb   : > { %v5073_v40 = vsel %vm4598_vm6, %v5072_v63, %v5068_v14 }
 0x7cc   : > { %v4490_v46 = vpop.permute.xlu0 %4489  ;;  %v5164_v22 = vsel %vm14694_vm14, %v5073_v40, %v12529_v18 }
 0x7cd   : > { %v5151_v3 = vrot.slane %v4490_v46, %v14553_v7 }
 0x7cf   : > { %v5152_v58 = vsel %vm4598_vm6, %v5151_v3, %v5147_v35 }
 0x7d0   : > { %v5166_v38 = vsel %vm14695_vm15, %v5152_v58, %v5164_v22 }
 0x7d1   : > { %5168 = vst [vmem:[%s7861_s15] sm:$0xff] %v5166_v38 }
 0x7d2 PF: > { %p6421_p2 = scmp.lt.s32.totalorder %s6401_s4, %s896_s16 }
 0x7d3   : > { %v7693_v21 = vmov (!%p6421_p2), 0.0  }
 0x7d4   : > { %6069 = sbr.rel (%p6421_p2) target bundleno = 2011 (0x7db), region = 68  ;;  %6070 = vst [vmem:[%s7861_s15] sm:$0xff] (!%p6421_p2), %v7693_v21  ;;  %6071 = vst [vmem:[%s7867_s19] sm:$0xff] (!%p6421_p2), %v7693_v21 }
 0x7db PF: > { %s14696_s24 = sld [smem:[#allocation10_spill]]  ;;  %s14697_s22 = sld [smem:[#allocation7_spill]] }
 0x7dc   : > { %s14698_s23 = sld [smem:[#allocation8_spill]]  ;;  %s14700_s0 = sld [smem:[#allocation11_spill]] }
 0x7dd   : > { %s14701_s25 = sld [smem:[#allocation12_spill]]  ;;  %s14702_s26 = sld [smem:[#allocation13_spill]] }
 0x7e1   : > { %s28_s27 = sadd.s32 1, %s14696_s24   ;;  %s14699_s24 = sld [smem:[#allocation9_spill]] }
 0x7e2   : > { %p25_p3 = scmp.ge.s32.totalorder %s28_s27, 10  }
 0x7e4   :  { %27 = sbr.rel (!%p25_p3) target bundleno = 20 (0x14), region = 134 }

</bundles_post_ra>
